<compile_context>
chip_gen: v6e
topology: v6e:2x2x1
jax: 0.10.0
libtpu: 0.0.40
codegen_flags: <defaults>
</compile_context>

<pallas_src>
import functools

import jax
import jax.numpy as jnp
from jax import lax
from jax.experimental import pallas as pl
from jax.experimental.pallas import tpu as pltpu


# ----------------------------------------------------------------------------
# helpers / hardware detection
# ----------------------------------------------------------------------------
def round_up(x, m):
    return (x + m - 1) // m * m


def _device_kind():
    try:
        return jax.devices()[0].device_kind.lower()
    except Exception:
        return ""


_KIND = _device_kind()
# 256-row tiles fill the 256-wide MXU on v6e/v7x; keep 128 on v5e and older.
_BIG_TILE = 128 if any(v in _KIND for v in ("v2", "v3", "v4", "v5")) else 256
# v7x has 2 TensorCores per chip, sharded over "parallel" grid axes.
_TWO_CORES = ("v7" in _KIND) or ("7x" in _KIND)

TN = 128  # output-column tile: keeps the f32 epilogue tile <= TM x 128 (<=32 vregs)


def _pick_tm(M, n_col_blocks, has_residual):
    # Cap TM so the f32 accumulator (+ residual cast) tile never blows the
    # register file; with TN=128, TM=256 is 32 vregs of f32 acc.
    big = 128 if has_residual else _BIG_TILE
    if M > big:
        return big
    tm = round_up(M, 16)
    # Give both v7x TensorCores work when this call would otherwise be grid=(1,1).
    if _TWO_CORES and n_col_blocks == 1 and M >= 64:
        tm = round_up((M + 1) // 2, 16)
    return tm


# ----------------------------------------------------------------------------
# Pallas kernels
# ----------------------------------------------------------------------------
def _mm_kernel(x_ref, w_ref, b_ref, l_ref, o_ref):
    # bf16 x bf16 -> f32 MXU accumulate; f32 epilogue; bf16 store.
    acc = jnp.dot(x_ref[...], w_ref[...], preferred_element_type=jnp.float32)
    out = acc + b_ref[...]
    # per-column activation: leak==0 -> ReLU, leak==1 -> identity
    out = jnp.maximum(out, out * l_ref[...])
    o_ref[...] = out.astype(o_ref.dtype)


def _mm_res_kernel(x_ref, w_ref, b_ref, l_ref, r_ref, o_ref):
    acc = jnp.dot(x_ref[...], w_ref[...], preferred_element_type=jnp.float32)
    out = acc + b_ref[...] + r_ref[...].astype(jnp.float32)
    out = jnp.maximum(out, out * l_ref[...])
    o_ref[...] = out.astype(o_ref.dtype)


def fused_matmul(x, w_p, shift_p, leak_p, n_out, residual=None):
    """out = act(x @ w + shift (+ residual))[:, :n_out].

    x: (M, K) bf16 patches.  w_p: (Kp, Np) bf16, shift_p/leak_p: (1, Np) f32 —
    all pre-padded to 128 multiples at init time.  residual: (M, n_out) bf16.
    """
    M, K = x.shape
    Kp, Np = w_p.shape
    has_res = residual is not None
    n_col_blocks = Np // TN
    TM = _pick_tm(M, n_col_blocks, has_res)
    Mp = round_up(M, TM)

    xp = x.astype(jnp.bfloat16)
    if Mp != M or Kp != K:
        xp = jnp.pad(xp, ((0, Mp - M), (0, Kp - K)))

    grid = (Mp // TM, n_col_blocks)
    x_spec = pl.BlockSpec((TM, Kp), lambda i, j: (i, 0))
    w_spec = pl.BlockSpec((Kp, TN), lambda i, j: (0, j))
    b_spec = pl.BlockSpec((1, TN), lambda i, j: (0, j))
    o_spec = pl.BlockSpec((TM, TN), lambda i, j: (i, j))

    flops = 2 * Mp * Kp * Np
    bytes_accessed = 2 * (Mp * Kp + Kp * Np + Mp * Np) + 8 * Np

    if not has_res:
        kernel = _mm_kernel
        in_specs = [x_spec, w_spec, b_spec, b_spec]
        args = (xp, w_p, shift_p, leak_p)
    else:
        rp = residual.astype(jnp.bfloat16)
        mr, nr = rp.shape
        if mr != Mp or nr != Np:
            rp = jnp.pad(rp, ((0, Mp - mr), (0, Np - nr)))
        kernel = _mm_res_kernel
        in_specs = [x_spec, w_spec, b_spec, b_spec, o_spec]
        args = (xp, w_p, shift_p, leak_p, rp)
        bytes_accessed += 2 * Mp * Np

    # NOTE(v7x): largest un-tiled weight block here is (2304, 128) bf16 (~0.6MB);
    # everything fits the 32 MiB scoped VMEM default with double buffering.
    out = pl.pallas_call(
        kernel,
        out_shape=jax.ShapeDtypeStruct((Mp, Np), jnp.bfloat16),
        grid=grid,
        in_specs=in_specs,
        out_specs=o_spec,
        compiler_params=pltpu.CompilerParams(
            dimension_semantics=("parallel", "parallel")),
        cost_estimate=pl.CostEstimate(
            flops=flops, transcendentals=0, bytes_accessed=bytes_accessed),
    )(*args)
    if Mp != M or Np != n_out:
        out = out[:M, :n_out]
    return out


# ----------------------------------------------------------------------------
# conv / deconv glue (slicing only; all FLOPs go through the Pallas kernel)
# ----------------------------------------------------------------------------
def extract_patches(x, k, stride, pad):
    # x: (N, H, W, C) -> (N, Ho, Wo, k*k, C)
    N, H, W, C = x.shape
    if pad:
        x = jnp.pad(x, ((0, 0), (pad, pad), (pad, pad), (0, 0)))
    Ho = (H + 2 * pad - k) // stride + 1
    Wo = (W + 2 * pad - k) // stride + 1
    cols = []
    for dy in range(k):
        ys = slice(dy, dy + (Ho - 1) * stride + 1, stride)
        for dx in range(k):
            xs = slice(dx, dx + (Wo - 1) * stride + 1, stride)
            cols.append(x[:, ys, xs, :])
    return jnp.stack(cols, axis=3), Ho, Wo


def conv_apply(x, plan, residual=None):
    N = x.shape[0]
    k, stride, pad, cin = plan["k"], plan["stride"], plan["pad"], plan["cin"]
    if k == 1 and pad == 0:
        xs = x[:, ::stride, ::stride, :]
        _, Ho, Wo, _ = xs.shape
        patches = xs.reshape(N * Ho * Wo, cin)
    else:
        p, Ho, Wo = extract_patches(x, k, stride, pad)
        patches = p.reshape(N * Ho * Wo, k * k * cin)
    res = None
    if residual is not None:
        res = residual.reshape(N * Ho * Wo, plan["n_out"])
    out = fused_matmul(patches, plan["w"], plan["shift"], plan["leak"],
                       plan["n_out"], residual=res)
    return out.reshape(N, Ho, Wo, plan["n_out"])


def deconv_apply(x, plan, residual=None):
    """ConvTranspose2d(k=4, s=2, p=1): all 4 sub-pixel phases in ONE matmul."""
    N, H, W, _ = x.shape
    cin, cout = plan["cin"], plan["cout"]
    p, Hp, Wp = extract_patches(x, 2, 1, 1)           # (N, H+1, W+1, 4, cin)
    patches = p.reshape(N * Hp * Wp, 4 * cin)
    y = fused_matmul(patches, plan["w"], plan["shift"], plan["leak"],
                     plan["n_out"])
    y = y.reshape(N, Hp, Wp, 4, cout)
    # out[:, 2i+py, 2j+px] = y[:, i+py, j+px, 2*py+px]
    rows = []
    for py in range(2):
        cols = [y[:, py:py + H, px:px + W, 2 * py + px, :] for px in range(2)]
        rows.append(jnp.stack(cols, axis=3))           # (N, H, W, 2, cout)
    t = jnp.stack(rows, axis=2)                        # (N, H, 2, W, 2, cout)
    out = t.reshape(N, 2 * H, 2 * W, cout)
    if residual is not None:
        out = out + residual.astype(out.dtype)
    return out


def maxpool_3x3_s2(x):
    # Memory-trivial op; per perf review use reduce_window instead of a 9x
    # patch materialization + Pallas reduce.
    return lax.reduce_window(
        x, jnp.array(-jnp.inf, x.dtype), lax.max,
        window_dimensions=(1, 3, 3, 1), window_strides=(1, 2, 2, 1),
        padding=((0, 0), (1, 1), (1, 1), (0, 0)))


# ----------------------------------------------------------------------------
# parameter init (deterministic, in-script) — torch layouts
# ----------------------------------------------------------------------------
def init_conv_w(key, cout, cin, k):
    fan_in = cin * k * k
    return jax.random.normal(key, (cout, cin, k, k), jnp.float32) * (2.0 / fan_in) ** 0.5


def init_bn(key, c):
    k1, k2, k3, k4 = jax.random.split(key, 4)
    return {
        "gamma": 1.0 + 0.1 * jax.random.normal(k1, (c,), jnp.float32),
        "beta": 0.1 * jax.random.normal(k2, (c,), jnp.float32),
        "mean": 0.1 * jax.random.normal(k3, (c,), jnp.float32),
        "var": 1.0 + 0.1 * jax.random.uniform(k4, (c,), jnp.float32),
    }


def bn_fold(bn, eps=1e-5):
    scale = bn["gamma"] / jnp.sqrt(bn["var"] + eps)
    shift = bn["beta"] - bn["mean"] * scale
    return scale, shift


def init_resblock(key, cin, cout, stride):
    ks = jax.random.split(key, 6)
    p = {
        "stride": stride,
        "w1": init_conv_w(ks[0], cout, cin, 3),
        "bn1": init_bn(ks[1], cout),
        "w2": init_conv_w(ks[2], cout, cout, 3),
        "bn2": init_bn(ks[3], cout),
    }
    if stride != 1 or cin != cout:
        p["ws"] = init_conv_w(ks[4], cout, cin, 1)
        p["bns"] = init_bn(ks[5], cout)
    return p


def init_model(key, num_classes=21):
    keys = iter(jax.random.split(key, 64))
    p = {}
    p["conv1"] = init_conv_w(next(keys), 32, 3, 3)
    p["bn1"] = init_bn(next(keys), 32)

    def make_layer(cin, cout, n, stride):
        blocks = [init_resblock(next(keys), cin, cout, stride)]
        for _ in range(1, n):
            blocks.append(init_resblock(next(keys), cout, cout, 1))
        return blocks

    p["layer1"] = make_layer(32, 32, 2, 1)
    p["layer2"] = make_layer(32, 64, 2, 2)
    p["layer3"] = make_layer(64, 128, 3, 2)
    p["layer4"] = make_layer(128, 256, 2, 2)

    def deconv(cin, cout):
        kw, kb = jax.random.split(next(keys))
        fan_in = cin * 16
        w = jax.random.normal(kw, (cin, cout, 4, 4), jnp.float32) / fan_in ** 0.5
        b = 0.1 * jax.random.normal(kb, (cout,), jnp.float32)
        return w, b

    p["deconv1"] = deconv(256, 128)
    p["deconv2"] = deconv(128, 64)
    p["deconv3"] = deconv(64, 32)
    p["deconv4"] = deconv(32, 16)

    kw, kb = jax.random.split(next(keys))
    p["cls_w"] = jax.random.normal(kw, (num_classes, 16, 1, 1), jnp.float32) * 0.25
    p["cls_b"] = 0.1 * jax.random.normal(kb, (num_classes,), jnp.float32)
    return p


# ----------------------------------------------------------------------------
# one-time weight preparation (runs eagerly at init; nothing at forward time)
# ----------------------------------------------------------------------------
def _finish_plan(wm, shift, leak, *, k, stride, pad, cin):
    K, N = wm.shape
    Kp, Np = round_up(K, 128), round_up(N, 128)
    w_p = jnp.pad(wm.astype(jnp.float32), ((0, Kp - K), (0, Np - N))).astype(jnp.bfloat16)
    shift_p = jnp.pad(shift.astype(jnp.float32), (0, Np - N)).reshape(1, Np)
    leak_p = jnp.pad(leak.astype(jnp.float32), (0, Np - N)).reshape(1, Np)
    return {"k": k, "stride": stride, "pad": pad, "cin": cin, "n_out": N,
            "w": w_p, "shift": shift_p, "leak": leak_p}


def prep_resblock(p):
    cout, cin = p["w1"].shape[0], p["w1"].shape[1]
    s1, b1 = bn_fold(p["bn1"])
    s2, b2 = bn_fold(p["bn2"])
    wm1 = jnp.transpose(p["w1"], (2, 3, 1, 0)).reshape(9 * cin, cout) * s1[None, :]
    fused = "ws" in p
    if fused:
        # Fold the 1x1 shortcut conv into the center-tap rows of a
        # (9*cin, 2*cout) weight; ReLU only on the first cout columns.
        ss, bs = bn_fold(p["bns"])
        ws = p["ws"][:, :, 0, 0].T * ss[None, :]          # (cin, cout)
        wms = jnp.zeros((9 * cin, cout), jnp.float32).at[4 * cin:5 * cin, :].set(ws)
        wm1 = jnp.concatenate([wm1, wms], axis=1)
        shift1 = jnp.concatenate([b1, bs])
        leak1 = jnp.concatenate([jnp.zeros((cout,), jnp.float32),
                                 jnp.ones((cout,), jnp.float32)])
    else:
        shift1, leak1 = b1, jnp.zeros((cout,), jnp.float32)
    conv1 = _finish_plan(wm1, shift1, leak1, k=3, stride=p["stride"], pad=1, cin=cin)
    wm2 = jnp.transpose(p["w2"], (2, 3, 1, 0)).reshape(9 * cout, cout) * s2[None, :]
    conv2 = _finish_plan(wm2, b2, jnp.zeros((cout,), jnp.float32),
                         k=3, stride=1, pad=1, cin=cout)
    return {"fused_shortcut": fused, "cout": cout, "conv1": conv1, "conv2": conv2}


def prep_deconv(w, bias):
    """ConvTranspose2d(k=4,s=2,p=1) -> one (4*Cin, 4*Cout) sub-pixel weight.

    Row (dy*2+dx)*Cin+cin, column (py*2+px)*Cout+cout  =  w[cin, cout, 3-py-2dy, 3-px-2dx].
    """
    cin, cout = w.shape[0], w.shape[1]
    w_flip = w[:, :, ::-1, ::-1]                         # index (a,b) -> w[...,3-a,3-b]
    w_cat = jnp.transpose(w_flip.reshape(cin, cout, 2, 2, 2, 2),
                          (2, 4, 0, 3, 5, 1)).reshape(4 * cin, 4 * cout)
    shift = jnp.tile(bias, 4)
    leak = jnp.ones((4 * cout,), jnp.float32)
    plan = _finish_plan(w_cat, shift, leak, k=2, stride=1, pad=1, cin=cin)
    plan["cout"] = cout
    return plan


def prepare_model(p):
    prep = {}
    s, b = bn_fold(p["bn1"])
    wm = jnp.transpose(p["conv1"], (2, 3, 1, 0)).reshape(27, 32) * s[None, :]
    prep["stem"] = _finish_plan(wm, b, jnp.zeros((32,), jnp.float32),
                                k=3, stride=2, pad=1, cin=3)
    for name in ("layer1", "layer2", "layer3", "layer4"):
        prep[name] = [prep_resblock(bp) for bp in p[name]]
    for i in range(1, 5):
        w, bias = p[f"deconv{i}"]
        prep[f"deconv{i}"] = prep_deconv(w, bias)
    wc = jnp.transpose(p["cls_w"], (2, 3, 1, 0)).reshape(16, p["cls_w"].shape[0])
    prep["cls"] = _finish_plan(wc, p["cls_b"], jnp.ones((p["cls_w"].shape[0],), jnp.float32),
                               k=1, stride=1, pad=0, cin=16)
    return prep


# ----------------------------------------------------------------------------
# model forward
# ----------------------------------------------------------------------------
def resblock_apply(x, bp):
    c = bp["cout"]
    if bp["fused_shortcut"]:
        y = conv_apply(x, bp["conv1"])        # [:, :, :, :c] relu(main), [c:] shortcut
        main, short = y[..., :c], y[..., c:]
    else:
        main = conv_apply(x, bp["conv1"])
        short = x
    # conv2 + bn2 + shortcut add + relu, all fused in one Pallas matmul call
    return conv_apply(main, bp["conv2"], residual=short)


def run_layer(x, blocks):
    for b in blocks:
        x = resblock_apply(x, b)
    return x


def forward(prep, x_nchw):
    x = jnp.transpose(x_nchw, (0, 2, 3, 1)).astype(jnp.bfloat16)  # NHWC bf16

    x = conv_apply(x, prep["stem"])
    x = maxpool_3x3_s2(x)

    x1 = run_layer(x, prep["layer1"])
    x2 = run_layer(x1, prep["layer2"])
    x3 = run_layer(x2, prep["layer3"])
    x4 = run_layer(x3, prep["layer4"])

    x = deconv_apply(x4, prep["deconv1"], residual=x3)
    x = deconv_apply(x, prep["deconv2"], residual=x2)
    x = deconv_apply(x, prep["deconv3"], residual=x1)
    x = deconv_apply(x, prep["deconv4"])
    out = conv_apply(x, prep["cls"])

    to_nchw = lambda t: jnp.transpose(t, (0, 3, 1, 2)).astype(jnp.float32)
    return {"out": to_nchw(out),
            "features": [to_nchw(x1), to_nchw(x2), to_nchw(x3), to_nchw(x4)]}


# ----------------------------------------------------------------------------
if __name__ == "__main__":
    key = jax.random.PRNGKey(0)
    kp, kx = jax.random.split(key)
    params = init_model(kp, num_classes=21)
    prep = prepare_model(params)        # one-time weight prep (eager, host-side)

    # NCHW input like the PyTorch module; 32x32 is the smallest spatial size
    # that keeps all skip-connection shapes valid.
    x = jax.random.normal(kx, (2, 3, 32, 32), jnp.float32)

    fwd = jax.jit(functools.partial(forward, prep))
    result = fwd(x)
    jax.block_until_ready(result["out"])

    assert result["out"].shape == (2, 21, 16, 16), result["out"].shape
    assert result["features"][0].shape == (2, 32, 8, 8)
    assert result["features"][1].shape == (2, 64, 4, 4)
    assert result["features"][2].shape == (2, 128, 2, 2)
    assert result["features"][3].shape == (2, 256, 1, 1)
    assert bool(jnp.all(jnp.isfinite(result["out"])))

    print("KERNEL_OK")
</pallas_src>

<mosaic_0001>
module attributes {stable_mosaic.version = 11 : i64} {
  func.func @_mm_kernel(%arg0: i32, %arg1: i32, %arg2: memref<256x128xbf16, #tpu.memory_space<vmem>>, %arg3: memref<128x128xbf16, #tpu.memory_space<vmem>>, %arg4: memref<1x128xf32, #tpu.memory_space<vmem>>, %arg5: memref<1x128xf32, #tpu.memory_space<vmem>>, %arg6: memref<256x128xbf16, #tpu.memory_space<vmem>>) attributes {dimension_semantics = [#tpu.dimension_semantics<parallel>, #tpu.dimension_semantics<parallel>], iteration_bounds = array<i64: 2, 1>, scalar_prefetch = 0 : i64, scratch_operands = 0 : i64, tpu.core_type = #tpu.core_type<tc>, window_params = [{transform_indices = @transform_0, window_bounds = array<i64: 256, 128>}, {transform_indices = @transform_1, window_bounds = array<i64: 128, 128>}, {transform_indices = @transform_2, window_bounds = array<i64: 1, 128>}, {transform_indices = @transform_3, window_bounds = array<i64: 1, 128>}, {transform_indices = @transform_4, window_bounds = array<i64: 256, 128>}]} {
    %c0 = arith.constant 0 : index
    %c0_0 = arith.constant 0 : index
    %0 = vector.load %arg2[%c0, %c0_0] : memref<256x128xbf16, #tpu.memory_space<vmem>>, vector<256x128xbf16>
    %c0_1 = arith.constant 0 : index
    %c0_2 = arith.constant 0 : index
    %1 = vector.load %arg3[%c0_1, %c0_2] : memref<128x128xbf16, #tpu.memory_space<vmem>>, vector<128x128xbf16>
    %cst = arith.constant dense<0.000000e+00> : vector<256x128xf32>
    %2 = tpu.matmul %0, %1, %cst {dimension_numbers = #tpu.dot_dimension_numbers<[1], [0], [0], [1], [0, 0, 1, 1], [], []>} : vector<256x128xbf16>, vector<128x128xbf16>, vector<256x128xf32> -> vector<256x128xf32>
    %c0_3 = arith.constant 0 : index
    %c0_4 = arith.constant 0 : index
    %3 = vector.load %arg4[%c0_3, %c0_4] : memref<1x128xf32, #tpu.memory_space<vmem>>, vector<1x128xf32>
    %4 = vector.broadcast %3 : vector<1x128xf32> to vector<256x128xf32>
    %5 = arith.addf %2, %4 : vector<256x128xf32>
    %c0_5 = arith.constant 0 : index
    %c0_6 = arith.constant 0 : index
    %6 = vector.load %arg5[%c0_5, %c0_6] : memref<1x128xf32, #tpu.memory_space<vmem>>, vector<1x128xf32>
    %7 = vector.broadcast %6 : vector<1x128xf32> to vector<256x128xf32>
    %8 = arith.mulf %5, %7 : vector<256x128xf32>
    %9 = arith.maximumf %5, %8 : vector<256x128xf32>
    %10 = arith.truncf %9 : vector<256x128xf32> to vector<256x128xbf16>
    %c0_7 = arith.constant 0 : index
    %c0_8 = arith.constant 0 : index
    %11 = vector.load %arg6[%c0_7, %c0_8] : memref<256x128xbf16, #tpu.memory_space<vmem>>, vector<256x128xbf16>
    tpu.vector_store %arg6[%c0_7, %c0_8], %10 {strides = array<i32>} : memref<256x128xbf16, #tpu.memory_space<vmem>>, vector<256x128xbf16>,
    return
  }
  func.func @transform_0(%arg0: i32, %arg1: i32) -> (i32, i32) {
    %c0_i32 = arith.constant 0 : i32
    %c0_i32_0 = arith.constant 0 : i32
    return %arg0, %c0_i32 : i32, i32
  }
  func.func @transform_1(%arg0: i32, %arg1: i32) -> (i32, i32) {
    %c0_i32 = arith.constant 0 : i32
    %c0_i32_0 = arith.constant 0 : i32
    return %c0_i32, %arg1 : i32, i32
  }
  func.func @transform_2(%arg0: i32, %arg1: i32) -> (i32, i32) {
    %c0_i32 = arith.constant 0 : i32
    %c0_i32_0 = arith.constant 0 : i32
    return %c0_i32, %arg1 : i32, i32
  }
  func.func @transform_3(%arg0: i32, %arg1: i32) -> (i32, i32) {
    %c0_i32 = arith.constant 0 : i32
    %c0_i32_0 = arith.constant 0 : i32
    return %c0_i32, %arg1 : i32, i32
  }
  func.func @transform_4(%arg0: i32, %arg1: i32) -> (i32, i32) {
    %c0_i32 = arith.constant 0 : i32
    return %arg0, %arg1 : i32, i32
  }
}

module attributes {stable_mosaic.version = 11 : i64} {
  func.func @_mm_kernel(%arg0: i32, %arg1: i32, %arg2: memref<128x384xbf16, #tpu.memory_space<vmem>>, %arg3: memref<384x128xbf16, #tpu.memory_space<vmem>>, %arg4: memref<1x128xf32, #tpu.memory_space<vmem>>, %arg5: memref<1x128xf32, #tpu.memory_space<vmem>>, %arg6: memref<128x128xbf16, #tpu.memory_space<vmem>>) attributes {dimension_semantics = [#tpu.dimension_semantics<parallel>, #tpu.dimension_semantics<parallel>], iteration_bounds = array<i64: 1, 1>, scalar_prefetch = 0 : i64, scratch_operands = 0 : i64, tpu.core_type = #tpu.core_type<tc>, window_params = [{transform_indices = @transform_0, window_bounds = array<i64: 128, 384>}, {transform_indices = @transform_1, window_bounds = array<i64: 384, 128>}, {transform_indices = @transform_2, window_bounds = array<i64: 1, 128>}, {transform_indices = @transform_3, window_bounds = array<i64: 1, 128>}, {transform_indices = @transform_4, window_bounds = array<i64: 128, 128>}]} {
    %c0 = arith.constant 0 : index
    %c0_0 = arith.constant 0 : index
    %0 = vector.load %arg2[%c0, %c0_0] : memref<128x384xbf16, #tpu.memory_space<vmem>>, vector<128x384xbf16>
    %c0_1 = arith.constant 0 : index
    %c0_2 = arith.constant 0 : index
    %1 = vector.load %arg3[%c0_1, %c0_2] : memref<384x128xbf16, #tpu.memory_space<vmem>>, vector<384x128xbf16>
    %cst = arith.constant dense<0.000000e+00> : vector<128x128xf32>
    %2 = tpu.matmul %0, %1, %cst {dimension_numbers = #tpu.dot_dimension_numbers<[1], [0], [0], [1], [0, 0, 1, 1], [], []>} : vector<128x384xbf16>, vector<384x128xbf16>, vector<128x128xf32> -> vector<128x128xf32>
    %c0_3 = arith.constant 0 : index
    %c0_4 = arith.constant 0 : index
    %3 = vector.load %arg4[%c0_3, %c0_4] : memref<1x128xf32, #tpu.memory_space<vmem>>, vector<1x128xf32>
    %4 = vector.broadcast %3 : vector<1x128xf32> to vector<128x128xf32>
    %5 = arith.addf %2, %4 : vector<128x128xf32>
    %c0_5 = arith.constant 0 : index
    %c0_6 = arith.constant 0 : index
    %6 = vector.load %arg5[%c0_5, %c0_6] : memref<1x128xf32, #tpu.memory_space<vmem>>, vector<1x128xf32>
    %7 = vector.broadcast %6 : vector<1x128xf32> to vector<128x128xf32>
    %8 = arith.mulf %5, %7 : vector<128x128xf32>
    %9 = arith.maximumf %5, %8 : vector<128x128xf32>
    %10 = arith.truncf %9 : vector<128x128xf32> to vector<128x128xbf16>
    %c0_7 = arith.constant 0 : index
    %c0_8 = arith.constant 0 : index
    %11 = vector.load %arg6[%c0_7, %c0_8] : memref<128x128xbf16, #tpu.memory_space<vmem>>, vector<128x128xbf16>
    tpu.vector_store %arg6[%c0_7, %c0_8], %10 {strides = array<i32>} : memref<128x128xbf16, #tpu.memory_space<vmem>>, vector<128x128xbf16>,
    return
  }
  func.func @transform_0(%arg0: i32, %arg1: i32) -> (i32, i32) {
    %c0_i32 = arith.constant 0 : i32
    %c0_i32_0 = arith.constant 0 : i32
    return %arg0, %c0_i32 : i32, i32
  }
  func.func @transform_1(%arg0: i32, %arg1: i32) -> (i32, i32) {
    %c0_i32 = arith.constant 0 : i32
    %c0_i32_0 = arith.constant 0 : i32
    return %c0_i32, %arg1 : i32, i32
  }
  func.func @transform_2(%arg0: i32, %arg1: i32) -> (i32, i32) {
    %c0_i32 = arith.constant 0 : i32
    %c0_i32_0 = arith.constant 0 : i32
    return %c0_i32, %arg1 : i32, i32
  }
  func.func @transform_3(%arg0: i32, %arg1: i32) -> (i32, i32) {
    %c0_i32 = arith.constant 0 : i32
    %c0_i32_0 = arith.constant 0 : i32
    return %c0_i32, %arg1 : i32, i32
  }
  func.func @transform_4(%arg0: i32, %arg1: i32) -> (i32, i32) {
    %c0_i32 = arith.constant 0 : i32
    return %arg0, %arg1 : i32, i32
  }
}

module attributes {stable_mosaic.version = 11 : i64} {
  func.func @_mm_res_kernel(%arg0: i32, %arg1: i32, %arg2: memref<128x384xbf16, #tpu.memory_space<vmem>>, %arg3: memref<384x128xbf16, #tpu.memory_space<vmem>>, %arg4: memref<1x128xf32, #tpu.memory_space<vmem>>, %arg5: memref<1x128xf32, #tpu.memory_space<vmem>>, %arg6: memref<128x128xbf16, #tpu.memory_space<vmem>>, %arg7: memref<128x128xbf16, #tpu.memory_space<vmem>>) attributes {dimension_semantics = [#tpu.dimension_semantics<parallel>, #tpu.dimension_semantics<parallel>], iteration_bounds = array<i64: 1, 1>, scalar_prefetch = 0 : i64, scratch_operands = 0 : i64, tpu.core_type = #tpu.core_type<tc>, window_params = [{transform_indices = @transform_0, window_bounds = array<i64: 128, 384>}, {transform_indices = @transform_1, window_bounds = array<i64: 384, 128>}, {transform_indices = @transform_2, window_bounds = array<i64: 1, 128>}, {transform_indices = @transform_3, window_bounds = array<i64: 1, 128>}, {transform_indices = @transform_4, window_bounds = array<i64: 128, 128>}, {transform_indices = @transform_5, window_bounds = array<i64: 128, 128>}]} {
    %c0 = arith.constant 0 : index
    %c0_0 = arith.constant 0 : index
    %0 = vector.load %arg2[%c0, %c0_0] : memref<128x384xbf16, #tpu.memory_space<vmem>>, vector<128x384xbf16>
    %c0_1 = arith.constant 0 : index
    %c0_2 = arith.constant 0 : index
    %1 = vector.load %arg3[%c0_1, %c0_2] : memref<384x128xbf16, #tpu.memory_space<vmem>>, vector<384x128xbf16>
    %cst = arith.constant dense<0.000000e+00> : vector<128x128xf32>
    %2 = tpu.matmul %0, %1, %cst {dimension_numbers = #tpu.dot_dimension_numbers<[1], [0], [0], [1], [0, 0, 1, 1], [], []>} : vector<128x384xbf16>, vector<384x128xbf16>, vector<128x128xf32> -> vector<128x128xf32>
    %c0_3 = arith.constant 0 : index
    %c0_4 = arith.constant 0 : index
    %3 = vector.load %arg4[%c0_3, %c0_4] : memref<1x128xf32, #tpu.memory_space<vmem>>, vector<1x128xf32>
    %4 = vector.broadcast %3 : vector<1x128xf32> to vector<128x128xf32>
    %5 = arith.addf %2, %4 : vector<128x128xf32>
    %c0_5 = arith.constant 0 : index
    %c0_6 = arith.constant 0 : index
    %6 = vector.load %arg6[%c0_5, %c0_6] : memref<128x128xbf16, #tpu.memory_space<vmem>>, vector<128x128xbf16>
    %7 = arith.extf %6 : vector<128x128xbf16> to vector<128x128xf32>
    %8 = arith.addf %5, %7 : vector<128x128xf32>
    %c0_7 = arith.constant 0 : index
    %c0_8 = arith.constant 0 : index
    %9 = vector.load %arg5[%c0_7, %c0_8] : memref<1x128xf32, #tpu.memory_space<vmem>>, vector<1x128xf32>
    %10 = vector.broadcast %9 : vector<1x128xf32> to vector<128x128xf32>
    %11 = arith.mulf %8, %10 : vector<128x128xf32>
    %12 = arith.maximumf %8, %11 : vector<128x128xf32>
    %13 = arith.truncf %12 : vector<128x128xf32> to vector<128x128xbf16>
    %c0_9 = arith.constant 0 : index
    %c0_10 = arith.constant 0 : index
    %14 = vector.load %arg7[%c0_9, %c0_10] : memref<128x128xbf16, #tpu.memory_space<vmem>>, vector<128x128xbf16>
    tpu.vector_store %arg7[%c0_9, %c0_10], %13 {strides = array<i32>} : memref<128x128xbf16, #tpu.memory_space<vmem>>, vector<128x128xbf16>,
    return
  }
  func.func @transform_0(%arg0: i32, %arg1: i32) -> (i32, i32) {
    %c0_i32 = arith.constant 0 : i32
    %c0_i32_0 = arith.constant 0 : i32
    return %arg0, %c0_i32 : i32, i32
  }
  func.func @transform_1(%arg0: i32, %arg1: i32) -> (i32, i32) {
    %c0_i32 = arith.constant 0 : i32
    %c0_i32_0 = arith.constant 0 : i32
    return %c0_i32, %arg1 : i32, i32
  }
  func.func @transform_2(%arg0: i32, %arg1: i32) -> (i32, i32) {
    %c0_i32 = arith.constant 0 : i32
    %c0_i32_0 = arith.constant 0 : i32
    return %c0_i32, %arg1 : i32, i32
  }
  func.func @transform_3(%arg0: i32, %arg1: i32) -> (i32, i32) {
    %c0_i32 = arith.constant 0 : i32
    %c0_i32_0 = arith.constant 0 : i32
    return %c0_i32, %arg1 : i32, i32
  }
  func.func @transform_4(%arg0: i32, %arg1: i32) -> (i32, i32) {
    %c0_i32 = arith.constant 0 : i32
    return %arg0, %arg1 : i32, i32
  }
  func.func @transform_5(%arg0: i32, %arg1: i32) -> (i32, i32) {
    %c0_i32 = arith.constant 0 : i32
    return %arg0, %arg1 : i32, i32
  }
}

module attributes {stable_mosaic.version = 11 : i64} {
  func.func @_mm_kernel(%arg0: i32, %arg1: i32, %arg2: memref<32x384xbf16, #tpu.memory_space<vmem>>, %arg3: memref<384x128xbf16, #tpu.memory_space<vmem>>, %arg4: memref<1x128xf32, #tpu.memory_space<vmem>>, %arg5: memref<1x128xf32, #tpu.memory_space<vmem>>, %arg6: memref<32x128xbf16, #tpu.memory_space<vmem>>) attributes {dimension_semantics = [#tpu.dimension_semantics<parallel>, #tpu.dimension_semantics<parallel>], iteration_bounds = array<i64: 1, 1>, scalar_prefetch = 0 : i64, scratch_operands = 0 : i64, tpu.core_type = #tpu.core_type<tc>, window_params = [{transform_indices = @transform_0, window_bounds = array<i64: 32, 384>}, {transform_indices = @transform_1, window_bounds = array<i64: 384, 128>}, {transform_indices = @transform_2, window_bounds = array<i64: 1, 128>}, {transform_indices = @transform_3, window_bounds = array<i64: 1, 128>}, {transform_indices = @transform_4, window_bounds = array<i64: 32, 128>}]} {
    %c0 = arith.constant 0 : index
    %c0_0 = arith.constant 0 : index
    %0 = vector.load %arg2[%c0, %c0_0] : memref<32x384xbf16, #tpu.memory_space<vmem>>, vector<32x384xbf16>
    %c0_1 = arith.constant 0 : index
    %c0_2 = arith.constant 0 : index
    %1 = vector.load %arg3[%c0_1, %c0_2] : memref<384x128xbf16, #tpu.memory_space<vmem>>, vector<384x128xbf16>
    %cst = arith.constant dense<0.000000e+00> : vector<32x128xf32>
    %2 = tpu.matmul %0, %1, %cst {dimension_numbers = #tpu.dot_dimension_numbers<[1], [0], [0], [1], [0, 0, 1, 1], [], []>} : vector<32x384xbf16>, vector<384x128xbf16>, vector<32x128xf32> -> vector<32x128xf32>
    %c0_3 = arith.constant 0 : index
    %c0_4 = arith.constant 0 : index
    %3 = vector.load %arg4[%c0_3, %c0_4] : memref<1x128xf32, #tpu.memory_space<vmem>>, vector<1x128xf32>
    %4 = vector.broadcast %3 : vector<1x128xf32> to vector<32x128xf32>
    %5 = arith.addf %2, %4 : vector<32x128xf32>
    %c0_5 = arith.constant 0 : index
    %c0_6 = arith.constant 0 : index
    %6 = vector.load %arg5[%c0_5, %c0_6] : memref<1x128xf32, #tpu.memory_space<vmem>>, vector<1x128xf32>
    %7 = vector.broadcast %6 : vector<1x128xf32> to vector<32x128xf32>
    %8 = arith.mulf %5, %7 : vector<32x128xf32>
    %9 = arith.maximumf %5, %8 : vector<32x128xf32>
    %10 = arith.truncf %9 : vector<32x128xf32> to vector<32x128xbf16>
    %c0_7 = arith.constant 0 : index
    %c0_8 = arith.constant 0 : index
    %11 = vector.load %arg6[%c0_7, %c0_8] : memref<32x128xbf16, #tpu.memory_space<vmem>>, vector<32x128xbf16>
    tpu.vector_store %arg6[%c0_7, %c0_8], %10 {strides = array<i32>} : memref<32x128xbf16, #tpu.memory_space<vmem>>, vector<32x128xbf16>,
    return
  }
  func.func @transform_0(%arg0: i32, %arg1: i32) -> (i32, i32) {
    %c0_i32 = arith.constant 0 : i32
    %c0_i32_0 = arith.constant 0 : i32
    return %arg0, %c0_i32 : i32, i32
  }
  func.func @transform_1(%arg0: i32, %arg1: i32) -> (i32, i32) {
    %c0_i32 = arith.constant 0 : i32
    %c0_i32_0 = arith.constant 0 : i32
    return %c0_i32, %arg1 : i32, i32
  }
  func.func @transform_2(%arg0: i32, %arg1: i32) -> (i32, i32) {
    %c0_i32 = arith.constant 0 : i32
    %c0_i32_0 = arith.constant 0 : i32
    return %c0_i32, %arg1 : i32, i32
  }
  func.func @transform_3(%arg0: i32, %arg1: i32) -> (i32, i32) {
    %c0_i32 = arith.constant 0 : i32
    %c0_i32_0 = arith.constant 0 : i32
    return %c0_i32, %arg1 : i32, i32
  }
  func.func @transform_4(%arg0: i32, %arg1: i32) -> (i32, i32) {
    %c0_i32 = arith.constant 0 : i32
    return %arg0, %arg1 : i32, i32
  }
}

module attributes {stable_mosaic.version = 11 : i64} {
  func.func @_mm_kernel(%arg0: i32, %arg1: i32, %arg2: memref<32x640xbf16, #tpu.memory_space<vmem>>, %arg3: memref<640x128xbf16, #tpu.memory_space<vmem>>, %arg4: memref<1x128xf32, #tpu.memory_space<vmem>>, %arg5: memref<1x128xf32, #tpu.memory_space<vmem>>, %arg6: memref<32x128xbf16, #tpu.memory_space<vmem>>) attributes {dimension_semantics = [#tpu.dimension_semantics<parallel>, #tpu.dimension_semantics<parallel>], iteration_bounds = array<i64: 1, 1>, scalar_prefetch = 0 : i64, scratch_operands = 0 : i64, tpu.core_type = #tpu.core_type<tc>, window_params = [{transform_indices = @transform_0, window_bounds = array<i64: 32, 640>}, {transform_indices = @transform_1, window_bounds = array<i64: 640, 128>}, {transform_indices = @transform_2, window_bounds = array<i64: 1, 128>}, {transform_indices = @transform_3, window_bounds = array<i64: 1, 128>}, {transform_indices = @transform_4, window_bounds = array<i64: 32, 128>}]} {
    %c0 = arith.constant 0 : index
    %c0_0 = arith.constant 0 : index
    %0 = vector.load %arg2[%c0, %c0_0] : memref<32x640xbf16, #tpu.memory_space<vmem>>, vector<32x640xbf16>
    %c0_1 = arith.constant 0 : index
    %c0_2 = arith.constant 0 : index
    %1 = vector.load %arg3[%c0_1, %c0_2] : memref<640x128xbf16, #tpu.memory_space<vmem>>, vector<640x128xbf16>
    %cst = arith.constant dense<0.000000e+00> : vector<32x128xf32>
    %2 = tpu.matmul %0, %1, %cst {dimension_numbers = #tpu.dot_dimension_numbers<[1], [0], [0], [1], [0, 0, 1, 1], [], []>} : vector<32x640xbf16>, vector<640x128xbf16>, vector<32x128xf32> -> vector<32x128xf32>
    %c0_3 = arith.constant 0 : index
    %c0_4 = arith.constant 0 : index
    %3 = vector.load %arg4[%c0_3, %c0_4] : memref<1x128xf32, #tpu.memory_space<vmem>>, vector<1x128xf32>
    %4 = vector.broadcast %3 : vector<1x128xf32> to vector<32x128xf32>
    %5 = arith.addf %2, %4 : vector<32x128xf32>
    %c0_5 = arith.constant 0 : index
    %c0_6 = arith.constant 0 : index
    %6 = vector.load %arg5[%c0_5, %c0_6] : memref<1x128xf32, #tpu.memory_space<vmem>>, vector<1x128xf32>
    %7 = vector.broadcast %6 : vector<1x128xf32> to vector<32x128xf32>
    %8 = arith.mulf %5, %7 : vector<32x128xf32>
    %9 = arith.maximumf %5, %8 : vector<32x128xf32>
    %10 = arith.truncf %9 : vector<32x128xf32> to vector<32x128xbf16>
    %c0_7 = arith.constant 0 : index
    %c0_8 = arith.constant 0 : index
    %11 = vector.load %arg6[%c0_7, %c0_8] : memref<32x128xbf16, #tpu.memory_space<vmem>>, vector<32x128xbf16>
    tpu.vector_store %arg6[%c0_7, %c0_8], %10 {strides = array<i32>} : memref<32x128xbf16, #tpu.memory_space<vmem>>, vector<32x128xbf16>,
    return
  }
  func.func @transform_0(%arg0: i32, %arg1: i32) -> (i32, i32) {
    %c0_i32 = arith.constant 0 : i32
    %c0_i32_0 = arith.constant 0 : i32
    return %arg0, %c0_i32 : i32, i32
  }
  func.func @transform_1(%arg0: i32, %arg1: i32) -> (i32, i32) {
    %c0_i32 = arith.constant 0 : i32
    %c0_i32_0 = arith.constant 0 : i32
    return %c0_i32, %arg1 : i32, i32
  }
  func.func @transform_2(%arg0: i32, %arg1: i32) -> (i32, i32) {
    %c0_i32 = arith.constant 0 : i32
    %c0_i32_0 = arith.constant 0 : i32
    return %c0_i32, %arg1 : i32, i32
  }
  func.func @transform_3(%arg0: i32, %arg1: i32) -> (i32, i32) {
    %c0_i32 = arith.constant 0 : i32
    %c0_i32_0 = arith.constant 0 : i32
    return %c0_i32, %arg1 : i32, i32
  }
  func.func @transform_4(%arg0: i32, %arg1: i32) -> (i32, i32) {
    %c0_i32 = arith.constant 0 : i32
    return %arg0, %arg1 : i32, i32
  }
}

module attributes {stable_mosaic.version = 11 : i64} {
  func.func @_mm_res_kernel(%arg0: i32, %arg1: i32, %arg2: memref<32x640xbf16, #tpu.memory_space<vmem>>, %arg3: memref<640x128xbf16, #tpu.memory_space<vmem>>, %arg4: memref<1x128xf32, #tpu.memory_space<vmem>>, %arg5: memref<1x128xf32, #tpu.memory_space<vmem>>, %arg6: memref<32x128xbf16, #tpu.memory_space<vmem>>, %arg7: memref<32x128xbf16, #tpu.memory_space<vmem>>) attributes {dimension_semantics = [#tpu.dimension_semantics<parallel>, #tpu.dimension_semantics<parallel>], iteration_bounds = array<i64: 1, 1>, scalar_prefetch = 0 : i64, scratch_operands = 0 : i64, tpu.core_type = #tpu.core_type<tc>, window_params = [{transform_indices = @transform_0, window_bounds = array<i64: 32, 640>}, {transform_indices = @transform_1, window_bounds = array<i64: 640, 128>}, {transform_indices = @transform_2, window_bounds = array<i64: 1, 128>}, {transform_indices = @transform_3, window_bounds = array<i64: 1, 128>}, {transform_indices = @transform_4, window_bounds = array<i64: 32, 128>}, {transform_indices = @transform_5, window_bounds = array<i64: 32, 128>}]} {
    %c0 = arith.constant 0 : index
    %c0_0 = arith.constant 0 : index
    %0 = vector.load %arg2[%c0, %c0_0] : memref<32x640xbf16, #tpu.memory_space<vmem>>, vector<32x640xbf16>
    %c0_1 = arith.constant 0 : index
    %c0_2 = arith.constant 0 : index
    %1 = vector.load %arg3[%c0_1, %c0_2] : memref<640x128xbf16, #tpu.memory_space<vmem>>, vector<640x128xbf16>
    %cst = arith.constant dense<0.000000e+00> : vector<32x128xf32>
    %2 = tpu.matmul %0, %1, %cst {dimension_numbers = #tpu.dot_dimension_numbers<[1], [0], [0], [1], [0, 0, 1, 1], [], []>} : vector<32x640xbf16>, vector<640x128xbf16>, vector<32x128xf32> -> vector<32x128xf32>
    %c0_3 = arith.constant 0 : index
    %c0_4 = arith.constant 0 : index
    %3 = vector.load %arg4[%c0_3, %c0_4] : memref<1x128xf32, #tpu.memory_space<vmem>>, vector<1x128xf32>
    %4 = vector.broadcast %3 : vector<1x128xf32> to vector<32x128xf32>
    %5 = arith.addf %2, %4 : vector<32x128xf32>
    %c0_5 = arith.constant 0 : index
    %c0_6 = arith.constant 0 : index
    %6 = vector.load %arg6[%c0_5, %c0_6] : memref<32x128xbf16, #tpu.memory_space<vmem>>, vector<32x128xbf16>
    %7 = arith.extf %6 : vector<32x128xbf16> to vector<32x128xf32>
    %8 = arith.addf %5, %7 : vector<32x128xf32>
    %c0_7 = arith.constant 0 : index
    %c0_8 = arith.constant 0 : index
    %9 = vector.load %arg5[%c0_7, %c0_8] : memref<1x128xf32, #tpu.memory_space<vmem>>, vector<1x128xf32>
    %10 = vector.broadcast %9 : vector<1x128xf32> to vector<32x128xf32>
    %11 = arith.mulf %8, %10 : vector<32x128xf32>
    %12 = arith.maximumf %8, %11 : vector<32x128xf32>
    %13 = arith.truncf %12 : vector<32x128xf32> to vector<32x128xbf16>
    %c0_9 = arith.constant 0 : index
    %c0_10 = arith.constant 0 : index
    %14 = vector.load %arg7[%c0_9, %c0_10] : memref<32x128xbf16, #tpu.memory_space<vmem>>, vector<32x128xbf16>
    tpu.vector_store %arg7[%c0_9, %c0_10], %13 {strides = array<i32>} : memref<32x128xbf16, #tpu.memory_space<vmem>>, vector<32x128xbf16>,
    return
  }
  func.func @transform_0(%arg0: i32, %arg1: i32) -> (i32, i32) {
    %c0_i32 = arith.constant 0 : i32
    %c0_i32_0 = arith.constant 0 : i32
    return %arg0, %c0_i32 : i32, i32
  }
  func.func @transform_1(%arg0: i32, %arg1: i32) -> (i32, i32) {
    %c0_i32 = arith.constant 0 : i32
    %c0_i32_0 = arith.constant 0 : i32
    return %c0_i32, %arg1 : i32, i32
  }
  func.func @transform_2(%arg0: i32, %arg1: i32) -> (i32, i32) {
    %c0_i32 = arith.constant 0 : i32
    %c0_i32_0 = arith.constant 0 : i32
    return %c0_i32, %arg1 : i32, i32
  }
  func.func @transform_3(%arg0: i32, %arg1: i32) -> (i32, i32) {
    %c0_i32 = arith.constant 0 : i32
    %c0_i32_0 = arith.constant 0 : i32
    return %c0_i32, %arg1 : i32, i32
  }
  func.func @transform_4(%arg0: i32, %arg1: i32) -> (i32, i32) {
    %c0_i32 = arith.constant 0 : i32
    return %arg0, %arg1 : i32, i32
  }
  func.func @transform_5(%arg0: i32, %arg1: i32) -> (i32, i32) {
    %c0_i32 = arith.constant 0 : i32
    return %arg0, %arg1 : i32, i32
  }
}

module attributes {stable_mosaic.version = 11 : i64} {
  func.func @_mm_kernel(%arg0: i32, %arg1: i32, %arg2: memref<16x1152xbf16, #tpu.memory_space<vmem>>, %arg3: memref<1152x128xbf16, #tpu.memory_space<vmem>>, %arg4: memref<1x128xf32, #tpu.memory_space<vmem>>, %arg5: memref<1x128xf32, #tpu.memory_space<vmem>>, %arg6: memref<16x128xbf16, #tpu.memory_space<vmem>>) attributes {dimension_semantics = [#tpu.dimension_semantics<parallel>, #tpu.dimension_semantics<parallel>], iteration_bounds = array<i64: 1, 1>, scalar_prefetch = 0 : i64, scratch_operands = 0 : i64, tpu.core_type = #tpu.core_type<tc>, window_params = [{transform_indices = @transform_0, window_bounds = array<i64: 16, 1152>}, {transform_indices = @transform_1, window_bounds = array<i64: 1152, 128>}, {transform_indices = @transform_2, window_bounds = array<i64: 1, 128>}, {transform_indices = @transform_3, window_bounds = array<i64: 1, 128>}, {transform_indices = @transform_4, window_bounds = array<i64: 16, 128>}]} {
    %c0 = arith.constant 0 : index
    %c0_0 = arith.constant 0 : index
    %0 = vector.load %arg2[%c0, %c0_0] : memref<16x1152xbf16, #tpu.memory_space<vmem>>, vector<16x1152xbf16>
    %c0_1 = arith.constant 0 : index
    %c0_2 = arith.constant 0 : index
    %1 = vector.load %arg3[%c0_1, %c0_2] : memref<1152x128xbf16, #tpu.memory_space<vmem>>, vector<1152x128xbf16>
    %cst = arith.constant dense<0.000000e+00> : vector<16x128xf32>
    %2 = tpu.matmul %0, %1, %cst {dimension_numbers = #tpu.dot_dimension_numbers<[1], [0], [0], [1], [0, 0, 1, 1], [], []>} : vector<16x1152xbf16>, vector<1152x128xbf16>, vector<16x128xf32> -> vector<16x128xf32>
    %c0_3 = arith.constant 0 : index
    %c0_4 = arith.constant 0 : index
    %3 = vector.load %arg4[%c0_3, %c0_4] : memref<1x128xf32, #tpu.memory_space<vmem>>, vector<1x128xf32>
    %4 = vector.broadcast %3 : vector<1x128xf32> to vector<16x128xf32>
    %5 = arith.addf %2, %4 : vector<16x128xf32>
    %c0_5 = arith.constant 0 : index
    %c0_6 = arith.constant 0 : index
    %6 = vector.load %arg5[%c0_5, %c0_6] : memref<1x128xf32, #tpu.memory_space<vmem>>, vector<1x128xf32>
    %7 = vector.broadcast %6 : vector<1x128xf32> to vector<16x128xf32>
    %8 = arith.mulf %5, %7 : vector<16x128xf32>
    %9 = arith.maximumf %5, %8 : vector<16x128xf32>
    %10 = arith.truncf %9 : vector<16x128xf32> to vector<16x128xbf16>
    %c0_7 = arith.constant 0 : index
    %c0_8 = arith.constant 0 : index
    %11 = vector.load %arg6[%c0_7, %c0_8] : memref<16x128xbf16, #tpu.memory_space<vmem>>, vector<16x128xbf16>
    tpu.vector_store %arg6[%c0_7, %c0_8], %10 {strides = array<i32>} : memref<16x128xbf16, #tpu.memory_space<vmem>>, vector<16x128xbf16>,
    return
  }
  func.func @transform_0(%arg0: i32, %arg1: i32) -> (i32, i32) {
    %c0_i32 = arith.constant 0 : i32
    %c0_i32_0 = arith.constant 0 : i32
    return %arg0, %c0_i32 : i32, i32
  }
  func.func @transform_1(%arg0: i32, %arg1: i32) -> (i32, i32) {
    %c0_i32 = arith.constant 0 : i32
    %c0_i32_0 = arith.constant 0 : i32
    return %c0_i32, %arg1 : i32, i32
  }
  func.func @transform_2(%arg0: i32, %arg1: i32) -> (i32, i32) {
    %c0_i32 = arith.constant 0 : i32
    %c0_i32_0 = arith.constant 0 : i32
    return %c0_i32, %arg1 : i32, i32
  }
  func.func @transform_3(%arg0: i32, %arg1: i32) -> (i32, i32) {
    %c0_i32 = arith.constant 0 : i32
    %c0_i32_0 = arith.constant 0 : i32
    return %c0_i32, %arg1 : i32, i32
  }
  func.func @transform_4(%arg0: i32, %arg1: i32) -> (i32, i32) {
    %c0_i32 = arith.constant 0 : i32
    return %arg0, %arg1 : i32, i32
  }
}

module attributes {stable_mosaic.version = 11 : i64} {
  func.func @_mm_kernel(%arg0: i32, %arg1: i32, %arg2: memref<16x640xbf16, #tpu.memory_space<vmem>>, %arg3: memref<640x128xbf16, #tpu.memory_space<vmem>>, %arg4: memref<1x128xf32, #tpu.memory_space<vmem>>, %arg5: memref<1x128xf32, #tpu.memory_space<vmem>>, %arg6: memref<16x128xbf16, #tpu.memory_space<vmem>>) attributes {dimension_semantics = [#tpu.dimension_semantics<parallel>, #tpu.dimension_semantics<parallel>], iteration_bounds = array<i64: 1, 2>, scalar_prefetch = 0 : i64, scratch_operands = 0 : i64, tpu.core_type = #tpu.core_type<tc>, window_params = [{transform_indices = @transform_0, window_bounds = array<i64: 16, 640>}, {transform_indices = @transform_1, window_bounds = array<i64: 640, 128>}, {transform_indices = @transform_2, window_bounds = array<i64: 1, 128>}, {transform_indices = @transform_3, window_bounds = array<i64: 1, 128>}, {transform_indices = @transform_4, window_bounds = array<i64: 16, 128>}]} {
    %c0 = arith.constant 0 : index
    %c0_0 = arith.constant 0 : index
    %0 = vector.load %arg2[%c0, %c0_0] : memref<16x640xbf16, #tpu.memory_space<vmem>>, vector<16x640xbf16>
    %c0_1 = arith.constant 0 : index
    %c0_2 = arith.constant 0 : index
    %1 = vector.load %arg3[%c0_1, %c0_2] : memref<640x128xbf16, #tpu.memory_space<vmem>>, vector<640x128xbf16>
    %cst = arith.constant dense<0.000000e+00> : vector<16x128xf32>
    %2 = tpu.matmul %0, %1, %cst {dimension_numbers = #tpu.dot_dimension_numbers<[1], [0], [0], [1], [0, 0, 1, 1], [], []>} : vector<16x640xbf16>, vector<640x128xbf16>, vector<16x128xf32> -> vector<16x128xf32>
    %c0_3 = arith.constant 0 : index
    %c0_4 = arith.constant 0 : index
    %3 = vector.load %arg4[%c0_3, %c0_4] : memref<1x128xf32, #tpu.memory_space<vmem>>, vector<1x128xf32>
    %4 = vector.broadcast %3 : vector<1x128xf32> to vector<16x128xf32>
    %5 = arith.addf %2, %4 : vector<16x128xf32>
    %c0_5 = arith.constant 0 : index
    %c0_6 = arith.constant 0 : index
    %6 = vector.load %arg5[%c0_5, %c0_6] : memref<1x128xf32, #tpu.memory_space<vmem>>, vector<1x128xf32>
    %7 = vector.broadcast %6 : vector<1x128xf32> to vector<16x128xf32>
    %8 = arith.mulf %5, %7 : vector<16x128xf32>
    %9 = arith.maximumf %5, %8 : vector<16x128xf32>
    %10 = arith.truncf %9 : vector<16x128xf32> to vector<16x128xbf16>
    %c0_7 = arith.constant 0 : index
    %c0_8 = arith.constant 0 : index
    %11 = vector.load %arg6[%c0_7, %c0_8] : memref<16x128xbf16, #tpu.memory_space<vmem>>, vector<16x128xbf16>
    tpu.vector_store %arg6[%c0_7, %c0_8], %10 {strides = array<i32>} : memref<16x128xbf16, #tpu.memory_space<vmem>>, vector<16x128xbf16>,
    return
  }
  func.func @transform_0(%arg0: i32, %arg1: i32) -> (i32, i32) {
    %c0_i32 = arith.constant 0 : i32
    %c0_i32_0 = arith.constant 0 : i32
    return %arg0, %c0_i32 : i32, i32
  }
  func.func @transform_1(%arg0: i32, %arg1: i32) -> (i32, i32) {
    %c0_i32 = arith.constant 0 : i32
    %c0_i32_0 = arith.constant 0 : i32
    return %c0_i32, %arg1 : i32, i32
  }
  func.func @transform_2(%arg0: i32, %arg1: i32) -> (i32, i32) {
    %c0_i32 = arith.constant 0 : i32
    %c0_i32_0 = arith.constant 0 : i32
    return %c0_i32, %arg1 : i32, i32
  }
  func.func @transform_3(%arg0: i32, %arg1: i32) -> (i32, i32) {
    %c0_i32 = arith.constant 0 : i32
    %c0_i32_0 = arith.constant 0 : i32
    return %c0_i32, %arg1 : i32, i32
  }
  func.func @transform_4(%arg0: i32, %arg1: i32) -> (i32, i32) {
    %c0_i32 = arith.constant 0 : i32
    return %arg0, %arg1 : i32, i32
  }
}

module attributes {stable_mosaic.version = 11 : i64} {
  func.func @_mm_res_kernel(%arg0: i32, %arg1: i32, %arg2: memref<16x1152xbf16, #tpu.memory_space<vmem>>, %arg3: memref<1152x128xbf16, #tpu.memory_space<vmem>>, %arg4: memref<1x128xf32, #tpu.memory_space<vmem>>, %arg5: memref<1x128xf32, #tpu.memory_space<vmem>>, %arg6: memref<16x128xbf16, #tpu.memory_space<vmem>>, %arg7: memref<16x128xbf16, #tpu.memory_space<vmem>>) attributes {dimension_semantics = [#tpu.dimension_semantics<parallel>, #tpu.dimension_semantics<parallel>], iteration_bounds = array<i64: 1, 1>, scalar_prefetch = 0 : i64, scratch_operands = 0 : i64, tpu.core_type = #tpu.core_type<tc>, window_params = [{transform_indices = @transform_0, window_bounds = array<i64: 16, 1152>}, {transform_indices = @transform_1, window_bounds = array<i64: 1152, 128>}, {transform_indices = @transform_2, window_bounds = array<i64: 1, 128>}, {transform_indices = @transform_3, window_bounds = array<i64: 1, 128>}, {transform_indices = @transform_4, window_bounds = array<i64: 16, 128>}, {transform_indices = @transform_5, window_bounds = array<i64: 16, 128>}]} {
    %c0 = arith.constant 0 : index
    %c0_0 = arith.constant 0 : index
    %0 = vector.load %arg2[%c0, %c0_0] : memref<16x1152xbf16, #tpu.memory_space<vmem>>, vector<16x1152xbf16>
    %c0_1 = arith.constant 0 : index
    %c0_2 = arith.constant 0 : index
    %1 = vector.load %arg3[%c0_1, %c0_2] : memref<1152x128xbf16, #tpu.memory_space<vmem>>, vector<1152x128xbf16>
    %cst = arith.constant dense<0.000000e+00> : vector<16x128xf32>
    %2 = tpu.matmul %0, %1, %cst {dimension_numbers = #tpu.dot_dimension_numbers<[1], [0], [0], [1], [0, 0, 1, 1], [], []>} : vector<16x1152xbf16>, vector<1152x128xbf16>, vector<16x128xf32> -> vector<16x128xf32>
    %c0_3 = arith.constant 0 : index
    %c0_4 = arith.constant 0 : index
    %3 = vector.load %arg4[%c0_3, %c0_4] : memref<1x128xf32, #tpu.memory_space<vmem>>, vector<1x128xf32>
    %4 = vector.broadcast %3 : vector<1x128xf32> to vector<16x128xf32>
    %5 = arith.addf %2, %4 : vector<16x128xf32>
    %c0_5 = arith.constant 0 : index
    %c0_6 = arith.constant 0 : index
    %6 = vector.load %arg6[%c0_5, %c0_6] : memref<16x128xbf16, #tpu.memory_space<vmem>>, vector<16x128xbf16>
    %7 = arith.extf %6 : vector<16x128xbf16> to vector<16x128xf32>
    %8 = arith.addf %5, %7 : vector<16x128xf32>
    %c0_7 = arith.constant 0 : index
    %c0_8 = arith.constant 0 : index
    %9 = vector.load %arg5[%c0_7, %c0_8] : memref<1x128xf32, #tpu.memory_space<vmem>>, vector<1x128xf32>
    %10 = vector.broadcast %9 : vector<1x128xf32> to vector<16x128xf32>
    %11 = arith.mulf %8, %10 : vector<16x128xf32>
    %12 = arith.maximumf %8, %11 : vector<16x128xf32>
    %13 = arith.truncf %12 : vector<16x128xf32> to vector<16x128xbf16>
    %c0_9 = arith.constant 0 : index
    %c0_10 = arith.constant 0 : index
    %14 = vector.load %arg7[%c0_9, %c0_10] : memref<16x128xbf16, #tpu.memory_space<vmem>>, vector<16x128xbf16>
    tpu.vector_store %arg7[%c0_9, %c0_10], %13 {strides = array<i32>} : memref<16x128xbf16, #tpu.memory_space<vmem>>, vector<16x128xbf16>,
    return
  }
  func.func @transform_0(%arg0: i32, %arg1: i32) -> (i32, i32) {
    %c0_i32 = arith.constant 0 : i32
    %c0_i32_0 = arith.constant 0 : i32
    return %arg0, %c0_i32 : i32, i32
  }
  func.func @transform_1(%arg0: i32, %arg1: i32) -> (i32, i32) {
    %c0_i32 = arith.constant 0 : i32
    %c0_i32_0 = arith.constant 0 : i32
    return %c0_i32, %arg1 : i32, i32
  }
  func.func @transform_2(%arg0: i32, %arg1: i32) -> (i32, i32) {
    %c0_i32 = arith.constant 0 : i32
    %c0_i32_0 = arith.constant 0 : i32
    return %c0_i32, %arg1 : i32, i32
  }
  func.func @transform_3(%arg0: i32, %arg1: i32) -> (i32, i32) {
    %c0_i32 = arith.constant 0 : i32
    %c0_i32_0 = arith.constant 0 : i32
    return %c0_i32, %arg1 : i32, i32
  }
  func.func @transform_4(%arg0: i32, %arg1: i32) -> (i32, i32) {
    %c0_i32 = arith.constant 0 : i32
    return %arg0, %arg1 : i32, i32
  }
  func.func @transform_5(%arg0: i32, %arg1: i32) -> (i32, i32) {
    %c0_i32 = arith.constant 0 : i32
    return %arg0, %arg1 : i32, i32
  }
}

module attributes {stable_mosaic.version = 11 : i64} {
  func.func @_mm_kernel(%arg0: i32, %arg1: i32, %arg2: memref<16x1152xbf16, #tpu.memory_space<vmem>>, %arg3: memref<1152x128xbf16, #tpu.memory_space<vmem>>, %arg4: memref<1x128xf32, #tpu.memory_space<vmem>>, %arg5: memref<1x128xf32, #tpu.memory_space<vmem>>, %arg6: memref<16x128xbf16, #tpu.memory_space<vmem>>) attributes {dimension_semantics = [#tpu.dimension_semantics<parallel>, #tpu.dimension_semantics<parallel>], iteration_bounds = array<i64: 1, 4>, scalar_prefetch = 0 : i64, scratch_operands = 0 : i64, tpu.core_type = #tpu.core_type<tc>, window_params = [{transform_indices = @transform_0, window_bounds = array<i64: 16, 1152>}, {transform_indices = @transform_1, window_bounds = array<i64: 1152, 128>}, {transform_indices = @transform_2, window_bounds = array<i64: 1, 128>}, {transform_indices = @transform_3, window_bounds = array<i64: 1, 128>}, {transform_indices = @transform_4, window_bounds = array<i64: 16, 128>}]} {
    %c0 = arith.constant 0 : index
    %c0_0 = arith.constant 0 : index
    %0 = vector.load %arg2[%c0, %c0_0] : memref<16x1152xbf16, #tpu.memory_space<vmem>>, vector<16x1152xbf16>
    %c0_1 = arith.constant 0 : index
    %c0_2 = arith.constant 0 : index
    %1 = vector.load %arg3[%c0_1, %c0_2] : memref<1152x128xbf16, #tpu.memory_space<vmem>>, vector<1152x128xbf16>
    %cst = arith.constant dense<0.000000e+00> : vector<16x128xf32>
    %2 = tpu.matmul %0, %1, %cst {dimension_numbers = #tpu.dot_dimension_numbers<[1], [0], [0], [1], [0, 0, 1, 1], [], []>} : vector<16x1152xbf16>, vector<1152x128xbf16>, vector<16x128xf32> -> vector<16x128xf32>
    %c0_3 = arith.constant 0 : index
    %c0_4 = arith.constant 0 : index
    %3 = vector.load %arg4[%c0_3, %c0_4] : memref<1x128xf32, #tpu.memory_space<vmem>>, vector<1x128xf32>
    %4 = vector.broadcast %3 : vector<1x128xf32> to vector<16x128xf32>
    %5 = arith.addf %2, %4 : vector<16x128xf32>
    %c0_5 = arith.constant 0 : index
    %c0_6 = arith.constant 0 : index
    %6 = vector.load %arg5[%c0_5, %c0_6] : memref<1x128xf32, #tpu.memory_space<vmem>>, vector<1x128xf32>
    %7 = vector.broadcast %6 : vector<1x128xf32> to vector<16x128xf32>
    %8 = arith.mulf %5, %7 : vector<16x128xf32>
    %9 = arith.maximumf %5, %8 : vector<16x128xf32>
    %10 = arith.truncf %9 : vector<16x128xf32> to vector<16x128xbf16>
    %c0_7 = arith.constant 0 : index
    %c0_8 = arith.constant 0 : index
    %11 = vector.load %arg6[%c0_7, %c0_8] : memref<16x128xbf16, #tpu.memory_space<vmem>>, vector<16x128xbf16>
    tpu.vector_store %arg6[%c0_7, %c0_8], %10 {strides = array<i32>} : memref<16x128xbf16, #tpu.memory_space<vmem>>, vector<16x128xbf16>,
    return
  }
  func.func @transform_0(%arg0: i32, %arg1: i32) -> (i32, i32) {
    %c0_i32 = arith.constant 0 : i32
    %c0_i32_0 = arith.constant 0 : i32
    return %arg0, %c0_i32 : i32, i32
  }
  func.func @transform_1(%arg0: i32, %arg1: i32) -> (i32, i32) {
    %c0_i32 = arith.constant 0 : i32
    %c0_i32_0 = arith.constant 0 : i32
    return %c0_i32, %arg1 : i32, i32
  }
  func.func @transform_2(%arg0: i32, %arg1: i32) -> (i32, i32) {
    %c0_i32 = arith.constant 0 : i32
    %c0_i32_0 = arith.constant 0 : i32
    return %c0_i32, %arg1 : i32, i32
  }
  func.func @transform_3(%arg0: i32, %arg1: i32) -> (i32, i32) {
    %c0_i32 = arith.constant 0 : i32
    %c0_i32_0 = arith.constant 0 : i32
    return %c0_i32, %arg1 : i32, i32
  }
  func.func @transform_4(%arg0: i32, %arg1: i32) -> (i32, i32) {
    %c0_i32 = arith.constant 0 : i32
    return %arg0, %arg1 : i32, i32
  }
}

module attributes {stable_mosaic.version = 11 : i64} {
  func.func @_mm_kernel(%arg0: i32, %arg1: i32, %arg2: memref<16x2304xbf16, #tpu.memory_space<vmem>>, %arg3: memref<2304x128xbf16, #tpu.memory_space<vmem>>, %arg4: memref<1x128xf32, #tpu.memory_space<vmem>>, %arg5: memref<1x128xf32, #tpu.memory_space<vmem>>, %arg6: memref<16x128xbf16, #tpu.memory_space<vmem>>) attributes {dimension_semantics = [#tpu.dimension_semantics<parallel>, #tpu.dimension_semantics<parallel>], iteration_bounds = array<i64: 1, 2>, scalar_prefetch = 0 : i64, scratch_operands = 0 : i64, tpu.core_type = #tpu.core_type<tc>, window_params = [{transform_indices = @transform_0, window_bounds = array<i64: 16, 2304>}, {transform_indices = @transform_1, window_bounds = array<i64: 2304, 128>}, {transform_indices = @transform_2, window_bounds = array<i64: 1, 128>}, {transform_indices = @transform_3, window_bounds = array<i64: 1, 128>}, {transform_indices = @transform_4, window_bounds = array<i64: 16, 128>}]} {
    %c0 = arith.constant 0 : index
    %c0_0 = arith.constant 0 : index
    %0 = vector.load %arg2[%c0, %c0_0] : memref<16x2304xbf16, #tpu.memory_space<vmem>>, vector<16x2304xbf16>
    %c0_1 = arith.constant 0 : index
    %c0_2 = arith.constant 0 : index
    %1 = vector.load %arg3[%c0_1, %c0_2] : memref<2304x128xbf16, #tpu.memory_space<vmem>>, vector<2304x128xbf16>
    %cst = arith.constant dense<0.000000e+00> : vector<16x128xf32>
    %2 = tpu.matmul %0, %1, %cst {dimension_numbers = #tpu.dot_dimension_numbers<[1], [0], [0], [1], [0, 0, 1, 1], [], []>} : vector<16x2304xbf16>, vector<2304x128xbf16>, vector<16x128xf32> -> vector<16x128xf32>
    %c0_3 = arith.constant 0 : index
    %c0_4 = arith.constant 0 : index
    %3 = vector.load %arg4[%c0_3, %c0_4] : memref<1x128xf32, #tpu.memory_space<vmem>>, vector<1x128xf32>
    %4 = vector.broadcast %3 : vector<1x128xf32> to vector<16x128xf32>
    %5 = arith.addf %2, %4 : vector<16x128xf32>
    %c0_5 = arith.constant 0 : index
    %c0_6 = arith.constant 0 : index
    %6 = vector.load %arg5[%c0_5, %c0_6] : memref<1x128xf32, #tpu.memory_space<vmem>>, vector<1x128xf32>
    %7 = vector.broadcast %6 : vector<1x128xf32> to vector<16x128xf32>
    %8 = arith.mulf %5, %7 : vector<16x128xf32>
    %9 = arith.maximumf %5, %8 : vector<16x128xf32>
    %10 = arith.truncf %9 : vector<16x128xf32> to vector<16x128xbf16>
    %c0_7 = arith.constant 0 : index
    %c0_8 = arith.constant 0 : index
    %11 = vector.load %arg6[%c0_7, %c0_8] : memref<16x128xbf16, #tpu.memory_space<vmem>>, vector<16x128xbf16>
    tpu.vector_store %arg6[%c0_7, %c0_8], %10 {strides = array<i32>} : memref<16x128xbf16, #tpu.memory_space<vmem>>, vector<16x128xbf16>,
    return
  }
  func.func @transform_0(%arg0: i32, %arg1: i32) -> (i32, i32) {
    %c0_i32 = arith.constant 0 : i32
    %c0_i32_0 = arith.constant 0 : i32
    return %arg0, %c0_i32 : i32, i32
  }
  func.func @transform_1(%arg0: i32, %arg1: i32) -> (i32, i32) {
    %c0_i32 = arith.constant 0 : i32
    %c0_i32_0 = arith.constant 0 : i32
    return %c0_i32, %arg1 : i32, i32
  }
  func.func @transform_2(%arg0: i32, %arg1: i32) -> (i32, i32) {
    %c0_i32 = arith.constant 0 : i32
    %c0_i32_0 = arith.constant 0 : i32
    return %c0_i32, %arg1 : i32, i32
  }
  func.func @transform_3(%arg0: i32, %arg1: i32) -> (i32, i32) {
    %c0_i32 = arith.constant 0 : i32
    %c0_i32_0 = arith.constant 0 : i32
    return %c0_i32, %arg1 : i32, i32
  }
  func.func @transform_4(%arg0: i32, %arg1: i32) -> (i32, i32) {
    %c0_i32 = arith.constant 0 : i32
    return %arg0, %arg1 : i32, i32
  }
}

module attributes {stable_mosaic.version = 11 : i64} {
  func.func @_mm_res_kernel(%arg0: i32, %arg1: i32, %arg2: memref<16x2304xbf16, #tpu.memory_space<vmem>>, %arg3: memref<2304x128xbf16, #tpu.memory_space<vmem>>, %arg4: memref<1x128xf32, #tpu.memory_space<vmem>>, %arg5: memref<1x128xf32, #tpu.memory_space<vmem>>, %arg6: memref<16x128xbf16, #tpu.memory_space<vmem>>, %arg7: memref<16x128xbf16, #tpu.memory_space<vmem>>) attributes {dimension_semantics = [#tpu.dimension_semantics<parallel>, #tpu.dimension_semantics<parallel>], iteration_bounds = array<i64: 1, 2>, scalar_prefetch = 0 : i64, scratch_operands = 0 : i64, tpu.core_type = #tpu.core_type<tc>, window_params = [{transform_indices = @transform_0, window_bounds = array<i64: 16, 2304>}, {transform_indices = @transform_1, window_bounds = array<i64: 2304, 128>}, {transform_indices = @transform_2, window_bounds = array<i64: 1, 128>}, {transform_indices = @transform_3, window_bounds = array<i64: 1, 128>}, {transform_indices = @transform_4, window_bounds = array<i64: 16, 128>}, {transform_indices = @transform_5, window_bounds = array<i64: 16, 128>}]} {
    %c0 = arith.constant 0 : index
    %c0_0 = arith.constant 0 : index
    %0 = vector.load %arg2[%c0, %c0_0] : memref<16x2304xbf16, #tpu.memory_space<vmem>>, vector<16x2304xbf16>
    %c0_1 = arith.constant 0 : index
    %c0_2 = arith.constant 0 : index
    %1 = vector.load %arg3[%c0_1, %c0_2] : memref<2304x128xbf16, #tpu.memory_space<vmem>>, vector<2304x128xbf16>
    %cst = arith.constant dense<0.000000e+00> : vector<16x128xf32>
    %2 = tpu.matmul %0, %1, %cst {dimension_numbers = #tpu.dot_dimension_numbers<[1], [0], [0], [1], [0, 0, 1, 1], [], []>} : vector<16x2304xbf16>, vector<2304x128xbf16>, vector<16x128xf32> -> vector<16x128xf32>
    %c0_3 = arith.constant 0 : index
    %c0_4 = arith.constant 0 : index
    %3 = vector.load %arg4[%c0_3, %c0_4] : memref<1x128xf32, #tpu.memory_space<vmem>>, vector<1x128xf32>
    %4 = vector.broadcast %3 : vector<1x128xf32> to vector<16x128xf32>
    %5 = arith.addf %2, %4 : vector<16x128xf32>
    %c0_5 = arith.constant 0 : index
    %c0_6 = arith.constant 0 : index
    %6 = vector.load %arg6[%c0_5, %c0_6] : memref<16x128xbf16, #tpu.memory_space<vmem>>, vector<16x128xbf16>
    %7 = arith.extf %6 : vector<16x128xbf16> to vector<16x128xf32>
    %8 = arith.addf %5, %7 : vector<16x128xf32>
    %c0_7 = arith.constant 0 : index
    %c0_8 = arith.constant 0 : index
    %9 = vector.load %arg5[%c0_7, %c0_8] : memref<1x128xf32, #tpu.memory_space<vmem>>, vector<1x128xf32>
    %10 = vector.broadcast %9 : vector<1x128xf32> to vector<16x128xf32>
    %11 = arith.mulf %8, %10 : vector<16x128xf32>
    %12 = arith.maximumf %8, %11 : vector<16x128xf32>
    %13 = arith.truncf %12 : vector<16x128xf32> to vector<16x128xbf16>
    %c0_9 = arith.constant 0 : index
    %c0_10 = arith.constant 0 : index
    %14 = vector.load %arg7[%c0_9, %c0_10] : memref<16x128xbf16, #tpu.memory_space<vmem>>, vector<16x128xbf16>
    tpu.vector_store %arg7[%c0_9, %c0_10], %13 {strides = array<i32>} : memref<16x128xbf16, #tpu.memory_space<vmem>>, vector<16x128xbf16>,
    return
  }
  func.func @transform_0(%arg0: i32, %arg1: i32) -> (i32, i32) {
    %c0_i32 = arith.constant 0 : i32
    %c0_i32_0 = arith.constant 0 : i32
    return %arg0, %c0_i32 : i32, i32
  }
  func.func @transform_1(%arg0: i32, %arg1: i32) -> (i32, i32) {
    %c0_i32 = arith.constant 0 : i32
    %c0_i32_0 = arith.constant 0 : i32
    return %c0_i32, %arg1 : i32, i32
  }
  func.func @transform_2(%arg0: i32, %arg1: i32) -> (i32, i32) {
    %c0_i32 = arith.constant 0 : i32
    %c0_i32_0 = arith.constant 0 : i32
    return %c0_i32, %arg1 : i32, i32
  }
  func.func @transform_3(%arg0: i32, %arg1: i32) -> (i32, i32) {
    %c0_i32 = arith.constant 0 : i32
    %c0_i32_0 = arith.constant 0 : i32
    return %c0_i32, %arg1 : i32, i32
  }
  func.func @transform_4(%arg0: i32, %arg1: i32) -> (i32, i32) {
    %c0_i32 = arith.constant 0 : i32
    return %arg0, %arg1 : i32, i32
  }
  func.func @transform_5(%arg0: i32, %arg1: i32) -> (i32, i32) {
    %c0_i32 = arith.constant 0 : i32
    return %arg0, %arg1 : i32, i32
  }
}

module attributes {stable_mosaic.version = 11 : i64} {
  func.func @_mm_kernel(%arg0: i32, %arg1: i32, %arg2: memref<16x1024xbf16, #tpu.memory_space<vmem>>, %arg3: memref<1024x128xbf16, #tpu.memory_space<vmem>>, %arg4: memref<1x128xf32, #tpu.memory_space<vmem>>, %arg5: memref<1x128xf32, #tpu.memory_space<vmem>>, %arg6: memref<16x128xbf16, #tpu.memory_space<vmem>>) attributes {dimension_semantics = [#tpu.dimension_semantics<parallel>, #tpu.dimension_semantics<parallel>], iteration_bounds = array<i64: 1, 4>, scalar_prefetch = 0 : i64, scratch_operands = 0 : i64, tpu.core_type = #tpu.core_type<tc>, window_params = [{transform_indices = @transform_0, window_bounds = array<i64: 16, 1024>}, {transform_indices = @transform_1, window_bounds = array<i64: 1024, 128>}, {transform_indices = @transform_2, window_bounds = array<i64: 1, 128>}, {transform_indices = @transform_3, window_bounds = array<i64: 1, 128>}, {transform_indices = @transform_4, window_bounds = array<i64: 16, 128>}]} {
    %c0 = arith.constant 0 : index
    %c0_0 = arith.constant 0 : index
    %0 = vector.load %arg2[%c0, %c0_0] : memref<16x1024xbf16, #tpu.memory_space<vmem>>, vector<16x1024xbf16>
    %c0_1 = arith.constant 0 : index
    %c0_2 = arith.constant 0 : index
    %1 = vector.load %arg3[%c0_1, %c0_2] : memref<1024x128xbf16, #tpu.memory_space<vmem>>, vector<1024x128xbf16>
    %cst = arith.constant dense<0.000000e+00> : vector<16x128xf32>
    %2 = tpu.matmul %0, %1, %cst {dimension_numbers = #tpu.dot_dimension_numbers<[1], [0], [0], [1], [0, 0, 1, 1], [], []>} : vector<16x1024xbf16>, vector<1024x128xbf16>, vector<16x128xf32> -> vector<16x128xf32>
    %c0_3 = arith.constant 0 : index
    %c0_4 = arith.constant 0 : index
    %3 = vector.load %arg4[%c0_3, %c0_4] : memref<1x128xf32, #tpu.memory_space<vmem>>, vector<1x128xf32>
    %4 = vector.broadcast %3 : vector<1x128xf32> to vector<16x128xf32>
    %5 = arith.addf %2, %4 : vector<16x128xf32>
    %c0_5 = arith.constant 0 : index
    %c0_6 = arith.constant 0 : index
    %6 = vector.load %arg5[%c0_5, %c0_6] : memref<1x128xf32, #tpu.memory_space<vmem>>, vector<1x128xf32>
    %7 = vector.broadcast %6 : vector<1x128xf32> to vector<16x128xf32>
    %8 = arith.mulf %5, %7 : vector<16x128xf32>
    %9 = arith.maximumf %5, %8 : vector<16x128xf32>
    %10 = arith.truncf %9 : vector<16x128xf32> to vector<16x128xbf16>
    %c0_7 = arith.constant 0 : index
    %c0_8 = arith.constant 0 : index
    %11 = vector.load %arg6[%c0_7, %c0_8] : memref<16x128xbf16, #tpu.memory_space<vmem>>, vector<16x128xbf16>
    tpu.vector_store %arg6[%c0_7, %c0_8], %10 {strides = array<i32>} : memref<16x128xbf16, #tpu.memory_space<vmem>>, vector<16x128xbf16>,
    return
  }
  func.func @transform_0(%arg0: i32, %arg1: i32) -> (i32, i32) {
    %c0_i32 = arith.constant 0 : i32
    %c0_i32_0 = arith.constant 0 : i32
    return %arg0, %c0_i32 : i32, i32
  }
  func.func @transform_1(%arg0: i32, %arg1: i32) -> (i32, i32) {
    %c0_i32 = arith.constant 0 : i32
    %c0_i32_0 = arith.constant 0 : i32
    return %c0_i32, %arg1 : i32, i32
  }
  func.func @transform_2(%arg0: i32, %arg1: i32) -> (i32, i32) {
    %c0_i32 = arith.constant 0 : i32
    %c0_i32_0 = arith.constant 0 : i32
    return %c0_i32, %arg1 : i32, i32
  }
  func.func @transform_3(%arg0: i32, %arg1: i32) -> (i32, i32) {
    %c0_i32 = arith.constant 0 : i32
    %c0_i32_0 = arith.constant 0 : i32
    return %c0_i32, %arg1 : i32, i32
  }
  func.func @transform_4(%arg0: i32, %arg1: i32) -> (i32, i32) {
    %c0_i32 = arith.constant 0 : i32
    return %arg0, %arg1 : i32, i32
  }
}

module attributes {stable_mosaic.version = 11 : i64} {
  func.func @_mm_kernel(%arg0: i32, %arg1: i32, %arg2: memref<32x512xbf16, #tpu.memory_space<vmem>>, %arg3: memref<512x128xbf16, #tpu.memory_space<vmem>>, %arg4: memref<1x128xf32, #tpu.memory_space<vmem>>, %arg5: memref<1x128xf32, #tpu.memory_space<vmem>>, %arg6: memref<32x128xbf16, #tpu.memory_space<vmem>>) attributes {dimension_semantics = [#tpu.dimension_semantics<parallel>, #tpu.dimension_semantics<parallel>], iteration_bounds = array<i64: 1, 2>, scalar_prefetch = 0 : i64, scratch_operands = 0 : i64, tpu.core_type = #tpu.core_type<tc>, window_params = [{transform_indices = @transform_0, window_bounds = array<i64: 32, 512>}, {transform_indices = @transform_1, window_bounds = array<i64: 512, 128>}, {transform_indices = @transform_2, window_bounds = array<i64: 1, 128>}, {transform_indices = @transform_3, window_bounds = array<i64: 1, 128>}, {transform_indices = @transform_4, window_bounds = array<i64: 32, 128>}]} {
    %c0 = arith.constant 0 : index
    %c0_0 = arith.constant 0 : index
    %0 = vector.load %arg2[%c0, %c0_0] : memref<32x512xbf16, #tpu.memory_space<vmem>>, vector<32x512xbf16>
    %c0_1 = arith.constant 0 : index
    %c0_2 = arith.constant 0 : index
    %1 = vector.load %arg3[%c0_1, %c0_2] : memref<512x128xbf16, #tpu.memory_space<vmem>>, vector<512x128xbf16>
    %cst = arith.constant dense<0.000000e+00> : vector<32x128xf32>
    %2 = tpu.matmul %0, %1, %cst {dimension_numbers = #tpu.dot_dimension_numbers<[1], [0], [0], [1], [0, 0, 1, 1], [], []>} : vector<32x512xbf16>, vector<512x128xbf16>, vector<32x128xf32> -> vector<32x128xf32>
    %c0_3 = arith.constant 0 : index
    %c0_4 = arith.constant 0 : index
    %3 = vector.load %arg4[%c0_3, %c0_4] : memref<1x128xf32, #tpu.memory_space<vmem>>, vector<1x128xf32>
    %4 = vector.broadcast %3 : vector<1x128xf32> to vector<32x128xf32>
    %5 = arith.addf %2, %4 : vector<32x128xf32>
    %c0_5 = arith.constant 0 : index
    %c0_6 = arith.constant 0 : index
    %6 = vector.load %arg5[%c0_5, %c0_6] : memref<1x128xf32, #tpu.memory_space<vmem>>, vector<1x128xf32>
    %7 = vector.broadcast %6 : vector<1x128xf32> to vector<32x128xf32>
    %8 = arith.mulf %5, %7 : vector<32x128xf32>
    %9 = arith.maximumf %5, %8 : vector<32x128xf32>
    %10 = arith.truncf %9 : vector<32x128xf32> to vector<32x128xbf16>
    %c0_7 = arith.constant 0 : index
    %c0_8 = arith.constant 0 : index
    %11 = vector.load %arg6[%c0_7, %c0_8] : memref<32x128xbf16, #tpu.memory_space<vmem>>, vector<32x128xbf16>
    tpu.vector_store %arg6[%c0_7, %c0_8], %10 {strides = array<i32>} : memref<32x128xbf16, #tpu.memory_space<vmem>>, vector<32x128xbf16>,
    return
  }
  func.func @transform_0(%arg0: i32, %arg1: i32) -> (i32, i32) {
    %c0_i32 = arith.constant 0 : i32
    %c0_i32_0 = arith.constant 0 : i32
    return %arg0, %c0_i32 : i32, i32
  }
  func.func @transform_1(%arg0: i32, %arg1: i32) -> (i32, i32) {
    %c0_i32 = arith.constant 0 : i32
    %c0_i32_0 = arith.constant 0 : i32
    return %c0_i32, %arg1 : i32, i32
  }
  func.func @transform_2(%arg0: i32, %arg1: i32) -> (i32, i32) {
    %c0_i32 = arith.constant 0 : i32
    %c0_i32_0 = arith.constant 0 : i32
    return %c0_i32, %arg1 : i32, i32
  }
  func.func @transform_3(%arg0: i32, %arg1: i32) -> (i32, i32) {
    %c0_i32 = arith.constant 0 : i32
    %c0_i32_0 = arith.constant 0 : i32
    return %c0_i32, %arg1 : i32, i32
  }
  func.func @transform_4(%arg0: i32, %arg1: i32) -> (i32, i32) {
    %c0_i32 = arith.constant 0 : i32
    return %arg0, %arg1 : i32, i32
  }
}

module attributes {stable_mosaic.version = 11 : i64} {
  func.func @_mm_kernel(%arg0: i32, %arg1: i32, %arg2: memref<64x256xbf16, #tpu.memory_space<vmem>>, %arg3: memref<256x128xbf16, #tpu.memory_space<vmem>>, %arg4: memref<1x128xf32, #tpu.memory_space<vmem>>, %arg5: memref<1x128xf32, #tpu.memory_space<vmem>>, %arg6: memref<64x128xbf16, #tpu.memory_space<vmem>>) attributes {dimension_semantics = [#tpu.dimension_semantics<parallel>, #tpu.dimension_semantics<parallel>], iteration_bounds = array<i64: 1, 1>, scalar_prefetch = 0 : i64, scratch_operands = 0 : i64, tpu.core_type = #tpu.core_type<tc>, window_params = [{transform_indices = @transform_0, window_bounds = array<i64: 64, 256>}, {transform_indices = @transform_1, window_bounds = array<i64: 256, 128>}, {transform_indices = @transform_2, window_bounds = array<i64: 1, 128>}, {transform_indices = @transform_3, window_bounds = array<i64: 1, 128>}, {transform_indices = @transform_4, window_bounds = array<i64: 64, 128>}]} {
    %c0 = arith.constant 0 : index
    %c0_0 = arith.constant 0 : index
    %0 = vector.load %arg2[%c0, %c0_0] : memref<64x256xbf16, #tpu.memory_space<vmem>>, vector<64x256xbf16>
    %c0_1 = arith.constant 0 : index
    %c0_2 = arith.constant 0 : index
    %1 = vector.load %arg3[%c0_1, %c0_2] : memref<256x128xbf16, #tpu.memory_space<vmem>>, vector<256x128xbf16>
    %cst = arith.constant dense<0.000000e+00> : vector<64x128xf32>
    %2 = tpu.matmul %0, %1, %cst {dimension_numbers = #tpu.dot_dimension_numbers<[1], [0], [0], [1], [0, 0, 1, 1], [], []>} : vector<64x256xbf16>, vector<256x128xbf16>, vector<64x128xf32> -> vector<64x128xf32>
    %c0_3 = arith.constant 0 : index
    %c0_4 = arith.constant 0 : index
    %3 = vector.load %arg4[%c0_3, %c0_4] : memref<1x128xf32, #tpu.memory_space<vmem>>, vector<1x128xf32>
    %4 = vector.broadcast %3 : vector<1x128xf32> to vector<64x128xf32>
    %5 = arith.addf %2, %4 : vector<64x128xf32>
    %c0_5 = arith.constant 0 : index
    %c0_6 = arith.constant 0 : index
    %6 = vector.load %arg5[%c0_5, %c0_6] : memref<1x128xf32, #tpu.memory_space<vmem>>, vector<1x128xf32>
    %7 = vector.broadcast %6 : vector<1x128xf32> to vector<64x128xf32>
    %8 = arith.mulf %5, %7 : vector<64x128xf32>
    %9 = arith.maximumf %5, %8 : vector<64x128xf32>
    %10 = arith.truncf %9 : vector<64x128xf32> to vector<64x128xbf16>
    %c0_7 = arith.constant 0 : index
    %c0_8 = arith.constant 0 : index
    %11 = vector.load %arg6[%c0_7, %c0_8] : memref<64x128xbf16, #tpu.memory_space<vmem>>, vector<64x128xbf16>
    tpu.vector_store %arg6[%c0_7, %c0_8], %10 {strides = array<i32>} : memref<64x128xbf16, #tpu.memory_space<vmem>>, vector<64x128xbf16>,
    return
  }
  func.func @transform_0(%arg0: i32, %arg1: i32) -> (i32, i32) {
    %c0_i32 = arith.constant 0 : i32
    %c0_i32_0 = arith.constant 0 : i32
    return %arg0, %c0_i32 : i32, i32
  }
  func.func @transform_1(%arg0: i32, %arg1: i32) -> (i32, i32) {
    %c0_i32 = arith.constant 0 : i32
    %c0_i32_0 = arith.constant 0 : i32
    return %c0_i32, %arg1 : i32, i32
  }
  func.func @transform_2(%arg0: i32, %arg1: i32) -> (i32, i32) {
    %c0_i32 = arith.constant 0 : i32
    %c0_i32_0 = arith.constant 0 : i32
    return %c0_i32, %arg1 : i32, i32
  }
  func.func @transform_3(%arg0: i32, %arg1: i32) -> (i32, i32) {
    %c0_i32 = arith.constant 0 : i32
    %c0_i32_0 = arith.constant 0 : i32
    return %c0_i32, %arg1 : i32, i32
  }
  func.func @transform_4(%arg0: i32, %arg1: i32) -> (i32, i32) {
    %c0_i32 = arith.constant 0 : i32
    return %arg0, %arg1 : i32, i32
  }
}

module attributes {stable_mosaic.version = 11 : i64} {
  func.func @_mm_kernel(%arg0: i32, %arg1: i32, %arg2: memref<176x128xbf16, #tpu.memory_space<vmem>>, %arg3: memref<128x128xbf16, #tpu.memory_space<vmem>>, %arg4: memref<1x128xf32, #tpu.memory_space<vmem>>, %arg5: memref<1x128xf32, #tpu.memory_space<vmem>>, %arg6: memref<176x128xbf16, #tpu.memory_space<vmem>>) attributes {dimension_semantics = [#tpu.dimension_semantics<parallel>, #tpu.dimension_semantics<parallel>], iteration_bounds = array<i64: 1, 1>, scalar_prefetch = 0 : i64, scratch_operands = 0 : i64, tpu.core_type = #tpu.core_type<tc>, window_params = [{transform_indices = @transform_0, window_bounds = array<i64: 176, 128>}, {transform_indices = @transform_1, window_bounds = array<i64: 128, 128>}, {transform_indices = @transform_2, window_bounds = array<i64: 1, 128>}, {transform_indices = @transform_3, window_bounds = array<i64: 1, 128>}, {transform_indices = @transform_4, window_bounds = array<i64: 176, 128>}]} {
    %c0 = arith.constant 0 : index
    %c0_0 = arith.constant 0 : index
    %0 = vector.load %arg2[%c0, %c0_0] : memref<176x128xbf16, #tpu.memory_space<vmem>>, vector<176x128xbf16>
    %c0_1 = arith.constant 0 : index
    %c0_2 = arith.constant 0 : index
    %1 = vector.load %arg3[%c0_1, %c0_2] : memref<128x128xbf16, #tpu.memory_space<vmem>>, vector<128x128xbf16>
    %cst = arith.constant dense<0.000000e+00> : vector<176x128xf32>
    %2 = tpu.matmul %0, %1, %cst {dimension_numbers = #tpu.dot_dimension_numbers<[1], [0], [0], [1], [0, 0, 1, 1], [], []>} : vector<176x128xbf16>, vector<128x128xbf16>, vector<176x128xf32> -> vector<176x128xf32>
    %c0_3 = arith.constant 0 : index
    %c0_4 = arith.constant 0 : index
    %3 = vector.load %arg4[%c0_3, %c0_4] : memref<1x128xf32, #tpu.memory_space<vmem>>, vector<1x128xf32>
    %4 = vector.broadcast %3 : vector<1x128xf32> to vector<176x128xf32>
    %5 = arith.addf %2, %4 : vector<176x128xf32>
    %c0_5 = arith.constant 0 : index
    %c0_6 = arith.constant 0 : index
    %6 = vector.load %arg5[%c0_5, %c0_6] : memref<1x128xf32, #tpu.memory_space<vmem>>, vector<1x128xf32>
    %7 = vector.broadcast %6 : vector<1x128xf32> to vector<176x128xf32>
    %8 = arith.mulf %5, %7 : vector<176x128xf32>
    %9 = arith.maximumf %5, %8 : vector<176x128xf32>
    %10 = arith.truncf %9 : vector<176x128xf32> to vector<176x128xbf16>
    %c0_7 = arith.constant 0 : index
    %c0_8 = arith.constant 0 : index
    %11 = vector.load %arg6[%c0_7, %c0_8] : memref<176x128xbf16, #tpu.memory_space<vmem>>, vector<176x128xbf16>
    tpu.vector_store %arg6[%c0_7, %c0_8], %10 {strides = array<i32>} : memref<176x128xbf16, #tpu.memory_space<vmem>>, vector<176x128xbf16>,
    return
  }
  func.func @transform_0(%arg0: i32, %arg1: i32) -> (i32, i32) {
    %c0_i32 = arith.constant 0 : i32
    %c0_i32_0 = arith.constant 0 : i32
    return %arg0, %c0_i32 : i32, i32
  }
  func.func @transform_1(%arg0: i32, %arg1: i32) -> (i32, i32) {
    %c0_i32 = arith.constant 0 : i32
    %c0_i32_0 = arith.constant 0 : i32
    return %c0_i32, %arg1 : i32, i32
  }
  func.func @transform_2(%arg0: i32, %arg1: i32) -> (i32, i32) {
    %c0_i32 = arith.constant 0 : i32
    %c0_i32_0 = arith.constant 0 : i32
    return %c0_i32, %arg1 : i32, i32
  }
  func.func @transform_3(%arg0: i32, %arg1: i32) -> (i32, i32) {
    %c0_i32 = arith.constant 0 : i32
    %c0_i32_0 = arith.constant 0 : i32
    return %c0_i32, %arg1 : i32, i32
  }
  func.func @transform_4(%arg0: i32, %arg1: i32) -> (i32, i32) {
    %c0_i32 = arith.constant 0 : i32
    return %arg0, %arg1 : i32, i32
  }
}

</mosaic_0001>

<bundles_post_ra>
// kernel: forward.24
= control target key start
LH: loop header
LB: loop body
LE: loop exit
PB: predicated region body
PF: predicated region fallthrough
CT: control target
= control target key end

     0   :  { %s1356_s15 = smov 0   ;;  %s1358_s16 = smov 0   ;;  %s1530_s0 = inlined_call_operand.vmem [shape: bf16[512,128], index: 0, kind: input, shape index: {}]   ;;  %s1531_s1 = inlined_call_operand.vmem [shape: bf16[128,128], index: 1, kind: input, shape index: {}]   ;;  %s1532_s2 = inlined_call_operand.vmem [shape: f32[1,128], index: 2, kind: input, shape index: {}]   ;;  %s1533_s3 = inlined_call_operand.vmem [shape: f32[1,128], index: 3, kind: input, shape index: {}]   ;;  %s1534_s4 = inlined_call_operand.vmem [shape: bf16[512,128], index: 4, kind: output, shape index: {}]  }
   0x1   :  { %s1360_s17 = smov 0  }
   0x2 LB: > { %s26_s18 = sadd.s32 1, %s1325_s16  ;;  %p979_p0 = scmp.ge.s32.totalorder %s1329_s17, 1  ;;  %s1329_s17 = sphi %s1360_s17, %s14_s17   ;;  %s1325_s16 = sphi %s1358_s16, %s1536_s16   ;;  %s1321_s15 = sphi %s1356_s15, %s1535_s15  }
   0x3   : > { %p28_p1 = scmp.ge.s32.totalorder %s26_s18, 2  ;;  %p202_p2 = scmp.lt.s32.totalorder %s1329_s17, 3 }
   0x5   : > { %s1538_s18 = smov (%p28_p1, %s26_s18), 0  ;;  %p203_p3 = pnand %p979_p0, %p202_p2 }
   0x6   : > { %s980_s21 = sshll.u32 (!%p203_p3), %s1321_s15, 5 }
   0x7   : > { %206 = sbr.rel (%p203_p3) target bundleno = 277 (0x115), region = 36  ;;  %p242_p4 = scmp.lt.s32.totalorder (!%p203_p3), %s980_s21, 63 }
   0xc   : > { %v1283_v0 = vld [vmem:[%s1531_s1 + $0x38] sm:$0xff]   ;;  %v1284_v1 = vld [vmem:[%s1531_s1 + $0x30] sm:$0xff]   ;;  %s1540_s21 = smov (!%p242_p4, %s980_s21), 63  ;;  %v1285_v2 = vld [vmem:[%s1531_s1 + $0x28] sm:$0xff]  }
   0xd   : > { %1195 = vmatprep.subr.bf16.mxu0 %v1283_v0  ;;  %1243 = vmatprep.subr.bf16.mxu1 %v1283_v0  ;;  %s981_s26 = sshll.u32 %s1540_s21, 2  ;;  %v1286_v3 = vld [vmem:[%s1531_s1 + $0x20] sm:$0xff]   ;;  %v1287_v6 = vld [vmem:[%s1531_s1 + $0x18] sm:$0xff]   ;;  %v1288_v7 = vld [vmem:[%s1531_s1 + $0x10] sm:$0xff]  }
   0xe   : > { %1196 = vmatpush3.bf16.msra.mxu0 %v1283_v0  ;;  %1251 = vmatpush3.bf16.msra.mxu1 %v1283_v0  ;;  %s1391_s29 = scalar_lea.vmem %s1530_s0, %s981_s26  ;;  %v1289_v8 = vld [vmem:[%s1531_s1 + $0x8] sm:$0xff]   ;;  %v1290_v9 = vld [vmem:[%s1531_s1] sm:$0xff]   ;;  %s1457_s24 = scalar_lea.vmem %s1534_s4, %s981_s26 }
   0xf   : > { %1197 = vmatprep.subr.bf16.mxu0 %v1284_v1  ;;  %1244 = vmatprep.subr.bf16.mxu1 %v1284_v1  ;;  %v1291_v4 = vld [vmem:[%s1391_s29] sm:$0xff]   ;;  %v1293_v10 = vld [vmem:[%s1391_s29 + $0x8] sm:$0xff]   ;;  %v1295_v12 = vld [vmem:[%s1391_s29 + $0x10] sm:$0xff]  }
  0x10   : > { %v1292_v5 = vld [vmem:[%s1391_s29 + $0x40] sm:$0xff]   ;;  %1211 = vmatprep.mubr.bf16.mxu0 %v1291_v4  ;;  %v1294_v11 = vld [vmem:[%s1391_s29 + $0x48] sm:$0xff]   ;;  %v1296_v13 = vld [vmem:[%s1391_s29 + $0x50] sm:$0xff]  }
  0x11   : > { %1227 = vmatprep.mubr.bf16.mxu1 %v1292_v5  ;;  %v1297_v14 = vld [vmem:[%s1391_s29 + $0x18] sm:$0xff]   ;;  %v1299_v16 = vld [vmem:[%s1391_s29 + $0x20] sm:$0xff]   ;;  %v1301_v18 = vld [vmem:[%s1391_s29 + $0x28] sm:$0xff]  }
  0x12   : > { %1198 = vmatpush3.bf16.msra.mxu0 %v1284_v1  ;;  %1252 = vmatpush3.bf16.msra.mxu1 %v1284_v1  ;;  %v1298_v15 = vld [vmem:[%s1391_s29 + $0x58] sm:$0xff]   ;;  %v1300_v17 = vld [vmem:[%s1391_s29 + $0x60] sm:$0xff]   ;;  %v1302_v19 = vld [vmem:[%s1391_s29 + $0x68] sm:$0xff]  }
  0x13   : > { %1199 = vmatprep.subr.bf16.mxu0 %v1285_v2  ;;  %1245 = vmatprep.subr.bf16.mxu1 %v1285_v2  ;;  %v1303_v20 = vld [vmem:[%s1391_s29 + $0x30] sm:$0xff]   ;;  %v1305_v22 = vld [vmem:[%s1391_s29 + $0x38] sm:$0xff]   ;;  %v1427_v24 = vld [vmem:[%s1532_s2] ss:$0 sm:$0xff] }
  0x14   : > { %v1304_v21 = vld [vmem:[%s1391_s29 + $0x70] sm:$0xff]   ;;  %v1306_v23 = vld [vmem:[%s1391_s29 + $0x78] sm:$0xff]   ;;  %v1434_v29 = vld [vmem:[%s1533_s3] ss:$0 sm:$0xff] }
  0x16   : > { %1200 = vmatpush3.bf16.msra.mxu0 %v1285_v2  ;;  %1253 = vmatpush3.bf16.msra.mxu1 %v1285_v2 }
  0x17   : > { %1201 = vmatprep.subr.bf16.mxu0 %v1286_v3  ;;  %1246 = vmatprep.subr.bf16.mxu1 %v1286_v3 }
  0x1a   : > { %1202 = vmatpush3.bf16.msra.mxu0 %v1286_v3  ;;  %1254 = vmatpush3.bf16.msra.mxu1 %v1286_v3 }
  0x1b   : > { %1203 = vmatprep.subr.bf16.mxu0 %v1287_v6  ;;  %1247 = vmatprep.subr.bf16.mxu1 %v1287_v6 }
  0x1e   : > { %1204 = vmatpush3.bf16.msra.mxu0 %v1287_v6  ;;  %1255 = vmatpush3.bf16.msra.mxu1 %v1287_v6 }
  0x1f   : > { %1205 = vmatprep.subr.bf16.mxu0 %v1288_v7  ;;  %1248 = vmatprep.subr.bf16.mxu1 %v1288_v7 }
  0x22   : > { %1206 = vmatpush3.bf16.msra.mxu0 %v1288_v7  ;;  %1256 = vmatpush3.bf16.msra.mxu1 %v1288_v7 }
  0x23   : > { %1207 = vmatprep.subr.bf16.mxu0 %v1289_v8  ;;  %1249 = vmatprep.subr.bf16.mxu1 %v1289_v8 }
  0x26   : > { %1208 = vmatpush3.bf16.msra.mxu0 %v1289_v8  ;;  %1257 = vmatpush3.bf16.msra.mxu1 %v1289_v8 }
  0x27   : > { %1209 = vmatprep.subr.bf16.mxu0 %v1290_v9  ;;  %1250 = vmatprep.subr.bf16.mxu1 %v1290_v9 }
  0x2a   : > { %1210 = vmatpush3.bf16.msra.mxu0 %v1290_v9  ;;  %1258 = vmatpush3.bf16.msra.mxu1 %v1290_v9 }
  0x2d   : > { %1212 = vmatmul.mubr.bf16.vlgmr.msra.gmra.mxu0 %v1293_v10  ;;  %1228 = vmatmul.mubr.bf16.vlgmr.msra.gmra.mxu1 %v1294_v11 }
  0x2e   : > { %1215 = vmatprep.mubr.bf16.mxu0 %v1295_v12  ;;  %1231 = vmatprep.mubr.bf16.mxu1 %v1296_v13 }
  0x35   : > { %1216 = vmatmul.mubr.bf16.gmra.mxu0 %v1297_v14  ;;  %1232 = vmatmul.mubr.bf16.gmra.mxu1 %v1298_v15 }
  0x36   : > { %1219 = vmatprep.mubr.bf16.mxu0 %v1299_v16  ;;  %1235 = vmatprep.mubr.bf16.mxu1 %v1300_v17 }
  0x3d   : > { %1220 = vmatmul.mubr.bf16.gmra.mxu0 %v1301_v18  ;;  %1236 = vmatmul.mubr.bf16.gmra.mxu1 %v1302_v19 }
  0x3e   : > { %1223 = vmatprep.mubr.bf16.mxu0 %v1303_v20  ;;  %1239 = vmatprep.mubr.bf16.mxu1 %v1304_v21 }
  0x45   : > { %1224 = vmatmul.mubr.bf16.gmra.mxu0 %v1305_v22  ;;  %1240 = vmatmul.mubr.bf16.gmra.mxu1 %v1306_v23 }
  0xed   : > { %v1213_v25 = vpop.f32.mrf.mxu0  ;;  %v1229_v26 = vpop.f32.mrf.mxu1 }
  0xee   : > { %v509_v27 = vadd.f32 %v1213_v25, %v1427_v24  ;;  %v573_v28 = vadd.f32 %v1229_v26, %v1427_v24 }
  0xef   : > { %v500_v30 = vpop.f32.mrf.mxu0  ;;  %v564_v31 = vpop.f32.mrf.mxu1 }
  0xf0   : > { %v501_v32 = vadd.f32 %v1427_v24, %v500_v30  ;;  %v565_v33 = vadd.f32 %v1427_v24, %v564_v31  ;;  %v636_v36 = vmul.f32 %v1434_v29, %v509_v27  ;;  %v652_v37 = vmul.f32 %v1434_v29, %v573_v28 }
  0xf1   : > { %v1214_v34 = vpop.f32.mrf.mxu0  ;;  %v1230_v35 = vpop.f32.mrf.mxu1 }
  0xf2   : > { %v512_v38 = vadd.f32 %v1214_v34, %v1427_v24  ;;  %v576_v39 = vadd.f32 %v1230_v35, %v1427_v24  ;;  %v634_v42 = vmul.f32 %v1434_v29, %v501_v32  ;;  %v650_v43 = vmul.f32 %v1434_v29, %v565_v33 }
  0xf3   : > { %v503_v40 = vpop.f32.mrf.mxu0  ;;  %v567_v41 = vpop.f32.mrf.mxu1  ;;  %v668_v50 = vmax.f32 %v509_v27, %v636_v36  ;;  %v684_v51 = vmax.f32 %v573_v28, %v652_v37 }
  0xf4   : > { %v504_v44 = vadd.f32 %v1427_v24, %v503_v40  ;;  %v568_v45 = vadd.f32 %v1427_v24, %v567_v41  ;;  %v637_v46 = vmul.f32 %v1434_v29, %v512_v38  ;;  %v653_v47 = vmul.f32 %v1434_v29, %v576_v39 }
  0xf5   : > { %v1217_v48 = vpop.f32.mrf.mxu0  ;;  %v1233_v49 = vpop.f32.mrf.mxu1  ;;  %v666_v60 = vmax.f32 %v501_v32, %v634_v42  ;;  %v682_v61 = vmax.f32 %v565_v33, %v650_v43 }
  0xf6   : > { %v635_v52 = vmul.f32 %v1434_v29, %v504_v44  ;;  %v651_v53 = vmul.f32 %v1434_v29, %v568_v45  ;;  %v669_v54 = vmax.f32 %v512_v38, %v637_v46  ;;  %v685_v55 = vmax.f32 %v576_v39, %v653_v47 }
  0xf7   : > { %v525_v56 = vadd.f32 %v1217_v48, %v1427_v24  ;;  %v589_v57 = vadd.f32 %v1233_v49, %v1427_v24  ;;  %v516_v58 = vpop.f32.mrf.mxu0  ;;  %v580_v59 = vpop.f32.mrf.mxu1 }
  0xf8   : > { %v667_v62 = vmax.f32 %v504_v44, %v635_v52  ;;  %v683_v63 = vmax.f32 %v568_v45, %v651_v53  ;;  %v1084_v0 = vpack.c.bf16 %v669_v54, %v668_v50  ;;  %v1124_v1 = vpack.c.bf16 %v685_v55, %v684_v51 }
  0xf9   : > { %v517_v2 = vadd.f32 %v1427_v24, %v516_v58  ;;  %v581_v3 = vadd.f32 %v1427_v24, %v580_v59  ;;  %v1218_v4 = vpop.f32.mrf.mxu0  ;;  %v1234_v5 = vpop.f32.mrf.mxu1  ;;  %v640_v8 = vmul.f32 %v1434_v29, %v525_v56  ;;  %v656_v9 = vmul.f32 %v1434_v29, %v589_v57 }
  0xfa   : > { %v1079_v6 = vpack.c.bf16 %v667_v62, %v666_v60  ;;  %v1119_v7 = vpack.c.bf16 %v683_v63, %v682_v61  ;;  %1156 = vst [vmem:[%s1457_s24 + $0x8] sm:$0xff] %v1084_v0   ;;  %1164 = vst [vmem:[%s1457_s24 + $0x48] sm:$0xff] %v1124_v1   ;;  %v528_v10 = vadd.f32 %v1218_v4, %v1427_v24 }
  0xfb   : > { %v592_v11 = vadd.f32 %v1234_v5, %v1427_v24  ;;  %v519_v12 = vpop.f32.mrf.mxu0  ;;  %v583_v13 = vpop.f32.mrf.mxu1  ;;  %v638_v14 = vmul.f32 %v1434_v29, %v517_v2  ;;  %v654_v15 = vmul.f32 %v1434_v29, %v581_v3  ;;  %v672_v27 = vmax.f32 %v525_v56, %v640_v8 }
  0xfc   : > { %1080 = vst [vmem:[%s1457_s24] sm:$0xff] %v1079_v6   ;;  %1163 = vst [vmem:[%s1457_s24 + $0x40] sm:$0xff] %v1119_v7   ;;  %v520_v16 = vadd.f32 %v1427_v24, %v519_v12  ;;  %v584_v17 = vadd.f32 %v1427_v24, %v583_v13  ;;  %v641_v18 = vmul.f32 %v1434_v29, %v528_v10 }
  0xfd   : > { %v657_v19 = vmul.f32 %v1434_v29, %v592_v11  ;;  %v1221_v20 = vpop.f32.mrf.mxu0  ;;  %v1237_v21 = vpop.f32.mrf.mxu1  ;;  %v688_v28 = vmax.f32 %v589_v57, %v656_v9  ;;  %v670_v34 = vmax.f32 %v517_v2, %v638_v14  ;;  %v686_v35 = vmax.f32 %v581_v3, %v654_v15 }
  0xfe   : > { %v639_v22 = vmul.f32 %v1434_v29, %v520_v16  ;;  %v655_v23 = vmul.f32 %v1434_v29, %v584_v17  ;;  %v541_v25 = vadd.f32 %v1221_v20, %v1427_v24  ;;  %v605_v26 = vadd.f32 %v1237_v21, %v1427_v24 }
  0xff   : > { %v673_v30 = vmax.f32 %v528_v10, %v641_v18  ;;  %v689_v31 = vmax.f32 %v592_v11, %v657_v19  ;;  %v532_v32 = vpop.f32.mrf.mxu0  ;;  %v596_v33 = vpop.f32.mrf.mxu1 }
 0x100   : > { %v671_v36 = vmax.f32 %v520_v16, %v639_v22  ;;  %v687_v37 = vmax.f32 %v584_v17, %v655_v23  ;;  %v533_v40 = vadd.f32 %v1427_v24, %v532_v32  ;;  %v597_v41 = vadd.f32 %v1427_v24, %v596_v33 }
 0x101   : > { %v1094_v38 = vpack.c.bf16 %v673_v30, %v672_v27  ;;  %v1134_v39 = vpack.c.bf16 %v689_v31, %v688_v28  ;;  %v1222_v42 = vpop.f32.mrf.mxu0  ;;  %v1238_v43 = vpop.f32.mrf.mxu1  ;;  %v644_v46 = vmul.f32 %v1434_v29, %v541_v25  ;;  %v660_v47 = vmul.f32 %v1434_v29, %v605_v26 }
 0x102   : > { %v1089_v44 = vpack.c.bf16 %v671_v36, %v670_v34  ;;  %v1129_v45 = vpack.c.bf16 %v687_v37, %v686_v35  ;;  %v544_v48 = vadd.f32 %v1222_v42, %v1427_v24  ;;  %v608_v49 = vadd.f32 %v1238_v43, %v1427_v24 }
 0x103   : > { %1158 = vst [vmem:[%s1457_s24 + $0x18] sm:$0xff] %v1094_v38   ;;  %1166 = vst [vmem:[%s1457_s24 + $0x58] sm:$0xff] %v1134_v39   ;;  %v535_v50 = vpop.f32.mrf.mxu0  ;;  %v599_v51 = vpop.f32.mrf.mxu1  ;;  %v642_v52 = vmul.f32 %v1434_v29, %v533_v40  ;;  %v658_v53 = vmul.f32 %v1434_v29, %v597_v41  ;;  %v676_v60 = vmax.f32 %v541_v25, %v644_v46 }
 0x104   : > { %1157 = vst [vmem:[%s1457_s24 + $0x10] sm:$0xff] %v1089_v44   ;;  %1165 = vst [vmem:[%s1457_s24 + $0x50] sm:$0xff] %v1129_v45   ;;  %v536_v54 = vadd.f32 %v1427_v24, %v535_v50  ;;  %v600_v55 = vadd.f32 %v1427_v24, %v599_v51  ;;  %v645_v56 = vmul.f32 %v1434_v29, %v544_v48 }
 0x105   : > { %v661_v57 = vmul.f32 %v1434_v29, %v608_v49  ;;  %v1225_v58 = vpop.f32.mrf.mxu0  ;;  %v1241_v59 = vpop.f32.mrf.mxu1  ;;  %v692_v61 = vmax.f32 %v605_v26, %v660_v47  ;;  %v674_v6 = vmax.f32 %v533_v40, %v642_v52  ;;  %v690_v7 = vmax.f32 %v597_v41, %v658_v53 }
 0x106   : > { %v643_v62 = vmul.f32 %v1434_v29, %v536_v54  ;;  %v659_v63 = vmul.f32 %v1434_v29, %v600_v55  ;;  %v677_v0 = vmax.f32 %v544_v48, %v645_v56  ;;  %v557_v2 = vadd.f32 %v1225_v58, %v1427_v24 }
 0x107   : > { %v693_v1 = vmax.f32 %v608_v49, %v661_v57  ;;  %v621_v3 = vadd.f32 %v1241_v59, %v1427_v24  ;;  %v548_v4 = vpop.f32.mrf.mxu0  ;;  %v612_v5 = vpop.f32.mrf.mxu1 }
 0x108   : > { %v675_v8 = vmax.f32 %v536_v54, %v643_v62  ;;  %v691_v9 = vmax.f32 %v600_v55, %v659_v63  ;;  %v1104_v10 = vpack.c.bf16 %v677_v0, %v676_v60  ;;  %v549_v12 = vadd.f32 %v1427_v24, %v548_v4 }
 0x109   : > { %v1144_v11 = vpack.c.bf16 %v693_v1, %v692_v61  ;;  %v613_v13 = vadd.f32 %v1427_v24, %v612_v5  ;;  %v1226_v14 = vpop.f32.mrf.mxu0  ;;  %v1242_v15 = vpop.f32.mrf.mxu1  ;;  %v648_v18 = vmul.f32 %v1434_v29, %v557_v2  ;;  %v664_v19 = vmul.f32 %v1434_v29, %v621_v3 }
 0x10a   : > { %v1099_v16 = vpack.c.bf16 %v675_v8, %v674_v6  ;;  %v1139_v17 = vpack.c.bf16 %v691_v9, %v690_v7  ;;  %1160 = vst [vmem:[%s1457_s24 + $0x28] sm:$0xff] %v1104_v10   ;;  %v560_v20 = vadd.f32 %v1226_v14, %v1427_v24  ;;  %v624_v21 = vadd.f32 %v1242_v15, %v1427_v24 }
 0x10b   : > { %1168 = vst [vmem:[%s1457_s24 + $0x68] sm:$0xff] %v1144_v11   ;;  %v551_v22 = vpop.f32.mrf.mxu0  ;;  %v615_v23 = vpop.f32.mrf.mxu1  ;;  %v646_v25 = vmul.f32 %v1434_v29, %v549_v12  ;;  %v662_v26 = vmul.f32 %v1434_v29, %v613_v13  ;;  %v680_v34 = vmax.f32 %v557_v2, %v648_v18  ;;  %v696_v35 = vmax.f32 %v621_v3, %v664_v19 }
 0x10c   : > { %1159 = vst [vmem:[%s1457_s24 + $0x20] sm:$0xff] %v1099_v16   ;;  %1167 = vst [vmem:[%s1457_s24 + $0x60] sm:$0xff] %v1139_v17   ;;  %v552_v27 = vadd.f32 %v1427_v24, %v551_v22  ;;  %v616_v28 = vadd.f32 %v1427_v24, %v615_v23  ;;  %v649_v30 = vmul.f32 %v1434_v29, %v560_v20 }
 0x10d   : > { %v665_v31 = vmul.f32 %v1434_v29, %v624_v21  ;;  %v678_v38 = vmax.f32 %v549_v12, %v646_v25  ;;  %v694_v39 = vmax.f32 %v613_v13, %v662_v26 }
 0x10e   : > { %v647_v32 = vmul.f32 %v1434_v29, %v552_v27  ;;  %v663_v33 = vmul.f32 %v1434_v29, %v616_v28  ;;  %v681_v36 = vmax.f32 %v560_v20, %v649_v30 }
 0x10f   : > { %v697_v37 = vmax.f32 %v624_v21, %v665_v31 }
 0x110   : > { %v679_v40 = vmax.f32 %v552_v27, %v647_v32  ;;  %v695_v24 = vmax.f32 %v616_v28, %v663_v33  ;;  %v1114_v41 = vpack.c.bf16 %v681_v36, %v680_v34 }
 0x111   : > { %v1154_v42 = vpack.c.bf16 %v697_v37, %v696_v35 }
 0x112   : > { %v1109_v43 = vpack.c.bf16 %v679_v40, %v678_v38  ;;  %v1149_v44 = vpack.c.bf16 %v695_v24, %v694_v39  ;;  %1162 = vst [vmem:[%s1457_s24 + $0x38] sm:$0xff] %v1114_v41  }
 0x113   : > { %1170 = vst [vmem:[%s1457_s24 + $0x78] sm:$0xff] %v1154_v42  }
 0x114   : > { %1161 = vst [vmem:[%s1457_s24 + $0x30] sm:$0xff] %v1109_v43   ;;  %1169 = vst [vmem:[%s1457_s24 + $0x70] sm:$0xff] %v1149_v44  }
 0x115 PF: > { %s14_s17 = sadd.s32 1, %s1329_s17   ;;  %s1535_s15 = smov %s1325_s16 }
 0x116   : > { %p11_p5 = scmp.ge.s32.totalorder %s14_s17, 4   ;;  %s1536_s16 = smov %s1538_s18 }
 0x118   :  { %13 = sbr.rel (!%p11_p5) target bundleno = 2 (0x2), region = 75 }

// kernel: forward.25
= control target key start
LH: loop header
LB: loop body
LE: loop exit
PB: predicated region body
PF: predicated region fallthrough
CT: control target
= control target key end

     0   :  { %s1226_s1 = inlined_call_operand.vmem [shape: bf16[384,128], index: 1, kind: input, shape index: {}]   ;;  %s1227_s0 = inlined_call_operand.vmem [shape: bf16[128,384], index: 0, kind: input, shape index: {}]   ;;  %s1228_s2 = inlined_call_operand.vmem [shape: f32[1,128], index: 2, kind: input, shape index: {}]   ;;  %s1229_s3 = inlined_call_operand.vmem [shape: f32[1,128], index: 3, kind: input, shape index: {}]   ;;  %s1230_s4 = inlined_call_operand.vmem [shape: bf16[128,128], index: 4, kind: output, shape index: {}]  }
   0x1   :  { %v935_v0 = vld [vmem:[%s1226_s1 + $0x78] sm:$0xff]   ;;  %v937_v2 = vld [vmem:[%s1226_s1 + $0x70] sm:$0xff]   ;;  %v940_v5 = vld [vmem:[%s1226_s1 + $0x68] sm:$0xff]  }
   0x2   :  { %v936_v1 = vld [vmem:[%s1226_s1 + $0x38] sm:$0xff]   ;;  %823 = vmatprep.subr.bf16.mxu0 %v935_v0  ;;  %v939_v4 = vld [vmem:[%s1226_s1 + $0x30] sm:$0xff]   ;;  %v942_v7 = vld [vmem:[%s1226_s1 + $0x28] sm:$0xff]  }
   0x3   :  { %824 = vmatpush3.bf16.msra.mxu0 %v936_v1  ;;  %v938_v3 = vld [vmem:[%s1226_s1 + $0xb8] sm:$0xff]   ;;  %v941_v6 = vld [vmem:[%s1226_s1 + $0xb0] sm:$0xff]   ;;  %v943_v8 = vld [vmem:[%s1226_s1 + $0x60] sm:$0xff]  }
   0x4   :  { %825 = vmatprep.subr.bf16.mxu0 %v937_v2  ;;  %903 = vmatprep.subr.bf16.mxu1 %v938_v3  ;;  %v944_v9 = vld [vmem:[%s1226_s1 + $0xa8] sm:$0xff]   ;;  %v945_v10 = vld [vmem:[%s1226_s1 + $0x20] sm:$0xff]   ;;  %v946_v11 = vld [vmem:[%s1226_s1 + $0x58] sm:$0xff]  }
   0x5   :  { %904 = vmatpush3.bf16.msra.mxu1 %v938_v3  ;;  %v947_v12 = vld [vmem:[%s1226_s1 + $0xa0] sm:$0xff]   ;;  %v948_v13 = vld [vmem:[%s1226_s1 + $0x18] sm:$0xff]   ;;  %v949_v15 = vld [vmem:[%s1226_s1 + $0x50] sm:$0xff]  }
   0x6   :  { %905 = vmatprep.subr.bf16.mxu1 %v941_v6  ;;  %v950_v14 = vld [vmem:[%s1226_s1 + $0x98] sm:$0xff]   ;;  %v951_v16 = vld [vmem:[%s1226_s1 + $0x10] sm:$0xff]   ;;  %v952_v18 = vld [vmem:[%s1226_s1 + $0x48] sm:$0xff]  }
   0x7   :  { %826 = vmatpush3.bf16.msra.mxu0 %v939_v4  ;;  %v953_v17 = vld [vmem:[%s1226_s1 + $0x90] sm:$0xff]   ;;  %v954_v19 = vld [vmem:[%s1226_s1 + $0x8] sm:$0xff]   ;;  %v955_v20 = vld [vmem:[%s1226_s1 + $0x40] sm:$0xff]  }
   0x8   :  { %827 = vmatprep.subr.bf16.mxu0 %v940_v5  ;;  %v956_v21 = vld [vmem:[%s1226_s1 + $0x88] sm:$0xff]   ;;  %v960_v22 = vld [vmem:[%s1227_s0 + $0x4] ss:$12 sps:$4 sm:$0xff]   ;;  %v967_v31 = vld [vmem:[%s1227_s0 + $0x34] ss:$12 sps:$4 sm:$0xff]  }
   0x9   :  { %906 = vmatpush3.bf16.msra.mxu1 %v941_v6  ;;  %v957_v23 = vld [vmem:[%s1226_s1] sm:$0xff]   ;;  %409 = vmatprep.mubr.bf16.mxu0 %v960_v22  ;;  %v962_v24 = vld [vmem:[%s1227_s0 + $0x8] ss:$12 sps:$4 sm:$0xff]   ;;  %v971_v32 = vld [vmem:[%s1227_s0 + $0x50] ss:$12 sps:$4 sm:$0xff]  }
   0xa   :  { %907 = vmatprep.subr.bf16.mxu1 %v944_v9  ;;  %v961_v25 = vld [vmem:[%s1226_s1 + $0x80] sm:$0xff]   ;;  %919 = vmatprep.mubr.bf16.mxu1 %v962_v24  ;;  %v964_v27 = vld [vmem:[%s1227_s0 + $0x1c] ss:$12 sps:$4 sm:$0xff]   ;;  %v972_v35 = vld [vmem:[%s1227_s0 + $0x4c] ss:$12 sps:$4 sm:$0xff]  }
   0xb   :  { %828 = vmatpush3.bf16.msra.mxu0 %v942_v7  ;;  %v958_v26 = vld [vmem:[%s1227_s0] ss:$12 sps:$4 sm:$0xff]   ;;  %v970_v29 = vld [vmem:[%s1227_s0 + $0x38] ss:$12 sps:$4 sm:$0xff]   ;;  %v978_v33 = vld [vmem:[%s1227_s0 + $0x68] ss:$12 sps:$4 sm:$0xff]  }
   0xc   :  { %829 = vmatprep.subr.bf16.mxu0 %v943_v8  ;;  %v963_v28 = vld [vmem:[%s1227_s0 + $0x20] ss:$12 sps:$4 sm:$0xff]   ;;  %v966_v30 = vld [vmem:[%s1227_s0 + $0x18] ss:$12 sps:$4 sm:$0xff]   ;;  %v969_v34 = vld [vmem:[%s1227_s0 + $0x30] ss:$12 sps:$4 sm:$0xff]  }
   0xd   :  { %908 = vmatpush3.bf16.msra.mxu1 %v944_v9  ;;  %v979_v36 = vld [vmem:[%s1227_s0 + $0x80] ss:$12 sps:$4 sm:$0xff]   ;;  %v986_v37 = vld [vmem:[%s1227_s0 + $0x98] ss:$12 sps:$4 sm:$0xff]   ;;  %v974_v38 = vld [vmem:[%s1227_s0 + $0x48] ss:$12 sps:$4 sm:$0xff]  }
   0xe   :  { %909 = vmatprep.subr.bf16.mxu1 %v947_v12  ;;  %v975_v39 = vld [vmem:[%s1227_s0 + $0x64] ss:$12 sps:$4 sm:$0xff]   ;;  %v977_v41 = vld [vmem:[%s1227_s0 + $0x60] ss:$12 sps:$4 sm:$0xff]   ;;  %v980_v42 = vld [vmem:[%s1227_s0 + $0x7c] ss:$12 sps:$4 sm:$0xff]  }
   0xf   :  { %830 = vmatpush3.bf16.msra.mxu0 %v945_v10  ;;  %v987_v40 = vld [vmem:[%s1227_s0 + $0xb0] ss:$12 sps:$4 sm:$0xff]   ;;  %v982_v43 = vld [vmem:[%s1227_s0 + $0x78] ss:$12 sps:$4 sm:$0xff]   ;;  %v983_v44 = vld [vmem:[%s1227_s0 + $0x94] ss:$12 sps:$4 sm:$0xff]  }
  0x10   :  { %831 = vmatprep.subr.bf16.mxu0 %v946_v11  ;;  %v985_v45 = vld [vmem:[%s1227_s0 + $0x90] ss:$12 sps:$4 sm:$0xff]   ;;  %v988_v46 = vld [vmem:[%s1227_s0 + $0xac] ss:$12 sps:$4 sm:$0xff]   ;;  %v990_v47 = vld [vmem:[%s1227_s0 + $0xa8] ss:$12 sps:$4 sm:$0xff]  }
  0x11   :  { %910 = vmatpush3.bf16.msra.mxu1 %v947_v12  ;;  %v1163_v50 = vld [vmem:[%s1228_s2] ss:$0 sm:$0xff] }
  0x12   :  { %911 = vmatprep.subr.bf16.mxu1 %v950_v14  ;;  %v1169_v60 = vld [vmem:[%s1229_s3] ss:$0 sm:$0xff] }
  0x13   :  { %832 = vmatpush3.bf16.msra.mxu0 %v948_v13 }
  0x14   :  { %833 = vmatprep.subr.bf16.mxu0 %v949_v15 }
  0x15   :  { %912 = vmatpush3.bf16.msra.mxu1 %v950_v14 }
  0x16   :  { %913 = vmatprep.subr.bf16.mxu1 %v953_v17 }
  0x17   :  { %834 = vmatpush3.bf16.msra.mxu0 %v951_v16 }
  0x18   :  { %835 = vmatprep.subr.bf16.mxu0 %v952_v18 }
  0x19   :  { %914 = vmatpush3.bf16.msra.mxu1 %v953_v17 }
  0x1a   :  { %915 = vmatprep.subr.bf16.mxu1 %v956_v21 }
  0x1b   :  { %836 = vmatpush3.bf16.msra.mxu0 %v954_v19 }
  0x1c   :  { %837 = vmatprep.subr.bf16.mxu0 %v955_v20 }
  0x1d   :  { %916 = vmatpush3.bf16.msra.mxu1 %v956_v21 }
  0x1e   :  { %917 = vmatprep.subr.bf16.mxu1 %v961_v25 }
  0x1f   :  { %838 = vmatpush3.bf16.msra.mxu0 %v957_v23 }
  0x21   :  { %918 = vmatpush3.bf16.msra.mxu1 %v961_v25 }
  0x22   :  { %410 = vmatmul.mubr.bf16.vlgmr.msra.gmra.mxu0 %v958_v26 }
  0x23   :  { %417 = vmatprep.mubr.bf16.mxu0 %v964_v27 }
  0x24   :  { %920 = vmatmul.mubr.bf16.vlgmr.msra.gmra.mxu1 %v963_v28 }
  0x25   :  { %923 = vmatprep.mubr.bf16.mxu1 %v970_v29 }
  0x2a   :  { %418 = vmatmul.mubr.bf16.gmra.mxu0 %v966_v30 }
  0x2b   :  { %425 = vmatprep.mubr.bf16.mxu0 %v967_v31 }
  0x2c   :  { %924 = vmatmul.mubr.bf16.gmra.mxu1 %v971_v32 }
  0x2d   :  { %927 = vmatprep.mubr.bf16.mxu1 %v978_v33 }
  0x32   :  { %426 = vmatmul.mubr.bf16.gmra.mxu0 %v969_v34 }
  0x33   :  { %433 = vmatprep.mubr.bf16.mxu0 %v972_v35 }
  0x34   :  { %928 = vmatmul.mubr.bf16.gmra.mxu1 %v979_v36 }
  0x35   :  { %931 = vmatprep.mubr.bf16.mxu1 %v986_v37 }
  0x3a   :  { %434 = vmatmul.mubr.bf16.gmra.mxu0 %v974_v38 }
  0x3b   :  { %441 = vmatprep.mubr.bf16.mxu0 %v975_v39 }
  0x3c   :  { %932 = vmatmul.mubr.bf16.gmra.mxu1 %v987_v40 }
  0x42   :  { %442 = vmatmul.mubr.bf16.gmra.mxu0 %v977_v41 }
  0x43   :  { %449 = vmatprep.mubr.bf16.mxu0 %v980_v42 }
  0x4a   :  { %450 = vmatmul.mubr.bf16.gmra.mxu0 %v982_v43 }
  0x4b   :  { %457 = vmatprep.mubr.bf16.mxu0 %v983_v44 }
  0x52   :  { %458 = vmatmul.mubr.bf16.gmra.mxu0 %v985_v45 }
  0x53   :  { %465 = vmatprep.mubr.bf16.mxu0 %v988_v46 }
  0x5a   :  { %466 = vmatmul.mubr.bf16.gmra.mxu0 %v990_v47 }
  0xe2   :  { %v839_v48 = vpop.f32.mrf.mxu0 }
  0xe4   :  { %v840_v49 = vpop.f32.mrf.mxu0  ;;  %v921_v52 = vpop.f32.mrf.mxu1 }
  0xe5   :  { %v841_v51 = vadd.f32 %v840_v49, %v839_v48 }
  0xe6   :  { %v842_v53 = vpop.f32.mrf.mxu0  ;;  %v508_v55 = vpop.f32.mrf.mxu1 }
  0xe7   :  { %v412_v54 = vadd.f32 %v841_v51, %v1163_v50 }
  0xe8   :  { %v843_v56 = vpop.f32.mrf.mxu0  ;;  %v922_v59 = vpop.f32.mrf.mxu1 }
  0xe9   :  { %v844_v57 = vadd.f32 %v843_v56, %v842_v53  ;;  %v509_v58 = vadd.f32 %v508_v55, %v412_v54 }
  0xea   :  { %v845_v61 = vpop.f32.mrf.mxu0  ;;  %v511_v63 = vpop.f32.mrf.mxu1 }
  0xeb   :  { %v415_v62 = vadd.f32 %v844_v57, %v1163_v50  ;;  %v578_v1 = vmul.f32 %v1169_v60, %v509_v58 }
  0xec   :  { %v846_v0 = vpop.f32.mrf.mxu0  ;;  %v925_v5 = vpop.f32.mrf.mxu1 }
  0xed   :  { %v847_v2 = vadd.f32 %v846_v0, %v845_v61  ;;  %v512_v3 = vadd.f32 %v511_v63, %v415_v62  ;;  %v594_v9 = vmax.f32 %v509_v58, %v578_v1 }
  0xee   :  { %v848_v4 = vpop.f32.mrf.mxu0  ;;  %v524_v14 = vpop.f32.mrf.mxu1 }
  0xef   :  { %v420_v6 = vadd.f32 %v847_v2, %v1163_v50  ;;  %v579_v7 = vmul.f32 %v1169_v60, %v512_v3 }
  0xf0   :  { %v849_v8 = vpop.f32.mrf.mxu0  ;;  %v926_v22 = vpop.f32.mrf.mxu1 }
  0xf1   :  { %v517_v10 = vadd.f32 %v921_v52, %v420_v6  ;;  %v595_v11 = vmax.f32 %v512_v3, %v579_v7  ;;  %v850_v12 = vadd.f32 %v849_v8, %v848_v4 }
  0xf2   :  { %v851_v13 = vpop.f32.mrf.mxu0  ;;  %v527_v31 = vpop.f32.mrf.mxu1 }
  0xf3   :  { %v779_v15 = vpack.c.bf16 %v595_v11, %v594_v9  ;;  %v423_v16 = vadd.f32 %v850_v12, %v1163_v50  ;;  %v580_v18 = vmul.f32 %v1169_v60, %v517_v10 }
  0xf4   :  { %v852_v17 = vpop.f32.mrf.mxu0  ;;  %v929_v39 = vpop.f32.mrf.mxu1 }
  0xf5   :  { %780 = vst [vmem:[%s1230_s4] sm:$0xff] %v779_v15   ;;  %v520_v19 = vadd.f32 %v922_v59, %v423_v16  ;;  %v853_v20 = vadd.f32 %v852_v17, %v851_v13  ;;  %v596_v26 = vmax.f32 %v517_v10, %v580_v18 }
  0xf6   :  { %v854_v21 = vpop.f32.mrf.mxu0  ;;  %v540_v48 = vpop.f32.mrf.mxu1 }
  0xf7   :  { %v581_v23 = vmul.f32 %v1169_v60, %v520_v19  ;;  %v428_v24 = vadd.f32 %v853_v20, %v1163_v50 }
  0xf8   :  { %v855_v25 = vpop.f32.mrf.mxu0  ;;  %v930_v57 = vpop.f32.mrf.mxu1 }
  0xf9   :  { %v597_v27 = vmax.f32 %v520_v19, %v581_v23  ;;  %v856_v28 = vadd.f32 %v855_v25, %v854_v21  ;;  %v525_v29 = vadd.f32 %v524_v14, %v428_v24 }
  0xfa   :  { %v857_v30 = vpop.f32.mrf.mxu0  ;;  %v543_v3 = vpop.f32.mrf.mxu1 }
  0xfb   :  { %v784_v32 = vpack.c.bf16 %v597_v27, %v596_v26  ;;  %v431_v33 = vadd.f32 %v856_v28, %v1163_v50  ;;  %v582_v35 = vmul.f32 %v1169_v60, %v525_v29 }
  0xfc   :  { %v858_v34 = vpop.f32.mrf.mxu0  ;;  %v933_v11 = vpop.f32.mrf.mxu1 }
  0xfd   :  { %816 = vst [vmem:[%s1230_s4 + $0x8] sm:$0xff] %v784_v32   ;;  %v859_v36 = vadd.f32 %v858_v34, %v857_v30  ;;  %v528_v37 = vadd.f32 %v527_v31, %v431_v33  ;;  %v598_v43 = vmax.f32 %v525_v29, %v582_v35 }
  0xfe   :  { %v860_v38 = vpop.f32.mrf.mxu0  ;;  %v556_v20 = vpop.f32.mrf.mxu1 }
  0xff   :  { %v436_v40 = vadd.f32 %v859_v36, %v1163_v50  ;;  %v583_v41 = vmul.f32 %v1169_v60, %v528_v37 }
 0x100   :  { %v861_v42 = vpop.f32.mrf.mxu0  ;;  %v934_v28 = vpop.f32.mrf.mxu1 }
 0x101   :  { %v533_v44 = vadd.f32 %v925_v5, %v436_v40  ;;  %v599_v45 = vmax.f32 %v528_v37, %v583_v41  ;;  %v862_v46 = vadd.f32 %v861_v42, %v860_v38 }
 0x102   :  { %v863_v47 = vpop.f32.mrf.mxu0  ;;  %v559_v37 = vpop.f32.mrf.mxu1 }
 0x103   :  { %v789_v49 = vpack.c.bf16 %v599_v45, %v598_v43  ;;  %v439_v51 = vadd.f32 %v862_v46, %v1163_v50  ;;  %v584_v53 = vmul.f32 %v1169_v60, %v533_v44 }
 0x104   :  { %v864_v52 = vpop.f32.mrf.mxu0 }
 0x105   :  { %817 = vst [vmem:[%s1230_s4 + $0x10] sm:$0xff] %v789_v49   ;;  %v536_v54 = vadd.f32 %v926_v22, %v439_v51  ;;  %v865_v55 = vadd.f32 %v864_v52, %v863_v47  ;;  %v600_v62 = vmax.f32 %v533_v44, %v584_v53 }
 0x106   :  { %v866_v56 = vpop.f32.mrf.mxu0 }
 0x107   :  { %v585_v58 = vmul.f32 %v1169_v60, %v536_v54  ;;  %v444_v59 = vadd.f32 %v865_v55, %v1163_v50 }
 0x108   :  { %v867_v61 = vpop.f32.mrf.mxu0 }
 0x109   :  { %v601_v63 = vmax.f32 %v536_v54, %v585_v58  ;;  %v868_v0 = vadd.f32 %v867_v61, %v866_v56  ;;  %v541_v1 = vadd.f32 %v540_v48, %v444_v59 }
 0x10a   :  { %v869_v2 = vpop.f32.mrf.mxu0 }
 0x10b   :  { %v794_v4 = vpack.c.bf16 %v601_v63, %v600_v62  ;;  %v447_v5 = vadd.f32 %v868_v0, %v1163_v50  ;;  %v586_v7 = vmul.f32 %v1169_v60, %v541_v1 }
 0x10c   :  { %v870_v6 = vpop.f32.mrf.mxu0 }
 0x10d   :  { %818 = vst [vmem:[%s1230_s4 + $0x18] sm:$0xff] %v794_v4   ;;  %v871_v8 = vadd.f32 %v870_v6, %v869_v2  ;;  %v544_v9 = vadd.f32 %v543_v3, %v447_v5  ;;  %v602_v15 = vmax.f32 %v541_v1, %v586_v7 }
 0x10e   :  { %v872_v10 = vpop.f32.mrf.mxu0 }
 0x10f   :  { %v452_v12 = vadd.f32 %v871_v8, %v1163_v50  ;;  %v587_v13 = vmul.f32 %v1169_v60, %v544_v9 }
 0x110   :  { %v873_v14 = vpop.f32.mrf.mxu0 }
 0x111   :  { %v549_v16 = vadd.f32 %v929_v39, %v452_v12  ;;  %v603_v17 = vmax.f32 %v544_v9, %v587_v13  ;;  %v874_v18 = vadd.f32 %v873_v14, %v872_v10 }
 0x112   :  { %v875_v19 = vpop.f32.mrf.mxu0 }
 0x113   :  { %v799_v21 = vpack.c.bf16 %v603_v17, %v602_v15  ;;  %v455_v22 = vadd.f32 %v874_v18, %v1163_v50  ;;  %v588_v24 = vmul.f32 %v1169_v60, %v549_v16 }
 0x114   :  { %v876_v23 = vpop.f32.mrf.mxu0 }
 0x115   :  { %819 = vst [vmem:[%s1230_s4 + $0x20] sm:$0xff] %v799_v21   ;;  %v552_v25 = vadd.f32 %v930_v57, %v455_v22  ;;  %v877_v26 = vadd.f32 %v876_v23, %v875_v19  ;;  %v604_v32 = vmax.f32 %v549_v16, %v588_v24 }
 0x116   :  { %v878_v27 = vpop.f32.mrf.mxu0 }
 0x117   :  { %v589_v29 = vmul.f32 %v1169_v60, %v552_v25  ;;  %v460_v30 = vadd.f32 %v877_v26, %v1163_v50 }
 0x118   :  { %v879_v31 = vpop.f32.mrf.mxu0 }
 0x119   :  { %v605_v33 = vmax.f32 %v552_v25, %v589_v29  ;;  %v880_v34 = vadd.f32 %v879_v31, %v878_v27  ;;  %v557_v35 = vadd.f32 %v556_v20, %v460_v30 }
 0x11a   :  { %v881_v36 = vpop.f32.mrf.mxu0 }
 0x11b   :  { %v804_v38 = vpack.c.bf16 %v605_v33, %v604_v32  ;;  %v463_v39 = vadd.f32 %v880_v34, %v1163_v50  ;;  %v590_v41 = vmul.f32 %v1169_v60, %v557_v35 }
 0x11c   :  { %v882_v40 = vpop.f32.mrf.mxu0 }
 0x11d   :  { %820 = vst [vmem:[%s1230_s4 + $0x28] sm:$0xff] %v804_v38   ;;  %v883_v42 = vadd.f32 %v882_v40, %v881_v36  ;;  %v560_v43 = vadd.f32 %v559_v37, %v463_v39  ;;  %v606_v48 = vmax.f32 %v557_v35, %v590_v41 }
 0x11e   :  { %v884_v44 = vpop.f32.mrf.mxu0 }
 0x11f   :  { %v468_v45 = vadd.f32 %v883_v42, %v1163_v50  ;;  %v591_v46 = vmul.f32 %v1169_v60, %v560_v43 }
 0x120   :  { %v885_v47 = vpop.f32.mrf.mxu0 }
 0x121   :  { %v565_v49 = vadd.f32 %v933_v11, %v468_v45  ;;  %v607_v51 = vmax.f32 %v560_v43, %v591_v46  ;;  %v886_v52 = vadd.f32 %v885_v47, %v884_v44 }
 0x123   :  { %v809_v53 = vpack.c.bf16 %v607_v51, %v606_v48  ;;  %v471_v54 = vadd.f32 %v886_v52, %v1163_v50  ;;  %v592_v55 = vmul.f32 %v1169_v60, %v565_v49 }
 0x125   :  { %821 = vst [vmem:[%s1230_s4 + $0x30] sm:$0xff] %v809_v53   ;;  %v568_v56 = vadd.f32 %v934_v28, %v471_v54  ;;  %v608_v58 = vmax.f32 %v565_v49, %v592_v55 }
 0x127   :  { %v593_v57 = vmul.f32 %v1169_v60, %v568_v56 }
 0x129   :  { %v609_v59 = vmax.f32 %v568_v56, %v593_v57 }
 0x12b   :  { %v814_v61 = vpack.c.bf16 %v609_v59, %v608_v58 }
 0x12d   :  { %822 = vst [vmem:[%s1230_s4 + $0x38] sm:$0xff] %v814_v61  }

// kernel: forward.26
= control target key start
LH: loop header
LB: loop body
LE: loop exit
PB: predicated region body
PF: predicated region fallthrough
CT: control target
= control target key end

     0   :  { %s1345_s1 = inlined_call_operand.vmem [shape: bf16[384,128], index: 1, kind: input, shape index: {}]   ;;  %s1346_s0 = inlined_call_operand.vmem [shape: bf16[128,384], index: 0, kind: input, shape index: {}]   ;;  %s1347_s2 = inlined_call_operand.vmem [shape: f32[1,128], index: 2, kind: input, shape index: {}]   ;;  %s1348_s4 = inlined_call_operand.vmem [shape: bf16[128,128], index: 4, kind: input, shape index: {}]   ;;  %s1349_s3 = inlined_call_operand.vmem [shape: f32[1,128], index: 3, kind: input, shape index: {}]   ;;  %s1350_s5 = inlined_call_operand.vmem [shape: bf16[128,128], index: 5, kind: output, shape index: {}]  }
   0x1   :  { %v1025_v0 = vld [vmem:[%s1345_s1 + $0x78] sm:$0xff]   ;;  %v1027_v2 = vld [vmem:[%s1345_s1 + $0x70] sm:$0xff]   ;;  %v1030_v5 = vld [vmem:[%s1345_s1 + $0x68] sm:$0xff]  }
   0x2   :  { %v1026_v1 = vld [vmem:[%s1345_s1 + $0x38] sm:$0xff]   ;;  %913 = vmatprep.subr.bf16.mxu0 %v1025_v0  ;;  %v1029_v4 = vld [vmem:[%s1345_s1 + $0x30] sm:$0xff]   ;;  %v1032_v7 = vld [vmem:[%s1345_s1 + $0x28] sm:$0xff]  }
   0x3   :  { %914 = vmatpush3.bf16.msra.mxu0 %v1026_v1  ;;  %v1028_v3 = vld [vmem:[%s1345_s1 + $0xb8] sm:$0xff]   ;;  %v1031_v6 = vld [vmem:[%s1345_s1 + $0xb0] sm:$0xff]   ;;  %v1033_v8 = vld [vmem:[%s1345_s1 + $0x60] sm:$0xff]  }
   0x4   :  { %915 = vmatprep.subr.bf16.mxu0 %v1027_v2  ;;  %993 = vmatprep.subr.bf16.mxu1 %v1028_v3  ;;  %v1034_v9 = vld [vmem:[%s1345_s1 + $0xa8] sm:$0xff]   ;;  %v1035_v10 = vld [vmem:[%s1345_s1 + $0x20] sm:$0xff]   ;;  %v1036_v11 = vld [vmem:[%s1345_s1 + $0x58] sm:$0xff]  }
   0x5   :  { %994 = vmatpush3.bf16.msra.mxu1 %v1028_v3  ;;  %v1037_v12 = vld [vmem:[%s1345_s1 + $0xa0] sm:$0xff]   ;;  %v1038_v13 = vld [vmem:[%s1345_s1 + $0x18] sm:$0xff]   ;;  %v1039_v15 = vld [vmem:[%s1345_s1 + $0x50] sm:$0xff]  }
   0x6   :  { %995 = vmatprep.subr.bf16.mxu1 %v1031_v6  ;;  %v1040_v14 = vld [vmem:[%s1345_s1 + $0x98] sm:$0xff]   ;;  %v1041_v16 = vld [vmem:[%s1345_s1 + $0x10] sm:$0xff]   ;;  %v1042_v18 = vld [vmem:[%s1345_s1 + $0x48] sm:$0xff]  }
   0x7   :  { %916 = vmatpush3.bf16.msra.mxu0 %v1029_v4  ;;  %v1043_v17 = vld [vmem:[%s1345_s1 + $0x90] sm:$0xff]   ;;  %v1044_v19 = vld [vmem:[%s1345_s1 + $0x8] sm:$0xff]   ;;  %v1045_v20 = vld [vmem:[%s1345_s1 + $0x40] sm:$0xff]  }
   0x8   :  { %917 = vmatprep.subr.bf16.mxu0 %v1030_v5  ;;  %v1046_v21 = vld [vmem:[%s1345_s1 + $0x88] sm:$0xff]   ;;  %v1050_v22 = vld [vmem:[%s1346_s0 + $0x4] ss:$12 sps:$4 sm:$0xff]   ;;  %v1057_v31 = vld [vmem:[%s1346_s0 + $0x34] ss:$12 sps:$4 sm:$0xff]  }
   0x9   :  { %996 = vmatpush3.bf16.msra.mxu1 %v1031_v6  ;;  %v1047_v23 = vld [vmem:[%s1345_s1] sm:$0xff]   ;;  %412 = vmatprep.mubr.bf16.mxu0 %v1050_v22  ;;  %v1052_v24 = vld [vmem:[%s1346_s0 + $0x8] ss:$12 sps:$4 sm:$0xff]   ;;  %v1061_v32 = vld [vmem:[%s1346_s0 + $0x50] ss:$12 sps:$4 sm:$0xff]  }
   0xa   :  { %997 = vmatprep.subr.bf16.mxu1 %v1034_v9  ;;  %v1051_v25 = vld [vmem:[%s1345_s1 + $0x80] sm:$0xff]   ;;  %1009 = vmatprep.mubr.bf16.mxu1 %v1052_v24  ;;  %v1054_v27 = vld [vmem:[%s1346_s0 + $0x1c] ss:$12 sps:$4 sm:$0xff]   ;;  %v1062_v35 = vld [vmem:[%s1346_s0 + $0x4c] ss:$12 sps:$4 sm:$0xff]  }
   0xb   :  { %918 = vmatpush3.bf16.msra.mxu0 %v1032_v7  ;;  %v1048_v26 = vld [vmem:[%s1346_s0] ss:$12 sps:$4 sm:$0xff]   ;;  %v1060_v29 = vld [vmem:[%s1346_s0 + $0x38] ss:$12 sps:$4 sm:$0xff]   ;;  %v1068_v33 = vld [vmem:[%s1346_s0 + $0x68] ss:$12 sps:$4 sm:$0xff]  }
   0xc   :  { %919 = vmatprep.subr.bf16.mxu0 %v1033_v8  ;;  %v1053_v28 = vld [vmem:[%s1346_s0 + $0x20] ss:$12 sps:$4 sm:$0xff]   ;;  %v1056_v30 = vld [vmem:[%s1346_s0 + $0x18] ss:$12 sps:$4 sm:$0xff]   ;;  %v1059_v34 = vld [vmem:[%s1346_s0 + $0x30] ss:$12 sps:$4 sm:$0xff]  }
   0xd   :  { %998 = vmatpush3.bf16.msra.mxu1 %v1034_v9  ;;  %v1069_v36 = vld [vmem:[%s1346_s0 + $0x80] ss:$12 sps:$4 sm:$0xff]   ;;  %v1076_v37 = vld [vmem:[%s1346_s0 + $0x98] ss:$12 sps:$4 sm:$0xff]   ;;  %v1064_v38 = vld [vmem:[%s1346_s0 + $0x48] ss:$12 sps:$4 sm:$0xff]  }
   0xe   :  { %999 = vmatprep.subr.bf16.mxu1 %v1037_v12  ;;  %v1065_v39 = vld [vmem:[%s1346_s0 + $0x64] ss:$12 sps:$4 sm:$0xff]   ;;  %v1067_v41 = vld [vmem:[%s1346_s0 + $0x60] ss:$12 sps:$4 sm:$0xff]   ;;  %v1070_v42 = vld [vmem:[%s1346_s0 + $0x7c] ss:$12 sps:$4 sm:$0xff]  }
   0xf   :  { %920 = vmatpush3.bf16.msra.mxu0 %v1035_v10  ;;  %v1077_v40 = vld [vmem:[%s1346_s0 + $0xb0] ss:$12 sps:$4 sm:$0xff]   ;;  %v1072_v43 = vld [vmem:[%s1346_s0 + $0x78] ss:$12 sps:$4 sm:$0xff]   ;;  %v1073_v44 = vld [vmem:[%s1346_s0 + $0x94] ss:$12 sps:$4 sm:$0xff]  }
  0x10   :  { %921 = vmatprep.subr.bf16.mxu0 %v1036_v11  ;;  %v1075_v45 = vld [vmem:[%s1346_s0 + $0x90] ss:$12 sps:$4 sm:$0xff]   ;;  %v1078_v46 = vld [vmem:[%s1346_s0 + $0xac] ss:$12 sps:$4 sm:$0xff]   ;;  %v1080_v47 = vld [vmem:[%s1346_s0 + $0xa8] ss:$12 sps:$4 sm:$0xff]  }
  0x11   :  { %1000 = vmatpush3.bf16.msra.mxu1 %v1037_v12  ;;  %v1258_v50 = vld [vmem:[%s1347_s2] ss:$0 sm:$0xff]  ;;  %v899_v5 = vld [vmem:[%s1348_s4 + $0x8] sm:$0xff]  }
  0x12   :  { %1001 = vmatprep.subr.bf16.mxu1 %v1040_v14  ;;  %v828_v51 = vld [vmem:[%s1348_s4] sm:$0xff]   ;;  %v833_v12 = vunpack.c.l.bf16 %v899_v5 }
  0x13   :  { %922 = vmatpush3.bf16.msra.mxu0 %v1038_v13  ;;  %v829_v57 = vunpack.c.l.bf16 %v828_v51  ;;  %v830_v2 = vunpack.c.h.bf16 %v828_v51  ;;  %v1268_v3 = vld [vmem:[%s1349_s3] ss:$0 sm:$0xff] }
  0x14   :  { %923 = vmatprep.subr.bf16.mxu0 %v1039_v15 }
  0x15   :  { %1002 = vmatpush3.bf16.msra.mxu1 %v1040_v14 }
  0x16   :  { %1003 = vmatprep.subr.bf16.mxu1 %v1043_v17 }
  0x17   :  { %924 = vmatpush3.bf16.msra.mxu0 %v1041_v16 }
  0x18   :  { %925 = vmatprep.subr.bf16.mxu0 %v1042_v18  ;;  %v834_v18 = vunpack.c.h.bf16 %v899_v5 }
  0x19   :  { %1004 = vmatpush3.bf16.msra.mxu1 %v1043_v17 }
  0x1a   :  { %1005 = vmatprep.subr.bf16.mxu1 %v1046_v21 }
  0x1b   :  { %926 = vmatpush3.bf16.msra.mxu0 %v1044_v19 }
  0x1c   :  { %927 = vmatprep.subr.bf16.mxu0 %v1045_v20 }
  0x1d   :  { %1006 = vmatpush3.bf16.msra.mxu1 %v1046_v21 }
  0x1e   :  { %1007 = vmatprep.subr.bf16.mxu1 %v1051_v25 }
  0x1f   :  { %928 = vmatpush3.bf16.msra.mxu0 %v1047_v23 }
  0x21   :  { %1008 = vmatpush3.bf16.msra.mxu1 %v1051_v25 }
  0x22   :  { %413 = vmatmul.mubr.bf16.vlgmr.msra.gmra.mxu0 %v1048_v26  ;;  %v900_v26 = vld [vmem:[%s1348_s4 + $0x10] sm:$0xff]  }
  0x23   :  { %420 = vmatprep.mubr.bf16.mxu0 %v1054_v27 }
  0x24   :  { %1010 = vmatmul.mubr.bf16.vlgmr.msra.gmra.mxu1 %v1053_v28 }
  0x25   :  { %1013 = vmatprep.mubr.bf16.mxu1 %v1060_v29 }
  0x2a   :  { %421 = vmatmul.mubr.bf16.gmra.mxu0 %v1056_v30 }
  0x2b   :  { %428 = vmatprep.mubr.bf16.mxu0 %v1057_v31 }
  0x2c   :  { %1014 = vmatmul.mubr.bf16.gmra.mxu1 %v1061_v32 }
  0x2d   :  { %1017 = vmatprep.mubr.bf16.mxu1 %v1068_v33 }
  0x32   :  { %429 = vmatmul.mubr.bf16.gmra.mxu0 %v1059_v34 }
  0x33   :  { %436 = vmatprep.mubr.bf16.mxu0 %v1062_v35  ;;  %v837_v35 = vunpack.c.l.bf16 %v900_v26 }
  0x34   :  { %1018 = vmatmul.mubr.bf16.gmra.mxu1 %v1069_v36 }
  0x35   :  { %1021 = vmatprep.mubr.bf16.mxu1 %v1076_v37 }
  0x3a   :  { %437 = vmatmul.mubr.bf16.gmra.mxu0 %v1064_v38 }
  0x3b   :  { %444 = vmatprep.mubr.bf16.mxu0 %v1065_v39 }
  0x3c   :  { %1022 = vmatmul.mubr.bf16.gmra.mxu1 %v1077_v40 }
  0x42   :  { %445 = vmatmul.mubr.bf16.gmra.mxu0 %v1067_v41 }
  0x43   :  { %452 = vmatprep.mubr.bf16.mxu0 %v1070_v42  ;;  %v838_v42 = vunpack.c.h.bf16 %v900_v26 }
  0x4a   :  { %453 = vmatmul.mubr.bf16.gmra.mxu0 %v1072_v43 }
  0x4b   :  { %460 = vmatprep.mubr.bf16.mxu0 %v1073_v44 }
  0x52   :  { %461 = vmatmul.mubr.bf16.gmra.mxu0 %v1075_v45 }
  0x53   :  { %468 = vmatprep.mubr.bf16.mxu0 %v1078_v46 }
  0x5a   :  { %469 = vmatmul.mubr.bf16.gmra.mxu0 %v1080_v47 }
  0xe2   :  { %v929_v48 = vpop.f32.mrf.mxu0 }
  0xe4   :  { %v930_v49 = vpop.f32.mrf.mxu0  ;;  %v1011_v53 = vpop.f32.mrf.mxu1 }
  0xe5   :  { %v931_v52 = vadd.f32 %v930_v49, %v929_v48  ;;  %v901_v48 = vld [vmem:[%s1348_s4 + $0x18] sm:$0xff]  }
  0xe6   :  { %v932_v54 = vpop.f32.mrf.mxu0  ;;  %v511_v56 = vpop.f32.mrf.mxu1 }
  0xe7   :  { %v415_v55 = vadd.f32 %v931_v52, %v1258_v50 }
  0xe8   :  { %v933_v58 = vpop.f32.mrf.mxu0  ;;  %v1012_v61 = vpop.f32.mrf.mxu1 }
  0xe9   :  { %v934_v59 = vadd.f32 %v933_v58, %v932_v54  ;;  %v512_v60 = vadd.f32 %v511_v56, %v415_v55 }
  0xea   :  { %v935_v62 = vpop.f32.mrf.mxu0  ;;  %v514_v1 = vpop.f32.mrf.mxu1 }
  0xeb   :  { %v606_v63 = vadd.f32 %v829_v57, %v512_v60  ;;  %v418_v0 = vadd.f32 %v934_v59, %v1258_v50  ;;  %v841_v57 = vunpack.c.l.bf16 %v901_v48 }
  0xec   :  { %v936_v4 = vpop.f32.mrf.mxu0  ;;  %v1015_v9 = vpop.f32.mrf.mxu1 }
  0xed   :  { %v937_v6 = vadd.f32 %v936_v4, %v935_v62  ;;  %v515_v7 = vadd.f32 %v514_v1, %v418_v0  ;;  %v629_v10 = vmul.f32 %v1268_v3, %v606_v63 }
  0xee   :  { %v938_v8 = vpop.f32.mrf.mxu0  ;;  %v527_v20 = vpop.f32.mrf.mxu1 }
  0xef   :  { %v423_v11 = vadd.f32 %v937_v6, %v1258_v50  ;;  %v607_v13 = vadd.f32 %v830_v2, %v515_v7  ;;  %v645_v21 = vmax.f32 %v606_v63, %v629_v10  ;;  %v842_v63 = vunpack.c.h.bf16 %v901_v48 }
  0xf0   :  { %v939_v14 = vpop.f32.mrf.mxu0  ;;  %v1016_v31 = vpop.f32.mrf.mxu1 }
  0xf1   :  { %v520_v15 = vadd.f32 %v1011_v53, %v423_v11  ;;  %v630_v16 = vmul.f32 %v1268_v3, %v607_v13  ;;  %v940_v17 = vadd.f32 %v939_v14, %v938_v8  ;;  %v902_v8 = vld [vmem:[%s1348_s4 + $0x20] sm:$0xff]  }
  0xf2   :  { %v941_v19 = vpop.f32.mrf.mxu0  ;;  %v530_v41 = vpop.f32.mrf.mxu1 }
  0xf3   :  { %v608_v22 = vadd.f32 %v833_v12, %v520_v15  ;;  %v646_v23 = vmax.f32 %v607_v13, %v630_v16  ;;  %v426_v24 = vadd.f32 %v940_v17, %v1258_v50  ;;  %v845_v17 = vunpack.c.l.bf16 %v902_v8 }
  0xf4   :  { %v942_v25 = vpop.f32.mrf.mxu0  ;;  %v1019_v54 = vpop.f32.mrf.mxu1 }
  0xf5   :  { %v862_v27 = vpack.c.bf16 %v646_v23, %v645_v21  ;;  %v523_v28 = vadd.f32 %v1012_v61, %v426_v24  ;;  %v943_v29 = vadd.f32 %v942_v25, %v941_v19  ;;  %v631_v32 = vmul.f32 %v1268_v3, %v608_v22 }
  0xf6   :  { %v944_v30 = vpop.f32.mrf.mxu0  ;;  %v543_v1 = vpop.f32.mrf.mxu1  ;;  %v846_v24 = vunpack.c.h.bf16 %v902_v8 }
  0xf7   :  { %863 = vst [vmem:[%s1350_s5] sm:$0xff] %v862_v27   ;;  %v609_v33 = vadd.f32 %v834_v18, %v523_v28  ;;  %v431_v34 = vadd.f32 %v943_v29, %v1258_v50  ;;  %v647_v43 = vmax.f32 %v608_v22, %v631_v32 }
  0xf8   :  { %v945_v36 = vpop.f32.mrf.mxu0  ;;  %v1020_v13 = vpop.f32.mrf.mxu1 }
  0xf9   :  { %v632_v37 = vmul.f32 %v1268_v3, %v609_v33  ;;  %v946_v38 = vadd.f32 %v945_v36, %v944_v30  ;;  %v528_v39 = vadd.f32 %v527_v20, %v431_v34  ;;  %v903_v30 = vld [vmem:[%s1348_s4 + $0x28] sm:$0xff]  }
  0xfa   :  { %v947_v40 = vpop.f32.mrf.mxu0  ;;  %v546_v23 = vpop.f32.mrf.mxu1 }
  0xfb   :  { %v648_v44 = vmax.f32 %v609_v33, %v632_v37  ;;  %v610_v45 = vadd.f32 %v837_v35, %v528_v39  ;;  %v434_v46 = vadd.f32 %v946_v38, %v1258_v50  ;;  %v849_v38 = vunpack.c.l.bf16 %v903_v30 }
  0xfc   :  { %v948_v47 = vpop.f32.mrf.mxu0  ;;  %v1023_v35 = vpop.f32.mrf.mxu1 }
  0xfd   :  { %v867_v49 = vpack.c.bf16 %v648_v44, %v647_v43  ;;  %v949_v51 = vadd.f32 %v948_v47, %v947_v40  ;;  %v531_v52 = vadd.f32 %v530_v41, %v434_v46  ;;  %v633_v55 = vmul.f32 %v1268_v3, %v610_v45 }
  0xfe   :  { %v950_v53 = vpop.f32.mrf.mxu0  ;;  %v850_v44 = vunpack.c.h.bf16 %v903_v30  ;;  %v559_v46 = vpop.f32.mrf.mxu1 }
  0xff   :  { %906 = vst [vmem:[%s1350_s5 + $0x8] sm:$0xff] %v867_v49   ;;  %v439_v56 = vadd.f32 %v949_v51, %v1258_v50  ;;  %v611_v58 = vadd.f32 %v838_v42, %v531_v52  ;;  %v649_v2 = vmax.f32 %v610_v45, %v633_v55 }
 0x100   :  { %v951_v59 = vpop.f32.mrf.mxu0 }
 0x101   :  { %v536_v60 = vadd.f32 %v1015_v9, %v439_v56  ;;  %v634_v61 = vmul.f32 %v1268_v3, %v611_v58  ;;  %v952_v62 = vadd.f32 %v951_v59, %v950_v53  ;;  %v904_v53 = vld [vmem:[%s1348_s4 + $0x30] sm:$0xff]  }
 0x102   :  { %v953_v0 = vpop.f32.mrf.mxu0 }
 0x103   :  { %v612_v4 = vadd.f32 %v841_v57, %v536_v60  ;;  %v650_v5 = vmax.f32 %v611_v58, %v634_v61  ;;  %v442_v6 = vadd.f32 %v952_v62, %v1258_v50  ;;  %v1024_v58 = vpop.f32.mrf.mxu1  ;;  %v853_v62 = vunpack.c.l.bf16 %v904_v53 }
 0x104   :  { %v954_v7 = vpop.f32.mrf.mxu0 }
 0x105   :  { %v872_v10 = vpack.c.bf16 %v650_v5, %v649_v2  ;;  %v539_v11 = vadd.f32 %v1016_v31, %v442_v6  ;;  %v955_v12 = vadd.f32 %v954_v7, %v953_v0  ;;  %v635_v14 = vmul.f32 %v1268_v3, %v612_v4  ;;  %v562_v5 = vpop.f32.mrf.mxu1 }
 0x106   :  { %v956_v9 = vpop.f32.mrf.mxu0  ;;  %v854_v6 = vunpack.c.h.bf16 %v904_v53 }
 0x107   :  { %907 = vst [vmem:[%s1350_s5 + $0x10] sm:$0xff] %v872_v10   ;;  %v613_v15 = vadd.f32 %v842_v63, %v539_v11  ;;  %v447_v16 = vadd.f32 %v955_v12, %v1258_v50  ;;  %v651_v25 = vmax.f32 %v612_v4, %v635_v14 }
 0x108   :  { %v957_v18 = vpop.f32.mrf.mxu0 }
 0x109   :  { %v636_v19 = vmul.f32 %v1268_v3, %v613_v15  ;;  %v958_v20 = vadd.f32 %v957_v18, %v956_v9  ;;  %v544_v21 = vadd.f32 %v543_v1, %v447_v16  ;;  %v905_v9 = vld [vmem:[%s1348_s4 + $0x38] sm:$0xff]  }
 0x10a   :  { %v959_v22 = vpop.f32.mrf.mxu0 }
 0x10b   :  { %v652_v26 = vmax.f32 %v613_v15, %v636_v19  ;;  %v614_v27 = vadd.f32 %v845_v17, %v544_v21  ;;  %v450_v28 = vadd.f32 %v958_v20, %v1258_v50  ;;  %v857_v19 = vunpack.c.l.bf16 %v905_v9 }
 0x10c   :  { %v960_v29 = vpop.f32.mrf.mxu0 }
 0x10d   :  { %v877_v31 = vpack.c.bf16 %v652_v26, %v651_v25  ;;  %v961_v32 = vadd.f32 %v960_v29, %v959_v22  ;;  %v547_v33 = vadd.f32 %v546_v23, %v450_v28  ;;  %v637_v36 = vmul.f32 %v1268_v3, %v614_v27 }
 0x10e   :  { %v962_v34 = vpop.f32.mrf.mxu0  ;;  %v858_v25 = vunpack.c.h.bf16 %v905_v9 }
 0x10f   :  { %908 = vst [vmem:[%s1350_s5 + $0x18] sm:$0xff] %v877_v31   ;;  %v455_v37 = vadd.f32 %v961_v32, %v1258_v50  ;;  %v615_v39 = vadd.f32 %v846_v24, %v547_v33  ;;  %v653_v47 = vmax.f32 %v614_v27, %v637_v36 }
 0x110   :  { %v963_v40 = vpop.f32.mrf.mxu0 }
 0x111   :  { %v552_v41 = vadd.f32 %v1019_v54, %v455_v37  ;;  %v638_v42 = vmul.f32 %v1268_v3, %v615_v39  ;;  %v964_v43 = vadd.f32 %v963_v40, %v962_v34 }
 0x112   :  { %v965_v45 = vpop.f32.mrf.mxu0 }
 0x113   :  { %v616_v48 = vadd.f32 %v849_v38, %v552_v41  ;;  %v654_v49 = vmax.f32 %v615_v39, %v638_v42  ;;  %v458_v51 = vadd.f32 %v964_v43, %v1258_v50 }
 0x114   :  { %v966_v52 = vpop.f32.mrf.mxu0 }
 0x115   :  { %v882_v55 = vpack.c.bf16 %v654_v49, %v653_v47  ;;  %v555_v56 = vadd.f32 %v1020_v13, %v458_v51  ;;  %v967_v57 = vadd.f32 %v966_v52, %v965_v45  ;;  %v639_v59 = vmul.f32 %v1268_v3, %v616_v48 }
 0x116   :  { %v968_v54 = vpop.f32.mrf.mxu0 }
 0x117   :  { %909 = vst [vmem:[%s1350_s5 + $0x20] sm:$0xff] %v882_v55   ;;  %v617_v60 = vadd.f32 %v850_v44, %v555_v56  ;;  %v463_v61 = vadd.f32 %v967_v57, %v1258_v50  ;;  %v655_v7 = vmax.f32 %v616_v48, %v639_v59 }
 0x118   :  { %v969_v63 = vpop.f32.mrf.mxu0 }
 0x119   :  { %v640_v0 = vmul.f32 %v1268_v3, %v617_v60  ;;  %v970_v1 = vadd.f32 %v969_v63, %v968_v54  ;;  %v560_v2 = vadd.f32 %v559_v46, %v463_v61 }
 0x11a   :  { %v971_v4 = vpop.f32.mrf.mxu0 }
 0x11b   :  { %v656_v8 = vmax.f32 %v617_v60, %v640_v0  ;;  %v618_v10 = vadd.f32 %v853_v62, %v560_v2  ;;  %v466_v11 = vadd.f32 %v970_v1, %v1258_v50 }
 0x11c   :  { %v972_v12 = vpop.f32.mrf.mxu0 }
 0x11d   :  { %v887_v13 = vpack.c.bf16 %v656_v8, %v655_v7  ;;  %v973_v14 = vadd.f32 %v972_v12, %v971_v4  ;;  %v563_v15 = vadd.f32 %v562_v5, %v466_v11  ;;  %v641_v17 = vmul.f32 %v1268_v3, %v618_v10 }
 0x11e   :  { %v974_v16 = vpop.f32.mrf.mxu0 }
 0x11f   :  { %910 = vst [vmem:[%s1350_s5 + $0x28] sm:$0xff] %v887_v13   ;;  %v471_v18 = vadd.f32 %v973_v14, %v1258_v50  ;;  %v619_v20 = vadd.f32 %v854_v6, %v563_v15  ;;  %v657_v26 = vmax.f32 %v618_v10, %v641_v17 }
 0x120   :  { %v975_v21 = vpop.f32.mrf.mxu0 }
 0x121   :  { %v568_v22 = vadd.f32 %v1023_v35, %v471_v18  ;;  %v642_v23 = vmul.f32 %v1268_v3, %v619_v20  ;;  %v976_v24 = vadd.f32 %v975_v21, %v974_v16 }
 0x123   :  { %v620_v27 = vadd.f32 %v857_v19, %v568_v22  ;;  %v658_v28 = vmax.f32 %v619_v20, %v642_v23  ;;  %v474_v29 = vadd.f32 %v976_v24, %v1258_v50 }
 0x125   :  { %v892_v30 = vpack.c.bf16 %v658_v28, %v657_v26  ;;  %v571_v31 = vadd.f32 %v1024_v58, %v474_v29  ;;  %v643_v32 = vmul.f32 %v1268_v3, %v620_v27 }
 0x127   :  { %911 = vst [vmem:[%s1350_s5 + $0x30] sm:$0xff] %v892_v30   ;;  %v621_v33 = vadd.f32 %v858_v25, %v571_v31  ;;  %v659_v35 = vmax.f32 %v620_v27, %v643_v32 }
 0x129   :  { %v644_v34 = vmul.f32 %v1268_v3, %v621_v33 }
 0x12b   :  { %v660_v36 = vmax.f32 %v621_v33, %v644_v34 }
 0x12d   :  { %v897_v37 = vpack.c.bf16 %v660_v36, %v659_v35 }
 0x12f   :  { %912 = vst [vmem:[%s1350_s5 + $0x38] sm:$0xff] %v897_v37  }

// kernel: forward.29
= control target key start
LH: loop header
LB: loop body
LE: loop exit
PB: predicated region body
PF: predicated region fallthrough
CT: control target
= control target key end

     0   :  { %s662_s1 = inlined_call_operand.vmem [shape: bf16[384,128], index: 1, kind: input, shape index: {}]   ;;  %s663_s0 = inlined_call_operand.vmem [shape: bf16[32,384], index: 0, kind: input, shape index: {}]   ;;  %s664_s2 = inlined_call_operand.vmem [shape: f32[1,128], index: 2, kind: input, shape index: {}]   ;;  %s665_s3 = inlined_call_operand.vmem [shape: f32[1,128], index: 3, kind: input, shape index: {}]   ;;  %s666_s4 = inlined_call_operand.vmem [shape: bf16[32,128], index: 4, kind: output, shape index: {}]  }
   0x1   :  { %v503_v0 = vld [vmem:[%s662_s1 + $0x78] sm:$0xff]   ;;  %v505_v2 = vld [vmem:[%s662_s1 + $0x70] sm:$0xff]   ;;  %v508_v5 = vld [vmem:[%s662_s1 + $0x68] sm:$0xff]  }
   0x2   :  { %v504_v1 = vld [vmem:[%s662_s1 + $0x38] sm:$0xff]   ;;  %445 = vmatprep.subr.bf16.mxu0 %v503_v0  ;;  %v507_v4 = vld [vmem:[%s662_s1 + $0x30] sm:$0xff]   ;;  %v510_v7 = vld [vmem:[%s662_s1 + $0x28] sm:$0xff]  }
   0x3   :  { %446 = vmatpush3.bf16.msra.mxu0 %v504_v1  ;;  %v506_v3 = vld [vmem:[%s662_s1 + $0xb8] sm:$0xff]   ;;  %v509_v6 = vld [vmem:[%s662_s1 + $0xb0] sm:$0xff]   ;;  %v511_v8 = vld [vmem:[%s662_s1 + $0x60] sm:$0xff]  }
   0x4   :  { %447 = vmatprep.subr.bf16.mxu0 %v505_v2  ;;  %483 = vmatprep.subr.bf16.mxu1 %v506_v3  ;;  %v512_v9 = vld [vmem:[%s662_s1 + $0xa8] sm:$0xff]   ;;  %v513_v10 = vld [vmem:[%s662_s1 + $0x20] sm:$0xff]   ;;  %v514_v11 = vld [vmem:[%s662_s1 + $0x58] sm:$0xff]  }
   0x5   :  { %484 = vmatpush3.bf16.msra.mxu1 %v506_v3  ;;  %v515_v12 = vld [vmem:[%s662_s1 + $0xa0] sm:$0xff]   ;;  %v516_v13 = vld [vmem:[%s662_s1 + $0x18] sm:$0xff]   ;;  %v517_v15 = vld [vmem:[%s662_s1 + $0x50] sm:$0xff]  }
   0x6   :  { %485 = vmatprep.subr.bf16.mxu1 %v509_v6  ;;  %v518_v14 = vld [vmem:[%s662_s1 + $0x98] sm:$0xff]   ;;  %v519_v16 = vld [vmem:[%s662_s1 + $0x10] sm:$0xff]   ;;  %v520_v18 = vld [vmem:[%s662_s1 + $0x48] sm:$0xff]  }
   0x7   :  { %448 = vmatpush3.bf16.msra.mxu0 %v507_v4  ;;  %v521_v17 = vld [vmem:[%s662_s1 + $0x90] sm:$0xff]   ;;  %v522_v19 = vld [vmem:[%s662_s1 + $0x8] sm:$0xff]   ;;  %v523_v20 = vld [vmem:[%s662_s1 + $0x40] sm:$0xff]  }
   0x8   :  { %449 = vmatprep.subr.bf16.mxu0 %v508_v5  ;;  %v524_v21 = vld [vmem:[%s662_s1 + $0x88] sm:$0xff]   ;;  %v528_v22 = vld [vmem:[%s663_s0 + $0x4] ss:$12 sps:$4 sm:$0xff]   ;;  %v394_v32 = vld [vmem:[%s664_s2] ss:$0 sm:$0xff] }
   0x9   :  { %486 = vmatpush3.bf16.msra.mxu1 %v509_v6  ;;  %v525_v23 = vld [vmem:[%s662_s1] sm:$0xff]   ;;  %289 = vmatprep.mubr.bf16.mxu0 %v528_v22  ;;  %v530_v24 = vld [vmem:[%s663_s0 + $0x8] ss:$12 sps:$4 sm:$0xff]  }
   0xa   :  { %487 = vmatprep.subr.bf16.mxu1 %v512_v9  ;;  %v529_v25 = vld [vmem:[%s662_s1 + $0x80] sm:$0xff]   ;;  %499 = vmatprep.mubr.bf16.mxu1 %v530_v24  ;;  %v532_v27 = vld [vmem:[%s663_s0 + $0x1c] ss:$12 sps:$4 sm:$0xff]  }
   0xb   :  { %450 = vmatpush3.bf16.msra.mxu0 %v510_v7  ;;  %v526_v26 = vld [vmem:[%s663_s0] ss:$12 sps:$4 sm:$0xff]   ;;  %v534_v29 = vld [vmem:[%s663_s0 + $0x18] ss:$12 sps:$4 sm:$0xff]  }
   0xc   :  { %451 = vmatprep.subr.bf16.mxu0 %v511_v8  ;;  %v531_v28 = vld [vmem:[%s663_s0 + $0x20] ss:$12 sps:$4 sm:$0xff]  }
   0xd   :  { %488 = vmatpush3.bf16.msra.mxu1 %v512_v9  ;;  %v425_v42 = vld [vmem:[%s665_s3] ss:$0 sm:$0xff] }
   0xe   :  { %489 = vmatprep.subr.bf16.mxu1 %v515_v12 }
   0xf   :  { %452 = vmatpush3.bf16.msra.mxu0 %v513_v10 }
  0x10   :  { %453 = vmatprep.subr.bf16.mxu0 %v514_v11 }
  0x11   :  { %490 = vmatpush3.bf16.msra.mxu1 %v515_v12 }
  0x12   :  { %491 = vmatprep.subr.bf16.mxu1 %v518_v14 }
  0x13   :  { %454 = vmatpush3.bf16.msra.mxu0 %v516_v13 }
  0x14   :  { %455 = vmatprep.subr.bf16.mxu0 %v517_v15 }
  0x15   :  { %492 = vmatpush3.bf16.msra.mxu1 %v518_v14 }
  0x16   :  { %493 = vmatprep.subr.bf16.mxu1 %v521_v17 }
  0x17   :  { %456 = vmatpush3.bf16.msra.mxu0 %v519_v16 }
  0x18   :  { %457 = vmatprep.subr.bf16.mxu0 %v520_v18 }
  0x19   :  { %494 = vmatpush3.bf16.msra.mxu1 %v521_v17 }
  0x1a   :  { %495 = vmatprep.subr.bf16.mxu1 %v524_v21 }
  0x1b   :  { %458 = vmatpush3.bf16.msra.mxu0 %v522_v19 }
  0x1c   :  { %459 = vmatprep.subr.bf16.mxu0 %v523_v20 }
  0x1d   :  { %496 = vmatpush3.bf16.msra.mxu1 %v524_v21 }
  0x1e   :  { %497 = vmatprep.subr.bf16.mxu1 %v529_v25 }
  0x1f   :  { %460 = vmatpush3.bf16.msra.mxu0 %v525_v23 }
  0x21   :  { %498 = vmatpush3.bf16.msra.mxu1 %v529_v25 }
  0x22   :  { %290 = vmatmul.mubr.bf16.vlgmr.msra.gmra.mxu0 %v526_v26 }
  0x23   :  { %297 = vmatprep.mubr.bf16.mxu0 %v532_v27 }
  0x24   :  { %500 = vmatmul.mubr.bf16.vlgmr.msra.gmra.mxu1 %v531_v28 }
  0x2a   :  { %298 = vmatmul.mubr.bf16.gmra.mxu0 %v534_v29 }
  0xe2   :  { %v461_v30 = vpop.f32.mrf.mxu0 }
  0xe4   :  { %v462_v31 = vpop.f32.mrf.mxu0  ;;  %v501_v34 = vpop.f32.mrf.mxu1 }
  0xe5   :  { %v463_v33 = vadd.f32 %v462_v31, %v461_v30 }
  0xe6   :  { %v464_v35 = vpop.f32.mrf.mxu0  ;;  %v340_v37 = vpop.f32.mrf.mxu1 }
  0xe7   :  { %v292_v36 = vadd.f32 %v463_v33, %v394_v32 }
  0xe8   :  { %v465_v38 = vpop.f32.mrf.mxu0  ;;  %v502_v41 = vpop.f32.mrf.mxu1 }
  0xe9   :  { %v466_v39 = vadd.f32 %v465_v38, %v464_v35  ;;  %v341_v40 = vadd.f32 %v340_v37, %v292_v36 }
  0xea   :  { %v467_v43 = vpop.f32.mrf.mxu0  ;;  %v343_v45 = vpop.f32.mrf.mxu1 }
  0xeb   :  { %v295_v44 = vadd.f32 %v466_v39, %v394_v32  ;;  %v362_v47 = vmul.f32 %v425_v42, %v341_v40 }
  0xec   :  { %v468_v46 = vpop.f32.mrf.mxu0 }
  0xed   :  { %v469_v48 = vadd.f32 %v468_v46, %v467_v43  ;;  %v344_v49 = vadd.f32 %v343_v45, %v295_v44  ;;  %v366_v54 = vmax.f32 %v341_v40, %v362_v47 }
  0xee   :  { %v470_v50 = vpop.f32.mrf.mxu0 }
  0xef   :  { %v300_v51 = vadd.f32 %v469_v48, %v394_v32  ;;  %v363_v52 = vmul.f32 %v425_v42, %v344_v49 }
  0xf0   :  { %v471_v53 = vpop.f32.mrf.mxu0 }
  0xf1   :  { %v349_v55 = vadd.f32 %v501_v34, %v300_v51  ;;  %v367_v56 = vmax.f32 %v344_v49, %v363_v52  ;;  %v472_v57 = vadd.f32 %v471_v53, %v470_v50 }
  0xf3   :  { %v437_v58 = vpack.c.bf16 %v367_v56, %v366_v54  ;;  %v303_v59 = vadd.f32 %v472_v57, %v394_v32  ;;  %v364_v60 = vmul.f32 %v425_v42, %v349_v55 }
  0xf5   :  { %438 = vst [vmem:[%s666_s4] sm:$0xff] %v437_v58   ;;  %v352_v61 = vadd.f32 %v502_v41, %v303_v59  ;;  %v368_v63 = vmax.f32 %v349_v55, %v364_v60 }
  0xf7   :  { %v365_v62 = vmul.f32 %v425_v42, %v352_v61 }
  0xf9   :  { %v369_v0 = vmax.f32 %v352_v61, %v365_v62 }
  0xfb   :  { %v442_v1 = vpack.c.bf16 %v369_v0, %v368_v63 }
  0xfd   :  { %444 = vst [vmem:[%s666_s4 + $0x8] sm:$0xff] %v442_v1  }

// kernel: forward.31
= control target key start
LH: loop header
LB: loop body
LE: loop exit
PB: predicated region body
PF: predicated region fallthrough
CT: control target
= control target key end

     0   :  { %s993_s1 = inlined_call_operand.vmem [shape: bf16[640,128], index: 1, kind: input, shape index: {}]   ;;  %s994_s0 = inlined_call_operand.vmem [shape: bf16[32,640], index: 0, kind: input, shape index: {}]   ;;  %s995_s2 = inlined_call_operand.vmem [shape: f32[1,128], index: 2, kind: input, shape index: {}]   ;;  %s996_s3 = inlined_call_operand.vmem [shape: f32[1,128], index: 3, kind: input, shape index: {}]   ;;  %s997_s4 = inlined_call_operand.vmem [shape: bf16[32,128], index: 4, kind: output, shape index: {}]  }
   0x1   :  { %v752_v0 = vld [vmem:[%s993_s1 + $0x78] sm:$0xff]   ;;  %v756_v4 = vld [vmem:[%s993_s1 + $0x70] sm:$0xff]   ;;  %v760_v8 = vld [vmem:[%s993_s1 + $0x68] sm:$0xff]  }
   0x2   :  { %v753_v1 = vld [vmem:[%s993_s1 + $0x38] sm:$0xff]   ;;  %666 = vmatprep.subr.bf16.mxu0 %v752_v0  ;;  %v757_v5 = vld [vmem:[%s993_s1 + $0x30] sm:$0xff]   ;;  %v761_v9 = vld [vmem:[%s993_s1 + $0x28] sm:$0xff]  }
   0x3   :  { %v754_v2 = vld [vmem:[%s993_s1 + $0xf8] sm:$0xff]   ;;  %667 = vmatpush3.bf16.msra.mxu0 %v753_v1  ;;  %v758_v6 = vld [vmem:[%s993_s1 + $0xf0] sm:$0xff]   ;;  %v762_v10 = vld [vmem:[%s993_s1 + $0xe8] sm:$0xff]  }
   0x4   :  { %v755_v3 = vld [vmem:[%s993_s1 + $0xb8] sm:$0xff]   ;;  %694 = vmatprep.subr.bf16.mxu1 %v754_v2  ;;  %668 = vmatprep.subr.bf16.mxu0 %v756_v4  ;;  %v759_v7 = vld [vmem:[%s993_s1 + $0xb0] sm:$0xff]   ;;  %v763_v11 = vld [vmem:[%s993_s1 + $0xa8] sm:$0xff]  }
   0x5   :  { %695 = vmatpush3.bf16.msra.mxu1 %v755_v3  ;;  %v764_v12 = vld [vmem:[%s993_s1 + $0x60] sm:$0xff]   ;;  %v768_v16 = vld [vmem:[%s993_s1 + $0x58] sm:$0xff]   ;;  %v772_v20 = vld [vmem:[%s993_s1 + $0x50] sm:$0xff]  }
   0x6   :  { %696 = vmatprep.subr.bf16.mxu1 %v758_v6  ;;  %v765_v13 = vld [vmem:[%s993_s1 + $0x20] sm:$0xff]   ;;  %v769_v17 = vld [vmem:[%s993_s1 + $0x18] sm:$0xff]   ;;  %v773_v21 = vld [vmem:[%s993_s1 + $0x10] sm:$0xff]  }
   0x7   :  { %669 = vmatpush3.bf16.msra.mxu0 %v757_v5  ;;  %v766_v14 = vld [vmem:[%s993_s1 + $0xe0] sm:$0xff]   ;;  %v770_v18 = vld [vmem:[%s993_s1 + $0xd8] sm:$0xff]   ;;  %v774_v22 = vld [vmem:[%s993_s1 + $0xd0] sm:$0xff]  }
   0x8   :  { %670 = vmatprep.subr.bf16.mxu0 %v760_v8  ;;  %v767_v15 = vld [vmem:[%s993_s1 + $0xa0] sm:$0xff]   ;;  %v771_v19 = vld [vmem:[%s993_s1 + $0x98] sm:$0xff]   ;;  %v775_v23 = vld [vmem:[%s993_s1 + $0x90] sm:$0xff]  }
   0x9   :  { %697 = vmatpush3.bf16.msra.mxu1 %v759_v7  ;;  %v776_v24 = vld [vmem:[%s993_s1 + $0x48] sm:$0xff]   ;;  %v780_v28 = vld [vmem:[%s993_s1 + $0x40] sm:$0xff]   ;;  %v787_v34 = vld [vmem:[%s993_s1 + $0x138] sm:$0xff]  }
   0xa   :  { %698 = vmatprep.subr.bf16.mxu1 %v762_v10  ;;  %v777_v25 = vld [vmem:[%s993_s1 + $0x8] sm:$0xff]   ;;  %v781_v29 = vld [vmem:[%s993_s1] sm:$0xff]   ;;  %v791_v37 = vld [vmem:[%s993_s1 + $0x130] sm:$0xff]  }
   0xb   :  { %671 = vmatpush3.bf16.msra.mxu0 %v761_v9  ;;  %v778_v26 = vld [vmem:[%s993_s1 + $0xc8] sm:$0xff]   ;;  %v782_v30 = vld [vmem:[%s993_s1 + $0xc0] sm:$0xff]   ;;  %v794_v44 = vld [vmem:[%s993_s1 + $0x118] sm:$0xff]  }
   0xc   :  { %672 = vmatprep.subr.bf16.mxu0 %v764_v12  ;;  %v779_v27 = vld [vmem:[%s993_s1 + $0x88] sm:$0xff]   ;;  %v783_v31 = vld [vmem:[%s994_s0] ss:$20 sps:$4 sm:$0xff]   ;;  %v785_v32 = vld [vmem:[%s994_s0 + $0x4] ss:$20 sps:$4 sm:$0xff]  }
   0xd   :  { %699 = vmatpush3.bf16.msra.mxu1 %v763_v11  ;;  %v786_v33 = vld [vmem:[%s993_s1 + $0x80] sm:$0xff]   ;;  %441 = vmatprep.mubr.bf16.mxu0 %v785_v32  ;;  %v788_v35 = vld [vmem:[%s994_s0 + $0x8] ss:$20 sps:$4 sm:$0xff]   ;;  %v801_v46 = vld [vmem:[%s993_s1 + $0x110] sm:$0xff]  }
   0xe   :  { %700 = vmatprep.subr.bf16.mxu1 %v766_v14  ;;  %v790_v36 = vld [vmem:[%s994_s0 + $0xc] ss:$20 sps:$4 sm:$0xff]   ;;  %v797_v41 = vld [vmem:[%s994_s0 + $0x28] ss:$20 sps:$4 sm:$0xff]   ;;  %v800_v43 = vld [vmem:[%s994_s0 + $0x30] ss:$20 sps:$4 sm:$0xff]  }
   0xf   :  { %673 = vmatpush3.bf16.msra.mxu0 %v765_v13  ;;  %490 = vmatprep.mubr.bf16.mxu1 %v790_v36  ;;  %v792_v38 = vld [vmem:[%s993_s1 + $0x128] sm:$0xff]   ;;  %v793_v39 = vld [vmem:[%s993_s1 + $0x120] sm:$0xff]  }
  0x10   :  { %674 = vmatprep.subr.bf16.mxu0 %v768_v16  ;;  %v795_v40 = vld [vmem:[%s994_s0 + $0x2c] ss:$20 sps:$4 sm:$0xff]   ;;  %v798_v42 = vld [vmem:[%s994_s0 + $0x34] ss:$20 sps:$4 sm:$0xff]   ;;  %v804_v45 = vld [vmem:[%s994_s0 + $0x10] ss:$20 sps:$4 sm:$0xff]  }
  0x11   :  { %701 = vmatpush3.bf16.msra.mxu1 %v767_v15  ;;  %v802_v47 = vld [vmem:[%s993_s1 + $0x108] sm:$0xff]   ;;  %v803_v48 = vld [vmem:[%s993_s1 + $0x100] sm:$0xff]  }
  0x12   :  { %702 = vmatprep.subr.bf16.mxu1 %v770_v18  ;;  %v805_v49 = vld [vmem:[%s994_s0 + $0x38] ss:$20 sps:$4 sm:$0xff]   ;;  %v595_v3 = vld [vmem:[%s995_s2] ss:$0 sm:$0xff] }
  0x13   :  { %675 = vmatpush3.bf16.msra.mxu0 %v769_v17 }
  0x14   :  { %676 = vmatprep.subr.bf16.mxu0 %v772_v20 }
  0x15   :  { %703 = vmatpush3.bf16.msra.mxu1 %v771_v19  ;;  %v646_v19 = vld [vmem:[%s996_s3] ss:$0 sm:$0xff] }
  0x16   :  { %704 = vmatprep.subr.bf16.mxu1 %v774_v22 }
  0x17   :  { %677 = vmatpush3.bf16.msra.mxu0 %v773_v21 }
  0x18   :  { %678 = vmatprep.subr.bf16.mxu0 %v776_v24 }
  0x19   :  { %705 = vmatpush3.bf16.msra.mxu1 %v775_v23 }
  0x1a   :  { %706 = vmatprep.subr.bf16.mxu1 %v778_v26 }
  0x1b   :  { %679 = vmatpush3.bf16.msra.mxu0 %v777_v25 }
  0x1c   :  { %680 = vmatprep.subr.bf16.mxu0 %v780_v28 }
  0x1d   :  { %707 = vmatpush3.bf16.msra.mxu1 %v779_v27 }
  0x1e   :  { %708 = vmatprep.subr.bf16.mxu1 %v782_v30 }
  0x1f   :  { %681 = vmatpush3.bf16.msra.mxu0 %v781_v29 }
  0x20   :  { %732 = vmatprep.subr.bf16.mxu0 %v787_v34 }
  0x21   :  { %709 = vmatpush3.bf16.msra.mxu1 %v786_v33 }
  0x22   :  { %442 = vmatmul.mubr.bf16.vlgmr.msra.gmra.mxu0 %v783_v31 }
  0x23   :  { %733 = vmatpush3.bf16.msra.mxu0 %v787_v34  ;;  %449 = vmatprep.mubr.bf16.mxu0 %v795_v40 }
  0x24   :  { %491 = vmatmul.mubr.bf16.vlgmr.msra.gmra.mxu1 %v788_v35  ;;  %734 = vmatprep.subr.bf16.mxu0 %v791_v37 }
  0x25   :  { %498 = vmatprep.mubr.bf16.mxu1 %v798_v42 }
  0x27   :  { %735 = vmatpush3.bf16.msra.mxu0 %v791_v37 }
  0x28   :  { %736 = vmatprep.subr.bf16.mxu0 %v792_v38 }
  0x2a   :  { %450 = vmatmul.mubr.bf16.gmra.mxu0 %v797_v41 }
  0x2b   :  { %737 = vmatpush3.bf16.msra.mxu0 %v792_v38  ;;  %748 = vmatprep.mubr.bf16.mxu0 %v804_v45 }
  0x2c   :  { %738 = vmatprep.subr.bf16.mxu0 %v793_v39  ;;  %499 = vmatmul.mubr.bf16.gmra.mxu1 %v800_v43 }
  0x2f   :  { %739 = vmatpush3.bf16.msra.mxu0 %v793_v39 }
  0x30   :  { %740 = vmatprep.subr.bf16.mxu0 %v794_v44 }
  0x33   :  { %741 = vmatpush3.bf16.msra.mxu0 %v794_v44 }
  0x34   :  { %742 = vmatprep.subr.bf16.mxu0 %v801_v46 }
  0x37   :  { %743 = vmatpush3.bf16.msra.mxu0 %v801_v46 }
  0x38   :  { %744 = vmatprep.subr.bf16.mxu0 %v802_v47 }
  0x3b   :  { %745 = vmatpush3.bf16.msra.mxu0 %v802_v47 }
  0x3c   :  { %746 = vmatprep.subr.bf16.mxu0 %v803_v48 }
  0x3f   :  { %747 = vmatpush3.bf16.msra.mxu0 %v803_v48 }
  0x42   :  { %749 = vmatmul.mubr.bf16.vlgmr.msra.gmra.mxu0 %v805_v49 }
  0xe2   :  { %v682_v50 = vpop.f32.mrf.mxu0 }
  0xe4   :  { %v683_v51 = vpop.f32.mrf.mxu0  ;;  %v710_v52 = vpop.f32.mrf.mxu1 }
  0xe5   :  { %v684_v2 = vadd.f32 %v683_v51, %v682_v50 }
  0xe6   :  { %v685_v53 = vpop.f32.mrf.mxu0  ;;  %v711_v54 = vpop.f32.mrf.mxu1 }
  0xe7   :  { %v444_v8 = vadd.f32 %v684_v2, %v595_v3  ;;  %v712_v9 = vadd.f32 %v711_v54, %v710_v52 }
  0xe8   :  { %v686_v55 = vpop.f32.mrf.mxu0  ;;  %v713_v56 = vpop.f32.mrf.mxu1 }
  0xe9   :  { %v687_v10 = vadd.f32 %v686_v55, %v685_v53  ;;  %v493_v18 = vadd.f32 %v712_v9, %v444_v8 }
  0xea   :  { %v688_v57 = vpop.f32.mrf.mxu0  ;;  %v714_v58 = vpop.f32.mrf.mxu1 }
  0xeb   :  { %v447_v15 = vadd.f32 %v687_v10, %v595_v3  ;;  %v715_v16 = vadd.f32 %v714_v58, %v713_v56 }
  0xec   :  { %v689_v59 = vpop.f32.mrf.mxu0  ;;  %v716_v60 = vpop.f32.mrf.mxu1 }
  0xed   :  { %v690_v63 = vadd.f32 %v689_v59, %v688_v57  ;;  %v496_v26 = vadd.f32 %v715_v16, %v447_v15 }
  0xee   :  { %v691_v61 = vpop.f32.mrf.mxu0  ;;  %v717_v62 = vpop.f32.mrf.mxu1 }
  0xef   :  { %v452_v4 = vadd.f32 %v690_v63, %v595_v3  ;;  %v718_v5 = vadd.f32 %v717_v62, %v716_v60 }
  0xf0   :  { %v692_v0 = vpop.f32.mrf.mxu0  ;;  %v719_v1 = vpop.f32.mrf.mxu1 }
  0xf1   :  { %v693_v6 = vadd.f32 %v692_v0, %v691_v61  ;;  %v501_v13 = vadd.f32 %v718_v5, %v452_v4 }
  0xf2   :  { %v720_v7 = vpop.f32.mrf.mxu1 }
  0xf3   :  { %v455_v11 = vadd.f32 %v693_v6, %v595_v3  ;;  %v721_v12 = vadd.f32 %v720_v7, %v719_v1 }
  0xf5   :  { %v504_v22 = vadd.f32 %v721_v12, %v455_v11 }
 0x102   :  { %v750_v14 = vpop.f32.mrf.mxu0 }
 0x103   :  { %v550_v17 = vadd.f32 %v750_v14, %v501_v13 }
 0x104   :  { %v541_v20 = vpop.f32.mrf.mxu0 }
 0x105   :  { %v542_v21 = vadd.f32 %v541_v20, %v493_v18  ;;  %v565_v24 = vmul.f32 %v646_v19, %v550_v17 }
 0x106   :  { %v751_v23 = vpop.f32.mrf.mxu0 }
 0x107   :  { %v553_v25 = vadd.f32 %v751_v23, %v504_v22  ;;  %v563_v28 = vmul.f32 %v646_v19, %v542_v21  ;;  %v569_v31 = vmax.f32 %v550_v17, %v565_v24 }
 0x108   :  { %v544_v27 = vpop.f32.mrf.mxu0 }
 0x109   :  { %v566_v29 = vmul.f32 %v646_v19, %v553_v25  ;;  %v545_v30 = vadd.f32 %v544_v27, %v496_v26  ;;  %v567_v34 = vmax.f32 %v542_v21, %v563_v28 }
 0x10b   :  { %v570_v32 = vmax.f32 %v553_v25, %v566_v29  ;;  %v564_v33 = vmul.f32 %v646_v19, %v545_v30 }
 0x10d   :  { %v663_v35 = vpack.c.bf16 %v570_v32, %v569_v31  ;;  %v568_v36 = vmax.f32 %v545_v30, %v564_v33 }
 0x10f   :  { %665 = vst [vmem:[%s997_s4 + $0x8] sm:$0xff] %v663_v35   ;;  %v658_v37 = vpack.c.bf16 %v568_v36, %v567_v34 }
 0x111   :  { %659 = vst [vmem:[%s997_s4] sm:$0xff] %v658_v37  }

// kernel: forward.30
= control target key start
LH: loop header
LB: loop body
LE: loop exit
PB: predicated region body
PF: predicated region fallthrough
CT: control target
= control target key end

     0   :  { %s1028_s1 = inlined_call_operand.vmem [shape: bf16[640,128], index: 1, kind: input, shape index: {}]   ;;  %s1029_s0 = inlined_call_operand.vmem [shape: bf16[32,640], index: 0, kind: input, shape index: {}]   ;;  %s1030_s2 = inlined_call_operand.vmem [shape: f32[1,128], index: 2, kind: input, shape index: {}]   ;;  %s1031_s4 = inlined_call_operand.vmem [shape: bf16[32,128], index: 4, kind: input, shape index: {}]   ;;  %s1032_s3 = inlined_call_operand.vmem [shape: f32[1,128], index: 3, kind: input, shape index: {}]   ;;  %s1033_s5 = inlined_call_operand.vmem [shape: bf16[32,128], index: 5, kind: output, shape index: {}]  }
   0x1   :  { %v776_v0 = vld [vmem:[%s1028_s1 + $0x78] sm:$0xff]   ;;  %v780_v4 = vld [vmem:[%s1028_s1 + $0x70] sm:$0xff]   ;;  %v784_v8 = vld [vmem:[%s1028_s1 + $0x68] sm:$0xff]  }
   0x2   :  { %v777_v1 = vld [vmem:[%s1028_s1 + $0x38] sm:$0xff]   ;;  %690 = vmatprep.subr.bf16.mxu0 %v776_v0  ;;  %v781_v5 = vld [vmem:[%s1028_s1 + $0x30] sm:$0xff]   ;;  %v785_v9 = vld [vmem:[%s1028_s1 + $0x28] sm:$0xff]  }
   0x3   :  { %v778_v2 = vld [vmem:[%s1028_s1 + $0xf8] sm:$0xff]   ;;  %691 = vmatpush3.bf16.msra.mxu0 %v777_v1  ;;  %v782_v6 = vld [vmem:[%s1028_s1 + $0xf0] sm:$0xff]   ;;  %v786_v10 = vld [vmem:[%s1028_s1 + $0xe8] sm:$0xff]  }
   0x4   :  { %v779_v3 = vld [vmem:[%s1028_s1 + $0xb8] sm:$0xff]   ;;  %718 = vmatprep.subr.bf16.mxu1 %v778_v2  ;;  %692 = vmatprep.subr.bf16.mxu0 %v780_v4  ;;  %v783_v7 = vld [vmem:[%s1028_s1 + $0xb0] sm:$0xff]   ;;  %v787_v11 = vld [vmem:[%s1028_s1 + $0xa8] sm:$0xff]  }
   0x5   :  { %719 = vmatpush3.bf16.msra.mxu1 %v779_v3  ;;  %v788_v12 = vld [vmem:[%s1028_s1 + $0x60] sm:$0xff]   ;;  %v792_v16 = vld [vmem:[%s1028_s1 + $0x58] sm:$0xff]   ;;  %v796_v20 = vld [vmem:[%s1028_s1 + $0x50] sm:$0xff]  }
   0x6   :  { %720 = vmatprep.subr.bf16.mxu1 %v782_v6  ;;  %v789_v13 = vld [vmem:[%s1028_s1 + $0x20] sm:$0xff]   ;;  %v793_v17 = vld [vmem:[%s1028_s1 + $0x18] sm:$0xff]   ;;  %v797_v21 = vld [vmem:[%s1028_s1 + $0x10] sm:$0xff]  }
   0x7   :  { %693 = vmatpush3.bf16.msra.mxu0 %v781_v5  ;;  %v790_v14 = vld [vmem:[%s1028_s1 + $0xe0] sm:$0xff]   ;;  %v794_v18 = vld [vmem:[%s1028_s1 + $0xd8] sm:$0xff]   ;;  %v798_v22 = vld [vmem:[%s1028_s1 + $0xd0] sm:$0xff]  }
   0x8   :  { %694 = vmatprep.subr.bf16.mxu0 %v784_v8  ;;  %v791_v15 = vld [vmem:[%s1028_s1 + $0xa0] sm:$0xff]   ;;  %v795_v19 = vld [vmem:[%s1028_s1 + $0x98] sm:$0xff]   ;;  %v799_v23 = vld [vmem:[%s1028_s1 + $0x90] sm:$0xff]  }
   0x9   :  { %721 = vmatpush3.bf16.msra.mxu1 %v783_v7  ;;  %v800_v24 = vld [vmem:[%s1028_s1 + $0x48] sm:$0xff]   ;;  %v804_v28 = vld [vmem:[%s1028_s1 + $0x40] sm:$0xff]   ;;  %v811_v34 = vld [vmem:[%s1028_s1 + $0x138] sm:$0xff]  }
   0xa   :  { %722 = vmatprep.subr.bf16.mxu1 %v786_v10  ;;  %v801_v25 = vld [vmem:[%s1028_s1 + $0x8] sm:$0xff]   ;;  %v805_v29 = vld [vmem:[%s1028_s1] sm:$0xff]   ;;  %v815_v37 = vld [vmem:[%s1028_s1 + $0x130] sm:$0xff]  }
   0xb   :  { %695 = vmatpush3.bf16.msra.mxu0 %v785_v9  ;;  %v802_v26 = vld [vmem:[%s1028_s1 + $0xc8] sm:$0xff]   ;;  %v806_v30 = vld [vmem:[%s1028_s1 + $0xc0] sm:$0xff]   ;;  %v818_v44 = vld [vmem:[%s1028_s1 + $0x118] sm:$0xff]  }
   0xc   :  { %696 = vmatprep.subr.bf16.mxu0 %v788_v12  ;;  %v803_v27 = vld [vmem:[%s1028_s1 + $0x88] sm:$0xff]   ;;  %v807_v31 = vld [vmem:[%s1029_s0] ss:$20 sps:$4 sm:$0xff]   ;;  %v809_v32 = vld [vmem:[%s1029_s0 + $0x4] ss:$20 sps:$4 sm:$0xff]  }
   0xd   :  { %723 = vmatpush3.bf16.msra.mxu1 %v787_v11  ;;  %v810_v33 = vld [vmem:[%s1028_s1 + $0x80] sm:$0xff]   ;;  %444 = vmatprep.mubr.bf16.mxu0 %v809_v32  ;;  %v812_v35 = vld [vmem:[%s1029_s0 + $0x8] ss:$20 sps:$4 sm:$0xff]   ;;  %v825_v46 = vld [vmem:[%s1028_s1 + $0x110] sm:$0xff]  }
   0xe   :  { %724 = vmatprep.subr.bf16.mxu1 %v790_v14  ;;  %v814_v36 = vld [vmem:[%s1029_s0 + $0xc] ss:$20 sps:$4 sm:$0xff]   ;;  %v821_v41 = vld [vmem:[%s1029_s0 + $0x28] ss:$20 sps:$4 sm:$0xff]   ;;  %v824_v43 = vld [vmem:[%s1029_s0 + $0x30] ss:$20 sps:$4 sm:$0xff]  }
   0xf   :  { %697 = vmatpush3.bf16.msra.mxu0 %v789_v13  ;;  %493 = vmatprep.mubr.bf16.mxu1 %v814_v36  ;;  %v816_v38 = vld [vmem:[%s1028_s1 + $0x128] sm:$0xff]   ;;  %v817_v39 = vld [vmem:[%s1028_s1 + $0x120] sm:$0xff]  }
  0x10   :  { %698 = vmatprep.subr.bf16.mxu0 %v792_v16  ;;  %v819_v40 = vld [vmem:[%s1029_s0 + $0x2c] ss:$20 sps:$4 sm:$0xff]   ;;  %v822_v42 = vld [vmem:[%s1029_s0 + $0x34] ss:$20 sps:$4 sm:$0xff]   ;;  %v828_v45 = vld [vmem:[%s1029_s0 + $0x10] ss:$20 sps:$4 sm:$0xff]  }
  0x11   :  { %725 = vmatpush3.bf16.msra.mxu1 %v791_v15  ;;  %v826_v47 = vld [vmem:[%s1028_s1 + $0x108] sm:$0xff]   ;;  %v827_v48 = vld [vmem:[%s1028_s1 + $0x100] sm:$0xff]  }
  0x12   :  { %726 = vmatprep.subr.bf16.mxu1 %v794_v18  ;;  %v829_v49 = vld [vmem:[%s1029_s0 + $0x38] ss:$20 sps:$4 sm:$0xff]   ;;  %v610_v3 = vld [vmem:[%s1030_s2] ss:$0 sm:$0xff] }
  0x13   :  { %699 = vmatpush3.bf16.msra.mxu0 %v793_v17  ;;  %v688_v8 = vld [vmem:[%s1031_s4 + $0x8] sm:$0xff]   ;;  %v671_v12 = vld [vmem:[%s1031_s4] sm:$0xff]  }
  0x14   :  { %700 = vmatprep.subr.bf16.mxu0 %v796_v20  ;;  %v676_v16 = vunpack.c.l.bf16 %v688_v8  ;;  %v672_v18 = vunpack.c.l.bf16 %v671_v12 }
  0x15   :  { %727 = vmatpush3.bf16.msra.mxu1 %v795_v19 }
  0x16   :  { %728 = vmatprep.subr.bf16.mxu1 %v798_v22 }
  0x17   :  { %701 = vmatpush3.bf16.msra.mxu0 %v797_v21 }
  0x18   :  { %702 = vmatprep.subr.bf16.mxu0 %v800_v24 }
  0x19   :  { %729 = vmatpush3.bf16.msra.mxu1 %v799_v23 }
  0x1a   :  { %730 = vmatprep.subr.bf16.mxu1 %v802_v26 }
  0x1b   :  { %703 = vmatpush3.bf16.msra.mxu0 %v801_v25 }
  0x1c   :  { %704 = vmatprep.subr.bf16.mxu0 %v804_v28  ;;  %v661_v28 = vld [vmem:[%s1032_s3] ss:$0 sm:$0xff] }
  0x1d   :  { %731 = vmatpush3.bf16.msra.mxu1 %v803_v27  ;;  %v677_v27 = vunpack.c.h.bf16 %v688_v8 }
  0x1e   :  { %732 = vmatprep.subr.bf16.mxu1 %v806_v30 }
  0x1f   :  { %705 = vmatpush3.bf16.msra.mxu0 %v805_v29 }
  0x20   :  { %756 = vmatprep.subr.bf16.mxu0 %v811_v34 }
  0x21   :  { %733 = vmatpush3.bf16.msra.mxu1 %v810_v33  ;;  %v673_v33 = vunpack.c.h.bf16 %v671_v12 }
  0x22   :  { %445 = vmatmul.mubr.bf16.vlgmr.msra.gmra.mxu0 %v807_v31 }
  0x23   :  { %757 = vmatpush3.bf16.msra.mxu0 %v811_v34  ;;  %452 = vmatprep.mubr.bf16.mxu0 %v819_v40 }
  0x24   :  { %494 = vmatmul.mubr.bf16.vlgmr.msra.gmra.mxu1 %v812_v35  ;;  %758 = vmatprep.subr.bf16.mxu0 %v815_v37 }
  0x25   :  { %501 = vmatprep.mubr.bf16.mxu1 %v822_v42 }
  0x27   :  { %759 = vmatpush3.bf16.msra.mxu0 %v815_v37 }
  0x28   :  { %760 = vmatprep.subr.bf16.mxu0 %v816_v38 }
  0x2a   :  { %453 = vmatmul.mubr.bf16.gmra.mxu0 %v821_v41 }
  0x2b   :  { %761 = vmatpush3.bf16.msra.mxu0 %v816_v38  ;;  %772 = vmatprep.mubr.bf16.mxu0 %v828_v45 }
  0x2c   :  { %762 = vmatprep.subr.bf16.mxu0 %v817_v39  ;;  %502 = vmatmul.mubr.bf16.gmra.mxu1 %v824_v43 }
  0x2f   :  { %763 = vmatpush3.bf16.msra.mxu0 %v817_v39 }
  0x30   :  { %764 = vmatprep.subr.bf16.mxu0 %v818_v44 }
  0x33   :  { %765 = vmatpush3.bf16.msra.mxu0 %v818_v44 }
  0x34   :  { %766 = vmatprep.subr.bf16.mxu0 %v825_v46 }
  0x37   :  { %767 = vmatpush3.bf16.msra.mxu0 %v825_v46 }
  0x38   :  { %768 = vmatprep.subr.bf16.mxu0 %v826_v47 }
  0x3b   :  { %769 = vmatpush3.bf16.msra.mxu0 %v826_v47 }
  0x3c   :  { %770 = vmatprep.subr.bf16.mxu0 %v827_v48 }
  0x3f   :  { %771 = vmatpush3.bf16.msra.mxu0 %v827_v48 }
  0x42   :  { %773 = vmatmul.mubr.bf16.vlgmr.msra.gmra.mxu0 %v829_v49 }
  0xe2   :  { %v706_v50 = vpop.f32.mrf.mxu0 }
  0xe4   :  { %v707_v51 = vpop.f32.mrf.mxu0  ;;  %v734_v52 = vpop.f32.mrf.mxu1 }
  0xe5   :  { %v708_v2 = vadd.f32 %v707_v51, %v706_v50 }
  0xe6   :  { %v709_v53 = vpop.f32.mrf.mxu0  ;;  %v735_v54 = vpop.f32.mrf.mxu1 }
  0xe7   :  { %v447_v9 = vadd.f32 %v708_v2, %v610_v3  ;;  %v736_v10 = vadd.f32 %v735_v54, %v734_v52 }
  0xe8   :  { %v710_v55 = vpop.f32.mrf.mxu0  ;;  %v737_v56 = vpop.f32.mrf.mxu1 }
  0xe9   :  { %v711_v11 = vadd.f32 %v710_v55, %v709_v53  ;;  %v496_v22 = vadd.f32 %v736_v10, %v447_v9 }
  0xea   :  { %v712_v57 = vpop.f32.mrf.mxu0  ;;  %v738_v58 = vpop.f32.mrf.mxu1 }
  0xeb   :  { %v450_v19 = vadd.f32 %v711_v11, %v610_v3  ;;  %v739_v20 = vadd.f32 %v738_v58, %v737_v56 }
  0xec   :  { %v713_v59 = vpop.f32.mrf.mxu0  ;;  %v740_v60 = vpop.f32.mrf.mxu1 }
  0xed   :  { %v714_v63 = vadd.f32 %v713_v59, %v712_v57  ;;  %v499_v32 = vadd.f32 %v739_v20, %v450_v19 }
  0xee   :  { %v715_v61 = vpop.f32.mrf.mxu0  ;;  %v741_v62 = vpop.f32.mrf.mxu1 }
  0xef   :  { %v455_v4 = vadd.f32 %v714_v63, %v610_v3  ;;  %v742_v5 = vadd.f32 %v741_v62, %v740_v60 }
  0xf0   :  { %v716_v0 = vpop.f32.mrf.mxu0  ;;  %v743_v1 = vpop.f32.mrf.mxu1 }
  0xf1   :  { %v717_v6 = vadd.f32 %v716_v0, %v715_v61  ;;  %v504_v15 = vadd.f32 %v742_v5, %v455_v4 }
  0xf2   :  { %v744_v7 = vpop.f32.mrf.mxu1 }
  0xf3   :  { %v458_v13 = vadd.f32 %v717_v6, %v610_v3  ;;  %v745_v14 = vadd.f32 %v744_v7, %v743_v1 }
  0xf5   :  { %v507_v26 = vadd.f32 %v745_v14, %v458_v13 }
 0x102   :  { %v774_v17 = vpop.f32.mrf.mxu0 }
 0x103   :  { %v553_v21 = vadd.f32 %v774_v17, %v504_v15 }
 0x104   :  { %v544_v23 = vpop.f32.mrf.mxu0 }
 0x105   :  { %v569_v24 = vadd.f32 %v676_v16, %v553_v21  ;;  %v545_v25 = vadd.f32 %v544_v23, %v496_v22 }
 0x106   :  { %v775_v29 = vpop.f32.mrf.mxu0 }
 0x107   :  { %v567_v30 = vadd.f32 %v672_v18, %v545_v25  ;;  %v556_v31 = vadd.f32 %v775_v29, %v507_v26  ;;  %v580_v35 = vmul.f32 %v661_v28, %v569_v24 }
 0x108   :  { %v547_v34 = vpop.f32.mrf.mxu0 }
 0x109   :  { %v570_v36 = vadd.f32 %v677_v27, %v556_v31  ;;  %v548_v37 = vadd.f32 %v547_v34, %v499_v32  ;;  %v578_v38 = vmul.f32 %v661_v28, %v567_v30  ;;  %v584_v41 = vmax.f32 %v569_v24, %v580_v35 }
 0x10b   :  { %v581_v39 = vmul.f32 %v661_v28, %v570_v36  ;;  %v568_v40 = vadd.f32 %v673_v33, %v548_v37  ;;  %v582_v44 = vmax.f32 %v567_v30, %v578_v38 }
 0x10d   :  { %v585_v42 = vmax.f32 %v570_v36, %v581_v39  ;;  %v579_v43 = vmul.f32 %v661_v28, %v568_v40 }
 0x10f   :  { %v686_v45 = vpack.c.bf16 %v585_v42, %v584_v41  ;;  %v583_v46 = vmax.f32 %v568_v40, %v579_v43 }
 0x111   :  { %689 = vst [vmem:[%s1033_s5 + $0x8] sm:$0xff] %v686_v45   ;;  %v681_v47 = vpack.c.bf16 %v583_v46, %v582_v44 }
 0x113   :  { %682 = vst [vmem:[%s1033_s5] sm:$0xff] %v681_v47  }

// kernel: forward.33
= control target key start
LH: loop header
LB: loop body
LE: loop exit
PB: predicated region body
PF: predicated region fallthrough
CT: control target
= control target key end

     0   :  { %s1579_s15 = smov 0   ;;  %s1581_s16 = smov 0   ;;  %s1884_s0 = inlined_call_operand.vmem [shape: bf16[16,640], index: 0, kind: input, shape index: {}]   ;;  %s1885_s1 = inlined_call_operand.vmem [shape: bf16[640,256], index: 1, kind: input, shape index: {}]   ;;  %s1886_s2 = inlined_call_operand.vmem [shape: f32[1,256], index: 2, kind: input, shape index: {}]   ;;  %s1887_s3 = inlined_call_operand.vmem [shape: f32[1,256], index: 3, kind: input, shape index: {}]   ;;  %s1888_s4 = inlined_call_operand.vmem [shape: bf16[16,256], index: 4, kind: output, shape index: {}]  }
   0x1   :  { %s1583_s17 = smov 0   ;;  %s1585_s18 = smov 0  }
   0x2   :  { %s1587_s19 = smov 0  }
   0x3 LB: > { %s23_s20 = sadd.s32 1, %s1546_s18  ;;  %s1280_s21 = sadd.s32 4294967295, %s1550_s19   ;;  %s1550_s19 = sphi %s1587_s19, %s14_s19   ;;  %s1546_s18 = sphi %s1585_s18, %s1893_s18   ;;  %s1542_s17 = sphi %s1583_s17, %s1892_s17   ;;  %s1538_s16 = sphi %s1581_s16, %s1891_s16   ;;  %s1534_s15 = sphi %s1579_s15, %s1890_s15  }
   0x4   : > { %p24_p0 = scmp.ge.s32.totalorder %s23_s20, 2  ;;  %p66_p1 = scmp.ne.s32.totalorder %s1538_s16, %s1534_s15 }
   0x5   : > { %p67_p2 = scmp.eq.s32.totalorder %s1550_s19, 0  ;;  %p150_p4 = scmp.eq.s32.totalorder %s1280_s21, 1 }
   0x6   : > { %s1895_s20 = smov (%p24_p0, %s23_s20), 0  ;;  %s59_s23 = sadd.s32 1, %s1538_s16 }
   0x7   : > { %p68_p3 = por %p67_p2, %p66_p1  ;;  %s56_s22 = ssub.s32 %s1546_s18, %s1895_s20 }
   0x8   : > { %p57_p5 = scmp.eq.s32.totalorder %s56_s22, 0  ;;  %p1614_p6 = por %p150_p4, %p66_p1 }
   0x9   : > { %p1284_p7 = scmp.ge.s32.totalorder %s1550_s19, 2 }
   0xa   : > { %s1619_s25 = scalar_select %p57_p5, %s1538_s16, %s59_s23  }
   0xb   : > { %182 = sbr.rel (%p1284_p7) target bundleno = 73 (0x49), region = 20 }
  0x10   : > { %185 = sbr.rel (!%p68_p3) target bundleno = 73 (0x49), region = 24  ;;  %s187_s26 = sand.u32 (%p68_p3), 1, %s1538_s16  }
  0x11   : > { %s1285_s27 = sshll.u32 (%p68_p3), %s1546_s18, 2  ;;  %s1421_s28 = smul.u32 (%p68_p3), 320, %s187_s26 }
  0x12   : > { %s1627_s5 = scalar_lea.vmem (%p68_p3), %s1885_s1, %s1285_s27 }
  0x13   : > { %v208_v0 = vld [vmem:[%s1627_s5] sm:$0xf] (%p68_p3)  ;;  %v210_v1 = vld [vmem:[%s1627_s5 + $0x8] sm:$0xf] (%p68_p3)  ;;  %v212_v2 = vld [vmem:[%s1627_s5 + $0x10] sm:$0xf] (%p68_p3) }
  0x14   : > { %v214_v3 = vld [vmem:[%s1627_s5 + $0x18] sm:$0xf] (%p68_p3)  ;;  %v216_v4 = vld [vmem:[%s1627_s5 + $0x20] sm:$0xf] (%p68_p3)  ;;  %s1634_s6 = scalar_lea.vmem (%p68_p3), [#allocation2], %s1421_s28 }
  0x15   : > { %209 = vst [vmem:[%s1634_s6] sm:$0xf] %v208_v0  ;;  %211 = vst [vmem:[%s1634_s6 + $0x4] sm:$0xf] %v210_v1  ;;  %v218_v5 = vld [vmem:[%s1627_s5 + $0x28] sm:$0xf] }
  0x16   : > { %213 = vst [vmem:[%s1634_s6 + $0x8] sm:$0xf] %v212_v2  ;;  %215 = vst [vmem:[%s1634_s6 + $0xc] sm:$0xf] %v214_v3  ;;  %v220_v6 = vld [vmem:[%s1627_s5 + $0x30] sm:$0xf] }
  0x17   : > { %217 = vst [vmem:[%s1634_s6 + $0x10] sm:$0xf] %v216_v4  ;;  %v222_v7 = vld [vmem:[%s1627_s5 + $0x38] sm:$0xf]  ;;  %219 = vst [vmem:[%s1634_s6 + $0x14] sm:$0xf] %v218_v5 }
  0x18   : > { %221 = vst [vmem:[%s1634_s6 + $0x18] sm:$0xf] %v220_v6  ;;  %223 = vst [vmem:[%s1634_s6 + $0x1c] sm:$0xf] %v222_v7  ;;  %v224_v8 = vld [vmem:[%s1627_s5 + $0x40] sm:$0xf] }
  0x19   : > { %v226_v9 = vld [vmem:[%s1627_s5 + $0x48] sm:$0xf]  ;;  %v228_v10 = vld [vmem:[%s1627_s5 + $0x50] sm:$0xf]  ;;  %225 = vst [vmem:[%s1634_s6 + $0x20] sm:$0xf] %v224_v8 }
  0x1a   : > { %227 = vst [vmem:[%s1634_s6 + $0x24] sm:$0xf] %v226_v9  ;;  %229 = vst [vmem:[%s1634_s6 + $0x28] sm:$0xf] %v228_v10  ;;  %v230_v11 = vld [vmem:[%s1627_s5 + $0x58] sm:$0xf] }
  0x1b   : > { %v232_v12 = vld [vmem:[%s1627_s5 + $0x60] sm:$0xf]  ;;  %v234_v13 = vld [vmem:[%s1627_s5 + $0x68] sm:$0xf]  ;;  %231 = vst [vmem:[%s1634_s6 + $0x2c] sm:$0xf] %v230_v11 }
  0x1c   : > { %233 = vst [vmem:[%s1634_s6 + $0x30] sm:$0xf] %v232_v12  ;;  %235 = vst [vmem:[%s1634_s6 + $0x34] sm:$0xf] %v234_v13  ;;  %v236_v14 = vld [vmem:[%s1627_s5 + $0x70] sm:$0xf] }
  0x1d   : > { %v238_v15 = vld [vmem:[%s1627_s5 + $0x78] sm:$0xf]  ;;  %v240_v16 = vld [vmem:[%s1627_s5 + $0x80] sm:$0xf]  ;;  %237 = vst [vmem:[%s1634_s6 + $0x38] sm:$0xf] %v236_v14 }
  0x1e   : > { %239 = vst [vmem:[%s1634_s6 + $0x3c] sm:$0xf] %v238_v15  ;;  %241 = vst [vmem:[%s1634_s6 + $0x40] sm:$0xf] %v240_v16  ;;  %v242_v17 = vld [vmem:[%s1627_s5 + $0x88] sm:$0xf] }
  0x1f   : > { %v244_v18 = vld [vmem:[%s1627_s5 + $0x90] sm:$0xf]  ;;  %v246_v19 = vld [vmem:[%s1627_s5 + $0x98] sm:$0xf]  ;;  %243 = vst [vmem:[%s1634_s6 + $0x44] sm:$0xf] %v242_v17 }
  0x20   : > { %245 = vst [vmem:[%s1634_s6 + $0x48] sm:$0xf] %v244_v18  ;;  %247 = vst [vmem:[%s1634_s6 + $0x4c] sm:$0xf] %v246_v19  ;;  %v248_v20 = vld [vmem:[%s1627_s5 + $0xa0] sm:$0xf] }
  0x21   : > { %v250_v21 = vld [vmem:[%s1627_s5 + $0xa8] sm:$0xf]  ;;  %v252_v22 = vld [vmem:[%s1627_s5 + $0xb0] sm:$0xf]  ;;  %249 = vst [vmem:[%s1634_s6 + $0x50] sm:$0xf] %v248_v20 }
  0x22   : > { %251 = vst [vmem:[%s1634_s6 + $0x54] sm:$0xf] %v250_v21  ;;  %253 = vst [vmem:[%s1634_s6 + $0x58] sm:$0xf] %v252_v22  ;;  %v254_v23 = vld [vmem:[%s1627_s5 + $0xb8] sm:$0xf] }
  0x23   : > { %v256_v24 = vld [vmem:[%s1627_s5 + $0xc0] sm:$0xf]  ;;  %v258_v25 = vld [vmem:[%s1627_s5 + $0xc8] sm:$0xf]  ;;  %255 = vst [vmem:[%s1634_s6 + $0x5c] sm:$0xf] %v254_v23 }
  0x24   : > { %257 = vst [vmem:[%s1634_s6 + $0x60] sm:$0xf] %v256_v24  ;;  %259 = vst [vmem:[%s1634_s6 + $0x64] sm:$0xf] %v258_v25  ;;  %v260_v26 = vld [vmem:[%s1627_s5 + $0xd0] sm:$0xf] }
  0x25   : > { %v262_v27 = vld [vmem:[%s1627_s5 + $0xd8] sm:$0xf]  ;;  %v264_v28 = vld [vmem:[%s1627_s5 + $0xe0] sm:$0xf]  ;;  %261 = vst [vmem:[%s1634_s6 + $0x68] sm:$0xf] %v260_v26 }
  0x26   : > { %263 = vst [vmem:[%s1634_s6 + $0x6c] sm:$0xf] %v262_v27  ;;  %265 = vst [vmem:[%s1634_s6 + $0x70] sm:$0xf] %v264_v28  ;;  %v266_v29 = vld [vmem:[%s1627_s5 + $0xe8] sm:$0xf] }
  0x27   : > { %v268_v30 = vld [vmem:[%s1627_s5 + $0xf0] sm:$0xf]  ;;  %v270_v31 = vld [vmem:[%s1627_s5 + $0xf8] sm:$0xf]  ;;  %267 = vst [vmem:[%s1634_s6 + $0x74] sm:$0xf] %v266_v29 }
  0x28   : > { %269 = vst [vmem:[%s1634_s6 + $0x78] sm:$0xf] %v268_v30  ;;  %271 = vst [vmem:[%s1634_s6 + $0x7c] sm:$0xf] %v270_v31  ;;  %v272_v32 = vld [vmem:[%s1627_s5 + $0x100] sm:$0xf] }
  0x29   : > { %v274_v33 = vld [vmem:[%s1627_s5 + $0x108] sm:$0xf]  ;;  %v276_v34 = vld [vmem:[%s1627_s5 + $0x110] sm:$0xf]  ;;  %273 = vst [vmem:[%s1634_s6 + $0x80] sm:$0xf] %v272_v32 }
  0x2a   : > { %275 = vst [vmem:[%s1634_s6 + $0x84] sm:$0xf] %v274_v33  ;;  %277 = vst [vmem:[%s1634_s6 + $0x88] sm:$0xf] %v276_v34  ;;  %v278_v35 = vld [vmem:[%s1627_s5 + $0x118] sm:$0xf] }
  0x2b   : > { %v280_v36 = vld [vmem:[%s1627_s5 + $0x120] sm:$0xf]  ;;  %v282_v37 = vld [vmem:[%s1627_s5 + $0x128] sm:$0xf]  ;;  %279 = vst [vmem:[%s1634_s6 + $0x8c] sm:$0xf] %v278_v35 }
  0x2c   : > { %281 = vst [vmem:[%s1634_s6 + $0x90] sm:$0xf] %v280_v36  ;;  %283 = vst [vmem:[%s1634_s6 + $0x94] sm:$0xf] %v282_v37  ;;  %v284_v38 = vld [vmem:[%s1627_s5 + $0x130] sm:$0xf] }
  0x2d   : > { %v286_v39 = vld [vmem:[%s1627_s5 + $0x138] sm:$0xf]  ;;  %v288_v40 = vld [vmem:[%s1627_s5 + $0x140] sm:$0xf]  ;;  %285 = vst [vmem:[%s1634_s6 + $0x98] sm:$0xf] %v284_v38 }
  0x2e   : > { %287 = vst [vmem:[%s1634_s6 + $0x9c] sm:$0xf] %v286_v39  ;;  %289 = vst [vmem:[%s1634_s6 + $0xa0] sm:$0xf] %v288_v40  ;;  %v290_v41 = vld [vmem:[%s1627_s5 + $0x148] sm:$0xf] }
  0x2f   : > { %v292_v42 = vld [vmem:[%s1627_s5 + $0x150] sm:$0xf]  ;;  %v294_v43 = vld [vmem:[%s1627_s5 + $0x158] sm:$0xf]  ;;  %291 = vst [vmem:[%s1634_s6 + $0xa4] sm:$0xf] %v290_v41 }
  0x30   : > { %293 = vst [vmem:[%s1634_s6 + $0xa8] sm:$0xf] %v292_v42  ;;  %295 = vst [vmem:[%s1634_s6 + $0xac] sm:$0xf] %v294_v43  ;;  %v296_v44 = vld [vmem:[%s1627_s5 + $0x160] sm:$0xf] }
  0x31   : > { %v298_v45 = vld [vmem:[%s1627_s5 + $0x168] sm:$0xf]  ;;  %v300_v46 = vld [vmem:[%s1627_s5 + $0x170] sm:$0xf]  ;;  %297 = vst [vmem:[%s1634_s6 + $0xb0] sm:$0xf] %v296_v44 }
  0x32   : > { %299 = vst [vmem:[%s1634_s6 + $0xb4] sm:$0xf] %v298_v45  ;;  %301 = vst [vmem:[%s1634_s6 + $0xb8] sm:$0xf] %v300_v46  ;;  %v302_v47 = vld [vmem:[%s1627_s5 + $0x178] sm:$0xf] }
  0x33   : > { %v304_v48 = vld [vmem:[%s1627_s5 + $0x180] sm:$0xf]  ;;  %v306_v49 = vld [vmem:[%s1627_s5 + $0x188] sm:$0xf]  ;;  %303 = vst [vmem:[%s1634_s6 + $0xbc] sm:$0xf] %v302_v47 }
  0x34   : > { %305 = vst [vmem:[%s1634_s6 + $0xc0] sm:$0xf] %v304_v48  ;;  %307 = vst [vmem:[%s1634_s6 + $0xc4] sm:$0xf] %v306_v49  ;;  %v308_v50 = vld [vmem:[%s1627_s5 + $0x190] sm:$0xf] }
  0x35   : > { %v310_v51 = vld [vmem:[%s1627_s5 + $0x198] sm:$0xf]  ;;  %v312_v52 = vld [vmem:[%s1627_s5 + $0x1a0] sm:$0xf]  ;;  %309 = vst [vmem:[%s1634_s6 + $0xc8] sm:$0xf] %v308_v50 }
  0x36   : > { %311 = vst [vmem:[%s1634_s6 + $0xcc] sm:$0xf] %v310_v51  ;;  %313 = vst [vmem:[%s1634_s6 + $0xd0] sm:$0xf] %v312_v52  ;;  %v314_v53 = vld [vmem:[%s1627_s5 + $0x1a8] sm:$0xf] }
  0x37   : > { %v316_v54 = vld [vmem:[%s1627_s5 + $0x1b0] sm:$0xf]  ;;  %v318_v55 = vld [vmem:[%s1627_s5 + $0x1b8] sm:$0xf]  ;;  %315 = vst [vmem:[%s1634_s6 + $0xd4] sm:$0xf] %v314_v53 }
  0x38   : > { %317 = vst [vmem:[%s1634_s6 + $0xd8] sm:$0xf] %v316_v54  ;;  %319 = vst [vmem:[%s1634_s6 + $0xdc] sm:$0xf] %v318_v55  ;;  %v320_v56 = vld [vmem:[%s1627_s5 + $0x1c0] sm:$0xf] }
  0x39   : > { %v322_v57 = vld [vmem:[%s1627_s5 + $0x1c8] sm:$0xf]  ;;  %v324_v58 = vld [vmem:[%s1627_s5 + $0x1d0] sm:$0xf]  ;;  %321 = vst [vmem:[%s1634_s6 + $0xe0] sm:$0xf] %v320_v56 }
  0x3a   : > { %323 = vst [vmem:[%s1634_s6 + $0xe4] sm:$0xf] %v322_v57  ;;  %325 = vst [vmem:[%s1634_s6 + $0xe8] sm:$0xf] %v324_v58  ;;  %v326_v59 = vld [vmem:[%s1627_s5 + $0x1d8] sm:$0xf] }
  0x3b   : > { %v328_v60 = vld [vmem:[%s1627_s5 + $0x1e0] sm:$0xf]  ;;  %v330_v61 = vld [vmem:[%s1627_s5 + $0x1e8] sm:$0xf]  ;;  %327 = vst [vmem:[%s1634_s6 + $0xec] sm:$0xf] %v326_v59 }
  0x3c   : > { %329 = vst [vmem:[%s1634_s6 + $0xf0] sm:$0xf] %v328_v60  ;;  %331 = vst [vmem:[%s1634_s6 + $0xf4] sm:$0xf] %v330_v61  ;;  %v332_v62 = vld [vmem:[%s1627_s5 + $0x1f0] sm:$0xf] }
  0x3d   : > { %v334_v63 = vld [vmem:[%s1627_s5 + $0x1f8] sm:$0xf]  ;;  %v336_v0 = vld [vmem:[%s1627_s5 + $0x200] sm:$0xf]  ;;  %333 = vst [vmem:[%s1634_s6 + $0xf8] sm:$0xf] %v332_v62 }
  0x3e   : > { %335 = vst [vmem:[%s1634_s6 + $0xfc] sm:$0xf] %v334_v63  ;;  %337 = vst [vmem:[%s1634_s6 + $0x100] sm:$0xf] %v336_v0  ;;  %v338_v1 = vld [vmem:[%s1627_s5 + $0x208] sm:$0xf] }
  0x3f   : > { %v340_v2 = vld [vmem:[%s1627_s5 + $0x210] sm:$0xf]  ;;  %v342_v3 = vld [vmem:[%s1627_s5 + $0x218] sm:$0xf]  ;;  %339 = vst [vmem:[%s1634_s6 + $0x104] sm:$0xf] %v338_v1 }
  0x40   : > { %341 = vst [vmem:[%s1634_s6 + $0x108] sm:$0xf] %v340_v2  ;;  %343 = vst [vmem:[%s1634_s6 + $0x10c] sm:$0xf] %v342_v3  ;;  %v344_v4 = vld [vmem:[%s1627_s5 + $0x220] sm:$0xf] }
  0x41   : > { %v346_v5 = vld [vmem:[%s1627_s5 + $0x228] sm:$0xf]  ;;  %v348_v6 = vld [vmem:[%s1627_s5 + $0x230] sm:$0xf]  ;;  %345 = vst [vmem:[%s1634_s6 + $0x110] sm:$0xf] %v344_v4 }
  0x42   : > { %347 = vst [vmem:[%s1634_s6 + $0x114] sm:$0xf] %v346_v5  ;;  %349 = vst [vmem:[%s1634_s6 + $0x118] sm:$0xf] %v348_v6  ;;  %v350_v7 = vld [vmem:[%s1627_s5 + $0x238] sm:$0xf] }
  0x43   : > { %v352_v8 = vld [vmem:[%s1627_s5 + $0x240] sm:$0xf]  ;;  %v354_v9 = vld [vmem:[%s1627_s5 + $0x248] sm:$0xf]  ;;  %351 = vst [vmem:[%s1634_s6 + $0x11c] sm:$0xf] %v350_v7 }
  0x44   : > { %353 = vst [vmem:[%s1634_s6 + $0x120] sm:$0xf] %v352_v8  ;;  %355 = vst [vmem:[%s1634_s6 + $0x124] sm:$0xf] %v354_v9  ;;  %v356_v10 = vld [vmem:[%s1627_s5 + $0x250] sm:$0xf] }
  0x45   : > { %v358_v11 = vld [vmem:[%s1627_s5 + $0x258] sm:$0xf]  ;;  %v360_v12 = vld [vmem:[%s1627_s5 + $0x260] sm:$0xf]  ;;  %357 = vst [vmem:[%s1634_s6 + $0x128] sm:$0xf] %v356_v10 }
  0x46   : > { %359 = vst [vmem:[%s1634_s6 + $0x12c] sm:$0xf] %v358_v11  ;;  %361 = vst [vmem:[%s1634_s6 + $0x130] sm:$0xf] %v360_v12  ;;  %v362_v13 = vld [vmem:[%s1627_s5 + $0x268] sm:$0xf] }
  0x47   : > { %v364_v14 = vld [vmem:[%s1627_s5 + $0x270] sm:$0xf]  ;;  %v366_v15 = vld [vmem:[%s1627_s5 + $0x278] sm:$0xf]  ;;  %363 = vst [vmem:[%s1634_s6 + $0x134] sm:$0xf] %v362_v13 }
  0x48   : > { %365 = vst [vmem:[%s1634_s6 + $0x138] sm:$0xf] %v364_v14  ;;  %367 = vst [vmem:[%s1634_s6 + $0x13c] sm:$0xf] %v366_v15 }
  0x49 PF: > { %p1286_p8 = scmp.ge.s32.totalorder %s1550_s19, 1  ;;  %p562_p9 = scmp.lt.s32.totalorder %s1550_s19, 3 }
  0x4b   : > { %p563_p10 = pnand %p1286_p8, %p562_p9 }
  0x4c   : > { %s569_s7 = sand.u32 (!%p563_p10), 1, %s1534_s15   ;;  %p612_p11 = scmp.lt.s32.totalorder (!%p563_p10), %s1542_s17, 1 }
  0x4d   : > { %566 = sbr.rel (%p563_p10) target bundleno = 362 (0x16a), region = 73  ;;  %s1287_s10 = sshll.u32 (!%p563_p10), %s569_s7, 3 }
  0x4e   : > { %s1422_s8 = smul.u32 (!%p563_p10), 320, %s569_s7  ;;  %s604_s11 = scalar_lea.vmem (!%p563_p10), [#allocation3], %s1287_s10 }
  0x50   : > { %s1802_s13 = scalar_lea.vmem (!%p563_p10), [#allocation2], %s1422_s8 }
  0x52   : > { %v1498_v16 = vld [vmem:[%s1884_s0 + $0x4] ss:$20 sps:$4 sm:$0xff]   ;;  %v1502_v17 = vld [vmem:[%s1884_s0 + $0xc] ss:$20 sps:$4 sm:$0xff]   ;;  %v1469_v22 = vld [vmem:[%s1802_s13 + $0x70] sm:$0xff]   ;;  %v1552_v52 = vmov 0.0  }
  0x53   : > { %1011 = vmatprep.mubr.bf16.mxu0 %v1498_v16  ;;  %v1465_v18 = vld [vmem:[%s1802_s13 + $0x78] sm:$0xff]   ;;  %1052 = vmatprep.mubr.bf16.mxu1 %v1502_v17  ;;  %v1470_v23 = vld [vmem:[%s1802_s13 + $0x30] sm:$0xff]   ;;  %v1473_v26 = vld [vmem:[%s1802_s13 + $0x68] sm:$0xff]   ;;  %vm1553_vm0 = vmmov 0   ;;  %s613_s28 = scalar_select %p612_p11, %s1542_s17, 1 }
  0x54   : > { %v1466_v19 = vld [vmem:[%s1802_s13 + $0x38] sm:$0xff]   ;;  %1348 = vmatprep.subr.bf16.mxu0 %v1465_v18  ;;  %v1471_v24 = vld [vmem:[%s1802_s13 + $0xf0] sm:$0xff]   ;;  %v1474_v27 = vld [vmem:[%s1802_s13 + $0x28] sm:$0xff]   ;;  %s1338_s12 = sshll.u32 (%p1614_p6), %s1542_s17, 2 }
  0x55   : > { %v1467_v20 = vld [vmem:[%s1802_s13 + $0xf8] sm:$0xff]   ;;  %1349 = vmatpush3.bf16.msra.mxu0 %v1466_v19  ;;  %v1472_v25 = vld [vmem:[%s1802_s13 + $0xb0] sm:$0xff]   ;;  %v1475_v28 = vld [vmem:[%s1802_s13 + $0xe8] sm:$0xff]   ;;  %s614_s5 = scalar_lea.vmem %s1886_s2, %s613_s28  ;;  %s617_s9 = scalar_lea.vmem %s1887_s3, %s613_s28 }
  0x56   : > { %v1468_v21 = vld [vmem:[%s1802_s13 + $0xb8] sm:$0xff]   ;;  %1370 = vmatprep.subr.bf16.mxu1 %v1467_v20  ;;  %1350 = vmatprep.subr.bf16.mxu0 %v1469_v22  ;;  %v1476_v29 = vld [vmem:[%s1802_s13 + $0xa8] sm:$0xff]   ;;  %v1477_v30 = vld [vmem:[%s1802_s13 + $0x60] sm:$0xff]   ;;  %s1134_s21 = scalar_lea.vmem (%p1614_p6), %s1888_s4, %s1338_s12 }
  0x57   : > { %1371 = vmatpush3.bf16.msra.mxu1 %v1468_v21  ;;  %v1478_v31 = vld [vmem:[%s1802_s13 + $0x20] sm:$0xff]   ;;  %v1481_v34 = vld [vmem:[%s1802_s13 + $0x58] sm:$0xff]   ;;  %v1485_v38 = vld [vmem:[%s1802_s13 + $0x50] sm:$0xff]  }
  0x58   : > { %1372 = vmatprep.subr.bf16.mxu1 %v1471_v24  ;;  %v1479_v32 = vld [vmem:[%s1802_s13 + $0xe0] sm:$0xff]   ;;  %v1482_v35 = vld [vmem:[%s1802_s13 + $0x18] sm:$0xff]   ;;  %v1486_v39 = vld [vmem:[%s1802_s13 + $0x10] sm:$0xff]  }
  0x59   : > { %1351 = vmatpush3.bf16.msra.mxu0 %v1470_v23  ;;  %v1480_v33 = vld [vmem:[%s1802_s13 + $0xa0] sm:$0xff]   ;;  %v1483_v36 = vld [vmem:[%s1802_s13 + $0xd8] sm:$0xff]   ;;  %v1487_v40 = vld [vmem:[%s1802_s13 + $0xd0] sm:$0xff]  }
  0x5a   : > { %1352 = vmatprep.subr.bf16.mxu0 %v1473_v26  ;;  %v1484_v37 = vld [vmem:[%s1802_s13 + $0x98] sm:$0xff]   ;;  %v1488_v41 = vld [vmem:[%s1802_s13 + $0x90] sm:$0xff]   ;;  %v1489_v42 = vld [vmem:[%s1802_s13 + $0x48] sm:$0xff]  }
  0x5b   : > { %1373 = vmatpush3.bf16.msra.mxu1 %v1472_v25  ;;  %v1490_v43 = vld [vmem:[%s1802_s13 + $0x8] sm:$0xff]   ;;  %v1493_v46 = vld [vmem:[%s1802_s13 + $0x40] sm:$0xff]   ;;  %v1503_v53 = vld [vmem:[%s1802_s13 + $0x138] sm:$0xff]  }
  0x5c   : > { %1374 = vmatprep.subr.bf16.mxu1 %v1475_v28  ;;  %v1491_v44 = vld [vmem:[%s1802_s13 + $0xc8] sm:$0xff]   ;;  %v1496_v47 = vld [vmem:[%s1884_s0] ss:$20 sps:$4 sm:$0xff]   ;;  %v1507_v57 = vld [vmem:[%s1802_s13 + $0x118] sm:$0xff]  }
  0x5d   : > { %1353 = vmatpush3.bf16.msra.mxu0 %v1474_v27  ;;  %v1492_v45 = vld [vmem:[%s1802_s13 + $0x88] sm:$0xff]   ;;  %v1494_v48 = vld [vmem:[%s1802_s13] sm:$0xff]   ;;  %v1504_v54 = vld [vmem:[%s1802_s13 + $0x130] sm:$0xff]  }
  0x5e   : > { %1354 = vmatprep.subr.bf16.mxu0 %v1477_v30  ;;  %v1495_v49 = vld [vmem:[%s1802_s13 + $0xc0] sm:$0xff]   ;;  %v1500_v50 = vld [vmem:[%s1884_s0 + $0x8] ss:$20 sps:$4 sm:$0xff]   ;;  %v1508_v58 = vld [vmem:[%s1802_s13 + $0x110] sm:$0xff]  }
  0x5f   : > { %1375 = vmatpush3.bf16.msra.mxu1 %v1476_v29  ;;  %v1499_v51 = vld [vmem:[%s1802_s13 + $0x80] sm:$0xff]   ;;  %v1505_v55 = vld [vmem:[%s1802_s13 + $0x128] sm:$0xff]  }
  0x60   : > { %1376 = vmatprep.subr.bf16.mxu1 %v1479_v32  ;;  %v1506_v56 = vld [vmem:[%s1802_s13 + $0x120] sm:$0xff]   ;;  %v1509_v59 = vld [vmem:[%s1802_s13 + $0x108] sm:$0xff]  }
  0x61   : > { %1355 = vmatpush3.bf16.msra.mxu0 %v1478_v31  ;;  %v1510_v60 = vld [vmem:[%s1802_s13 + $0x100] sm:$0xff]  }
  0x62   : > { %1356 = vmatprep.subr.bf16.mxu0 %v1481_v34  ;;  %v1511_v61 = vld [vmem:[%s1884_s0 + $0x10] ss:$20 sps:$4 sm:$0xff]   ;;  %v1288_v4 = vld [vmem:[%s614_s5] ss:$0 sm:$0xff] }
  0x63   : > { %1377 = vmatpush3.bf16.msra.mxu1 %v1480_v33  ;;  %v1334_v16 = vld [vmem:[%s617_s9] ss:$0 sm:$0xff] }
  0x64   : > { %1378 = vmatprep.subr.bf16.mxu1 %v1483_v36 }
  0x65   : > { %1357 = vmatpush3.bf16.msra.mxu0 %v1482_v35 }
  0x66   : > { %1358 = vmatprep.subr.bf16.mxu0 %v1485_v38 }
  0x67   : > { %1379 = vmatpush3.bf16.msra.mxu1 %v1484_v37 }
  0x68   : > { %1380 = vmatprep.subr.bf16.mxu1 %v1487_v40 }
  0x69   : > { %1359 = vmatpush3.bf16.msra.mxu0 %v1486_v39 }
  0x6a   : > { %1360 = vmatprep.subr.bf16.mxu0 %v1489_v42 }
  0x6b   : > { %1381 = vmatpush3.bf16.msra.mxu1 %v1488_v41 }
  0x6c   : > { %1382 = vmatprep.subr.bf16.mxu1 %v1491_v44 }
  0x6d   : > { %1361 = vmatpush3.bf16.msra.mxu0 %v1490_v43 }
  0x6e   : > { %1362 = vmatprep.subr.bf16.mxu0 %v1493_v46 }
  0x6f   : > { %1383 = vmatpush3.bf16.msra.mxu1 %v1492_v45 }
  0x70   : > { %1384 = vmatprep.subr.bf16.mxu1 %v1495_v49 }
  0x71   : > { %1363 = vmatpush3.bf16.msra.mxu0 %v1494_v48 }
  0x72   : > { %1401 = vmatprep.subr.bf16.mxu0 %v1552_v52 }
  0x73   : > { %1385 = vmatpush3.bf16.msra.mxu1 %v1499_v51 }
  0x74   : > { %1012 = vmatmul.mubr.bf16.vlgmr.msra.gmra.mxu0 %v1496_v47 }
  0x75   : > { %1402 = vmatpush3.bf16.msra.mxu0 %v1503_v53  ;;  %1417 = vmatprep.mubr.msk.bf16.mxu0 %vm1553_vm0, %v1552_v52 }
  0x76   : > { %1053 = vmatmul.mubr.bf16.vlgmr.msra.gmra.mxu1 %v1500_v50  ;;  %1403 = vmatprep.subr.bf16.mxu0 %v1552_v52 }
  0x79   : > { %1404 = vmatpush3.bf16.msra.mxu0 %v1504_v54 }
  0x7a   : > { %1405 = vmatprep.subr.bf16.mxu0 %v1552_v52 }
  0x7d   : > { %1406 = vmatpush3.bf16.msra.mxu0 %v1505_v55 }
  0x7e   : > { %1407 = vmatprep.subr.bf16.mxu0 %v1552_v52 }
  0x81   : > { %1408 = vmatpush3.bf16.msra.mxu0 %v1506_v56 }
  0x82   : > { %1409 = vmatprep.subr.bf16.mxu0 %v1552_v52 }
  0x85   : > { %1410 = vmatpush3.bf16.msra.mxu0 %v1507_v57 }
  0x86   : > { %1411 = vmatprep.subr.bf16.mxu0 %v1552_v52 }
  0x89   : > { %1412 = vmatpush3.bf16.msra.mxu0 %v1508_v58 }
  0x8a   : > { %1413 = vmatprep.subr.bf16.mxu0 %v1552_v52 }
  0x8d   : > { %1414 = vmatpush3.bf16.msra.mxu0 %v1509_v59 }
  0x8e   : > { %1415 = vmatprep.subr.bf16.mxu0 %v1552_v52 }
  0x91   : > { %1416 = vmatpush3.bf16.msra.mxu0 %v1510_v60 }
  0x94   : > { %1418 = vmatmul.mubr.bf16.vlgmr.msra.gmra.mxu0 %v1511_v61 }
 0x134   : > { %v1364_v62 = vpop.f32.mrf.mxu0 }
 0x136   : > { %v1365_v63 = vpop.f32.mrf.mxu0  ;;  %v1386_v0 = vpop.f32.mrf.mxu1 }
 0x137   : > { %v1366_v3 = vadd.f32 %v1365_v63, %v1364_v62 }
 0x138   : > { %v1367_v1 = vpop.f32.mrf.mxu0  ;;  %v1387_v2 = vpop.f32.mrf.mxu1 }
 0x139   : > { %v1014_v7 = vadd.f32 %v1366_v3, %v1288_v4  ;;  %v1388_v8 = vadd.f32 %v1387_v2, %v1386_v0 }
 0x13a   : > { %v1368_v5 = vpop.f32.mrf.mxu0  ;;  %v1389_v6 = vpop.f32.mrf.mxu1 }
 0x13b   : > { %v1369_v9 = vadd.f32 %v1368_v5, %v1367_v1  ;;  %v1055_v13 = vadd.f32 %v1388_v8, %v1014_v7 }
 0x13c   : > { %v1390_v10 = vpop.f32.mrf.mxu1 }
 0x13d   : > { %v1017_v11 = vadd.f32 %v1369_v9, %v1288_v4  ;;  %v1391_v12 = vadd.f32 %v1390_v10, %v1389_v6 }
 0x13f   : > { %v1058_v18 = vadd.f32 %v1391_v12, %v1017_v11 }
 0x154   : > { %v1095_v14 = vpop.f32.mrf.mxu0 }
 0x155   : > { %v1096_v15 = vadd.f32 %v1095_v14, %v1055_v13 }
 0x156   : > { %v1419_v17 = vpop.f32.mrf.mxu0 }
 0x157   : > { %v1109_v20 = vmul.f32 %v1334_v16, %v1096_v15 }
 0x158   : > { %v1098_v19 = vpop.f32.mrf.mxu0 }
 0x159   : > { %v1099_v21 = vadd.f32 %v1098_v19, %v1058_v18  ;;  %v1111_v24 = vmax.f32 %v1096_v15, %v1109_v20 }
 0x15a   : > { %v1420_v22 = vpop.f32.mrf.mxu0 }
 0x15b   : > { %v1110_v23 = vmul.f32 %v1334_v16, %v1099_v21 }
 0x15d   : > { %v1112_v25 = vmax.f32 %v1099_v21, %v1110_v23  ;;  %1129 = sbr.rel (!%p1614_p6) target bundleno = 362 (0x16a), region = 81 }
 0x15f   : > { %v1346_v26 = vpack.c.bf16 %v1112_v25, %v1111_v24 }
 0x161   : > { %1347 = vst [vmem:[%s604_s11] sm:$0xff] %v1346_v26  }
 0x168   : > { %v1151_v27 = vld [vmem:[%s604_s11] sm:$0xf]  ;;  %v1153_v28 = vld [vmem:[%s604_s11 + $0x4] sm:$0xf] }
 0x169   : > { %1152 = vst [vmem:[%s1134_s21] sm:$0xf] %v1151_v27  ;;  %1154 = vst [vmem:[%s1134_s21 + $0x8] sm:$0xf] %v1153_v28 }
 0x16a PF: > { %s14_s19 = sadd.s32 1, %s1550_s19   ;;  %s1890_s15 = smov %s1538_s16 }
 0x16b   : > { %p11_p12 = scmp.ge.s32.totalorder %s14_s19, 4   ;;  %s1891_s16 = smov %s1619_s25 }
 0x16c   : > { %s1892_s17 = smov %s1546_s18  ;;  %s1893_s18 = smov %s1895_s20 }
 0x16d   :  { %13 = sbr.rel (!%p11_p12) target bundleno = 3 (0x3), region = 162 }

// kernel: forward.35
= control target key start
LH: loop header
LB: loop body
LE: loop exit
PB: predicated region body
PF: predicated region fallthrough
CT: control target
= control target key end

     0   :  { %vm1184_vm0 = vmmov 0   ;;  %s1462_s1 = inlined_call_operand.vmem [shape: bf16[1152,128], index: 1, kind: input, shape index: {}]   ;;  %s1463_s0 = inlined_call_operand.vmem [shape: bf16[16,1152], index: 0, kind: input, shape index: {}]   ;;  %s1464_s2 = inlined_call_operand.vmem [shape: f32[1,128], index: 2, kind: input, shape index: {}]   ;;  %s1465_s3 = inlined_call_operand.vmem [shape: f32[1,128], index: 3, kind: input, shape index: {}]   ;;  %s1466_s4 = inlined_call_operand.vmem [shape: bf16[16,128], index: 4, kind: output, shape index: {}]  }
   0x1   :  { %v1098_v0 = vld [vmem:[%s1462_s1 + $0x78] sm:$0xff]   ;;  %v1102_v4 = vld [vmem:[%s1462_s1 + $0x70] sm:$0xff]   ;;  %v1106_v8 = vld [vmem:[%s1462_s1 + $0x68] sm:$0xff]  }
   0x2   :  { %v1099_v1 = vld [vmem:[%s1462_s1 + $0x38] sm:$0xff]   ;;  %979 = vmatprep.subr.bf16.mxu0 %v1098_v0  ;;  %v1103_v5 = vld [vmem:[%s1462_s1 + $0x30] sm:$0xff]   ;;  %v1107_v9 = vld [vmem:[%s1462_s1 + $0x28] sm:$0xff]  }
   0x3   :  { %v1100_v2 = vld [vmem:[%s1462_s1 + $0xf8] sm:$0xff]   ;;  %980 = vmatpush3.bf16.msra.mxu0 %v1099_v1  ;;  %v1104_v6 = vld [vmem:[%s1462_s1 + $0xf0] sm:$0xff]   ;;  %v1108_v10 = vld [vmem:[%s1462_s1 + $0xe8] sm:$0xff]  }
   0x4   :  { %v1101_v3 = vld [vmem:[%s1462_s1 + $0xb8] sm:$0xff]   ;;  %1001 = vmatprep.subr.bf16.mxu1 %v1100_v2  ;;  %981 = vmatprep.subr.bf16.mxu0 %v1102_v4  ;;  %v1105_v7 = vld [vmem:[%s1462_s1 + $0xb0] sm:$0xff]   ;;  %v1109_v11 = vld [vmem:[%s1462_s1 + $0xa8] sm:$0xff]  }
   0x5   :  { %1002 = vmatpush3.bf16.msra.mxu1 %v1101_v3  ;;  %v1110_v12 = vld [vmem:[%s1462_s1 + $0x60] sm:$0xff]   ;;  %v1114_v16 = vld [vmem:[%s1462_s1 + $0x58] sm:$0xff]   ;;  %v1118_v20 = vld [vmem:[%s1462_s1 + $0x50] sm:$0xff]  }
   0x6   :  { %1003 = vmatprep.subr.bf16.mxu1 %v1104_v6  ;;  %v1111_v13 = vld [vmem:[%s1462_s1 + $0x20] sm:$0xff]   ;;  %v1115_v17 = vld [vmem:[%s1462_s1 + $0x18] sm:$0xff]   ;;  %v1119_v21 = vld [vmem:[%s1462_s1 + $0x10] sm:$0xff]   ;;  %v1183_v6 = vmov 0.0  }
   0x7   :  { %982 = vmatpush3.bf16.msra.mxu0 %v1103_v5  ;;  %v1112_v14 = vld [vmem:[%s1462_s1 + $0xe0] sm:$0xff]   ;;  %v1116_v18 = vld [vmem:[%s1462_s1 + $0xd8] sm:$0xff]   ;;  %v1120_v22 = vld [vmem:[%s1462_s1 + $0xd0] sm:$0xff]  }
   0x8   :  { %983 = vmatprep.subr.bf16.mxu0 %v1106_v8  ;;  %v1113_v15 = vld [vmem:[%s1462_s1 + $0xa0] sm:$0xff]   ;;  %v1117_v19 = vld [vmem:[%s1462_s1 + $0x98] sm:$0xff]   ;;  %v1121_v23 = vld [vmem:[%s1462_s1 + $0x90] sm:$0xff]  }
   0x9   :  { %1004 = vmatpush3.bf16.msra.mxu1 %v1105_v7  ;;  %v1122_v24 = vld [vmem:[%s1462_s1 + $0x48] sm:$0xff]   ;;  %v1126_v28 = vld [vmem:[%s1462_s1 + $0x40] sm:$0xff]   ;;  %v1133_v34 = vld [vmem:[%s1462_s1 + $0x178] sm:$0xff]  }
   0xa   :  { %1005 = vmatprep.subr.bf16.mxu1 %v1108_v10  ;;  %v1123_v25 = vld [vmem:[%s1462_s1 + $0x8] sm:$0xff]   ;;  %v1127_v29 = vld [vmem:[%s1462_s1] sm:$0xff]   ;;  %v1137_v37 = vld [vmem:[%s1462_s1 + $0x138] sm:$0xff]  }
   0xb   :  { %984 = vmatpush3.bf16.msra.mxu0 %v1107_v9  ;;  %v1124_v26 = vld [vmem:[%s1462_s1 + $0xc8] sm:$0xff]   ;;  %v1128_v30 = vld [vmem:[%s1462_s1 + $0xc0] sm:$0xff]   ;;  %v1138_v38 = vld [vmem:[%s1462_s1 + $0x1f8] sm:$0xff]  }
   0xc   :  { %985 = vmatprep.subr.bf16.mxu0 %v1110_v12  ;;  %v1125_v27 = vld [vmem:[%s1462_s1 + $0x88] sm:$0xff]   ;;  %v1129_v31 = vld [vmem:[%s1463_s0] ss:$36 sps:$4 sm:$0xff]   ;;  %v1139_v39 = vld [vmem:[%s1462_s1 + $0x1b8] sm:$0xff]  }
   0xd   :  { %1006 = vmatpush3.bf16.msra.mxu1 %v1109_v11  ;;  %v1131_v32 = vld [vmem:[%s1463_s0 + $0x4] ss:$36 sps:$4 sm:$0xff]   ;;  %v1136_v36 = vld [vmem:[%s1463_s0 + $0xc] ss:$36 sps:$4 sm:$0xff]   ;;  %v1152_v52 = vld [vmem:[%s1462_s1 + $0x158] sm:$0xff]  }
   0xe   :  { %1007 = vmatprep.subr.bf16.mxu1 %v1112_v14  ;;  %v1132_v33 = vld [vmem:[%s1462_s1 + $0x80] sm:$0xff]   ;;  %689 = vmatprep.mubr.bf16.mxu0 %v1131_v32  ;;  %v1134_v35 = vld [vmem:[%s1463_s0 + $0x8] ss:$36 sps:$4 sm:$0xff]   ;;  %v1140_v40 = vld [vmem:[%s1462_s1 + $0x170] sm:$0xff]  }
   0xf   :  { %986 = vmatpush3.bf16.msra.mxu0 %v1111_v13  ;;  %730 = vmatprep.mubr.bf16.mxu1 %v1136_v36  ;;  %v1141_v41 = vld [vmem:[%s1462_s1 + $0x130] sm:$0xff]   ;;  %v1144_v44 = vld [vmem:[%s1462_s1 + $0x168] sm:$0xff]   ;;  %v1148_v48 = vld [vmem:[%s1462_s1 + $0x160] sm:$0xff]  }
  0x10   :  { %987 = vmatprep.subr.bf16.mxu0 %v1114_v16  ;;  %v1142_v42 = vld [vmem:[%s1462_s1 + $0x1f0] sm:$0xff]   ;;  %v1145_v45 = vld [vmem:[%s1462_s1 + $0x128] sm:$0xff]   ;;  %v1149_v49 = vld [vmem:[%s1462_s1 + $0x120] sm:$0xff]  }
  0x11   :  { %1008 = vmatpush3.bf16.msra.mxu1 %v1113_v15  ;;  %v1143_v43 = vld [vmem:[%s1462_s1 + $0x1b0] sm:$0xff]   ;;  %v1146_v46 = vld [vmem:[%s1462_s1 + $0x1e8] sm:$0xff]   ;;  %v1150_v50 = vld [vmem:[%s1462_s1 + $0x1e0] sm:$0xff]  }
  0x12   :  { %1009 = vmatprep.subr.bf16.mxu1 %v1116_v18  ;;  %v1147_v47 = vld [vmem:[%s1462_s1 + $0x1a8] sm:$0xff]   ;;  %v1151_v51 = vld [vmem:[%s1462_s1 + $0x1a0] sm:$0xff]   ;;  %v1153_v53 = vld [vmem:[%s1462_s1 + $0x118] sm:$0xff]  }
  0x13   :  { %988 = vmatpush3.bf16.msra.mxu0 %v1115_v17  ;;  %v1154_v54 = vld [vmem:[%s1462_s1 + $0x1d8] sm:$0xff]   ;;  %v1156_v56 = vld [vmem:[%s1462_s1 + $0x150] sm:$0xff]   ;;  %v1160_v60 = vld [vmem:[%s1462_s1 + $0x148] sm:$0xff]  }
  0x14   :  { %989 = vmatprep.subr.bf16.mxu0 %v1118_v20  ;;  %v1155_v55 = vld [vmem:[%s1462_s1 + $0x198] sm:$0xff]   ;;  %v1157_v57 = vld [vmem:[%s1462_s1 + $0x110] sm:$0xff]   ;;  %v1161_v61 = vld [vmem:[%s1462_s1 + $0x108] sm:$0xff]  }
  0x15   :  { %1010 = vmatpush3.bf16.msra.mxu1 %v1117_v19  ;;  %v1158_v58 = vld [vmem:[%s1462_s1 + $0x1d0] sm:$0xff]   ;;  %v1162_v62 = vld [vmem:[%s1462_s1 + $0x1c8] sm:$0xff]   ;;  %v1164_v0 = vld [vmem:[%s1462_s1 + $0x140] sm:$0xff]  }
  0x16   :  { %1011 = vmatprep.subr.bf16.mxu1 %v1120_v22  ;;  %v1159_v59 = vld [vmem:[%s1462_s1 + $0x190] sm:$0xff]   ;;  %v1163_v63 = vld [vmem:[%s1462_s1 + $0x188] sm:$0xff]   ;;  %v1165_v1 = vld [vmem:[%s1462_s1 + $0x100] sm:$0xff]  }
  0x17   :  { %990 = vmatpush3.bf16.msra.mxu0 %v1119_v21  ;;  %v1166_v2 = vld [vmem:[%s1462_s1 + $0x1c0] sm:$0xff]   ;;  %v1167_v3 = vld [vmem:[%s1463_s0 + $0x10] ss:$36 sps:$4 sm:$0xff]   ;;  %v1171_v7 = vld [vmem:[%s1463_s0 + $0x18] ss:$36 sps:$4 sm:$0xff]  }
  0x18   :  { %991 = vmatprep.subr.bf16.mxu0 %v1122_v24  ;;  %v1169_v4 = vld [vmem:[%s1463_s0 + $0x14] ss:$36 sps:$4 sm:$0xff]   ;;  %v1170_v5 = vld [vmem:[%s1462_s1 + $0x180] sm:$0xff]   ;;  %v1176_v11 = vld [vmem:[%s1462_s1 + $0x228] sm:$0xff]  }
  0x19   :  { %1012 = vmatpush3.bf16.msra.mxu1 %v1121_v23  ;;  %v1173_v8 = vld [vmem:[%s1463_s0 + $0x1c] ss:$36 sps:$4 sm:$0xff]   ;;  %v1175_v10 = vld [vmem:[%s1462_s1 + $0x230] sm:$0xff]   ;;  %v1180_v15 = vld [vmem:[%s1462_s1 + $0x208] sm:$0xff]  }
  0x1a   :  { %1013 = vmatprep.subr.bf16.mxu1 %v1124_v26  ;;  %v1174_v9 = vld [vmem:[%s1462_s1 + $0x238] sm:$0xff]   ;;  %v1177_v12 = vld [vmem:[%s1462_s1 + $0x220] sm:$0xff]   ;;  %v1179_v14 = vld [vmem:[%s1462_s1 + $0x210] sm:$0xff]  }
  0x1b   :  { %992 = vmatpush3.bf16.msra.mxu0 %v1123_v25  ;;  %v1178_v13 = vld [vmem:[%s1462_s1 + $0x218] sm:$0xff]   ;;  %v1181_v16 = vld [vmem:[%s1462_s1 + $0x200] sm:$0xff]  }
  0x1c   :  { %993 = vmatprep.subr.bf16.mxu0 %v1126_v28  ;;  %v1182_v17 = vld [vmem:[%s1463_s0 + $0x20] ss:$36 sps:$4 sm:$0xff]  }
  0x1d   :  { %1014 = vmatpush3.bf16.msra.mxu1 %v1125_v27 }
  0x1e   :  { %1015 = vmatprep.subr.bf16.mxu1 %v1128_v30  ;;  %v887_v30 = vld [vmem:[%s1464_s2] ss:$0 sm:$0xff] }
  0x1f   :  { %994 = vmatpush3.bf16.msra.mxu0 %v1127_v29 }
  0x20   :  { %1023 = vmatprep.subr.bf16.mxu0 %v1133_v34 }
  0x21   :  { %1016 = vmatpush3.bf16.msra.mxu1 %v1132_v33 }
  0x22   :  { %690 = vmatmul.mubr.bf16.vlgmr.msra.gmra.mxu0 %v1129_v31  ;;  %1045 = vmatprep.subr.bf16.mxu1 %v1138_v38 }
  0x23   :  { %1024 = vmatpush3.bf16.msra.mxu0 %v1137_v37  ;;  %771 = vmatprep.mubr.bf16.mxu0 %v1169_v4 }
  0x24   :  { %731 = vmatmul.mubr.bf16.vlgmr.msra.gmra.mxu1 %v1134_v35  ;;  %1025 = vmatprep.subr.bf16.mxu0 %v1140_v40 }
  0x25   :  { %1046 = vmatpush3.bf16.msra.mxu1 %v1139_v39  ;;  %812 = vmatprep.mubr.bf16.mxu1 %v1173_v8 }
  0x26   :  { %1047 = vmatprep.subr.bf16.mxu1 %v1142_v42 }
  0x27   :  { %1026 = vmatpush3.bf16.msra.mxu0 %v1141_v41 }
  0x28   :  { %1027 = vmatprep.subr.bf16.mxu0 %v1144_v44 }
  0x29   :  { %1048 = vmatpush3.bf16.msra.mxu1 %v1143_v43 }
  0x2a   :  { %1049 = vmatprep.subr.bf16.mxu1 %v1146_v46 }
  0x2b   :  { %1028 = vmatpush3.bf16.msra.mxu0 %v1145_v45 }
  0x2c   :  { %1029 = vmatprep.subr.bf16.mxu0 %v1148_v48 }
  0x2d   :  { %1050 = vmatpush3.bf16.msra.mxu1 %v1147_v47 }
  0x2e   :  { %1051 = vmatprep.subr.bf16.mxu1 %v1150_v50 }
  0x2f   :  { %1030 = vmatpush3.bf16.msra.mxu0 %v1149_v49 }
  0x30   :  { %1031 = vmatprep.subr.bf16.mxu0 %v1152_v52  ;;  %v969_v52 = vld [vmem:[%s1465_s3] ss:$0 sm:$0xff] }
  0x31   :  { %1052 = vmatpush3.bf16.msra.mxu1 %v1151_v51 }
  0x32   :  { %1053 = vmatprep.subr.bf16.mxu1 %v1154_v54 }
  0x33   :  { %1032 = vmatpush3.bf16.msra.mxu0 %v1153_v53 }
  0x34   :  { %1033 = vmatprep.subr.bf16.mxu0 %v1156_v56 }
  0x35   :  { %1054 = vmatpush3.bf16.msra.mxu1 %v1155_v55 }
  0x36   :  { %1055 = vmatprep.subr.bf16.mxu1 %v1158_v58 }
  0x37   :  { %1034 = vmatpush3.bf16.msra.mxu0 %v1157_v57 }
  0x38   :  { %1035 = vmatprep.subr.bf16.mxu0 %v1160_v60 }
  0x39   :  { %1056 = vmatpush3.bf16.msra.mxu1 %v1159_v59 }
  0x3a   :  { %1057 = vmatprep.subr.bf16.mxu1 %v1162_v62 }
  0x3b   :  { %1036 = vmatpush3.bf16.msra.mxu0 %v1161_v61 }
  0x3c   :  { %1037 = vmatprep.subr.bf16.mxu0 %v1164_v0 }
  0x3d   :  { %1058 = vmatpush3.bf16.msra.mxu1 %v1163_v63 }
  0x3e   :  { %1059 = vmatprep.subr.bf16.mxu1 %v1166_v2 }
  0x3f   :  { %1038 = vmatpush3.bf16.msra.mxu0 %v1165_v1 }
  0x40   :  { %1076 = vmatprep.subr.bf16.mxu0 %v1183_v6 }
  0x41   :  { %1060 = vmatpush3.bf16.msra.mxu1 %v1170_v5 }
  0x42   :  { %772 = vmatmul.mubr.bf16.vlgmr.msra.gmra.mxu0 %v1167_v3 }
  0x43   :  { %1092 = vmatprep.mubr.msk.bf16.mxu0 %vm1184_vm0, %v1183_v6  ;;  %1077 = vmatpush3.bf16.msra.mxu0 %v1174_v9 }
  0x44   :  { %813 = vmatmul.mubr.bf16.vlgmr.msra.gmra.mxu1 %v1171_v7  ;;  %1078 = vmatprep.subr.bf16.mxu0 %v1183_v6 }
  0x47   :  { %1079 = vmatpush3.bf16.msra.mxu0 %v1175_v10 }
  0x48   :  { %1080 = vmatprep.subr.bf16.mxu0 %v1183_v6 }
  0x4b   :  { %1081 = vmatpush3.bf16.msra.mxu0 %v1176_v11 }
  0x4c   :  { %1082 = vmatprep.subr.bf16.mxu0 %v1183_v6 }
  0x4f   :  { %1083 = vmatpush3.bf16.msra.mxu0 %v1177_v12 }
  0x50   :  { %1084 = vmatprep.subr.bf16.mxu0 %v1183_v6 }
  0x53   :  { %1085 = vmatpush3.bf16.msra.mxu0 %v1178_v13 }
  0x54   :  { %1086 = vmatprep.subr.bf16.mxu0 %v1183_v6 }
  0x57   :  { %1087 = vmatpush3.bf16.msra.mxu0 %v1179_v14 }
  0x58   :  { %1088 = vmatprep.subr.bf16.mxu0 %v1183_v6 }
  0x5b   :  { %1089 = vmatpush3.bf16.msra.mxu0 %v1180_v15 }
  0x5c   :  { %1090 = vmatprep.subr.bf16.mxu0 %v1183_v6 }
  0x5f   :  { %1091 = vmatpush3.bf16.msra.mxu0 %v1181_v16 }
  0x62   :  { %1093 = vmatmul.mubr.bf16.vlgmr.msra.gmra.mxu0 %v1182_v17 }
  0xe2   :  { %v995_v18 = vpop.f32.mrf.mxu0 }
  0xe4   :  { %v996_v19 = vpop.f32.mrf.mxu0  ;;  %v1017_v20 = vpop.f32.mrf.mxu1 }
  0xe5   :  { %v997_v29 = vadd.f32 %v996_v19, %v995_v18 }
  0xe6   :  { %v998_v21 = vpop.f32.mrf.mxu0  ;;  %v1018_v22 = vpop.f32.mrf.mxu1 }
  0xe7   :  { %v692_v33 = vadd.f32 %v997_v29, %v887_v30  ;;  %v1019_v34 = vadd.f32 %v1018_v22, %v1017_v20 }
  0xe8   :  { %v999_v23 = vpop.f32.mrf.mxu0  ;;  %v1020_v24 = vpop.f32.mrf.mxu1 }
  0xe9   :  { %v1000_v35 = vadd.f32 %v999_v23, %v998_v21  ;;  %v733_v39 = vadd.f32 %v1019_v34, %v692_v33 }
  0xea   :  { %v1021_v26 = vpop.f32.mrf.mxu1 }
  0xeb   :  { %v695_v40 = vadd.f32 %v1000_v35, %v887_v30  ;;  %v1022_v41 = vadd.f32 %v1021_v26, %v1020_v24 }
  0xed   :  { %v736_v46 = vadd.f32 %v1022_v41, %v695_v40 }
 0x102   :  { %v1039_v25 = vpop.f32.mrf.mxu0 }
 0x104   :  { %v1040_v27 = vpop.f32.mrf.mxu0  ;;  %v1061_v28 = vpop.f32.mrf.mxu1 }
 0x105   :  { %v1041_v36 = vadd.f32 %v1040_v27, %v1039_v25 }
 0x106   :  { %v1042_v31 = vpop.f32.mrf.mxu0  ;;  %v1062_v32 = vpop.f32.mrf.mxu1 }
 0x107   :  { %v774_v42 = vadd.f32 %v1041_v36, %v733_v39  ;;  %v1063_v43 = vadd.f32 %v1062_v32, %v1061_v28 }
 0x108   :  { %v1043_v37 = vpop.f32.mrf.mxu0  ;;  %v1064_v38 = vpop.f32.mrf.mxu1 }
 0x109   :  { %v1044_v44 = vadd.f32 %v1043_v37, %v1042_v31  ;;  %v815_v49 = vadd.f32 %v1063_v43, %v774_v42 }
 0x10a   :  { %v1065_v45 = vpop.f32.mrf.mxu1 }
 0x10b   :  { %v777_v47 = vadd.f32 %v1044_v44, %v736_v46  ;;  %v1066_v48 = vadd.f32 %v1065_v45, %v1064_v38 }
 0x10d   :  { %v818_v54 = vadd.f32 %v1066_v48, %v777_v47 }
 0x122   :  { %v855_v50 = vpop.f32.mrf.mxu0 }
 0x123   :  { %v856_v51 = vadd.f32 %v855_v50, %v815_v49 }
 0x124   :  { %v1094_v53 = vpop.f32.mrf.mxu0 }
 0x125   :  { %v869_v56 = vmul.f32 %v969_v52, %v856_v51 }
 0x126   :  { %v858_v55 = vpop.f32.mrf.mxu0 }
 0x127   :  { %v859_v57 = vadd.f32 %v858_v55, %v818_v54  ;;  %v871_v60 = vmax.f32 %v856_v51, %v869_v56 }
 0x128   :  { %v1095_v58 = vpop.f32.mrf.mxu0 }
 0x129   :  { %v870_v59 = vmul.f32 %v969_v52, %v859_v57 }
 0x12b   :  { %v872_v61 = vmax.f32 %v859_v57, %v870_v59 }
 0x12d   :  { %v977_v62 = vpack.c.bf16 %v872_v61, %v871_v60 }
 0x12f   :  { %978 = vst [vmem:[%s1466_s4] sm:$0xff] %v977_v62  }

// kernel: forward.34
= control target key start
LH: loop header
LB: loop body
LE: loop exit
PB: predicated region body
PF: predicated region fallthrough
CT: control target
= control target key end

     0   :  { %vm1197_vm0 = vmmov 0   ;;  %s1483_s1 = inlined_call_operand.vmem [shape: bf16[1152,128], index: 1, kind: input, shape index: {}]   ;;  %s1484_s0 = inlined_call_operand.vmem [shape: bf16[16,1152], index: 0, kind: input, shape index: {}]   ;;  %s1485_s2 = inlined_call_operand.vmem [shape: f32[1,128], index: 2, kind: input, shape index: {}]   ;;  %s1486_s4 = inlined_call_operand.vmem [shape: bf16[16,128], index: 4, kind: input, shape index: {}]   ;;  %s1487_s3 = inlined_call_operand.vmem [shape: f32[1,128], index: 3, kind: input, shape index: {}]   ;;  %s1488_s5 = inlined_call_operand.vmem [shape: bf16[16,128], index: 5, kind: output, shape index: {}]  }
   0x1   :  { %v1111_v0 = vld [vmem:[%s1483_s1 + $0x78] sm:$0xff]   ;;  %v1115_v4 = vld [vmem:[%s1483_s1 + $0x70] sm:$0xff]   ;;  %v1119_v8 = vld [vmem:[%s1483_s1 + $0x68] sm:$0xff]  }
   0x2   :  { %v1112_v1 = vld [vmem:[%s1483_s1 + $0x38] sm:$0xff]   ;;  %992 = vmatprep.subr.bf16.mxu0 %v1111_v0  ;;  %v1116_v5 = vld [vmem:[%s1483_s1 + $0x30] sm:$0xff]   ;;  %v1120_v9 = vld [vmem:[%s1483_s1 + $0x28] sm:$0xff]  }
   0x3   :  { %v1113_v2 = vld [vmem:[%s1483_s1 + $0xf8] sm:$0xff]   ;;  %993 = vmatpush3.bf16.msra.mxu0 %v1112_v1  ;;  %v1117_v6 = vld [vmem:[%s1483_s1 + $0xf0] sm:$0xff]   ;;  %v1121_v10 = vld [vmem:[%s1483_s1 + $0xe8] sm:$0xff]  }
   0x4   :  { %v1114_v3 = vld [vmem:[%s1483_s1 + $0xb8] sm:$0xff]   ;;  %1014 = vmatprep.subr.bf16.mxu1 %v1113_v2  ;;  %994 = vmatprep.subr.bf16.mxu0 %v1115_v4  ;;  %v1118_v7 = vld [vmem:[%s1483_s1 + $0xb0] sm:$0xff]   ;;  %v1122_v11 = vld [vmem:[%s1483_s1 + $0xa8] sm:$0xff]  }
   0x5   :  { %1015 = vmatpush3.bf16.msra.mxu1 %v1114_v3  ;;  %v1123_v12 = vld [vmem:[%s1483_s1 + $0x60] sm:$0xff]   ;;  %v1127_v16 = vld [vmem:[%s1483_s1 + $0x58] sm:$0xff]   ;;  %v1131_v20 = vld [vmem:[%s1483_s1 + $0x50] sm:$0xff]  }
   0x6   :  { %1016 = vmatprep.subr.bf16.mxu1 %v1117_v6  ;;  %v1124_v13 = vld [vmem:[%s1483_s1 + $0x20] sm:$0xff]   ;;  %v1128_v17 = vld [vmem:[%s1483_s1 + $0x18] sm:$0xff]   ;;  %v1132_v21 = vld [vmem:[%s1483_s1 + $0x10] sm:$0xff]   ;;  %v1196_v6 = vmov 0.0  }
   0x7   :  { %995 = vmatpush3.bf16.msra.mxu0 %v1116_v5  ;;  %v1125_v14 = vld [vmem:[%s1483_s1 + $0xe0] sm:$0xff]   ;;  %v1129_v18 = vld [vmem:[%s1483_s1 + $0xd8] sm:$0xff]   ;;  %v1133_v22 = vld [vmem:[%s1483_s1 + $0xd0] sm:$0xff]  }
   0x8   :  { %996 = vmatprep.subr.bf16.mxu0 %v1119_v8  ;;  %v1126_v15 = vld [vmem:[%s1483_s1 + $0xa0] sm:$0xff]   ;;  %v1130_v19 = vld [vmem:[%s1483_s1 + $0x98] sm:$0xff]   ;;  %v1134_v23 = vld [vmem:[%s1483_s1 + $0x90] sm:$0xff]  }
   0x9   :  { %1017 = vmatpush3.bf16.msra.mxu1 %v1118_v7  ;;  %v1135_v24 = vld [vmem:[%s1483_s1 + $0x48] sm:$0xff]   ;;  %v1139_v28 = vld [vmem:[%s1483_s1 + $0x40] sm:$0xff]   ;;  %v1146_v34 = vld [vmem:[%s1483_s1 + $0x178] sm:$0xff]  }
   0xa   :  { %1018 = vmatprep.subr.bf16.mxu1 %v1121_v10  ;;  %v1136_v25 = vld [vmem:[%s1483_s1 + $0x8] sm:$0xff]   ;;  %v1140_v29 = vld [vmem:[%s1483_s1] sm:$0xff]   ;;  %v1150_v37 = vld [vmem:[%s1483_s1 + $0x138] sm:$0xff]  }
   0xb   :  { %997 = vmatpush3.bf16.msra.mxu0 %v1120_v9  ;;  %v1137_v26 = vld [vmem:[%s1483_s1 + $0xc8] sm:$0xff]   ;;  %v1141_v30 = vld [vmem:[%s1483_s1 + $0xc0] sm:$0xff]   ;;  %v1151_v38 = vld [vmem:[%s1483_s1 + $0x1f8] sm:$0xff]  }
   0xc   :  { %998 = vmatprep.subr.bf16.mxu0 %v1123_v12  ;;  %v1138_v27 = vld [vmem:[%s1483_s1 + $0x88] sm:$0xff]   ;;  %v1142_v31 = vld [vmem:[%s1484_s0] ss:$36 sps:$4 sm:$0xff]   ;;  %v1152_v39 = vld [vmem:[%s1483_s1 + $0x1b8] sm:$0xff]  }
   0xd   :  { %1019 = vmatpush3.bf16.msra.mxu1 %v1122_v11  ;;  %v1144_v32 = vld [vmem:[%s1484_s0 + $0x4] ss:$36 sps:$4 sm:$0xff]   ;;  %v1149_v36 = vld [vmem:[%s1484_s0 + $0xc] ss:$36 sps:$4 sm:$0xff]   ;;  %v1165_v52 = vld [vmem:[%s1483_s1 + $0x158] sm:$0xff]  }
   0xe   :  { %1020 = vmatprep.subr.bf16.mxu1 %v1125_v14  ;;  %v1145_v33 = vld [vmem:[%s1483_s1 + $0x80] sm:$0xff]   ;;  %692 = vmatprep.mubr.bf16.mxu0 %v1144_v32  ;;  %v1147_v35 = vld [vmem:[%s1484_s0 + $0x8] ss:$36 sps:$4 sm:$0xff]   ;;  %v1153_v40 = vld [vmem:[%s1483_s1 + $0x170] sm:$0xff]  }
   0xf   :  { %999 = vmatpush3.bf16.msra.mxu0 %v1124_v13  ;;  %733 = vmatprep.mubr.bf16.mxu1 %v1149_v36  ;;  %v1154_v41 = vld [vmem:[%s1483_s1 + $0x130] sm:$0xff]   ;;  %v1157_v44 = vld [vmem:[%s1483_s1 + $0x168] sm:$0xff]   ;;  %v1161_v48 = vld [vmem:[%s1483_s1 + $0x160] sm:$0xff]  }
  0x10   :  { %1000 = vmatprep.subr.bf16.mxu0 %v1127_v16  ;;  %v1155_v42 = vld [vmem:[%s1483_s1 + $0x1f0] sm:$0xff]   ;;  %v1158_v45 = vld [vmem:[%s1483_s1 + $0x128] sm:$0xff]   ;;  %v1162_v49 = vld [vmem:[%s1483_s1 + $0x120] sm:$0xff]  }
  0x11   :  { %1021 = vmatpush3.bf16.msra.mxu1 %v1126_v15  ;;  %v1156_v43 = vld [vmem:[%s1483_s1 + $0x1b0] sm:$0xff]   ;;  %v1159_v46 = vld [vmem:[%s1483_s1 + $0x1e8] sm:$0xff]   ;;  %v1163_v50 = vld [vmem:[%s1483_s1 + $0x1e0] sm:$0xff]  }
  0x12   :  { %1022 = vmatprep.subr.bf16.mxu1 %v1129_v18  ;;  %v1160_v47 = vld [vmem:[%s1483_s1 + $0x1a8] sm:$0xff]   ;;  %v1164_v51 = vld [vmem:[%s1483_s1 + $0x1a0] sm:$0xff]   ;;  %v1166_v53 = vld [vmem:[%s1483_s1 + $0x118] sm:$0xff]  }
  0x13   :  { %1001 = vmatpush3.bf16.msra.mxu0 %v1128_v17  ;;  %v1167_v54 = vld [vmem:[%s1483_s1 + $0x1d8] sm:$0xff]   ;;  %v1169_v56 = vld [vmem:[%s1483_s1 + $0x150] sm:$0xff]   ;;  %v1173_v60 = vld [vmem:[%s1483_s1 + $0x148] sm:$0xff]  }
  0x14   :  { %1002 = vmatprep.subr.bf16.mxu0 %v1131_v20  ;;  %v1168_v55 = vld [vmem:[%s1483_s1 + $0x198] sm:$0xff]   ;;  %v1170_v57 = vld [vmem:[%s1483_s1 + $0x110] sm:$0xff]   ;;  %v1174_v61 = vld [vmem:[%s1483_s1 + $0x108] sm:$0xff]  }
  0x15   :  { %1023 = vmatpush3.bf16.msra.mxu1 %v1130_v19  ;;  %v1171_v58 = vld [vmem:[%s1483_s1 + $0x1d0] sm:$0xff]   ;;  %v1175_v62 = vld [vmem:[%s1483_s1 + $0x1c8] sm:$0xff]   ;;  %v1177_v0 = vld [vmem:[%s1483_s1 + $0x140] sm:$0xff]  }
  0x16   :  { %1024 = vmatprep.subr.bf16.mxu1 %v1133_v22  ;;  %v1172_v59 = vld [vmem:[%s1483_s1 + $0x190] sm:$0xff]   ;;  %v1176_v63 = vld [vmem:[%s1483_s1 + $0x188] sm:$0xff]   ;;  %v1178_v1 = vld [vmem:[%s1483_s1 + $0x100] sm:$0xff]  }
  0x17   :  { %1003 = vmatpush3.bf16.msra.mxu0 %v1132_v21  ;;  %v1179_v2 = vld [vmem:[%s1483_s1 + $0x1c0] sm:$0xff]   ;;  %v1180_v3 = vld [vmem:[%s1484_s0 + $0x10] ss:$36 sps:$4 sm:$0xff]   ;;  %v1184_v7 = vld [vmem:[%s1484_s0 + $0x18] ss:$36 sps:$4 sm:$0xff]  }
  0x18   :  { %1004 = vmatprep.subr.bf16.mxu0 %v1135_v24  ;;  %v1182_v4 = vld [vmem:[%s1484_s0 + $0x14] ss:$36 sps:$4 sm:$0xff]   ;;  %v1183_v5 = vld [vmem:[%s1483_s1 + $0x180] sm:$0xff]   ;;  %v1189_v11 = vld [vmem:[%s1483_s1 + $0x228] sm:$0xff]  }
  0x19   :  { %1025 = vmatpush3.bf16.msra.mxu1 %v1134_v23  ;;  %v1186_v8 = vld [vmem:[%s1484_s0 + $0x1c] ss:$36 sps:$4 sm:$0xff]   ;;  %v1188_v10 = vld [vmem:[%s1483_s1 + $0x230] sm:$0xff]   ;;  %v1193_v15 = vld [vmem:[%s1483_s1 + $0x208] sm:$0xff]  }
  0x1a   :  { %1026 = vmatprep.subr.bf16.mxu1 %v1137_v26  ;;  %v1187_v9 = vld [vmem:[%s1483_s1 + $0x238] sm:$0xff]   ;;  %v1190_v12 = vld [vmem:[%s1483_s1 + $0x220] sm:$0xff]   ;;  %v1192_v14 = vld [vmem:[%s1483_s1 + $0x210] sm:$0xff]  }
  0x1b   :  { %1005 = vmatpush3.bf16.msra.mxu0 %v1136_v25  ;;  %v1191_v13 = vld [vmem:[%s1483_s1 + $0x218] sm:$0xff]   ;;  %v1194_v16 = vld [vmem:[%s1483_s1 + $0x200] sm:$0xff]  }
  0x1c   :  { %1006 = vmatprep.subr.bf16.mxu0 %v1139_v28  ;;  %v1195_v17 = vld [vmem:[%s1484_s0 + $0x20] ss:$36 sps:$4 sm:$0xff]  }
  0x1d   :  { %1027 = vmatpush3.bf16.msra.mxu1 %v1138_v27 }
  0x1e   :  { %1028 = vmatprep.subr.bf16.mxu1 %v1141_v30  ;;  %v896_v30 = vld [vmem:[%s1485_s2] ss:$0 sm:$0xff] }
  0x1f   :  { %1007 = vmatpush3.bf16.msra.mxu0 %v1140_v29 }
  0x20   :  { %1036 = vmatprep.subr.bf16.mxu0 %v1146_v34 }
  0x21   :  { %1029 = vmatpush3.bf16.msra.mxu1 %v1145_v33 }
  0x22   :  { %693 = vmatmul.mubr.bf16.vlgmr.msra.gmra.mxu0 %v1142_v31  ;;  %1058 = vmatprep.subr.bf16.mxu1 %v1151_v38 }
  0x23   :  { %1037 = vmatpush3.bf16.msra.mxu0 %v1150_v37  ;;  %774 = vmatprep.mubr.bf16.mxu0 %v1182_v4 }
  0x24   :  { %734 = vmatmul.mubr.bf16.vlgmr.msra.gmra.mxu1 %v1147_v35  ;;  %1038 = vmatprep.subr.bf16.mxu0 %v1153_v40 }
  0x25   :  { %1059 = vmatpush3.bf16.msra.mxu1 %v1152_v39  ;;  %815 = vmatprep.mubr.bf16.mxu1 %v1186_v8 }
  0x26   :  { %1060 = vmatprep.subr.bf16.mxu1 %v1155_v42 }
  0x27   :  { %1039 = vmatpush3.bf16.msra.mxu0 %v1154_v41 }
  0x28   :  { %1040 = vmatprep.subr.bf16.mxu0 %v1157_v44 }
  0x29   :  { %1061 = vmatpush3.bf16.msra.mxu1 %v1156_v43 }
  0x2a   :  { %1062 = vmatprep.subr.bf16.mxu1 %v1159_v46  ;;  %v984_v46 = vld [vmem:[%s1486_s4] sm:$0xff]  }
  0x2b   :  { %1041 = vmatpush3.bf16.msra.mxu0 %v1158_v45 }
  0x2c   :  { %1042 = vmatprep.subr.bf16.mxu0 %v1161_v48 }
  0x2d   :  { %1063 = vmatpush3.bf16.msra.mxu1 %v1160_v47 }
  0x2e   :  { %1064 = vmatprep.subr.bf16.mxu1 %v1163_v50 }
  0x2f   :  { %1043 = vmatpush3.bf16.msra.mxu0 %v1162_v49 }
  0x30   :  { %1044 = vmatprep.subr.bf16.mxu0 %v1165_v52 }
  0x31   :  { %1065 = vmatpush3.bf16.msra.mxu1 %v1164_v51  ;;  %v985_v51 = vunpack.c.l.bf16 %v984_v46 }
  0x32   :  { %1066 = vmatprep.subr.bf16.mxu1 %v1167_v54 }
  0x33   :  { %1045 = vmatpush3.bf16.msra.mxu0 %v1166_v53 }
  0x34   :  { %1046 = vmatprep.subr.bf16.mxu0 %v1169_v56 }
  0x35   :  { %1067 = vmatpush3.bf16.msra.mxu1 %v1168_v55 }
  0x36   :  { %1068 = vmatprep.subr.bf16.mxu1 %v1171_v58  ;;  %v978_v58 = vld [vmem:[%s1487_s3] ss:$0 sm:$0xff] }
  0x37   :  { %1047 = vmatpush3.bf16.msra.mxu0 %v1170_v57  ;;  %v986_v57 = vunpack.c.h.bf16 %v984_v46 }
  0x38   :  { %1048 = vmatprep.subr.bf16.mxu0 %v1173_v60 }
  0x39   :  { %1069 = vmatpush3.bf16.msra.mxu1 %v1172_v59 }
  0x3a   :  { %1070 = vmatprep.subr.bf16.mxu1 %v1175_v62 }
  0x3b   :  { %1049 = vmatpush3.bf16.msra.mxu0 %v1174_v61 }
  0x3c   :  { %1050 = vmatprep.subr.bf16.mxu0 %v1177_v0 }
  0x3d   :  { %1071 = vmatpush3.bf16.msra.mxu1 %v1176_v63 }
  0x3e   :  { %1072 = vmatprep.subr.bf16.mxu1 %v1179_v2 }
  0x3f   :  { %1051 = vmatpush3.bf16.msra.mxu0 %v1178_v1 }
  0x40   :  { %1089 = vmatprep.subr.bf16.mxu0 %v1196_v6 }
  0x41   :  { %1073 = vmatpush3.bf16.msra.mxu1 %v1183_v5 }
  0x42   :  { %775 = vmatmul.mubr.bf16.vlgmr.msra.gmra.mxu0 %v1180_v3 }
  0x43   :  { %1105 = vmatprep.mubr.msk.bf16.mxu0 %vm1197_vm0, %v1196_v6  ;;  %1090 = vmatpush3.bf16.msra.mxu0 %v1187_v9 }
  0x44   :  { %816 = vmatmul.mubr.bf16.vlgmr.msra.gmra.mxu1 %v1184_v7  ;;  %1091 = vmatprep.subr.bf16.mxu0 %v1196_v6 }
  0x47   :  { %1092 = vmatpush3.bf16.msra.mxu0 %v1188_v10 }
  0x48   :  { %1093 = vmatprep.subr.bf16.mxu0 %v1196_v6 }
  0x4b   :  { %1094 = vmatpush3.bf16.msra.mxu0 %v1189_v11 }
  0x4c   :  { %1095 = vmatprep.subr.bf16.mxu0 %v1196_v6 }
  0x4f   :  { %1096 = vmatpush3.bf16.msra.mxu0 %v1190_v12 }
  0x50   :  { %1097 = vmatprep.subr.bf16.mxu0 %v1196_v6 }
  0x53   :  { %1098 = vmatpush3.bf16.msra.mxu0 %v1191_v13 }
  0x54   :  { %1099 = vmatprep.subr.bf16.mxu0 %v1196_v6 }
  0x57   :  { %1100 = vmatpush3.bf16.msra.mxu0 %v1192_v14 }
  0x58   :  { %1101 = vmatprep.subr.bf16.mxu0 %v1196_v6 }
  0x5b   :  { %1102 = vmatpush3.bf16.msra.mxu0 %v1193_v15 }
  0x5c   :  { %1103 = vmatprep.subr.bf16.mxu0 %v1196_v6 }
  0x5f   :  { %1104 = vmatpush3.bf16.msra.mxu0 %v1194_v16 }
  0x62   :  { %1106 = vmatmul.mubr.bf16.vlgmr.msra.gmra.mxu0 %v1195_v17 }
  0xe2   :  { %v1008_v18 = vpop.f32.mrf.mxu0 }
  0xe4   :  { %v1009_v19 = vpop.f32.mrf.mxu0  ;;  %v1030_v20 = vpop.f32.mrf.mxu1 }
  0xe5   :  { %v1010_v29 = vadd.f32 %v1009_v19, %v1008_v18 }
  0xe6   :  { %v1011_v21 = vpop.f32.mrf.mxu0  ;;  %v1031_v22 = vpop.f32.mrf.mxu1 }
  0xe7   :  { %v695_v33 = vadd.f32 %v1010_v29, %v896_v30  ;;  %v1032_v34 = vadd.f32 %v1031_v22, %v1030_v20 }
  0xe8   :  { %v1012_v23 = vpop.f32.mrf.mxu0  ;;  %v1033_v24 = vpop.f32.mrf.mxu1 }
  0xe9   :  { %v1013_v35 = vadd.f32 %v1012_v23, %v1011_v21  ;;  %v736_v39 = vadd.f32 %v1032_v34, %v695_v33 }
  0xea   :  { %v1034_v26 = vpop.f32.mrf.mxu1 }
  0xeb   :  { %v698_v40 = vadd.f32 %v1013_v35, %v896_v30  ;;  %v1035_v41 = vadd.f32 %v1034_v26, %v1033_v24 }
  0xed   :  { %v739_v47 = vadd.f32 %v1035_v41, %v698_v40 }
 0x102   :  { %v1052_v25 = vpop.f32.mrf.mxu0 }
 0x104   :  { %v1053_v27 = vpop.f32.mrf.mxu0  ;;  %v1074_v28 = vpop.f32.mrf.mxu1 }
 0x105   :  { %v1054_v36 = vadd.f32 %v1053_v27, %v1052_v25 }
 0x106   :  { %v1055_v31 = vpop.f32.mrf.mxu0  ;;  %v1075_v32 = vpop.f32.mrf.mxu1 }
 0x107   :  { %v777_v42 = vadd.f32 %v1054_v36, %v736_v39  ;;  %v1076_v43 = vadd.f32 %v1075_v32, %v1074_v28 }
 0x108   :  { %v1056_v37 = vpop.f32.mrf.mxu0  ;;  %v1077_v38 = vpop.f32.mrf.mxu1 }
 0x109   :  { %v1057_v44 = vadd.f32 %v1056_v37, %v1055_v31  ;;  %v818_v50 = vadd.f32 %v1076_v43, %v777_v42 }
 0x10a   :  { %v1078_v45 = vpop.f32.mrf.mxu1 }
 0x10b   :  { %v780_v48 = vadd.f32 %v1057_v44, %v739_v47  ;;  %v1079_v49 = vadd.f32 %v1078_v45, %v1077_v38 }
 0x10d   :  { %v821_v56 = vadd.f32 %v1079_v49, %v780_v48 }
 0x122   :  { %v858_v52 = vpop.f32.mrf.mxu0 }
 0x123   :  { %v859_v53 = vadd.f32 %v858_v52, %v818_v50 }
 0x124   :  { %v1107_v54 = vpop.f32.mrf.mxu0 }
 0x125   :  { %v869_v55 = vadd.f32 %v985_v51, %v859_v53 }
 0x126   :  { %v861_v59 = vpop.f32.mrf.mxu0 }
 0x127   :  { %v862_v60 = vadd.f32 %v861_v59, %v821_v56  ;;  %v878_v62 = vmul.f32 %v978_v58, %v869_v55 }
 0x128   :  { %v1108_v61 = vpop.f32.mrf.mxu0 }
 0x129   :  { %v870_v63 = vadd.f32 %v986_v57, %v862_v60  ;;  %v880_v1 = vmax.f32 %v869_v55, %v878_v62 }
 0x12b   :  { %v879_v0 = vmul.f32 %v978_v58, %v870_v63 }
 0x12d   :  { %v881_v2 = vmax.f32 %v870_v63, %v879_v0 }
 0x12f   :  { %v990_v3 = vpack.c.bf16 %v881_v2, %v880_v1 }
 0x131   :  { %991 = vst [vmem:[%s1488_s5] sm:$0xff] %v990_v3  }

// kernel: forward.39
= control target key start
LH: loop header
LB: loop body
LE: loop exit
PB: predicated region body
PF: predicated region fallthrough
CT: control target
= control target key end

     0   :  { %s2315_s15 = smov 0   ;;  %s2317_s16 = smov 0   ;;  %s2796_s0 = inlined_call_operand.vmem [shape: bf16[16,1152], index: 0, kind: input, shape index: {}]   ;;  %s2797_s1 = inlined_call_operand.vmem [shape: bf16[1152,512], index: 1, kind: input, shape index: {}]   ;;  %s2798_s2 = inlined_call_operand.vmem [shape: f32[1,512], index: 2, kind: input, shape index: {}]   ;;  %s2799_s3 = inlined_call_operand.vmem [shape: f32[1,512], index: 3, kind: input, shape index: {}]   ;;  %s2800_s4 = inlined_call_operand.vmem [shape: bf16[16,512], index: 4, kind: output, shape index: {}]  }
   0x1   :  { %s2319_s17 = smov 0   ;;  %s2321_s18 = smov 0  }
   0x2   :  { %s2323_s19 = smov 0  }
   0x3 LB: > { %s23_s20 = sadd.s32 1, %s2282_s18  ;;  %s1898_s21 = sadd.s32 4294967295, %s2286_s19   ;;  %s2286_s19 = sphi %s2323_s19, %s14_s19   ;;  %s2282_s18 = sphi %s2321_s18, %s2805_s18   ;;  %s2278_s17 = sphi %s2319_s17, %s2804_s17   ;;  %s2274_s16 = sphi %s2317_s16, %s2803_s16   ;;  %s2270_s15 = sphi %s2315_s15, %s2802_s15  }
   0x4   : > { %p24_p0 = scmp.ge.s32.totalorder %s23_s20, 4  ;;  %p66_p1 = scmp.ne.s32.totalorder %s2274_s16, %s2270_s15 }
   0x5   : > { %p67_p2 = scmp.eq.s32.totalorder %s2286_s19, 0  ;;  %p150_p4 = scmp.eq.s32.totalorder %s1898_s21, 3 }
   0x6   : > { %s2807_s20 = smov (%p24_p0, %s23_s20), 0  ;;  %s59_s23 = sadd.s32 1, %s2274_s16 }
   0x7   : > { %p68_p3 = por %p67_p2, %p66_p1  ;;  %s56_s22 = ssub.s32 %s2282_s18, %s2807_s20 }
   0x8   : > { %p57_p5 = scmp.eq.s32.totalorder %s56_s22, 0  ;;  %p2350_p6 = por %p150_p4, %p66_p1 }
   0x9   : > { %p1902_p7 = scmp.ge.s32.totalorder %s2286_s19, 4 }
   0xa   : > { %s2355_s25 = scalar_select %p57_p5, %s2274_s16, %s59_s23  }
   0xb   : > { %182 = sbr.rel (%p1902_p7) target bundleno = 116 (0x74), region = 20 }
  0x10   : > { %185 = sbr.rel (!%p68_p3) target bundleno = 116 (0x74), region = 24  ;;  %s187_s26 = sand.u32 (%p68_p3), 1, %s2274_s16  }
  0x11   : > { %s1903_s27 = sshll.u32 (%p68_p3), %s2282_s18, 2  ;;  %s2119_s28 = smul.u32 (%p68_p3), 576, %s187_s26 }
  0x12   : > { %s2363_s5 = scalar_lea.vmem (%p68_p3), %s2797_s1, %s1903_s27 }
  0x13   : > { %v208_v0 = vld [vmem:[%s2363_s5] sm:$0xf] (%p68_p3)  ;;  %v210_v1 = vld [vmem:[%s2363_s5 + $0x10] sm:$0xf] (%p68_p3)  ;;  %s2370_s6 = scalar_lea.vmem (%p68_p3), [#allocation2], %s2119_s28 }
  0x14   : > { %v212_v2 = vld [vmem:[%s2363_s5 + $0x20] sm:$0xf] (%p68_p3)  ;;  %v214_v3 = vld [vmem:[%s2363_s5 + $0x30] sm:$0xf] (%p68_p3)  ;;  %209 = vst [vmem:[%s2370_s6] sm:$0xf] (%p68_p3), %v208_v0 }
  0x15   : > { %v216_v4 = vld [vmem:[%s2363_s5 + $0x40] sm:$0xf]  ;;  %211 = vst [vmem:[%s2370_s6 + $0x4] sm:$0xf] %v210_v1  ;;  %213 = vst [vmem:[%s2370_s6 + $0x8] sm:$0xf] %v212_v2 }
  0x16   : > { %215 = vst [vmem:[%s2370_s6 + $0xc] sm:$0xf] %v214_v3  ;;  %217 = vst [vmem:[%s2370_s6 + $0x10] sm:$0xf] %v216_v4  ;;  %v218_v5 = vld [vmem:[%s2363_s5 + $0x50] sm:$0xf] }
  0x17   : > { %v220_v6 = vld [vmem:[%s2363_s5 + $0x60] sm:$0xf]  ;;  %v222_v7 = vld [vmem:[%s2363_s5 + $0x70] sm:$0xf]  ;;  %219 = vst [vmem:[%s2370_s6 + $0x14] sm:$0xf] %v218_v5 }
  0x18   : > { %221 = vst [vmem:[%s2370_s6 + $0x18] sm:$0xf] %v220_v6  ;;  %223 = vst [vmem:[%s2370_s6 + $0x1c] sm:$0xf] %v222_v7  ;;  %v224_v8 = vld [vmem:[%s2363_s5 + $0x80] sm:$0xf] }
  0x19   : > { %v226_v9 = vld [vmem:[%s2363_s5 + $0x90] sm:$0xf]  ;;  %v228_v10 = vld [vmem:[%s2363_s5 + $0xa0] sm:$0xf]  ;;  %225 = vst [vmem:[%s2370_s6 + $0x20] sm:$0xf] %v224_v8 }
  0x1a   : > { %227 = vst [vmem:[%s2370_s6 + $0x24] sm:$0xf] %v226_v9  ;;  %229 = vst [vmem:[%s2370_s6 + $0x28] sm:$0xf] %v228_v10  ;;  %v230_v11 = vld [vmem:[%s2363_s5 + $0xb0] sm:$0xf] }
  0x1b   : > { %v232_v12 = vld [vmem:[%s2363_s5 + $0xc0] sm:$0xf]  ;;  %v234_v13 = vld [vmem:[%s2363_s5 + $0xd0] sm:$0xf]  ;;  %231 = vst [vmem:[%s2370_s6 + $0x2c] sm:$0xf] %v230_v11 }
  0x1c   : > { %233 = vst [vmem:[%s2370_s6 + $0x30] sm:$0xf] %v232_v12  ;;  %235 = vst [vmem:[%s2370_s6 + $0x34] sm:$0xf] %v234_v13  ;;  %v236_v14 = vld [vmem:[%s2363_s5 + $0xe0] sm:$0xf] }
  0x1d   : > { %v238_v15 = vld [vmem:[%s2363_s5 + $0xf0] sm:$0xf]  ;;  %v240_v16 = vld [vmem:[%s2363_s5 + $0x100] sm:$0xf]  ;;  %237 = vst [vmem:[%s2370_s6 + $0x38] sm:$0xf] %v236_v14 }
  0x1e   : > { %239 = vst [vmem:[%s2370_s6 + $0x3c] sm:$0xf] %v238_v15  ;;  %241 = vst [vmem:[%s2370_s6 + $0x40] sm:$0xf] %v240_v16  ;;  %v242_v17 = vld [vmem:[%s2363_s5 + $0x110] sm:$0xf] }
  0x1f   : > { %v244_v18 = vld [vmem:[%s2363_s5 + $0x120] sm:$0xf]  ;;  %v246_v19 = vld [vmem:[%s2363_s5 + $0x130] sm:$0xf]  ;;  %243 = vst [vmem:[%s2370_s6 + $0x44] sm:$0xf] %v242_v17 }
  0x20   : > { %245 = vst [vmem:[%s2370_s6 + $0x48] sm:$0xf] %v244_v18  ;;  %247 = vst [vmem:[%s2370_s6 + $0x4c] sm:$0xf] %v246_v19  ;;  %v248_v20 = vld [vmem:[%s2363_s5 + $0x140] sm:$0xf] }
  0x21   : > { %v250_v21 = vld [vmem:[%s2363_s5 + $0x150] sm:$0xf]  ;;  %v252_v22 = vld [vmem:[%s2363_s5 + $0x160] sm:$0xf]  ;;  %249 = vst [vmem:[%s2370_s6 + $0x50] sm:$0xf] %v248_v20 }
  0x22   : > { %251 = vst [vmem:[%s2370_s6 + $0x54] sm:$0xf] %v250_v21  ;;  %253 = vst [vmem:[%s2370_s6 + $0x58] sm:$0xf] %v252_v22  ;;  %v254_v23 = vld [vmem:[%s2363_s5 + $0x170] sm:$0xf] }
  0x23   : > { %v256_v24 = vld [vmem:[%s2363_s5 + $0x180] sm:$0xf]  ;;  %v258_v25 = vld [vmem:[%s2363_s5 + $0x190] sm:$0xf]  ;;  %255 = vst [vmem:[%s2370_s6 + $0x5c] sm:$0xf] %v254_v23 }
  0x24   : > { %257 = vst [vmem:[%s2370_s6 + $0x60] sm:$0xf] %v256_v24  ;;  %259 = vst [vmem:[%s2370_s6 + $0x64] sm:$0xf] %v258_v25  ;;  %v260_v26 = vld [vmem:[%s2363_s5 + $0x1a0] sm:$0xf] }
  0x25   : > { %v262_v27 = vld [vmem:[%s2363_s5 + $0x1b0] sm:$0xf]  ;;  %v264_v28 = vld [vmem:[%s2363_s5 + $0x1c0] sm:$0xf]  ;;  %261 = vst [vmem:[%s2370_s6 + $0x68] sm:$0xf] %v260_v26 }
  0x26   : > { %263 = vst [vmem:[%s2370_s6 + $0x6c] sm:$0xf] %v262_v27  ;;  %265 = vst [vmem:[%s2370_s6 + $0x70] sm:$0xf] %v264_v28  ;;  %v266_v29 = vld [vmem:[%s2363_s5 + $0x1d0] sm:$0xf] }
  0x27   : > { %v268_v30 = vld [vmem:[%s2363_s5 + $0x1e0] sm:$0xf]  ;;  %v270_v31 = vld [vmem:[%s2363_s5 + $0x1f0] sm:$0xf]  ;;  %267 = vst [vmem:[%s2370_s6 + $0x74] sm:$0xf] %v266_v29 }
  0x28   : > { %269 = vst [vmem:[%s2370_s6 + $0x78] sm:$0xf] %v268_v30  ;;  %271 = vst [vmem:[%s2370_s6 + $0x7c] sm:$0xf] %v270_v31  ;;  %v272_v32 = vld [vmem:[%s2363_s5 + $0x200] sm:$0xf] }
  0x29   : > { %v274_v33 = vld [vmem:[%s2363_s5 + $0x210] sm:$0xf]  ;;  %v276_v34 = vld [vmem:[%s2363_s5 + $0x220] sm:$0xf]  ;;  %273 = vst [vmem:[%s2370_s6 + $0x80] sm:$0xf] %v272_v32 }
  0x2a   : > { %275 = vst [vmem:[%s2370_s6 + $0x84] sm:$0xf] %v274_v33  ;;  %277 = vst [vmem:[%s2370_s6 + $0x88] sm:$0xf] %v276_v34  ;;  %v278_v35 = vld [vmem:[%s2363_s5 + $0x230] sm:$0xf] }
  0x2b   : > { %v280_v36 = vld [vmem:[%s2363_s5 + $0x240] sm:$0xf]  ;;  %v282_v37 = vld [vmem:[%s2363_s5 + $0x250] sm:$0xf]  ;;  %279 = vst [vmem:[%s2370_s6 + $0x8c] sm:$0xf] %v278_v35 }
  0x2c   : > { %281 = vst [vmem:[%s2370_s6 + $0x90] sm:$0xf] %v280_v36  ;;  %283 = vst [vmem:[%s2370_s6 + $0x94] sm:$0xf] %v282_v37  ;;  %v284_v38 = vld [vmem:[%s2363_s5 + $0x260] sm:$0xf] }
  0x2d   : > { %v286_v39 = vld [vmem:[%s2363_s5 + $0x270] sm:$0xf]  ;;  %v288_v40 = vld [vmem:[%s2363_s5 + $0x280] sm:$0xf]  ;;  %285 = vst [vmem:[%s2370_s6 + $0x98] sm:$0xf] %v284_v38 }
  0x2e   : > { %287 = vst [vmem:[%s2370_s6 + $0x9c] sm:$0xf] %v286_v39  ;;  %289 = vst [vmem:[%s2370_s6 + $0xa0] sm:$0xf] %v288_v40  ;;  %v290_v41 = vld [vmem:[%s2363_s5 + $0x290] sm:$0xf] }
  0x2f   : > { %v292_v42 = vld [vmem:[%s2363_s5 + $0x2a0] sm:$0xf]  ;;  %v294_v43 = vld [vmem:[%s2363_s5 + $0x2b0] sm:$0xf]  ;;  %291 = vst [vmem:[%s2370_s6 + $0xa4] sm:$0xf] %v290_v41 }
  0x30   : > { %293 = vst [vmem:[%s2370_s6 + $0xa8] sm:$0xf] %v292_v42  ;;  %295 = vst [vmem:[%s2370_s6 + $0xac] sm:$0xf] %v294_v43  ;;  %v296_v44 = vld [vmem:[%s2363_s5 + $0x2c0] sm:$0xf] }
  0x31   : > { %v298_v45 = vld [vmem:[%s2363_s5 + $0x2d0] sm:$0xf]  ;;  %v300_v46 = vld [vmem:[%s2363_s5 + $0x2e0] sm:$0xf]  ;;  %297 = vst [vmem:[%s2370_s6 + $0xb0] sm:$0xf] %v296_v44 }
  0x32   : > { %299 = vst [vmem:[%s2370_s6 + $0xb4] sm:$0xf] %v298_v45  ;;  %301 = vst [vmem:[%s2370_s6 + $0xb8] sm:$0xf] %v300_v46  ;;  %v302_v47 = vld [vmem:[%s2363_s5 + $0x2f0] sm:$0xf] }
  0x33   : > { %v304_v48 = vld [vmem:[%s2363_s5 + $0x300] sm:$0xf]  ;;  %v306_v49 = vld [vmem:[%s2363_s5 + $0x310] sm:$0xf]  ;;  %303 = vst [vmem:[%s2370_s6 + $0xbc] sm:$0xf] %v302_v47 }
  0x34   : > { %305 = vst [vmem:[%s2370_s6 + $0xc0] sm:$0xf] %v304_v48  ;;  %307 = vst [vmem:[%s2370_s6 + $0xc4] sm:$0xf] %v306_v49  ;;  %v308_v50 = vld [vmem:[%s2363_s5 + $0x320] sm:$0xf] }
  0x35   : > { %v310_v51 = vld [vmem:[%s2363_s5 + $0x330] sm:$0xf]  ;;  %v312_v52 = vld [vmem:[%s2363_s5 + $0x340] sm:$0xf]  ;;  %309 = vst [vmem:[%s2370_s6 + $0xc8] sm:$0xf] %v308_v50 }
  0x36   : > { %311 = vst [vmem:[%s2370_s6 + $0xcc] sm:$0xf] %v310_v51  ;;  %313 = vst [vmem:[%s2370_s6 + $0xd0] sm:$0xf] %v312_v52  ;;  %v314_v53 = vld [vmem:[%s2363_s5 + $0x350] sm:$0xf] }
  0x37   : > { %v316_v54 = vld [vmem:[%s2363_s5 + $0x360] sm:$0xf]  ;;  %v318_v55 = vld [vmem:[%s2363_s5 + $0x370] sm:$0xf]  ;;  %315 = vst [vmem:[%s2370_s6 + $0xd4] sm:$0xf] %v314_v53 }
  0x38   : > { %317 = vst [vmem:[%s2370_s6 + $0xd8] sm:$0xf] %v316_v54  ;;  %319 = vst [vmem:[%s2370_s6 + $0xdc] sm:$0xf] %v318_v55  ;;  %v320_v56 = vld [vmem:[%s2363_s5 + $0x380] sm:$0xf] }
  0x39   : > { %v322_v57 = vld [vmem:[%s2363_s5 + $0x390] sm:$0xf]  ;;  %v324_v58 = vld [vmem:[%s2363_s5 + $0x3a0] sm:$0xf]  ;;  %321 = vst [vmem:[%s2370_s6 + $0xe0] sm:$0xf] %v320_v56 }
  0x3a   : > { %323 = vst [vmem:[%s2370_s6 + $0xe4] sm:$0xf] %v322_v57  ;;  %325 = vst [vmem:[%s2370_s6 + $0xe8] sm:$0xf] %v324_v58  ;;  %v326_v59 = vld [vmem:[%s2363_s5 + $0x3b0] sm:$0xf] }
  0x3b   : > { %v328_v60 = vld [vmem:[%s2363_s5 + $0x3c0] sm:$0xf]  ;;  %v330_v61 = vld [vmem:[%s2363_s5 + $0x3d0] sm:$0xf]  ;;  %327 = vst [vmem:[%s2370_s6 + $0xec] sm:$0xf] %v326_v59 }
  0x3c   : > { %329 = vst [vmem:[%s2370_s6 + $0xf0] sm:$0xf] %v328_v60  ;;  %331 = vst [vmem:[%s2370_s6 + $0xf4] sm:$0xf] %v330_v61  ;;  %v332_v62 = vld [vmem:[%s2363_s5 + $0x3e0] sm:$0xf] }
  0x3d   : > { %v334_v63 = vld [vmem:[%s2363_s5 + $0x3f0] sm:$0xf]  ;;  %v336_v0 = vld [vmem:[%s2363_s5 + $0x400] sm:$0xf]  ;;  %333 = vst [vmem:[%s2370_s6 + $0xf8] sm:$0xf] %v332_v62 }
  0x3e   : > { %335 = vst [vmem:[%s2370_s6 + $0xfc] sm:$0xf] %v334_v63  ;;  %337 = vst [vmem:[%s2370_s6 + $0x100] sm:$0xf] %v336_v0  ;;  %v338_v1 = vld [vmem:[%s2363_s5 + $0x410] sm:$0xf] }
  0x3f   : > { %v340_v2 = vld [vmem:[%s2363_s5 + $0x420] sm:$0xf]  ;;  %v342_v3 = vld [vmem:[%s2363_s5 + $0x430] sm:$0xf]  ;;  %339 = vst [vmem:[%s2370_s6 + $0x104] sm:$0xf] %v338_v1 }
  0x40   : > { %341 = vst [vmem:[%s2370_s6 + $0x108] sm:$0xf] %v340_v2  ;;  %343 = vst [vmem:[%s2370_s6 + $0x10c] sm:$0xf] %v342_v3  ;;  %v344_v4 = vld [vmem:[%s2363_s5 + $0x440] sm:$0xf] }
  0x41   : > { %v346_v5 = vld [vmem:[%s2363_s5 + $0x450] sm:$0xf]  ;;  %v348_v6 = vld [vmem:[%s2363_s5 + $0x460] sm:$0xf]  ;;  %345 = vst [vmem:[%s2370_s6 + $0x110] sm:$0xf] %v344_v4 }
  0x42   : > { %347 = vst [vmem:[%s2370_s6 + $0x114] sm:$0xf] %v346_v5  ;;  %349 = vst [vmem:[%s2370_s6 + $0x118] sm:$0xf] %v348_v6  ;;  %v350_v7 = vld [vmem:[%s2363_s5 + $0x470] sm:$0xf] }
  0x43   : > { %v352_v8 = vld [vmem:[%s2363_s5 + $0x480] sm:$0xf]  ;;  %v354_v9 = vld [vmem:[%s2363_s5 + $0x490] sm:$0xf]  ;;  %351 = vst [vmem:[%s2370_s6 + $0x11c] sm:$0xf] %v350_v7 }
  0x44   : > { %353 = vst [vmem:[%s2370_s6 + $0x120] sm:$0xf] %v352_v8  ;;  %355 = vst [vmem:[%s2370_s6 + $0x124] sm:$0xf] %v354_v9  ;;  %v356_v10 = vld [vmem:[%s2363_s5 + $0x4a0] sm:$0xf] }
  0x45   : > { %v358_v11 = vld [vmem:[%s2363_s5 + $0x4b0] sm:$0xf]  ;;  %v360_v12 = vld [vmem:[%s2363_s5 + $0x4c0] sm:$0xf]  ;;  %357 = vst [vmem:[%s2370_s6 + $0x128] sm:$0xf] %v356_v10 }
  0x46   : > { %359 = vst [vmem:[%s2370_s6 + $0x12c] sm:$0xf] %v358_v11  ;;  %361 = vst [vmem:[%s2370_s6 + $0x130] sm:$0xf] %v360_v12  ;;  %v362_v13 = vld [vmem:[%s2363_s5 + $0x4d0] sm:$0xf] }
  0x47   : > { %v364_v14 = vld [vmem:[%s2363_s5 + $0x4e0] sm:$0xf]  ;;  %v366_v15 = vld [vmem:[%s2363_s5 + $0x4f0] sm:$0xf]  ;;  %363 = vst [vmem:[%s2370_s6 + $0x134] sm:$0xf] %v362_v13 }
  0x48   : > { %365 = vst [vmem:[%s2370_s6 + $0x138] sm:$0xf] %v364_v14  ;;  %367 = vst [vmem:[%s2370_s6 + $0x13c] sm:$0xf] %v366_v15  ;;  %v368_v16 = vld [vmem:[%s2363_s5 + $0x500] sm:$0xf] }
  0x49   : > { %v370_v17 = vld [vmem:[%s2363_s5 + $0x510] sm:$0xf]  ;;  %v372_v18 = vld [vmem:[%s2363_s5 + $0x520] sm:$0xf]  ;;  %369 = vst [vmem:[%s2370_s6 + $0x140] sm:$0xf] %v368_v16 }
  0x4a   : > { %371 = vst [vmem:[%s2370_s6 + $0x144] sm:$0xf] %v370_v17  ;;  %373 = vst [vmem:[%s2370_s6 + $0x148] sm:$0xf] %v372_v18  ;;  %v374_v19 = vld [vmem:[%s2363_s5 + $0x530] sm:$0xf] }
  0x4b   : > { %v376_v20 = vld [vmem:[%s2363_s5 + $0x540] sm:$0xf]  ;;  %v378_v21 = vld [vmem:[%s2363_s5 + $0x550] sm:$0xf]  ;;  %375 = vst [vmem:[%s2370_s6 + $0x14c] sm:$0xf] %v374_v19 }
  0x4c   : > { %377 = vst [vmem:[%s2370_s6 + $0x150] sm:$0xf] %v376_v20  ;;  %379 = vst [vmem:[%s2370_s6 + $0x154] sm:$0xf] %v378_v21  ;;  %v380_v22 = vld [vmem:[%s2363_s5 + $0x560] sm:$0xf] }
  0x4d   : > { %v382_v23 = vld [vmem:[%s2363_s5 + $0x570] sm:$0xf]  ;;  %v384_v24 = vld [vmem:[%s2363_s5 + $0x580] sm:$0xf]  ;;  %381 = vst [vmem:[%s2370_s6 + $0x158] sm:$0xf] %v380_v22 }
  0x4e   : > { %383 = vst [vmem:[%s2370_s6 + $0x15c] sm:$0xf] %v382_v23  ;;  %385 = vst [vmem:[%s2370_s6 + $0x160] sm:$0xf] %v384_v24  ;;  %v386_v25 = vld [vmem:[%s2363_s5 + $0x590] sm:$0xf] }
  0x4f   : > { %v388_v26 = vld [vmem:[%s2363_s5 + $0x5a0] sm:$0xf]  ;;  %v390_v27 = vld [vmem:[%s2363_s5 + $0x5b0] sm:$0xf]  ;;  %387 = vst [vmem:[%s2370_s6 + $0x164] sm:$0xf] %v386_v25 }
  0x50   : > { %389 = vst [vmem:[%s2370_s6 + $0x168] sm:$0xf] %v388_v26  ;;  %391 = vst [vmem:[%s2370_s6 + $0x16c] sm:$0xf] %v390_v27  ;;  %v392_v28 = vld [vmem:[%s2363_s5 + $0x5c0] sm:$0xf] }
  0x51   : > { %v394_v29 = vld [vmem:[%s2363_s5 + $0x5d0] sm:$0xf]  ;;  %v396_v30 = vld [vmem:[%s2363_s5 + $0x5e0] sm:$0xf]  ;;  %393 = vst [vmem:[%s2370_s6 + $0x170] sm:$0xf] %v392_v28 }
  0x52   : > { %395 = vst [vmem:[%s2370_s6 + $0x174] sm:$0xf] %v394_v29  ;;  %397 = vst [vmem:[%s2370_s6 + $0x178] sm:$0xf] %v396_v30  ;;  %v398_v31 = vld [vmem:[%s2363_s5 + $0x5f0] sm:$0xf] }
  0x53   : > { %v400_v32 = vld [vmem:[%s2363_s5 + $0x600] sm:$0xf]  ;;  %v402_v33 = vld [vmem:[%s2363_s5 + $0x610] sm:$0xf]  ;;  %399 = vst [vmem:[%s2370_s6 + $0x17c] sm:$0xf] %v398_v31 }
  0x54   : > { %401 = vst [vmem:[%s2370_s6 + $0x180] sm:$0xf] %v400_v32  ;;  %403 = vst [vmem:[%s2370_s6 + $0x184] sm:$0xf] %v402_v33  ;;  %v404_v34 = vld [vmem:[%s2363_s5 + $0x620] sm:$0xf] }
  0x55   : > { %v406_v35 = vld [vmem:[%s2363_s5 + $0x630] sm:$0xf]  ;;  %v408_v36 = vld [vmem:[%s2363_s5 + $0x640] sm:$0xf]  ;;  %405 = vst [vmem:[%s2370_s6 + $0x188] sm:$0xf] %v404_v34 }
  0x56   : > { %407 = vst [vmem:[%s2370_s6 + $0x18c] sm:$0xf] %v406_v35  ;;  %409 = vst [vmem:[%s2370_s6 + $0x190] sm:$0xf] %v408_v36  ;;  %v410_v37 = vld [vmem:[%s2363_s5 + $0x650] sm:$0xf] }
  0x57   : > { %v412_v38 = vld [vmem:[%s2363_s5 + $0x660] sm:$0xf]  ;;  %v414_v39 = vld [vmem:[%s2363_s5 + $0x670] sm:$0xf]  ;;  %411 = vst [vmem:[%s2370_s6 + $0x194] sm:$0xf] %v410_v37 }
  0x58   : > { %413 = vst [vmem:[%s2370_s6 + $0x198] sm:$0xf] %v412_v38  ;;  %415 = vst [vmem:[%s2370_s6 + $0x19c] sm:$0xf] %v414_v39  ;;  %v416_v40 = vld [vmem:[%s2363_s5 + $0x680] sm:$0xf] }
  0x59   : > { %v418_v41 = vld [vmem:[%s2363_s5 + $0x690] sm:$0xf]  ;;  %v420_v42 = vld [vmem:[%s2363_s5 + $0x6a0] sm:$0xf]  ;;  %417 = vst [vmem:[%s2370_s6 + $0x1a0] sm:$0xf] %v416_v40 }
  0x5a   : > { %419 = vst [vmem:[%s2370_s6 + $0x1a4] sm:$0xf] %v418_v41  ;;  %421 = vst [vmem:[%s2370_s6 + $0x1a8] sm:$0xf] %v420_v42  ;;  %v422_v43 = vld [vmem:[%s2363_s5 + $0x6b0] sm:$0xf] }
  0x5b   : > { %v424_v44 = vld [vmem:[%s2363_s5 + $0x6c0] sm:$0xf]  ;;  %v426_v45 = vld [vmem:[%s2363_s5 + $0x6d0] sm:$0xf]  ;;  %423 = vst [vmem:[%s2370_s6 + $0x1ac] sm:$0xf] %v422_v43 }
  0x5c   : > { %425 = vst [vmem:[%s2370_s6 + $0x1b0] sm:$0xf] %v424_v44  ;;  %427 = vst [vmem:[%s2370_s6 + $0x1b4] sm:$0xf] %v426_v45  ;;  %v428_v46 = vld [vmem:[%s2363_s5 + $0x6e0] sm:$0xf] }
  0x5d   : > { %v430_v47 = vld [vmem:[%s2363_s5 + $0x6f0] sm:$0xf]  ;;  %v432_v48 = vld [vmem:[%s2363_s5 + $0x700] sm:$0xf]  ;;  %429 = vst [vmem:[%s2370_s6 + $0x1b8] sm:$0xf] %v428_v46 }
  0x5e   : > { %431 = vst [vmem:[%s2370_s6 + $0x1bc] sm:$0xf] %v430_v47  ;;  %433 = vst [vmem:[%s2370_s6 + $0x1c0] sm:$0xf] %v432_v48  ;;  %v434_v49 = vld [vmem:[%s2363_s5 + $0x710] sm:$0xf] }
  0x5f   : > { %v436_v50 = vld [vmem:[%s2363_s5 + $0x720] sm:$0xf]  ;;  %v438_v51 = vld [vmem:[%s2363_s5 + $0x730] sm:$0xf]  ;;  %435 = vst [vmem:[%s2370_s6 + $0x1c4] sm:$0xf] %v434_v49 }
  0x60   : > { %437 = vst [vmem:[%s2370_s6 + $0x1c8] sm:$0xf] %v436_v50  ;;  %439 = vst [vmem:[%s2370_s6 + $0x1cc] sm:$0xf] %v438_v51  ;;  %v440_v52 = vld [vmem:[%s2363_s5 + $0x740] sm:$0xf] }
  0x61   : > { %v442_v53 = vld [vmem:[%s2363_s5 + $0x750] sm:$0xf]  ;;  %v444_v54 = vld [vmem:[%s2363_s5 + $0x760] sm:$0xf]  ;;  %441 = vst [vmem:[%s2370_s6 + $0x1d0] sm:$0xf] %v440_v52 }
  0x62   : > { %443 = vst [vmem:[%s2370_s6 + $0x1d4] sm:$0xf] %v442_v53  ;;  %445 = vst [vmem:[%s2370_s6 + $0x1d8] sm:$0xf] %v444_v54  ;;  %v446_v55 = vld [vmem:[%s2363_s5 + $0x770] sm:$0xf] }
  0x63   : > { %v448_v56 = vld [vmem:[%s2363_s5 + $0x780] sm:$0xf]  ;;  %v450_v57 = vld [vmem:[%s2363_s5 + $0x790] sm:$0xf]  ;;  %447 = vst [vmem:[%s2370_s6 + $0x1dc] sm:$0xf] %v446_v55 }
  0x64   : > { %449 = vst [vmem:[%s2370_s6 + $0x1e0] sm:$0xf] %v448_v56  ;;  %451 = vst [vmem:[%s2370_s6 + $0x1e4] sm:$0xf] %v450_v57  ;;  %v452_v58 = vld [vmem:[%s2363_s5 + $0x7a0] sm:$0xf] }
  0x65   : > { %v454_v59 = vld [vmem:[%s2363_s5 + $0x7b0] sm:$0xf]  ;;  %v456_v60 = vld [vmem:[%s2363_s5 + $0x7c0] sm:$0xf]  ;;  %453 = vst [vmem:[%s2370_s6 + $0x1e8] sm:$0xf] %v452_v58 }
  0x66   : > { %455 = vst [vmem:[%s2370_s6 + $0x1ec] sm:$0xf] %v454_v59  ;;  %457 = vst [vmem:[%s2370_s6 + $0x1f0] sm:$0xf] %v456_v60  ;;  %v458_v61 = vld [vmem:[%s2363_s5 + $0x7d0] sm:$0xf] }
  0x67   : > { %v460_v62 = vld [vmem:[%s2363_s5 + $0x7e0] sm:$0xf]  ;;  %v462_v63 = vld [vmem:[%s2363_s5 + $0x7f0] sm:$0xf]  ;;  %459 = vst [vmem:[%s2370_s6 + $0x1f4] sm:$0xf] %v458_v61 }
  0x68   : > { %461 = vst [vmem:[%s2370_s6 + $0x1f8] sm:$0xf] %v460_v62  ;;  %463 = vst [vmem:[%s2370_s6 + $0x1fc] sm:$0xf] %v462_v63  ;;  %v464_v0 = vld [vmem:[%s2363_s5 + $0x800] sm:$0xf] }
  0x69   : > { %v466_v1 = vld [vmem:[%s2363_s5 + $0x810] sm:$0xf]  ;;  %v468_v2 = vld [vmem:[%s2363_s5 + $0x820] sm:$0xf]  ;;  %465 = vst [vmem:[%s2370_s6 + $0x200] sm:$0xf] %v464_v0 }
  0x6a   : > { %467 = vst [vmem:[%s2370_s6 + $0x204] sm:$0xf] %v466_v1  ;;  %469 = vst [vmem:[%s2370_s6 + $0x208] sm:$0xf] %v468_v2  ;;  %v470_v3 = vld [vmem:[%s2363_s5 + $0x830] sm:$0xf] }
  0x6b   : > { %v472_v4 = vld [vmem:[%s2363_s5 + $0x840] sm:$0xf]  ;;  %v474_v5 = vld [vmem:[%s2363_s5 + $0x850] sm:$0xf]  ;;  %471 = vst [vmem:[%s2370_s6 + $0x20c] sm:$0xf] %v470_v3 }
  0x6c   : > { %473 = vst [vmem:[%s2370_s6 + $0x210] sm:$0xf] %v472_v4  ;;  %475 = vst [vmem:[%s2370_s6 + $0x214] sm:$0xf] %v474_v5  ;;  %v476_v6 = vld [vmem:[%s2363_s5 + $0x860] sm:$0xf] }
  0x6d   : > { %v478_v7 = vld [vmem:[%s2363_s5 + $0x870] sm:$0xf]  ;;  %v480_v8 = vld [vmem:[%s2363_s5 + $0x880] sm:$0xf]  ;;  %477 = vst [vmem:[%s2370_s6 + $0x218] sm:$0xf] %v476_v6 }
  0x6e   : > { %479 = vst [vmem:[%s2370_s6 + $0x21c] sm:$0xf] %v478_v7  ;;  %481 = vst [vmem:[%s2370_s6 + $0x220] sm:$0xf] %v480_v8  ;;  %v482_v9 = vld [vmem:[%s2363_s5 + $0x890] sm:$0xf] }
  0x6f   : > { %v484_v10 = vld [vmem:[%s2363_s5 + $0x8a0] sm:$0xf]  ;;  %v486_v11 = vld [vmem:[%s2363_s5 + $0x8b0] sm:$0xf]  ;;  %483 = vst [vmem:[%s2370_s6 + $0x224] sm:$0xf] %v482_v9 }
  0x70   : > { %485 = vst [vmem:[%s2370_s6 + $0x228] sm:$0xf] %v484_v10  ;;  %487 = vst [vmem:[%s2370_s6 + $0x22c] sm:$0xf] %v486_v11  ;;  %v488_v12 = vld [vmem:[%s2363_s5 + $0x8c0] sm:$0xf] }
  0x71   : > { %v490_v13 = vld [vmem:[%s2363_s5 + $0x8d0] sm:$0xf]  ;;  %v492_v14 = vld [vmem:[%s2363_s5 + $0x8e0] sm:$0xf]  ;;  %489 = vst [vmem:[%s2370_s6 + $0x230] sm:$0xf] %v488_v12 }
  0x72   : > { %491 = vst [vmem:[%s2370_s6 + $0x234] sm:$0xf] %v490_v13  ;;  %493 = vst [vmem:[%s2370_s6 + $0x238] sm:$0xf] %v492_v14  ;;  %v494_v15 = vld [vmem:[%s2363_s5 + $0x8f0] sm:$0xf] }
  0x73   : > { %495 = vst [vmem:[%s2370_s6 + $0x23c] sm:$0xf] %v494_v15 }
  0x74 PF: > { %p1904_p8 = scmp.ge.s32.totalorder %s2286_s19, 1  ;;  %p818_p9 = scmp.lt.s32.totalorder %s2286_s19, 5 }
  0x76   : > { %p819_p10 = pnand %p1904_p8, %p818_p9 }
  0x77   : > { %s825_s7 = sand.u32 (!%p819_p10), 1, %s2270_s15   ;;  %p868_p11 = scmp.lt.s32.totalorder (!%p819_p10), %s2278_s17, 3 }
  0x78   : > { %822 = sbr.rel (%p819_p10) target bundleno = 437 (0x1b5), region = 73  ;;  %s1905_s26 = sshll.u32 (!%p819_p10), %s825_s7, 3 }
  0x79   : > { %s2120_s8 = smul.u32 (!%p819_p10), 576, %s825_s7  ;;  %s860_s27 = scalar_lea.vmem (!%p819_p10), [#allocation3], %s1905_s26 }
  0x7b   : > { %s2666_s13 = scalar_lea.vmem (!%p819_p10), [#allocation2], %s2120_s8 }
  0x7d   : > { %v2196_v16 = vld [vmem:[%s2796_s0 + $0x4] ss:$36 sps:$4 sm:$0xff]   ;;  %v2201_v17 = vld [vmem:[%s2796_s0 + $0xc] ss:$36 sps:$4 sm:$0xff]   ;;  %v2163_v18 = vld [vmem:[%s2666_s13 + $0x78] sm:$0xff]   ;;  %vm2289_vm0 = vmmov 0  }
  0x7e   : > { %1547 = vmatprep.mubr.bf16.mxu0 %v2196_v16  ;;  %1588 = vmatprep.mubr.bf16.mxu1 %v2201_v17  ;;  %v2164_v19 = vld [vmem:[%s2666_s13 + $0x38] sm:$0xff]   ;;  %v2167_v22 = vld [vmem:[%s2666_s13 + $0x70] sm:$0xff]   ;;  %v2171_v26 = vld [vmem:[%s2666_s13 + $0x68] sm:$0xff]   ;;  %s2763_s11 = scalar_select %p868_p11, %s2278_s17, 3 }
  0x7f   : > { %2002 = vmatprep.subr.bf16.mxu0 %v2163_v18  ;;  %v2165_v20 = vld [vmem:[%s2666_s13 + $0xf8] sm:$0xff]   ;;  %v2168_v23 = vld [vmem:[%s2666_s13 + $0x30] sm:$0xff]   ;;  %v2172_v27 = vld [vmem:[%s2666_s13 + $0x28] sm:$0xff]   ;;  %s1992_s28 = sshll.u32 (%p2350_p6), %s2278_s17, 2 }
  0x80   : > { %2003 = vmatpush3.bf16.msra.mxu0 %v2164_v19  ;;  %v2166_v21 = vld [vmem:[%s2666_s13 + $0xb8] sm:$0xff]   ;;  %2024 = vmatprep.subr.bf16.mxu1 %v2165_v20  ;;  %v2169_v24 = vld [vmem:[%s2666_s13 + $0xf0] sm:$0xff]   ;;  %v2173_v28 = vld [vmem:[%s2666_s13 + $0xe8] sm:$0xff]   ;;  %s870_s14 = scalar_lea.vmem %s2798_s2, %s2763_s11  ;;  %s873_s23 = scalar_lea.vmem %s2799_s3, %s2763_s11 }
  0x81   : > { %2025 = vmatpush3.bf16.msra.mxu1 %v2166_v21  ;;  %2004 = vmatprep.subr.bf16.mxu0 %v2167_v22  ;;  %v2170_v25 = vld [vmem:[%s2666_s13 + $0xb0] sm:$0xff]   ;;  %v2174_v29 = vld [vmem:[%s2666_s13 + $0xa8] sm:$0xff]   ;;  %v2175_v30 = vld [vmem:[%s2666_s13 + $0x60] sm:$0xff]   ;;  %v2288_v22 = vmov 0.0   ;;  %s1752_s5 = scalar_lea.vmem (%p2350_p6), %s2800_s4, %s1992_s28 }
  0x82   : > { %2026 = vmatprep.subr.bf16.mxu1 %v2169_v24  ;;  %v2176_v31 = vld [vmem:[%s2666_s13 + $0x20] sm:$0xff]   ;;  %v2179_v34 = vld [vmem:[%s2666_s13 + $0x58] sm:$0xff]   ;;  %v2183_v38 = vld [vmem:[%s2666_s13 + $0x50] sm:$0xff]  }
  0x83   : > { %v2177_v32 = vld [vmem:[%s2666_s13 + $0xe0] sm:$0xff]   ;;  %v2180_v35 = vld [vmem:[%s2666_s13 + $0x18] sm:$0xff]   ;;  %v2184_v39 = vld [vmem:[%s2666_s13 + $0x10] sm:$0xff]  }
  0x84   : > { %2005 = vmatpush3.bf16.msra.mxu0 %v2168_v23  ;;  %v2178_v33 = vld [vmem:[%s2666_s13 + $0xa0] sm:$0xff]   ;;  %v2181_v36 = vld [vmem:[%s2666_s13 + $0xd8] sm:$0xff]   ;;  %v2185_v40 = vld [vmem:[%s2666_s13 + $0xd0] sm:$0xff]  }
  0x85   : > { %2027 = vmatpush3.bf16.msra.mxu1 %v2170_v25  ;;  %2006 = vmatprep.subr.bf16.mxu0 %v2171_v26  ;;  %v2182_v37 = vld [vmem:[%s2666_s13 + $0x98] sm:$0xff]   ;;  %v2186_v41 = vld [vmem:[%s2666_s13 + $0x90] sm:$0xff]   ;;  %v2187_v42 = vld [vmem:[%s2666_s13 + $0x48] sm:$0xff]  }
  0x86   : > { %2028 = vmatprep.subr.bf16.mxu1 %v2173_v28  ;;  %v2188_v43 = vld [vmem:[%s2666_s13 + $0x8] sm:$0xff]   ;;  %v2191_v46 = vld [vmem:[%s2666_s13 + $0x40] sm:$0xff]   ;;  %v2234_v49 = vld [vmem:[%s2796_s0 + $0x14] ss:$36 sps:$4 sm:$0xff]  }
  0x87   : > { %v2189_v44 = vld [vmem:[%s2666_s13 + $0xc8] sm:$0xff]   ;;  %v2194_v47 = vld [vmem:[%s2796_s0] ss:$36 sps:$4 sm:$0xff]   ;;  %v2198_v53 = vld [vmem:[%s2666_s13 + $0x178] sm:$0xff]  }
  0x88   : > { %2007 = vmatpush3.bf16.msra.mxu0 %v2172_v27  ;;  %v2190_v45 = vld [vmem:[%s2666_s13 + $0x88] sm:$0xff]   ;;  %v2192_v48 = vld [vmem:[%s2666_s13] sm:$0xff]   ;;  %v2202_v54 = vld [vmem:[%s2666_s13 + $0x138] sm:$0xff]  }
  0x89   : > { %2029 = vmatpush3.bf16.msra.mxu1 %v2174_v29  ;;  %2008 = vmatprep.subr.bf16.mxu0 %v2175_v30  ;;  %v2193_v50 = vld [vmem:[%s2666_s13 + $0xc0] sm:$0xff]   ;;  %v2199_v51 = vld [vmem:[%s2796_s0 + $0x8] ss:$36 sps:$4 sm:$0xff]   ;;  %v2203_v55 = vld [vmem:[%s2666_s13 + $0x1f8] sm:$0xff]  }
  0x8a   : > { %2030 = vmatprep.subr.bf16.mxu1 %v2177_v32  ;;  %v2197_v52 = vld [vmem:[%s2666_s13 + $0x80] sm:$0xff]   ;;  %v2204_v56 = vld [vmem:[%s2666_s13 + $0x1b8] sm:$0xff]   ;;  %v2205_v57 = vld [vmem:[%s2666_s13 + $0x170] sm:$0xff]  }
  0x8b   : > { %v2206_v58 = vld [vmem:[%s2666_s13 + $0x130] sm:$0xff]   ;;  %v2209_v61 = vld [vmem:[%s2666_s13 + $0x168] sm:$0xff]   ;;  %v2213_v1 = vld [vmem:[%s2666_s13 + $0x160] sm:$0xff]  }
  0x8c   : > { %2009 = vmatpush3.bf16.msra.mxu0 %v2176_v31  ;;  %v2207_v59 = vld [vmem:[%s2666_s13 + $0x1f0] sm:$0xff]   ;;  %v2210_v62 = vld [vmem:[%s2666_s13 + $0x128] sm:$0xff]   ;;  %v2214_v2 = vld [vmem:[%s2666_s13 + $0x120] sm:$0xff]  }
  0x8d   : > { %2031 = vmatpush3.bf16.msra.mxu1 %v2178_v33  ;;  %2010 = vmatprep.subr.bf16.mxu0 %v2179_v34  ;;  %v2208_v60 = vld [vmem:[%s2666_s13 + $0x1b0] sm:$0xff]   ;;  %v2211_v63 = vld [vmem:[%s2666_s13 + $0x1e8] sm:$0xff]   ;;  %v2215_v3 = vld [vmem:[%s2666_s13 + $0x1e0] sm:$0xff]  }
  0x8e   : > { %2032 = vmatprep.subr.bf16.mxu1 %v2181_v36  ;;  %v2212_v0 = vld [vmem:[%s2666_s13 + $0x1a8] sm:$0xff]   ;;  %v2216_v4 = vld [vmem:[%s2666_s13 + $0x1a0] sm:$0xff]   ;;  %v2217_v5 = vld [vmem:[%s2666_s13 + $0x158] sm:$0xff]  }
  0x8f   : > { %v2218_v6 = vld [vmem:[%s2666_s13 + $0x118] sm:$0xff]   ;;  %v2221_v9 = vld [vmem:[%s2666_s13 + $0x150] sm:$0xff]   ;;  %v2225_v13 = vld [vmem:[%s2666_s13 + $0x148] sm:$0xff]  }
  0x90   : > { %2011 = vmatpush3.bf16.msra.mxu0 %v2180_v35  ;;  %v2219_v7 = vld [vmem:[%s2666_s13 + $0x1d8] sm:$0xff]   ;;  %v2222_v10 = vld [vmem:[%s2666_s13 + $0x110] sm:$0xff]   ;;  %v2226_v14 = vld [vmem:[%s2666_s13 + $0x108] sm:$0xff]  }
  0x91   : > { %2033 = vmatpush3.bf16.msra.mxu1 %v2182_v37  ;;  %2012 = vmatprep.subr.bf16.mxu0 %v2183_v38  ;;  %v2220_v8 = vld [vmem:[%s2666_s13 + $0x198] sm:$0xff]   ;;  %v2223_v11 = vld [vmem:[%s2666_s13 + $0x1d0] sm:$0xff]   ;;  %v2227_v15 = vld [vmem:[%s2666_s13 + $0x1c8] sm:$0xff]  }
  0x92   : > { %2034 = vmatprep.subr.bf16.mxu1 %v2185_v40  ;;  %v2224_v12 = vld [vmem:[%s2666_s13 + $0x190] sm:$0xff]   ;;  %v2228_v16 = vld [vmem:[%s2666_s13 + $0x188] sm:$0xff]   ;;  %v2229_v17 = vld [vmem:[%s2666_s13 + $0x140] sm:$0xff]  }
  0x93   : > { %v2232_v18 = vld [vmem:[%s2796_s0 + $0x10] ss:$36 sps:$4 sm:$0xff]   ;;  %v2230_v19 = vld [vmem:[%s2666_s13 + $0x100] sm:$0xff]   ;;  %v2236_v23 = vld [vmem:[%s2796_s0 + $0x18] ss:$36 sps:$4 sm:$0xff]  }
  0x94   : > { %2013 = vmatpush3.bf16.msra.mxu0 %v2184_v39  ;;  %v2231_v20 = vld [vmem:[%s2666_s13 + $0x1c0] sm:$0xff]   ;;  %v2239_v25 = vld [vmem:[%s2666_s13 + $0x238] sm:$0xff]   ;;  %v2240_v26 = vld [vmem:[%s2666_s13 + $0x230] sm:$0xff]  }
  0x95   : > { %2035 = vmatpush3.bf16.msra.mxu1 %v2186_v41  ;;  %2014 = vmatprep.subr.bf16.mxu0 %v2187_v42  ;;  %v2235_v21 = vld [vmem:[%s2666_s13 + $0x180] sm:$0xff]   ;;  %v2241_v27 = vld [vmem:[%s2666_s13 + $0x228] sm:$0xff]   ;;  %v2243_v29 = vld [vmem:[%s2666_s13 + $0x218] sm:$0xff]  }
  0x96   : > { %2036 = vmatprep.subr.bf16.mxu1 %v2189_v44  ;;  %v2238_v24 = vld [vmem:[%s2796_s0 + $0x1c] ss:$36 sps:$4 sm:$0xff]   ;;  %v2244_v30 = vld [vmem:[%s2666_s13 + $0x210] sm:$0xff]   ;;  %v2245_v31 = vld [vmem:[%s2666_s13 + $0x208] sm:$0xff]  }
  0x97   : > { %v2242_v28 = vld [vmem:[%s2666_s13 + $0x220] sm:$0xff]  }
  0x98   : > { %2015 = vmatpush3.bf16.msra.mxu0 %v2188_v43  ;;  %v2246_v32 = vld [vmem:[%s2666_s13 + $0x200] sm:$0xff]  }
  0x99   : > { %2037 = vmatpush3.bf16.msra.mxu1 %v2190_v45  ;;  %2016 = vmatprep.subr.bf16.mxu0 %v2191_v46  ;;  %v2247_v33 = vld [vmem:[%s2796_s0 + $0x20] ss:$36 sps:$4 sm:$0xff]  }
  0x9a   : > { %2038 = vmatprep.subr.bf16.mxu1 %v2193_v50  ;;  %v1906_v46 = vld [vmem:[%s870_s14] ss:$0 sm:$0xff] }
  0x9c   : > { %2017 = vmatpush3.bf16.msra.mxu0 %v2192_v48 }
  0x9d   : > { %2039 = vmatpush3.bf16.msra.mxu1 %v2197_v52  ;;  %2046 = vmatprep.subr.bf16.mxu0 %v2198_v53 }
  0x9e   : > { %2068 = vmatprep.subr.bf16.mxu1 %v2203_v55 }
  0x9f   : > { %1548 = vmatmul.mubr.bf16.vlgmr.msra.gmra.mxu0 %v2194_v47 }
  0xa0   : > { %2047 = vmatpush3.bf16.msra.mxu0 %v2202_v54  ;;  %1629 = vmatprep.mubr.bf16.mxu0 %v2234_v49 }
  0xa1   : > { %1589 = vmatmul.mubr.bf16.vlgmr.msra.gmra.mxu1 %v2199_v51  ;;  %2048 = vmatprep.subr.bf16.mxu0 %v2205_v57 }
  0xa2   : > { %2069 = vmatpush3.bf16.msra.mxu1 %v2204_v56  ;;  %1670 = vmatprep.mubr.bf16.mxu1 %v2238_v24 }
  0xa3   : > { %2070 = vmatprep.subr.bf16.mxu1 %v2207_v59 }
  0xa4   : > { %2049 = vmatpush3.bf16.msra.mxu0 %v2206_v58 }
  0xa5   : > { %2050 = vmatprep.subr.bf16.mxu0 %v2209_v61 }
  0xa6   : > { %2071 = vmatpush3.bf16.msra.mxu1 %v2208_v60 }
  0xa7   : > { %2072 = vmatprep.subr.bf16.mxu1 %v2211_v63 }
  0xa8   : > { %2051 = vmatpush3.bf16.msra.mxu0 %v2210_v62 }
  0xa9   : > { %2052 = vmatprep.subr.bf16.mxu0 %v2213_v1 }
  0xaa   : > { %2073 = vmatpush3.bf16.msra.mxu1 %v2212_v0 }
  0xab   : > { %2074 = vmatprep.subr.bf16.mxu1 %v2215_v3 }
  0xac   : > { %2053 = vmatpush3.bf16.msra.mxu0 %v2214_v2 }
  0xad   : > { %2054 = vmatprep.subr.bf16.mxu0 %v2217_v5 }
  0xae   : > { %2075 = vmatpush3.bf16.msra.mxu1 %v2216_v4  ;;  %v1988_v4 = vld [vmem:[%s873_s23] ss:$0 sm:$0xff] }
  0xaf   : > { %2076 = vmatprep.subr.bf16.mxu1 %v2219_v7 }
  0xb0   : > { %2055 = vmatpush3.bf16.msra.mxu0 %v2218_v6 }
  0xb1   : > { %2056 = vmatprep.subr.bf16.mxu0 %v2221_v9 }
  0xb2   : > { %2077 = vmatpush3.bf16.msra.mxu1 %v2220_v8 }
  0xb3   : > { %2078 = vmatprep.subr.bf16.mxu1 %v2223_v11 }
  0xb4   : > { %2057 = vmatpush3.bf16.msra.mxu0 %v2222_v10 }
  0xb5   : > { %2058 = vmatprep.subr.bf16.mxu0 %v2225_v13 }
  0xb6   : > { %2079 = vmatpush3.bf16.msra.mxu1 %v2224_v12 }
  0xb7   : > { %2080 = vmatprep.subr.bf16.mxu1 %v2227_v15 }
  0xb8   : > { %2059 = vmatpush3.bf16.msra.mxu0 %v2226_v14 }
  0xb9   : > { %2060 = vmatprep.subr.bf16.mxu0 %v2229_v17 }
  0xba   : > { %2081 = vmatpush3.bf16.msra.mxu1 %v2228_v16 }
  0xbb   : > { %2082 = vmatprep.subr.bf16.mxu1 %v2231_v20 }
  0xbc   : > { %2061 = vmatpush3.bf16.msra.mxu0 %v2230_v19 }
  0xbd   : > { %2099 = vmatprep.subr.bf16.mxu0 %v2288_v22 }
  0xbe   : > { %2083 = vmatpush3.bf16.msra.mxu1 %v2235_v21 }
  0xbf   : > { %1630 = vmatmul.mubr.bf16.vlgmr.msra.gmra.mxu0 %v2232_v18 }
  0xc0   : > { %2115 = vmatprep.mubr.msk.bf16.mxu0 %vm2289_vm0, %v2288_v22  ;;  %2100 = vmatpush3.bf16.msra.mxu0 %v2239_v25 }
  0xc1   : > { %1671 = vmatmul.mubr.bf16.vlgmr.msra.gmra.mxu1 %v2236_v23  ;;  %2101 = vmatprep.subr.bf16.mxu0 %v2288_v22 }
  0xc4   : > { %2102 = vmatpush3.bf16.msra.mxu0 %v2240_v26 }
  0xc5   : > { %2103 = vmatprep.subr.bf16.mxu0 %v2288_v22 }
  0xc8   : > { %2104 = vmatpush3.bf16.msra.mxu0 %v2241_v27 }
  0xc9   : > { %2105 = vmatprep.subr.bf16.mxu0 %v2288_v22 }
  0xcc   : > { %2106 = vmatpush3.bf16.msra.mxu0 %v2242_v28 }
  0xcd   : > { %2107 = vmatprep.subr.bf16.mxu0 %v2288_v22 }
  0xd0   : > { %2108 = vmatpush3.bf16.msra.mxu0 %v2243_v29 }
  0xd1   : > { %2109 = vmatprep.subr.bf16.mxu0 %v2288_v22 }
  0xd4   : > { %2110 = vmatpush3.bf16.msra.mxu0 %v2244_v30 }
  0xd5   : > { %2111 = vmatprep.subr.bf16.mxu0 %v2288_v22 }
  0xd8   : > { %2112 = vmatpush3.bf16.msra.mxu0 %v2245_v31 }
  0xd9   : > { %2113 = vmatprep.subr.bf16.mxu0 %v2288_v22 }
  0xdc   : > { %2114 = vmatpush3.bf16.msra.mxu0 %v2246_v32 }
  0xdf   : > { %2116 = vmatmul.mubr.bf16.vlgmr.msra.gmra.mxu0 %v2247_v33 }
 0x15f   : > { %v2018_v34 = vpop.f32.mrf.mxu0 }
 0x161   : > { %v2019_v35 = vpop.f32.mrf.mxu0  ;;  %v2040_v36 = vpop.f32.mrf.mxu1 }
 0x162   : > { %v2020_v45 = vadd.f32 %v2019_v35, %v2018_v34 }
 0x163   : > { %v2021_v37 = vpop.f32.mrf.mxu0  ;;  %v2041_v38 = vpop.f32.mrf.mxu1 }
 0x164   : > { %v1550_v49 = vadd.f32 %v2020_v45, %v1906_v46  ;;  %v2042_v50 = vadd.f32 %v2041_v38, %v2040_v36 }
 0x165   : > { %v2022_v39 = vpop.f32.mrf.mxu0  ;;  %v2043_v40 = vpop.f32.mrf.mxu1 }
 0x166   : > { %v2023_v51 = vadd.f32 %v2022_v39, %v2021_v37  ;;  %v1591_v55 = vadd.f32 %v2042_v50, %v1550_v49 }
 0x167   : > { %v2044_v42 = vpop.f32.mrf.mxu1 }
 0x168   : > { %v1553_v56 = vadd.f32 %v2023_v51, %v1906_v46  ;;  %v2045_v57 = vadd.f32 %v2044_v42, %v2043_v40 }
 0x16a   : > { %v1594_v62 = vadd.f32 %v2045_v57, %v1553_v56 }
 0x17f   : > { %v2062_v41 = vpop.f32.mrf.mxu0 }
 0x181   : > { %v2063_v43 = vpop.f32.mrf.mxu0  ;;  %v2084_v44 = vpop.f32.mrf.mxu1 }
 0x182   : > { %v2064_v52 = vadd.f32 %v2063_v43, %v2062_v41 }
 0x183   : > { %v2065_v47 = vpop.f32.mrf.mxu0  ;;  %v2085_v48 = vpop.f32.mrf.mxu1 }
 0x184   : > { %v1632_v58 = vadd.f32 %v2064_v52, %v1591_v55  ;;  %v2086_v59 = vadd.f32 %v2085_v48, %v2084_v44 }
 0x185   : > { %v2066_v53 = vpop.f32.mrf.mxu0  ;;  %v2087_v54 = vpop.f32.mrf.mxu1 }
 0x186   : > { %v2067_v60 = vadd.f32 %v2066_v53, %v2065_v47  ;;  %v1673_v1 = vadd.f32 %v2086_v59, %v1632_v58 }
 0x187   : > { %v2088_v61 = vpop.f32.mrf.mxu1 }
 0x188   : > { %v1635_v63 = vadd.f32 %v2067_v60, %v1594_v62  ;;  %v2089_v0 = vadd.f32 %v2088_v61, %v2087_v54 }
 0x18a   : > { %v1676_v6 = vadd.f32 %v2089_v0, %v1635_v63 }
 0x19f   : > { %v1713_v2 = vpop.f32.mrf.mxu0 }
 0x1a0   : > { %v1714_v3 = vadd.f32 %v1713_v2, %v1673_v1 }
 0x1a1   : > { %v2117_v5 = vpop.f32.mrf.mxu0 }
 0x1a2   : > { %v1727_v8 = vmul.f32 %v1988_v4, %v1714_v3 }
 0x1a3   : > { %v1716_v7 = vpop.f32.mrf.mxu0 }
 0x1a4   : > { %v1717_v9 = vadd.f32 %v1716_v7, %v1676_v6  ;;  %v1729_v12 = vmax.f32 %v1714_v3, %v1727_v8 }
 0x1a5   : > { %v2118_v10 = vpop.f32.mrf.mxu0 }
 0x1a6   : > { %v1728_v11 = vmul.f32 %v1988_v4, %v1717_v9 }
 0x1a8   : > { %v1730_v13 = vmax.f32 %v1717_v9, %v1728_v11  ;;  %1747 = sbr.rel (!%p2350_p6) target bundleno = 437 (0x1b5), region = 81 }
 0x1aa   : > { %v2000_v14 = vpack.c.bf16 %v1730_v13, %v1729_v12 }
 0x1ac   : > { %2001 = vst [vmem:[%s860_s27] sm:$0xff] %v2000_v14  }
 0x1b3   : > { %v1769_v15 = vld [vmem:[%s860_s27] sm:$0xf]  ;;  %v1771_v16 = vld [vmem:[%s860_s27 + $0x4] sm:$0xf] }
 0x1b4   : > { %1770 = vst [vmem:[%s1752_s5] sm:$0xf] %v1769_v15  ;;  %1772 = vst [vmem:[%s1752_s5 + $0x10] sm:$0xf] %v1771_v16 }
 0x1b5 PF: > { %s14_s19 = sadd.s32 1, %s2286_s19   ;;  %s2802_s15 = smov %s2274_s16 }
 0x1b6   : > { %p11_p12 = scmp.ge.s32.totalorder %s14_s19, 6   ;;  %s2803_s16 = smov %s2355_s25 }
 0x1b7   : > { %s2804_s17 = smov %s2282_s18  ;;  %s2805_s18 = smov %s2807_s20 }
 0x1b8   :  { %13 = sbr.rel (!%p11_p12) target bundleno = 3 (0x3), region = 162 }

// kernel: forward.40
= control target key start
LH: loop header
LB: loop body
LE: loop exit
PB: predicated region body
PF: predicated region fallthrough
CT: control target
= control target key end

     0   :  { %s4065_s18 = smov 0   ;;  %s4067_s19 = smov 0   ;;  %s4950_s0 = inlined_call_operand.vmem [shape: bf16[16,2304], index: 0, kind: input, shape index: {}]   ;;  %s4951_s1 = inlined_call_operand.vmem [shape: bf16[2304,256], index: 1, kind: input, shape index: {}]   ;;  %s4952_s2 = inlined_call_operand.vmem [shape: f32[1,256], index: 2, kind: input, shape index: {}]   ;;  %s4953_s3 = inlined_call_operand.vmem [shape: f32[1,256], index: 3, kind: input, shape index: {}]   ;;  %s4954_s4 = inlined_call_operand.vmem [shape: bf16[16,256], index: 4, kind: input, shape index: {}]   ;;  %s4955_s5 = inlined_call_operand.vmem [shape: bf16[16,256], index: 5, kind: output, shape index: {}]  }
   0x1   :  { %s4069_s20 = smov 0   ;;  %s4071_s21 = smov 0  }
   0x2   :  { %s4073_s22 = smov 0  }
   0x3 LB: > { %s24_s23 = sadd.s32 1, %s4029_s21  ;;  %s3392_s24 = sadd.s32 4294967295, %s4033_s22   ;;  %s4033_s22 = sphi %s4073_s22, %s15_s22   ;;  %s4029_s21 = sphi %s4071_s21, %s4961_s21   ;;  %s4025_s20 = sphi %s4069_s20, %s4960_s20   ;;  %s4021_s19 = sphi %s4067_s19, %s4959_s19   ;;  %s4017_s18 = sphi %s4065_s18, %s4958_s18  }
   0x4   : > { %p25_p0 = scmp.ge.s32.totalorder %s24_s23, 2  ;;  %p67_p1 = scmp.ne.s32.totalorder %s4021_s19, %s4017_s18 }
   0x5   : > { %p68_p2 = scmp.eq.s32.totalorder %s4033_s22, 0  ;;  %p179_p4 = scmp.eq.s32.totalorder %s3392_s24, 1 }
   0x6   : > { %s4963_s23 = smov (%p25_p0, %s24_s23), 0  ;;  %s60_s27 = sadd.s32 1, %s4021_s19 }
   0x7   : > { %p4097_p3 = por %p68_p2, %p67_p1  ;;  %s57_s26 = ssub.s32 %s4029_s21, %s4963_s23 }
   0x8   : > { %p58_p5 = scmp.eq.s32.totalorder %s57_s26, 0  ;;  %p4104_p6 = por %p179_p4, %p67_p1 }
   0x9   : > { %p3396_p7 = scmp.ge.s32.totalorder %s4033_s22, 2 }
   0xa   : > { %s4109_s29 = scalar_select %p58_p5, %s4021_s19, %s60_s27  }
   0xb   : > { %211 = sbr.rel (%p3396_p7) target bundleno = 217 (0xd9), region = 20 }
  0x10   : > { %214 = sbr.rel (!%p4097_p3) target bundleno = 212 (0xd4), region = 24  ;;  %s216_s30 = sand.u32 (%p4097_p3), 1, %s4021_s19  }
  0x11   : > { %s3397_s6 = sshll.u32 (%p4097_p3), %s4029_s21, 2  ;;  %s3782_s7 = smul.u32 (%p4097_p3), 1152, %s216_s30 }
  0x12   : > { %s4119_s10 = scalar_lea.vmem (%p4097_p3), %s4951_s1, %s3397_s6 }
  0x13   : > { %v237_v0 = vld [vmem:[%s4119_s10] sm:$0xf] (%p4097_p3)  ;;  %v239_v1 = vld [vmem:[%s4119_s10 + $0x8] sm:$0xf] (%p4097_p3)  ;;  %v241_v2 = vld [vmem:[%s4119_s10 + $0x10] sm:$0xf] (%p4097_p3) }
  0x14   : > { %v243_v3 = vld [vmem:[%s4119_s10 + $0x18] sm:$0xf] (%p4097_p3)  ;;  %v245_v4 = vld [vmem:[%s4119_s10 + $0x20] sm:$0xf] (%p4097_p3)  ;;  %s4126_s11 = scalar_lea.vmem (%p4097_p3), [#allocation2], %s3782_s7 }
  0x15   : > { %238 = vst [vmem:[%s4126_s11] sm:$0xf] %v237_v0  ;;  %240 = vst [vmem:[%s4126_s11 + $0x4] sm:$0xf] %v239_v1  ;;  %v247_v5 = vld [vmem:[%s4119_s10 + $0x28] sm:$0xf] }
  0x16   : > { %242 = vst [vmem:[%s4126_s11 + $0x8] sm:$0xf] %v241_v2  ;;  %244 = vst [vmem:[%s4126_s11 + $0xc] sm:$0xf] %v243_v3  ;;  %v249_v6 = vld [vmem:[%s4119_s10 + $0x30] sm:$0xf] }
  0x17   : > { %246 = vst [vmem:[%s4126_s11 + $0x10] sm:$0xf] %v245_v4  ;;  %v251_v7 = vld [vmem:[%s4119_s10 + $0x38] sm:$0xf]  ;;  %248 = vst [vmem:[%s4126_s11 + $0x14] sm:$0xf] %v247_v5 }
  0x18   : > { %250 = vst [vmem:[%s4126_s11 + $0x18] sm:$0xf] %v249_v6  ;;  %252 = vst [vmem:[%s4126_s11 + $0x1c] sm:$0xf] %v251_v7  ;;  %v253_v8 = vld [vmem:[%s4119_s10 + $0x40] sm:$0xf] }
  0x19   : > { %v255_v9 = vld [vmem:[%s4119_s10 + $0x48] sm:$0xf]  ;;  %v257_v10 = vld [vmem:[%s4119_s10 + $0x50] sm:$0xf]  ;;  %254 = vst [vmem:[%s4126_s11 + $0x20] sm:$0xf] %v253_v8 }
  0x1a   : > { %256 = vst [vmem:[%s4126_s11 + $0x24] sm:$0xf] %v255_v9  ;;  %258 = vst [vmem:[%s4126_s11 + $0x28] sm:$0xf] %v257_v10  ;;  %v259_v11 = vld [vmem:[%s4119_s10 + $0x58] sm:$0xf] }
  0x1b   : > { %v261_v12 = vld [vmem:[%s4119_s10 + $0x60] sm:$0xf]  ;;  %v263_v13 = vld [vmem:[%s4119_s10 + $0x68] sm:$0xf]  ;;  %260 = vst [vmem:[%s4126_s11 + $0x2c] sm:$0xf] %v259_v11 }
  0x1c   : > { %262 = vst [vmem:[%s4126_s11 + $0x30] sm:$0xf] %v261_v12  ;;  %264 = vst [vmem:[%s4126_s11 + $0x34] sm:$0xf] %v263_v13  ;;  %v265_v14 = vld [vmem:[%s4119_s10 + $0x70] sm:$0xf] }
  0x1d   : > { %v267_v15 = vld [vmem:[%s4119_s10 + $0x78] sm:$0xf]  ;;  %v269_v16 = vld [vmem:[%s4119_s10 + $0x80] sm:$0xf]  ;;  %266 = vst [vmem:[%s4126_s11 + $0x38] sm:$0xf] %v265_v14 }
  0x1e   : > { %268 = vst [vmem:[%s4126_s11 + $0x3c] sm:$0xf] %v267_v15  ;;  %270 = vst [vmem:[%s4126_s11 + $0x40] sm:$0xf] %v269_v16  ;;  %v271_v17 = vld [vmem:[%s4119_s10 + $0x88] sm:$0xf] }
  0x1f   : > { %v273_v18 = vld [vmem:[%s4119_s10 + $0x90] sm:$0xf]  ;;  %v275_v19 = vld [vmem:[%s4119_s10 + $0x98] sm:$0xf]  ;;  %272 = vst [vmem:[%s4126_s11 + $0x44] sm:$0xf] %v271_v17 }
  0x20   : > { %274 = vst [vmem:[%s4126_s11 + $0x48] sm:$0xf] %v273_v18  ;;  %276 = vst [vmem:[%s4126_s11 + $0x4c] sm:$0xf] %v275_v19  ;;  %v277_v20 = vld [vmem:[%s4119_s10 + $0xa0] sm:$0xf] }
  0x21   : > { %v279_v21 = vld [vmem:[%s4119_s10 + $0xa8] sm:$0xf]  ;;  %v281_v22 = vld [vmem:[%s4119_s10 + $0xb0] sm:$0xf]  ;;  %278 = vst [vmem:[%s4126_s11 + $0x50] sm:$0xf] %v277_v20 }
  0x22   : > { %280 = vst [vmem:[%s4126_s11 + $0x54] sm:$0xf] %v279_v21  ;;  %282 = vst [vmem:[%s4126_s11 + $0x58] sm:$0xf] %v281_v22  ;;  %v283_v23 = vld [vmem:[%s4119_s10 + $0xb8] sm:$0xf] }
  0x23   : > { %v285_v24 = vld [vmem:[%s4119_s10 + $0xc0] sm:$0xf]  ;;  %v287_v25 = vld [vmem:[%s4119_s10 + $0xc8] sm:$0xf]  ;;  %284 = vst [vmem:[%s4126_s11 + $0x5c] sm:$0xf] %v283_v23 }
  0x24   : > { %286 = vst [vmem:[%s4126_s11 + $0x60] sm:$0xf] %v285_v24  ;;  %288 = vst [vmem:[%s4126_s11 + $0x64] sm:$0xf] %v287_v25  ;;  %v289_v26 = vld [vmem:[%s4119_s10 + $0xd0] sm:$0xf] }
  0x25   : > { %v291_v27 = vld [vmem:[%s4119_s10 + $0xd8] sm:$0xf]  ;;  %v293_v28 = vld [vmem:[%s4119_s10 + $0xe0] sm:$0xf]  ;;  %290 = vst [vmem:[%s4126_s11 + $0x68] sm:$0xf] %v289_v26 }
  0x26   : > { %292 = vst [vmem:[%s4126_s11 + $0x6c] sm:$0xf] %v291_v27  ;;  %294 = vst [vmem:[%s4126_s11 + $0x70] sm:$0xf] %v293_v28  ;;  %v295_v29 = vld [vmem:[%s4119_s10 + $0xe8] sm:$0xf] }
  0x27   : > { %v297_v30 = vld [vmem:[%s4119_s10 + $0xf0] sm:$0xf]  ;;  %v299_v31 = vld [vmem:[%s4119_s10 + $0xf8] sm:$0xf]  ;;  %296 = vst [vmem:[%s4126_s11 + $0x74] sm:$0xf] %v295_v29 }
  0x28   : > { %298 = vst [vmem:[%s4126_s11 + $0x78] sm:$0xf] %v297_v30  ;;  %300 = vst [vmem:[%s4126_s11 + $0x7c] sm:$0xf] %v299_v31  ;;  %v301_v32 = vld [vmem:[%s4119_s10 + $0x100] sm:$0xf] }
  0x29   : > { %v303_v33 = vld [vmem:[%s4119_s10 + $0x108] sm:$0xf]  ;;  %v305_v34 = vld [vmem:[%s4119_s10 + $0x110] sm:$0xf]  ;;  %302 = vst [vmem:[%s4126_s11 + $0x80] sm:$0xf] %v301_v32 }
  0x2a   : > { %304 = vst [vmem:[%s4126_s11 + $0x84] sm:$0xf] %v303_v33  ;;  %306 = vst [vmem:[%s4126_s11 + $0x88] sm:$0xf] %v305_v34  ;;  %v307_v35 = vld [vmem:[%s4119_s10 + $0x118] sm:$0xf] }
  0x2b   : > { %v309_v36 = vld [vmem:[%s4119_s10 + $0x120] sm:$0xf]  ;;  %v311_v37 = vld [vmem:[%s4119_s10 + $0x128] sm:$0xf]  ;;  %308 = vst [vmem:[%s4126_s11 + $0x8c] sm:$0xf] %v307_v35 }
  0x2c   : > { %310 = vst [vmem:[%s4126_s11 + $0x90] sm:$0xf] %v309_v36  ;;  %312 = vst [vmem:[%s4126_s11 + $0x94] sm:$0xf] %v311_v37  ;;  %v313_v38 = vld [vmem:[%s4119_s10 + $0x130] sm:$0xf] }
  0x2d   : > { %v315_v39 = vld [vmem:[%s4119_s10 + $0x138] sm:$0xf]  ;;  %v317_v40 = vld [vmem:[%s4119_s10 + $0x140] sm:$0xf]  ;;  %314 = vst [vmem:[%s4126_s11 + $0x98] sm:$0xf] %v313_v38 }
  0x2e   : > { %316 = vst [vmem:[%s4126_s11 + $0x9c] sm:$0xf] %v315_v39  ;;  %318 = vst [vmem:[%s4126_s11 + $0xa0] sm:$0xf] %v317_v40  ;;  %v319_v41 = vld [vmem:[%s4119_s10 + $0x148] sm:$0xf] }
  0x2f   : > { %v321_v42 = vld [vmem:[%s4119_s10 + $0x150] sm:$0xf]  ;;  %v323_v43 = vld [vmem:[%s4119_s10 + $0x158] sm:$0xf]  ;;  %320 = vst [vmem:[%s4126_s11 + $0xa4] sm:$0xf] %v319_v41 }
  0x30   : > { %322 = vst [vmem:[%s4126_s11 + $0xa8] sm:$0xf] %v321_v42  ;;  %324 = vst [vmem:[%s4126_s11 + $0xac] sm:$0xf] %v323_v43  ;;  %v325_v44 = vld [vmem:[%s4119_s10 + $0x160] sm:$0xf] }
  0x31   : > { %v327_v45 = vld [vmem:[%s4119_s10 + $0x168] sm:$0xf]  ;;  %v329_v46 = vld [vmem:[%s4119_s10 + $0x170] sm:$0xf]  ;;  %326 = vst [vmem:[%s4126_s11 + $0xb0] sm:$0xf] %v325_v44 }
  0x32   : > { %328 = vst [vmem:[%s4126_s11 + $0xb4] sm:$0xf] %v327_v45  ;;  %330 = vst [vmem:[%s4126_s11 + $0xb8] sm:$0xf] %v329_v46  ;;  %v331_v47 = vld [vmem:[%s4119_s10 + $0x178] sm:$0xf] }
  0x33   : > { %v333_v48 = vld [vmem:[%s4119_s10 + $0x180] sm:$0xf]  ;;  %v335_v49 = vld [vmem:[%s4119_s10 + $0x188] sm:$0xf]  ;;  %332 = vst [vmem:[%s4126_s11 + $0xbc] sm:$0xf] %v331_v47 }
  0x34   : > { %334 = vst [vmem:[%s4126_s11 + $0xc0] sm:$0xf] %v333_v48  ;;  %336 = vst [vmem:[%s4126_s11 + $0xc4] sm:$0xf] %v335_v49  ;;  %v337_v50 = vld [vmem:[%s4119_s10 + $0x190] sm:$0xf] }
  0x35   : > { %v339_v51 = vld [vmem:[%s4119_s10 + $0x198] sm:$0xf]  ;;  %v341_v52 = vld [vmem:[%s4119_s10 + $0x1a0] sm:$0xf]  ;;  %338 = vst [vmem:[%s4126_s11 + $0xc8] sm:$0xf] %v337_v50 }
  0x36   : > { %340 = vst [vmem:[%s4126_s11 + $0xcc] sm:$0xf] %v339_v51  ;;  %342 = vst [vmem:[%s4126_s11 + $0xd0] sm:$0xf] %v341_v52  ;;  %v343_v53 = vld [vmem:[%s4119_s10 + $0x1a8] sm:$0xf] }
  0x37   : > { %v345_v54 = vld [vmem:[%s4119_s10 + $0x1b0] sm:$0xf]  ;;  %v347_v55 = vld [vmem:[%s4119_s10 + $0x1b8] sm:$0xf]  ;;  %344 = vst [vmem:[%s4126_s11 + $0xd4] sm:$0xf] %v343_v53 }
  0x38   : > { %346 = vst [vmem:[%s4126_s11 + $0xd8] sm:$0xf] %v345_v54  ;;  %348 = vst [vmem:[%s4126_s11 + $0xdc] sm:$0xf] %v347_v55  ;;  %v349_v56 = vld [vmem:[%s4119_s10 + $0x1c0] sm:$0xf] }
  0x39   : > { %v351_v57 = vld [vmem:[%s4119_s10 + $0x1c8] sm:$0xf]  ;;  %v353_v58 = vld [vmem:[%s4119_s10 + $0x1d0] sm:$0xf]  ;;  %350 = vst [vmem:[%s4126_s11 + $0xe0] sm:$0xf] %v349_v56 }
  0x3a   : > { %352 = vst [vmem:[%s4126_s11 + $0xe4] sm:$0xf] %v351_v57  ;;  %354 = vst [vmem:[%s4126_s11 + $0xe8] sm:$0xf] %v353_v58  ;;  %v355_v59 = vld [vmem:[%s4119_s10 + $0x1d8] sm:$0xf] }
  0x3b   : > { %v357_v60 = vld [vmem:[%s4119_s10 + $0x1e0] sm:$0xf]  ;;  %v359_v61 = vld [vmem:[%s4119_s10 + $0x1e8] sm:$0xf]  ;;  %356 = vst [vmem:[%s4126_s11 + $0xec] sm:$0xf] %v355_v59 }
  0x3c   : > { %358 = vst [vmem:[%s4126_s11 + $0xf0] sm:$0xf] %v357_v60  ;;  %360 = vst [vmem:[%s4126_s11 + $0xf4] sm:$0xf] %v359_v61  ;;  %v361_v62 = vld [vmem:[%s4119_s10 + $0x1f0] sm:$0xf] }
  0x3d   : > { %v363_v63 = vld [vmem:[%s4119_s10 + $0x1f8] sm:$0xf]  ;;  %v365_v0 = vld [vmem:[%s4119_s10 + $0x200] sm:$0xf]  ;;  %362 = vst [vmem:[%s4126_s11 + $0xf8] sm:$0xf] %v361_v62 }
  0x3e   : > { %364 = vst [vmem:[%s4126_s11 + $0xfc] sm:$0xf] %v363_v63  ;;  %366 = vst [vmem:[%s4126_s11 + $0x100] sm:$0xf] %v365_v0  ;;  %v367_v1 = vld [vmem:[%s4119_s10 + $0x208] sm:$0xf] }
  0x3f   : > { %v369_v2 = vld [vmem:[%s4119_s10 + $0x210] sm:$0xf]  ;;  %v371_v3 = vld [vmem:[%s4119_s10 + $0x218] sm:$0xf]  ;;  %368 = vst [vmem:[%s4126_s11 + $0x104] sm:$0xf] %v367_v1 }
  0x40   : > { %370 = vst [vmem:[%s4126_s11 + $0x108] sm:$0xf] %v369_v2  ;;  %372 = vst [vmem:[%s4126_s11 + $0x10c] sm:$0xf] %v371_v3  ;;  %v373_v4 = vld [vmem:[%s4119_s10 + $0x220] sm:$0xf] }
  0x41   : > { %v375_v5 = vld [vmem:[%s4119_s10 + $0x228] sm:$0xf]  ;;  %v377_v6 = vld [vmem:[%s4119_s10 + $0x230] sm:$0xf]  ;;  %374 = vst [vmem:[%s4126_s11 + $0x110] sm:$0xf] %v373_v4 }
  0x42   : > { %376 = vst [vmem:[%s4126_s11 + $0x114] sm:$0xf] %v375_v5  ;;  %378 = vst [vmem:[%s4126_s11 + $0x118] sm:$0xf] %v377_v6  ;;  %v379_v7 = vld [vmem:[%s4119_s10 + $0x238] sm:$0xf] }
  0x43   : > { %v381_v8 = vld [vmem:[%s4119_s10 + $0x240] sm:$0xf]  ;;  %v383_v9 = vld [vmem:[%s4119_s10 + $0x248] sm:$0xf]  ;;  %380 = vst [vmem:[%s4126_s11 + $0x11c] sm:$0xf] %v379_v7 }
  0x44   : > { %382 = vst [vmem:[%s4126_s11 + $0x120] sm:$0xf] %v381_v8  ;;  %384 = vst [vmem:[%s4126_s11 + $0x124] sm:$0xf] %v383_v9  ;;  %v385_v10 = vld [vmem:[%s4119_s10 + $0x250] sm:$0xf] }
  0x45   : > { %v387_v11 = vld [vmem:[%s4119_s10 + $0x258] sm:$0xf]  ;;  %v389_v12 = vld [vmem:[%s4119_s10 + $0x260] sm:$0xf]  ;;  %386 = vst [vmem:[%s4126_s11 + $0x128] sm:$0xf] %v385_v10 }
  0x46   : > { %388 = vst [vmem:[%s4126_s11 + $0x12c] sm:$0xf] %v387_v11  ;;  %390 = vst [vmem:[%s4126_s11 + $0x130] sm:$0xf] %v389_v12  ;;  %v391_v13 = vld [vmem:[%s4119_s10 + $0x268] sm:$0xf] }
  0x47   : > { %v393_v14 = vld [vmem:[%s4119_s10 + $0x270] sm:$0xf]  ;;  %v395_v15 = vld [vmem:[%s4119_s10 + $0x278] sm:$0xf]  ;;  %392 = vst [vmem:[%s4126_s11 + $0x134] sm:$0xf] %v391_v13 }
  0x48   : > { %394 = vst [vmem:[%s4126_s11 + $0x138] sm:$0xf] %v393_v14  ;;  %396 = vst [vmem:[%s4126_s11 + $0x13c] sm:$0xf] %v395_v15  ;;  %v397_v16 = vld [vmem:[%s4119_s10 + $0x280] sm:$0xf] }
  0x49   : > { %v399_v17 = vld [vmem:[%s4119_s10 + $0x288] sm:$0xf]  ;;  %v401_v18 = vld [vmem:[%s4119_s10 + $0x290] sm:$0xf]  ;;  %398 = vst [vmem:[%s4126_s11 + $0x140] sm:$0xf] %v397_v16 }
  0x4a   : > { %400 = vst [vmem:[%s4126_s11 + $0x144] sm:$0xf] %v399_v17  ;;  %402 = vst [vmem:[%s4126_s11 + $0x148] sm:$0xf] %v401_v18  ;;  %v403_v19 = vld [vmem:[%s4119_s10 + $0x298] sm:$0xf] }
  0x4b   : > { %v405_v20 = vld [vmem:[%s4119_s10 + $0x2a0] sm:$0xf]  ;;  %v407_v21 = vld [vmem:[%s4119_s10 + $0x2a8] sm:$0xf]  ;;  %404 = vst [vmem:[%s4126_s11 + $0x14c] sm:$0xf] %v403_v19 }
  0x4c   : > { %406 = vst [vmem:[%s4126_s11 + $0x150] sm:$0xf] %v405_v20  ;;  %408 = vst [vmem:[%s4126_s11 + $0x154] sm:$0xf] %v407_v21  ;;  %v409_v22 = vld [vmem:[%s4119_s10 + $0x2b0] sm:$0xf] }
  0x4d   : > { %v411_v23 = vld [vmem:[%s4119_s10 + $0x2b8] sm:$0xf]  ;;  %v413_v24 = vld [vmem:[%s4119_s10 + $0x2c0] sm:$0xf]  ;;  %410 = vst [vmem:[%s4126_s11 + $0x158] sm:$0xf] %v409_v22 }
  0x4e   : > { %412 = vst [vmem:[%s4126_s11 + $0x15c] sm:$0xf] %v411_v23  ;;  %414 = vst [vmem:[%s4126_s11 + $0x160] sm:$0xf] %v413_v24  ;;  %v415_v25 = vld [vmem:[%s4119_s10 + $0x2c8] sm:$0xf] }
  0x4f   : > { %v417_v26 = vld [vmem:[%s4119_s10 + $0x2d0] sm:$0xf]  ;;  %v419_v27 = vld [vmem:[%s4119_s10 + $0x2d8] sm:$0xf]  ;;  %416 = vst [vmem:[%s4126_s11 + $0x164] sm:$0xf] %v415_v25 }
  0x50   : > { %418 = vst [vmem:[%s4126_s11 + $0x168] sm:$0xf] %v417_v26  ;;  %420 = vst [vmem:[%s4126_s11 + $0x16c] sm:$0xf] %v419_v27  ;;  %v421_v28 = vld [vmem:[%s4119_s10 + $0x2e0] sm:$0xf] }
  0x51   : > { %v423_v29 = vld [vmem:[%s4119_s10 + $0x2e8] sm:$0xf]  ;;  %v425_v30 = vld [vmem:[%s4119_s10 + $0x2f0] sm:$0xf]  ;;  %422 = vst [vmem:[%s4126_s11 + $0x170] sm:$0xf] %v421_v28 }
  0x52   : > { %424 = vst [vmem:[%s4126_s11 + $0x174] sm:$0xf] %v423_v29  ;;  %426 = vst [vmem:[%s4126_s11 + $0x178] sm:$0xf] %v425_v30  ;;  %v427_v31 = vld [vmem:[%s4119_s10 + $0x2f8] sm:$0xf] }
  0x53   : > { %v429_v32 = vld [vmem:[%s4119_s10 + $0x300] sm:$0xf]  ;;  %v431_v33 = vld [vmem:[%s4119_s10 + $0x308] sm:$0xf]  ;;  %428 = vst [vmem:[%s4126_s11 + $0x17c] sm:$0xf] %v427_v31 }
  0x54   : > { %430 = vst [vmem:[%s4126_s11 + $0x180] sm:$0xf] %v429_v32  ;;  %432 = vst [vmem:[%s4126_s11 + $0x184] sm:$0xf] %v431_v33  ;;  %v433_v34 = vld [vmem:[%s4119_s10 + $0x310] sm:$0xf] }
  0x55   : > { %v435_v35 = vld [vmem:[%s4119_s10 + $0x318] sm:$0xf]  ;;  %v437_v36 = vld [vmem:[%s4119_s10 + $0x320] sm:$0xf]  ;;  %434 = vst [vmem:[%s4126_s11 + $0x188] sm:$0xf] %v433_v34 }
  0x56   : > { %436 = vst [vmem:[%s4126_s11 + $0x18c] sm:$0xf] %v435_v35  ;;  %438 = vst [vmem:[%s4126_s11 + $0x190] sm:$0xf] %v437_v36  ;;  %v439_v37 = vld [vmem:[%s4119_s10 + $0x328] sm:$0xf] }
  0x57   : > { %v441_v38 = vld [vmem:[%s4119_s10 + $0x330] sm:$0xf]  ;;  %v443_v39 = vld [vmem:[%s4119_s10 + $0x338] sm:$0xf]  ;;  %440 = vst [vmem:[%s4126_s11 + $0x194] sm:$0xf] %v439_v37 }
  0x58   : > { %442 = vst [vmem:[%s4126_s11 + $0x198] sm:$0xf] %v441_v38  ;;  %444 = vst [vmem:[%s4126_s11 + $0x19c] sm:$0xf] %v443_v39  ;;  %v445_v40 = vld [vmem:[%s4119_s10 + $0x340] sm:$0xf] }
  0x59   : > { %v447_v41 = vld [vmem:[%s4119_s10 + $0x348] sm:$0xf]  ;;  %v449_v42 = vld [vmem:[%s4119_s10 + $0x350] sm:$0xf]  ;;  %446 = vst [vmem:[%s4126_s11 + $0x1a0] sm:$0xf] %v445_v40 }
  0x5a   : > { %448 = vst [vmem:[%s4126_s11 + $0x1a4] sm:$0xf] %v447_v41  ;;  %450 = vst [vmem:[%s4126_s11 + $0x1a8] sm:$0xf] %v449_v42  ;;  %v451_v43 = vld [vmem:[%s4119_s10 + $0x358] sm:$0xf] }
  0x5b   : > { %v453_v44 = vld [vmem:[%s4119_s10 + $0x360] sm:$0xf]  ;;  %v455_v45 = vld [vmem:[%s4119_s10 + $0x368] sm:$0xf]  ;;  %452 = vst [vmem:[%s4126_s11 + $0x1ac] sm:$0xf] %v451_v43 }
  0x5c   : > { %454 = vst [vmem:[%s4126_s11 + $0x1b0] sm:$0xf] %v453_v44  ;;  %456 = vst [vmem:[%s4126_s11 + $0x1b4] sm:$0xf] %v455_v45  ;;  %v457_v46 = vld [vmem:[%s4119_s10 + $0x370] sm:$0xf] }
  0x5d   : > { %v459_v47 = vld [vmem:[%s4119_s10 + $0x378] sm:$0xf]  ;;  %v461_v48 = vld [vmem:[%s4119_s10 + $0x380] sm:$0xf]  ;;  %458 = vst [vmem:[%s4126_s11 + $0x1b8] sm:$0xf] %v457_v46 }
  0x5e   : > { %460 = vst [vmem:[%s4126_s11 + $0x1bc] sm:$0xf] %v459_v47  ;;  %462 = vst [vmem:[%s4126_s11 + $0x1c0] sm:$0xf] %v461_v48  ;;  %v463_v49 = vld [vmem:[%s4119_s10 + $0x388] sm:$0xf] }
  0x5f   : > { %v465_v50 = vld [vmem:[%s4119_s10 + $0x390] sm:$0xf]  ;;  %v467_v51 = vld [vmem:[%s4119_s10 + $0x398] sm:$0xf]  ;;  %464 = vst [vmem:[%s4126_s11 + $0x1c4] sm:$0xf] %v463_v49 }
  0x60   : > { %466 = vst [vmem:[%s4126_s11 + $0x1c8] sm:$0xf] %v465_v50  ;;  %468 = vst [vmem:[%s4126_s11 + $0x1cc] sm:$0xf] %v467_v51  ;;  %v469_v52 = vld [vmem:[%s4119_s10 + $0x3a0] sm:$0xf] }
  0x61   : > { %v471_v53 = vld [vmem:[%s4119_s10 + $0x3a8] sm:$0xf]  ;;  %v473_v54 = vld [vmem:[%s4119_s10 + $0x3b0] sm:$0xf]  ;;  %470 = vst [vmem:[%s4126_s11 + $0x1d0] sm:$0xf] %v469_v52 }
  0x62   : > { %472 = vst [vmem:[%s4126_s11 + $0x1d4] sm:$0xf] %v471_v53  ;;  %474 = vst [vmem:[%s4126_s11 + $0x1d8] sm:$0xf] %v473_v54  ;;  %v475_v55 = vld [vmem:[%s4119_s10 + $0x3b8] sm:$0xf] }
  0x63   : > { %v477_v56 = vld [vmem:[%s4119_s10 + $0x3c0] sm:$0xf]  ;;  %v479_v57 = vld [vmem:[%s4119_s10 + $0x3c8] sm:$0xf]  ;;  %476 = vst [vmem:[%s4126_s11 + $0x1dc] sm:$0xf] %v475_v55 }
  0x64   : > { %478 = vst [vmem:[%s4126_s11 + $0x1e0] sm:$0xf] %v477_v56  ;;  %480 = vst [vmem:[%s4126_s11 + $0x1e4] sm:$0xf] %v479_v57  ;;  %v481_v58 = vld [vmem:[%s4119_s10 + $0x3d0] sm:$0xf] }
  0x65   : > { %v483_v59 = vld [vmem:[%s4119_s10 + $0x3d8] sm:$0xf]  ;;  %v485_v60 = vld [vmem:[%s4119_s10 + $0x3e0] sm:$0xf]  ;;  %482 = vst [vmem:[%s4126_s11 + $0x1e8] sm:$0xf] %v481_v58 }
  0x66   : > { %484 = vst [vmem:[%s4126_s11 + $0x1ec] sm:$0xf] %v483_v59  ;;  %486 = vst [vmem:[%s4126_s11 + $0x1f0] sm:$0xf] %v485_v60  ;;  %v487_v61 = vld [vmem:[%s4119_s10 + $0x3e8] sm:$0xf] }
  0x67   : > { %v489_v62 = vld [vmem:[%s4119_s10 + $0x3f0] sm:$0xf]  ;;  %v491_v63 = vld [vmem:[%s4119_s10 + $0x3f8] sm:$0xf]  ;;  %488 = vst [vmem:[%s4126_s11 + $0x1f4] sm:$0xf] %v487_v61 }
  0x68   : > { %490 = vst [vmem:[%s4126_s11 + $0x1f8] sm:$0xf] %v489_v62  ;;  %492 = vst [vmem:[%s4126_s11 + $0x1fc] sm:$0xf] %v491_v63  ;;  %v493_v0 = vld [vmem:[%s4119_s10 + $0x400] sm:$0xf] }
  0x69   : > { %v495_v1 = vld [vmem:[%s4119_s10 + $0x408] sm:$0xf]  ;;  %v497_v2 = vld [vmem:[%s4119_s10 + $0x410] sm:$0xf]  ;;  %494 = vst [vmem:[%s4126_s11 + $0x200] sm:$0xf] %v493_v0 }
  0x6a   : > { %496 = vst [vmem:[%s4126_s11 + $0x204] sm:$0xf] %v495_v1  ;;  %498 = vst [vmem:[%s4126_s11 + $0x208] sm:$0xf] %v497_v2  ;;  %v499_v3 = vld [vmem:[%s4119_s10 + $0x418] sm:$0xf] }
  0x6b   : > { %v501_v4 = vld [vmem:[%s4119_s10 + $0x420] sm:$0xf]  ;;  %v503_v5 = vld [vmem:[%s4119_s10 + $0x428] sm:$0xf]  ;;  %500 = vst [vmem:[%s4126_s11 + $0x20c] sm:$0xf] %v499_v3 }
  0x6c   : > { %502 = vst [vmem:[%s4126_s11 + $0x210] sm:$0xf] %v501_v4  ;;  %504 = vst [vmem:[%s4126_s11 + $0x214] sm:$0xf] %v503_v5  ;;  %v505_v6 = vld [vmem:[%s4119_s10 + $0x430] sm:$0xf] }
  0x6d   : > { %v507_v7 = vld [vmem:[%s4119_s10 + $0x438] sm:$0xf]  ;;  %v509_v8 = vld [vmem:[%s4119_s10 + $0x440] sm:$0xf]  ;;  %506 = vst [vmem:[%s4126_s11 + $0x218] sm:$0xf] %v505_v6 }
  0x6e   : > { %508 = vst [vmem:[%s4126_s11 + $0x21c] sm:$0xf] %v507_v7  ;;  %510 = vst [vmem:[%s4126_s11 + $0x220] sm:$0xf] %v509_v8  ;;  %v511_v9 = vld [vmem:[%s4119_s10 + $0x448] sm:$0xf] }
  0x6f   : > { %v513_v10 = vld [vmem:[%s4119_s10 + $0x450] sm:$0xf]  ;;  %v515_v11 = vld [vmem:[%s4119_s10 + $0x458] sm:$0xf]  ;;  %512 = vst [vmem:[%s4126_s11 + $0x224] sm:$0xf] %v511_v9 }
  0x70   : > { %514 = vst [vmem:[%s4126_s11 + $0x228] sm:$0xf] %v513_v10  ;;  %516 = vst [vmem:[%s4126_s11 + $0x22c] sm:$0xf] %v515_v11  ;;  %v517_v12 = vld [vmem:[%s4119_s10 + $0x460] sm:$0xf] }
  0x71   : > { %v519_v13 = vld [vmem:[%s4119_s10 + $0x468] sm:$0xf]  ;;  %v521_v14 = vld [vmem:[%s4119_s10 + $0x470] sm:$0xf]  ;;  %518 = vst [vmem:[%s4126_s11 + $0x230] sm:$0xf] %v517_v12 }
  0x72   : > { %520 = vst [vmem:[%s4126_s11 + $0x234] sm:$0xf] %v519_v13  ;;  %522 = vst [vmem:[%s4126_s11 + $0x238] sm:$0xf] %v521_v14  ;;  %v523_v15 = vld [vmem:[%s4119_s10 + $0x478] sm:$0xf] }
  0x73   : > { %v525_v16 = vld [vmem:[%s4119_s10 + $0x480] sm:$0xf]  ;;  %v527_v17 = vld [vmem:[%s4119_s10 + $0x488] sm:$0xf]  ;;  %524 = vst [vmem:[%s4126_s11 + $0x23c] sm:$0xf] %v523_v15 }
  0x74   : > { %526 = vst [vmem:[%s4126_s11 + $0x240] sm:$0xf] %v525_v16  ;;  %528 = vst [vmem:[%s4126_s11 + $0x244] sm:$0xf] %v527_v17  ;;  %v529_v18 = vld [vmem:[%s4119_s10 + $0x490] sm:$0xf] }
  0x75   : > { %v531_v19 = vld [vmem:[%s4119_s10 + $0x498] sm:$0xf]  ;;  %v533_v20 = vld [vmem:[%s4119_s10 + $0x4a0] sm:$0xf]  ;;  %530 = vst [vmem:[%s4126_s11 + $0x248] sm:$0xf] %v529_v18 }
  0x76   : > { %532 = vst [vmem:[%s4126_s11 + $0x24c] sm:$0xf] %v531_v19  ;;  %534 = vst [vmem:[%s4126_s11 + $0x250] sm:$0xf] %v533_v20  ;;  %v535_v21 = vld [vmem:[%s4119_s10 + $0x4a8] sm:$0xf] }
  0x77   : > { %v537_v22 = vld [vmem:[%s4119_s10 + $0x4b0] sm:$0xf]  ;;  %v539_v23 = vld [vmem:[%s4119_s10 + $0x4b8] sm:$0xf]  ;;  %536 = vst [vmem:[%s4126_s11 + $0x254] sm:$0xf] %v535_v21 }
  0x78   : > { %538 = vst [vmem:[%s4126_s11 + $0x258] sm:$0xf] %v537_v22  ;;  %540 = vst [vmem:[%s4126_s11 + $0x25c] sm:$0xf] %v539_v23  ;;  %v541_v24 = vld [vmem:[%s4119_s10 + $0x4c0] sm:$0xf] }
  0x79   : > { %v543_v25 = vld [vmem:[%s4119_s10 + $0x4c8] sm:$0xf]  ;;  %v545_v26 = vld [vmem:[%s4119_s10 + $0x4d0] sm:$0xf]  ;;  %542 = vst [vmem:[%s4126_s11 + $0x260] sm:$0xf] %v541_v24 }
  0x7a   : > { %544 = vst [vmem:[%s4126_s11 + $0x264] sm:$0xf] %v543_v25  ;;  %546 = vst [vmem:[%s4126_s11 + $0x268] sm:$0xf] %v545_v26  ;;  %v547_v27 = vld [vmem:[%s4119_s10 + $0x4d8] sm:$0xf] }
  0x7b   : > { %v549_v28 = vld [vmem:[%s4119_s10 + $0x4e0] sm:$0xf]  ;;  %v551_v29 = vld [vmem:[%s4119_s10 + $0x4e8] sm:$0xf]  ;;  %548 = vst [vmem:[%s4126_s11 + $0x26c] sm:$0xf] %v547_v27 }
  0x7c   : > { %550 = vst [vmem:[%s4126_s11 + $0x270] sm:$0xf] %v549_v28  ;;  %552 = vst [vmem:[%s4126_s11 + $0x274] sm:$0xf] %v551_v29  ;;  %v553_v30 = vld [vmem:[%s4119_s10 + $0x4f0] sm:$0xf] }
  0x7d   : > { %v555_v31 = vld [vmem:[%s4119_s10 + $0x4f8] sm:$0xf]  ;;  %v557_v32 = vld [vmem:[%s4119_s10 + $0x500] sm:$0xf]  ;;  %554 = vst [vmem:[%s4126_s11 + $0x278] sm:$0xf] %v553_v30 }
  0x7e   : > { %556 = vst [vmem:[%s4126_s11 + $0x27c] sm:$0xf] %v555_v31  ;;  %558 = vst [vmem:[%s4126_s11 + $0x280] sm:$0xf] %v557_v32  ;;  %v559_v33 = vld [vmem:[%s4119_s10 + $0x508] sm:$0xf] }
  0x7f   : > { %v561_v34 = vld [vmem:[%s4119_s10 + $0x510] sm:$0xf]  ;;  %v563_v35 = vld [vmem:[%s4119_s10 + $0x518] sm:$0xf]  ;;  %560 = vst [vmem:[%s4126_s11 + $0x284] sm:$0xf] %v559_v33 }
  0x80   : > { %562 = vst [vmem:[%s4126_s11 + $0x288] sm:$0xf] %v561_v34  ;;  %564 = vst [vmem:[%s4126_s11 + $0x28c] sm:$0xf] %v563_v35  ;;  %v565_v36 = vld [vmem:[%s4119_s10 + $0x520] sm:$0xf] }
  0x81   : > { %v567_v37 = vld [vmem:[%s4119_s10 + $0x528] sm:$0xf]  ;;  %v569_v38 = vld [vmem:[%s4119_s10 + $0x530] sm:$0xf]  ;;  %566 = vst [vmem:[%s4126_s11 + $0x290] sm:$0xf] %v565_v36 }
  0x82   : > { %568 = vst [vmem:[%s4126_s11 + $0x294] sm:$0xf] %v567_v37  ;;  %570 = vst [vmem:[%s4126_s11 + $0x298] sm:$0xf] %v569_v38  ;;  %v571_v39 = vld [vmem:[%s4119_s10 + $0x538] sm:$0xf] }
  0x83   : > { %v573_v40 = vld [vmem:[%s4119_s10 + $0x540] sm:$0xf]  ;;  %v575_v41 = vld [vmem:[%s4119_s10 + $0x548] sm:$0xf]  ;;  %572 = vst [vmem:[%s4126_s11 + $0x29c] sm:$0xf] %v571_v39 }
  0x84   : > { %574 = vst [vmem:[%s4126_s11 + $0x2a0] sm:$0xf] %v573_v40  ;;  %576 = vst [vmem:[%s4126_s11 + $0x2a4] sm:$0xf] %v575_v41  ;;  %v577_v42 = vld [vmem:[%s4119_s10 + $0x550] sm:$0xf] }
  0x85   : > { %v579_v43 = vld [vmem:[%s4119_s10 + $0x558] sm:$0xf]  ;;  %v581_v44 = vld [vmem:[%s4119_s10 + $0x560] sm:$0xf]  ;;  %578 = vst [vmem:[%s4126_s11 + $0x2a8] sm:$0xf] %v577_v42 }
  0x86   : > { %580 = vst [vmem:[%s4126_s11 + $0x2ac] sm:$0xf] %v579_v43  ;;  %582 = vst [vmem:[%s4126_s11 + $0x2b0] sm:$0xf] %v581_v44  ;;  %v583_v45 = vld [vmem:[%s4119_s10 + $0x568] sm:$0xf] }
  0x87   : > { %v585_v46 = vld [vmem:[%s4119_s10 + $0x570] sm:$0xf]  ;;  %v587_v47 = vld [vmem:[%s4119_s10 + $0x578] sm:$0xf]  ;;  %584 = vst [vmem:[%s4126_s11 + $0x2b4] sm:$0xf] %v583_v45 }
  0x88   : > { %586 = vst [vmem:[%s4126_s11 + $0x2b8] sm:$0xf] %v585_v46  ;;  %588 = vst [vmem:[%s4126_s11 + $0x2bc] sm:$0xf] %v587_v47  ;;  %v589_v48 = vld [vmem:[%s4119_s10 + $0x580] sm:$0xf] }
  0x89   : > { %v591_v49 = vld [vmem:[%s4119_s10 + $0x588] sm:$0xf]  ;;  %v593_v50 = vld [vmem:[%s4119_s10 + $0x590] sm:$0xf]  ;;  %590 = vst [vmem:[%s4126_s11 + $0x2c0] sm:$0xf] %v589_v48 }
  0x8a   : > { %592 = vst [vmem:[%s4126_s11 + $0x2c4] sm:$0xf] %v591_v49  ;;  %594 = vst [vmem:[%s4126_s11 + $0x2c8] sm:$0xf] %v593_v50  ;;  %v595_v51 = vld [vmem:[%s4119_s10 + $0x598] sm:$0xf] }
  0x8b   : > { %v597_v52 = vld [vmem:[%s4119_s10 + $0x5a0] sm:$0xf]  ;;  %v599_v53 = vld [vmem:[%s4119_s10 + $0x5a8] sm:$0xf]  ;;  %596 = vst [vmem:[%s4126_s11 + $0x2cc] sm:$0xf] %v595_v51 }
  0x8c   : > { %598 = vst [vmem:[%s4126_s11 + $0x2d0] sm:$0xf] %v597_v52  ;;  %600 = vst [vmem:[%s4126_s11 + $0x2d4] sm:$0xf] %v599_v53  ;;  %v601_v54 = vld [vmem:[%s4119_s10 + $0x5b0] sm:$0xf] }
  0x8d   : > { %v603_v55 = vld [vmem:[%s4119_s10 + $0x5b8] sm:$0xf]  ;;  %v605_v56 = vld [vmem:[%s4119_s10 + $0x5c0] sm:$0xf]  ;;  %602 = vst [vmem:[%s4126_s11 + $0x2d8] sm:$0xf] %v601_v54 }
  0x8e   : > { %604 = vst [vmem:[%s4126_s11 + $0x2dc] sm:$0xf] %v603_v55  ;;  %606 = vst [vmem:[%s4126_s11 + $0x2e0] sm:$0xf] %v605_v56  ;;  %v607_v57 = vld [vmem:[%s4119_s10 + $0x5c8] sm:$0xf] }
  0x8f   : > { %v609_v58 = vld [vmem:[%s4119_s10 + $0x5d0] sm:$0xf]  ;;  %v611_v59 = vld [vmem:[%s4119_s10 + $0x5d8] sm:$0xf]  ;;  %608 = vst [vmem:[%s4126_s11 + $0x2e4] sm:$0xf] %v607_v57 }
  0x90   : > { %610 = vst [vmem:[%s4126_s11 + $0x2e8] sm:$0xf] %v609_v58  ;;  %612 = vst [vmem:[%s4126_s11 + $0x2ec] sm:$0xf] %v611_v59  ;;  %v613_v60 = vld [vmem:[%s4119_s10 + $0x5e0] sm:$0xf] }
  0x91   : > { %v615_v61 = vld [vmem:[%s4119_s10 + $0x5e8] sm:$0xf]  ;;  %v617_v62 = vld [vmem:[%s4119_s10 + $0x5f0] sm:$0xf]  ;;  %614 = vst [vmem:[%s4126_s11 + $0x2f0] sm:$0xf] %v613_v60 }
  0x92   : > { %616 = vst [vmem:[%s4126_s11 + $0x2f4] sm:$0xf] %v615_v61  ;;  %618 = vst [vmem:[%s4126_s11 + $0x2f8] sm:$0xf] %v617_v62  ;;  %v619_v63 = vld [vmem:[%s4119_s10 + $0x5f8] sm:$0xf] }
  0x93   : > { %v621_v0 = vld [vmem:[%s4119_s10 + $0x600] sm:$0xf]  ;;  %v623_v1 = vld [vmem:[%s4119_s10 + $0x608] sm:$0xf]  ;;  %620 = vst [vmem:[%s4126_s11 + $0x2fc] sm:$0xf] %v619_v63 }
  0x94   : > { %622 = vst [vmem:[%s4126_s11 + $0x300] sm:$0xf] %v621_v0  ;;  %624 = vst [vmem:[%s4126_s11 + $0x304] sm:$0xf] %v623_v1  ;;  %v625_v2 = vld [vmem:[%s4119_s10 + $0x610] sm:$0xf] }
  0x95   : > { %v627_v3 = vld [vmem:[%s4119_s10 + $0x618] sm:$0xf]  ;;  %v629_v4 = vld [vmem:[%s4119_s10 + $0x620] sm:$0xf]  ;;  %626 = vst [vmem:[%s4126_s11 + $0x308] sm:$0xf] %v625_v2 }
  0x96   : > { %628 = vst [vmem:[%s4126_s11 + $0x30c] sm:$0xf] %v627_v3  ;;  %630 = vst [vmem:[%s4126_s11 + $0x310] sm:$0xf] %v629_v4  ;;  %v631_v5 = vld [vmem:[%s4119_s10 + $0x628] sm:$0xf] }
  0x97   : > { %v633_v6 = vld [vmem:[%s4119_s10 + $0x630] sm:$0xf]  ;;  %v635_v7 = vld [vmem:[%s4119_s10 + $0x638] sm:$0xf]  ;;  %632 = vst [vmem:[%s4126_s11 + $0x314] sm:$0xf] %v631_v5 }
  0x98   : > { %634 = vst [vmem:[%s4126_s11 + $0x318] sm:$0xf] %v633_v6  ;;  %636 = vst [vmem:[%s4126_s11 + $0x31c] sm:$0xf] %v635_v7  ;;  %v637_v8 = vld [vmem:[%s4119_s10 + $0x640] sm:$0xf] }
  0x99   : > { %v639_v9 = vld [vmem:[%s4119_s10 + $0x648] sm:$0xf]  ;;  %v641_v10 = vld [vmem:[%s4119_s10 + $0x650] sm:$0xf]  ;;  %638 = vst [vmem:[%s4126_s11 + $0x320] sm:$0xf] %v637_v8 }
  0x9a   : > { %640 = vst [vmem:[%s4126_s11 + $0x324] sm:$0xf] %v639_v9  ;;  %642 = vst [vmem:[%s4126_s11 + $0x328] sm:$0xf] %v641_v10  ;;  %v643_v11 = vld [vmem:[%s4119_s10 + $0x658] sm:$0xf] }
  0x9b   : > { %v645_v12 = vld [vmem:[%s4119_s10 + $0x660] sm:$0xf]  ;;  %v647_v13 = vld [vmem:[%s4119_s10 + $0x668] sm:$0xf]  ;;  %644 = vst [vmem:[%s4126_s11 + $0x32c] sm:$0xf] %v643_v11 }
  0x9c   : > { %646 = vst [vmem:[%s4126_s11 + $0x330] sm:$0xf] %v645_v12  ;;  %648 = vst [vmem:[%s4126_s11 + $0x334] sm:$0xf] %v647_v13  ;;  %v649_v14 = vld [vmem:[%s4119_s10 + $0x670] sm:$0xf] }
  0x9d   : > { %v651_v15 = vld [vmem:[%s4119_s10 + $0x678] sm:$0xf]  ;;  %v653_v16 = vld [vmem:[%s4119_s10 + $0x680] sm:$0xf]  ;;  %650 = vst [vmem:[%s4126_s11 + $0x338] sm:$0xf] %v649_v14 }
  0x9e   : > { %652 = vst [vmem:[%s4126_s11 + $0x33c] sm:$0xf] %v651_v15  ;;  %654 = vst [vmem:[%s4126_s11 + $0x340] sm:$0xf] %v653_v16  ;;  %v655_v17 = vld [vmem:[%s4119_s10 + $0x688] sm:$0xf] }
  0x9f   : > { %v657_v18 = vld [vmem:[%s4119_s10 + $0x690] sm:$0xf]  ;;  %v659_v19 = vld [vmem:[%s4119_s10 + $0x698] sm:$0xf]  ;;  %656 = vst [vmem:[%s4126_s11 + $0x344] sm:$0xf] %v655_v17 }
  0xa0   : > { %658 = vst [vmem:[%s4126_s11 + $0x348] sm:$0xf] %v657_v18  ;;  %660 = vst [vmem:[%s4126_s11 + $0x34c] sm:$0xf] %v659_v19  ;;  %v661_v20 = vld [vmem:[%s4119_s10 + $0x6a0] sm:$0xf] }
  0xa1   : > { %v663_v21 = vld [vmem:[%s4119_s10 + $0x6a8] sm:$0xf]  ;;  %v665_v22 = vld [vmem:[%s4119_s10 + $0x6b0] sm:$0xf]  ;;  %662 = vst [vmem:[%s4126_s11 + $0x350] sm:$0xf] %v661_v20 }
  0xa2   : > { %664 = vst [vmem:[%s4126_s11 + $0x354] sm:$0xf] %v663_v21  ;;  %666 = vst [vmem:[%s4126_s11 + $0x358] sm:$0xf] %v665_v22  ;;  %v667_v23 = vld [vmem:[%s4119_s10 + $0x6b8] sm:$0xf] }
  0xa3   : > { %v669_v24 = vld [vmem:[%s4119_s10 + $0x6c0] sm:$0xf]  ;;  %v671_v25 = vld [vmem:[%s4119_s10 + $0x6c8] sm:$0xf]  ;;  %668 = vst [vmem:[%s4126_s11 + $0x35c] sm:$0xf] %v667_v23 }
  0xa4   : > { %670 = vst [vmem:[%s4126_s11 + $0x360] sm:$0xf] %v669_v24  ;;  %672 = vst [vmem:[%s4126_s11 + $0x364] sm:$0xf] %v671_v25  ;;  %v673_v26 = vld [vmem:[%s4119_s10 + $0x6d0] sm:$0xf] }
  0xa5   : > { %v675_v27 = vld [vmem:[%s4119_s10 + $0x6d8] sm:$0xf]  ;;  %v677_v28 = vld [vmem:[%s4119_s10 + $0x6e0] sm:$0xf]  ;;  %674 = vst [vmem:[%s4126_s11 + $0x368] sm:$0xf] %v673_v26 }
  0xa6   : > { %676 = vst [vmem:[%s4126_s11 + $0x36c] sm:$0xf] %v675_v27  ;;  %678 = vst [vmem:[%s4126_s11 + $0x370] sm:$0xf] %v677_v28  ;;  %v679_v29 = vld [vmem:[%s4119_s10 + $0x6e8] sm:$0xf] }
  0xa7   : > { %v681_v30 = vld [vmem:[%s4119_s10 + $0x6f0] sm:$0xf]  ;;  %v683_v31 = vld [vmem:[%s4119_s10 + $0x6f8] sm:$0xf]  ;;  %680 = vst [vmem:[%s4126_s11 + $0x374] sm:$0xf] %v679_v29 }
  0xa8   : > { %682 = vst [vmem:[%s4126_s11 + $0x378] sm:$0xf] %v681_v30  ;;  %684 = vst [vmem:[%s4126_s11 + $0x37c] sm:$0xf] %v683_v31  ;;  %v685_v32 = vld [vmem:[%s4119_s10 + $0x700] sm:$0xf] }
  0xa9   : > { %v687_v33 = vld [vmem:[%s4119_s10 + $0x708] sm:$0xf]  ;;  %v689_v34 = vld [vmem:[%s4119_s10 + $0x710] sm:$0xf]  ;;  %686 = vst [vmem:[%s4126_s11 + $0x380] sm:$0xf] %v685_v32 }
  0xaa   : > { %688 = vst [vmem:[%s4126_s11 + $0x384] sm:$0xf] %v687_v33  ;;  %690 = vst [vmem:[%s4126_s11 + $0x388] sm:$0xf] %v689_v34  ;;  %v691_v35 = vld [vmem:[%s4119_s10 + $0x718] sm:$0xf] }
  0xab   : > { %v693_v36 = vld [vmem:[%s4119_s10 + $0x720] sm:$0xf]  ;;  %v695_v37 = vld [vmem:[%s4119_s10 + $0x728] sm:$0xf]  ;;  %692 = vst [vmem:[%s4126_s11 + $0x38c] sm:$0xf] %v691_v35 }
  0xac   : > { %694 = vst [vmem:[%s4126_s11 + $0x390] sm:$0xf] %v693_v36  ;;  %696 = vst [vmem:[%s4126_s11 + $0x394] sm:$0xf] %v695_v37  ;;  %v697_v38 = vld [vmem:[%s4119_s10 + $0x730] sm:$0xf] }
  0xad   : > { %v699_v39 = vld [vmem:[%s4119_s10 + $0x738] sm:$0xf]  ;;  %v701_v40 = vld [vmem:[%s4119_s10 + $0x740] sm:$0xf]  ;;  %698 = vst [vmem:[%s4126_s11 + $0x398] sm:$0xf] %v697_v38 }
  0xae   : > { %700 = vst [vmem:[%s4126_s11 + $0x39c] sm:$0xf] %v699_v39  ;;  %702 = vst [vmem:[%s4126_s11 + $0x3a0] sm:$0xf] %v701_v40  ;;  %v703_v41 = vld [vmem:[%s4119_s10 + $0x748] sm:$0xf] }
  0xaf   : > { %v705_v42 = vld [vmem:[%s4119_s10 + $0x750] sm:$0xf]  ;;  %v707_v43 = vld [vmem:[%s4119_s10 + $0x758] sm:$0xf]  ;;  %704 = vst [vmem:[%s4126_s11 + $0x3a4] sm:$0xf] %v703_v41 }
  0xb0   : > { %706 = vst [vmem:[%s4126_s11 + $0x3a8] sm:$0xf] %v705_v42  ;;  %708 = vst [vmem:[%s4126_s11 + $0x3ac] sm:$0xf] %v707_v43  ;;  %v709_v44 = vld [vmem:[%s4119_s10 + $0x760] sm:$0xf] }
  0xb1   : > { %v711_v45 = vld [vmem:[%s4119_s10 + $0x768] sm:$0xf]  ;;  %v713_v46 = vld [vmem:[%s4119_s10 + $0x770] sm:$0xf]  ;;  %710 = vst [vmem:[%s4126_s11 + $0x3b0] sm:$0xf] %v709_v44 }
  0xb2   : > { %712 = vst [vmem:[%s4126_s11 + $0x3b4] sm:$0xf] %v711_v45  ;;  %714 = vst [vmem:[%s4126_s11 + $0x3b8] sm:$0xf] %v713_v46  ;;  %v715_v47 = vld [vmem:[%s4119_s10 + $0x778] sm:$0xf] }
  0xb3   : > { %v717_v48 = vld [vmem:[%s4119_s10 + $0x780] sm:$0xf]  ;;  %v719_v49 = vld [vmem:[%s4119_s10 + $0x788] sm:$0xf]  ;;  %716 = vst [vmem:[%s4126_s11 + $0x3bc] sm:$0xf] %v715_v47 }
  0xb4   : > { %718 = vst [vmem:[%s4126_s11 + $0x3c0] sm:$0xf] %v717_v48  ;;  %720 = vst [vmem:[%s4126_s11 + $0x3c4] sm:$0xf] %v719_v49  ;;  %v721_v50 = vld [vmem:[%s4119_s10 + $0x790] sm:$0xf] }
  0xb5   : > { %v723_v51 = vld [vmem:[%s4119_s10 + $0x798] sm:$0xf]  ;;  %v725_v52 = vld [vmem:[%s4119_s10 + $0x7a0] sm:$0xf]  ;;  %722 = vst [vmem:[%s4126_s11 + $0x3c8] sm:$0xf] %v721_v50 }
  0xb6   : > { %724 = vst [vmem:[%s4126_s11 + $0x3cc] sm:$0xf] %v723_v51  ;;  %726 = vst [vmem:[%s4126_s11 + $0x3d0] sm:$0xf] %v725_v52  ;;  %v727_v53 = vld [vmem:[%s4119_s10 + $0x7a8] sm:$0xf] }
  0xb7   : > { %v729_v54 = vld [vmem:[%s4119_s10 + $0x7b0] sm:$0xf]  ;;  %v731_v55 = vld [vmem:[%s4119_s10 + $0x7b8] sm:$0xf]  ;;  %728 = vst [vmem:[%s4126_s11 + $0x3d4] sm:$0xf] %v727_v53 }
  0xb8   : > { %730 = vst [vmem:[%s4126_s11 + $0x3d8] sm:$0xf] %v729_v54  ;;  %732 = vst [vmem:[%s4126_s11 + $0x3dc] sm:$0xf] %v731_v55  ;;  %v733_v56 = vld [vmem:[%s4119_s10 + $0x7c0] sm:$0xf] }
  0xb9   : > { %v735_v57 = vld [vmem:[%s4119_s10 + $0x7c8] sm:$0xf]  ;;  %v737_v58 = vld [vmem:[%s4119_s10 + $0x7d0] sm:$0xf]  ;;  %734 = vst [vmem:[%s4126_s11 + $0x3e0] sm:$0xf] %v733_v56 }
  0xba   : > { %736 = vst [vmem:[%s4126_s11 + $0x3e4] sm:$0xf] %v735_v57  ;;  %738 = vst [vmem:[%s4126_s11 + $0x3e8] sm:$0xf] %v737_v58  ;;  %v739_v59 = vld [vmem:[%s4119_s10 + $0x7d8] sm:$0xf] }
  0xbb   : > { %v741_v60 = vld [vmem:[%s4119_s10 + $0x7e0] sm:$0xf]  ;;  %v743_v61 = vld [vmem:[%s4119_s10 + $0x7e8] sm:$0xf]  ;;  %740 = vst [vmem:[%s4126_s11 + $0x3ec] sm:$0xf] %v739_v59 }
  0xbc   : > { %742 = vst [vmem:[%s4126_s11 + $0x3f0] sm:$0xf] %v741_v60  ;;  %744 = vst [vmem:[%s4126_s11 + $0x3f4] sm:$0xf] %v743_v61  ;;  %v745_v62 = vld [vmem:[%s4119_s10 + $0x7f0] sm:$0xf] }
  0xbd   : > { %v747_v63 = vld [vmem:[%s4119_s10 + $0x7f8] sm:$0xf]  ;;  %v749_v0 = vld [vmem:[%s4119_s10 + $0x800] sm:$0xf]  ;;  %746 = vst [vmem:[%s4126_s11 + $0x3f8] sm:$0xf] %v745_v62 }
  0xbe   : > { %748 = vst [vmem:[%s4126_s11 + $0x3fc] sm:$0xf] %v747_v63  ;;  %750 = vst [vmem:[%s4126_s11 + $0x400] sm:$0xf] %v749_v0  ;;  %v751_v1 = vld [vmem:[%s4119_s10 + $0x808] sm:$0xf] }
  0xbf   : > { %v753_v2 = vld [vmem:[%s4119_s10 + $0x810] sm:$0xf]  ;;  %v755_v3 = vld [vmem:[%s4119_s10 + $0x818] sm:$0xf]  ;;  %752 = vst [vmem:[%s4126_s11 + $0x404] sm:$0xf] %v751_v1 }
  0xc0   : > { %754 = vst [vmem:[%s4126_s11 + $0x408] sm:$0xf] %v753_v2  ;;  %756 = vst [vmem:[%s4126_s11 + $0x40c] sm:$0xf] %v755_v3  ;;  %v757_v4 = vld [vmem:[%s4119_s10 + $0x820] sm:$0xf] }
  0xc1   : > { %v759_v5 = vld [vmem:[%s4119_s10 + $0x828] sm:$0xf]  ;;  %v761_v6 = vld [vmem:[%s4119_s10 + $0x830] sm:$0xf]  ;;  %758 = vst [vmem:[%s4126_s11 + $0x410] sm:$0xf] %v757_v4 }
  0xc2   : > { %760 = vst [vmem:[%s4126_s11 + $0x414] sm:$0xf] %v759_v5  ;;  %762 = vst [vmem:[%s4126_s11 + $0x418] sm:$0xf] %v761_v6  ;;  %v763_v7 = vld [vmem:[%s4119_s10 + $0x838] sm:$0xf] }
  0xc3   : > { %v765_v8 = vld [vmem:[%s4119_s10 + $0x840] sm:$0xf]  ;;  %v767_v9 = vld [vmem:[%s4119_s10 + $0x848] sm:$0xf]  ;;  %764 = vst [vmem:[%s4126_s11 + $0x41c] sm:$0xf] %v763_v7 }
  0xc4   : > { %766 = vst [vmem:[%s4126_s11 + $0x420] sm:$0xf] %v765_v8  ;;  %768 = vst [vmem:[%s4126_s11 + $0x424] sm:$0xf] %v767_v9  ;;  %v769_v10 = vld [vmem:[%s4119_s10 + $0x850] sm:$0xf] }
  0xc5   : > { %v771_v11 = vld [vmem:[%s4119_s10 + $0x858] sm:$0xf]  ;;  %v773_v12 = vld [vmem:[%s4119_s10 + $0x860] sm:$0xf]  ;;  %770 = vst [vmem:[%s4126_s11 + $0x428] sm:$0xf] %v769_v10 }
  0xc6   : > { %772 = vst [vmem:[%s4126_s11 + $0x42c] sm:$0xf] %v771_v11  ;;  %774 = vst [vmem:[%s4126_s11 + $0x430] sm:$0xf] %v773_v12  ;;  %v775_v13 = vld [vmem:[%s4119_s10 + $0x868] sm:$0xf] }
  0xc7   : > { %v777_v14 = vld [vmem:[%s4119_s10 + $0x870] sm:$0xf]  ;;  %v779_v15 = vld [vmem:[%s4119_s10 + $0x878] sm:$0xf]  ;;  %776 = vst [vmem:[%s4126_s11 + $0x434] sm:$0xf] %v775_v13 }
  0xc8   : > { %778 = vst [vmem:[%s4126_s11 + $0x438] sm:$0xf] %v777_v14  ;;  %780 = vst [vmem:[%s4126_s11 + $0x43c] sm:$0xf] %v779_v15  ;;  %v781_v16 = vld [vmem:[%s4119_s10 + $0x880] sm:$0xf] }
  0xc9   : > { %v783_v17 = vld [vmem:[%s4119_s10 + $0x888] sm:$0xf]  ;;  %v785_v18 = vld [vmem:[%s4119_s10 + $0x890] sm:$0xf]  ;;  %782 = vst [vmem:[%s4126_s11 + $0x440] sm:$0xf] %v781_v16 }
  0xca   : > { %784 = vst [vmem:[%s4126_s11 + $0x444] sm:$0xf] %v783_v17  ;;  %786 = vst [vmem:[%s4126_s11 + $0x448] sm:$0xf] %v785_v18  ;;  %v787_v19 = vld [vmem:[%s4119_s10 + $0x898] sm:$0xf] }
  0xcb   : > { %v789_v20 = vld [vmem:[%s4119_s10 + $0x8a0] sm:$0xf]  ;;  %v791_v21 = vld [vmem:[%s4119_s10 + $0x8a8] sm:$0xf]  ;;  %788 = vst [vmem:[%s4126_s11 + $0x44c] sm:$0xf] %v787_v19 }
  0xcc   : > { %790 = vst [vmem:[%s4126_s11 + $0x450] sm:$0xf] %v789_v20  ;;  %792 = vst [vmem:[%s4126_s11 + $0x454] sm:$0xf] %v791_v21  ;;  %v793_v22 = vld [vmem:[%s4119_s10 + $0x8b0] sm:$0xf] }
  0xcd   : > { %v795_v23 = vld [vmem:[%s4119_s10 + $0x8b8] sm:$0xf]  ;;  %v797_v24 = vld [vmem:[%s4119_s10 + $0x8c0] sm:$0xf]  ;;  %794 = vst [vmem:[%s4126_s11 + $0x458] sm:$0xf] %v793_v22 }
  0xce   : > { %796 = vst [vmem:[%s4126_s11 + $0x45c] sm:$0xf] %v795_v23  ;;  %798 = vst [vmem:[%s4126_s11 + $0x460] sm:$0xf] %v797_v24  ;;  %v799_v25 = vld [vmem:[%s4119_s10 + $0x8c8] sm:$0xf] }
  0xcf   : > { %v801_v26 = vld [vmem:[%s4119_s10 + $0x8d0] sm:$0xf]  ;;  %v803_v27 = vld [vmem:[%s4119_s10 + $0x8d8] sm:$0xf]  ;;  %800 = vst [vmem:[%s4126_s11 + $0x464] sm:$0xf] %v799_v25 }
  0xd0   : > { %802 = vst [vmem:[%s4126_s11 + $0x468] sm:$0xf] %v801_v26  ;;  %804 = vst [vmem:[%s4126_s11 + $0x46c] sm:$0xf] %v803_v27  ;;  %v805_v28 = vld [vmem:[%s4119_s10 + $0x8e0] sm:$0xf] }
  0xd1   : > { %v807_v29 = vld [vmem:[%s4119_s10 + $0x8e8] sm:$0xf]  ;;  %v809_v30 = vld [vmem:[%s4119_s10 + $0x8f0] sm:$0xf]  ;;  %806 = vst [vmem:[%s4126_s11 + $0x470] sm:$0xf] %v805_v28 }
  0xd2   : > { %808 = vst [vmem:[%s4126_s11 + $0x474] sm:$0xf] %v807_v29  ;;  %810 = vst [vmem:[%s4126_s11 + $0x478] sm:$0xf] %v809_v30  ;;  %v811_v31 = vld [vmem:[%s4119_s10 + $0x8f8] sm:$0xf] }
  0xd3   : > { %812 = vst [vmem:[%s4126_s11 + $0x47c] sm:$0xf] %v811_v31 }
  0xd4 PF: > { %1424 = sbr.rel (!%p4097_p3) target bundleno = 217 (0xd9), region = 73  ;;  %s1426_s12 = sand.u32 (%p4097_p3), 1, %s4021_s19  }
  0xd5   : > { %s3399_s13 = sshll.u32 (%p4097_p3), %s4029_s21, 2  ;;  %s3398_s14 = sshll.u32 (%p4097_p3), %s1426_s12, 3 }
  0xd6   : > { %s1433_s17 = scalar_lea.vmem (%p4097_p3), %s4954_s4, %s3399_s13  ;;  %s1428_s24 = scalar_lea.vmem (%p4097_p3), [#allocation3], %s3398_s14 }
  0xd7   : > { %v1450_v32 = vld [vmem:[%s1433_s17] sm:$0xf] (%p4097_p3)  ;;  %v1452_v33 = vld [vmem:[%s1433_s17 + $0x8] sm:$0xf] (%p4097_p3) }
  0xd8   : > { %1451 = vst [vmem:[%s1428_s24] sm:$0xf] (%p4097_p3), %v1450_v32  ;;  %1453 = vst [vmem:[%s1428_s24 + $0x4] sm:$0xf] (%p4097_p3), %v1452_v33 }
  0xd9 PF: > { %p3400_p8 = scmp.ge.s32.totalorder %s4033_s22, 1  ;;  %p1480_p9 = scmp.lt.s32.totalorder %s4033_s22, 3 }
  0xdb   : > { %p1481_p10 = pnand %p3400_p8, %p1480_p9 }
  0xdc   : > { %s1487_s25 = sand.u32 (!%p1481_p10), 1, %s4017_s18   ;;  %p1543_p11 = scmp.lt.s32.totalorder (!%p1481_p10), %s4025_s20, 1 }
  0xdd   : > { %1484 = sbr.rel (%p1481_p10) target bundleno = 607 (0x25f), region = 114  ;;  %s4921_s14 = sshll.u32 (!%p1481_p10), %s1487_s25, 3 }
  0xde   : > { %s3783_s26 = smul.u32 (!%p1481_p10), 1152, %s1487_s25  ;;  %s1496_s15 = scalar_lea.vmem (!%p1481_p10), [#allocation3], %s4921_s14 }
  0xdf   : > { %s1535_s17 = scalar_lea.vmem (!%p1481_p10), [#allocation4], %s4921_s14 }
  0xe0   : > { %s4717_s8 = scalar_lea.vmem (!%p1481_p10), [#allocation2], %s3783_s26 }
  0xe2   : > { %v3857_v34 = vld [vmem:[%s4950_s0 + $0x4] ss:$72 sps:$4 sm:$0xff]   ;;  %v3824_v36 = vld [vmem:[%s4717_s8 + $0x78] sm:$0xff]   ;;  %v3828_v40 = vld [vmem:[%s4717_s8 + $0x70] sm:$0xff]   ;;  %s3570_s24 = sshll.u32 (%p4104_p6), %s4025_s20, 2 }
  0xe3   : > { %v3862_v35 = vld [vmem:[%s4950_s0 + $0xc] ss:$72 sps:$4 sm:$0xff]   ;;  %2851 = vmatprep.mubr.bf16.mxu0 %v3857_v34  ;;  %v3825_v37 = vld [vmem:[%s4717_s8 + $0x38] sm:$0xff]   ;;  %3584 = vmatprep.subr.bf16.mxu0 %v3824_v36  ;;  %v3836_v48 = vld [vmem:[%s4717_s8 + $0x60] sm:$0xff]   ;;  %s3226_s30 = scalar_lea.vmem (%p4104_p6), %s4955_s5, %s3570_s24 }
  0xe4   : > { %2892 = vmatprep.mubr.bf16.mxu1 %v3862_v35  ;;  %v3826_v38 = vld [vmem:[%s4717_s8 + $0xf8] sm:$0xff]   ;;  %3585 = vmatpush3.bf16.msra.mxu0 %v3825_v37  ;;  %v3829_v41 = vld [vmem:[%s4717_s8 + $0x30] sm:$0xff]   ;;  %v3832_v44 = vld [vmem:[%s4717_s8 + $0x68] sm:$0xff]  }
  0xe5   : > { %v3827_v39 = vld [vmem:[%s4717_s8 + $0xb8] sm:$0xff]   ;;  %3606 = vmatprep.subr.bf16.mxu1 %v3826_v38  ;;  %3586 = vmatprep.subr.bf16.mxu0 %v3828_v40  ;;  %v3830_v42 = vld [vmem:[%s4717_s8 + $0xf0] sm:$0xff]   ;;  %v3833_v45 = vld [vmem:[%s4717_s8 + $0x28] sm:$0xff]  }
  0xe6   : > { %3607 = vmatpush3.bf16.msra.mxu1 %v3827_v39  ;;  %v3831_v43 = vld [vmem:[%s4717_s8 + $0xb0] sm:$0xff]   ;;  %v3834_v46 = vld [vmem:[%s4717_s8 + $0xe8] sm:$0xff]   ;;  %v3837_v49 = vld [vmem:[%s4717_s8 + $0x20] sm:$0xff]  }
  0xe7   : > { %3608 = vmatprep.subr.bf16.mxu1 %v3830_v42  ;;  %v3835_v47 = vld [vmem:[%s4717_s8 + $0xa8] sm:$0xff]   ;;  %v3838_v50 = vld [vmem:[%s4717_s8 + $0xe0] sm:$0xff]   ;;  %v3840_v52 = vld [vmem:[%s4717_s8 + $0x58] sm:$0xff]  }
  0xe8   : > { %3587 = vmatpush3.bf16.msra.mxu0 %v3829_v41  ;;  %v3839_v51 = vld [vmem:[%s4717_s8 + $0xa0] sm:$0xff]   ;;  %v3841_v53 = vld [vmem:[%s4717_s8 + $0x18] sm:$0xff]   ;;  %v3844_v56 = vld [vmem:[%s4717_s8 + $0x50] sm:$0xff]  }
  0xe9   : > { %3588 = vmatprep.subr.bf16.mxu0 %v3832_v44  ;;  %v3842_v54 = vld [vmem:[%s4717_s8 + $0xd8] sm:$0xff]   ;;  %v3845_v57 = vld [vmem:[%s4717_s8 + $0x10] sm:$0xff]   ;;  %v3848_v60 = vld [vmem:[%s4717_s8 + $0x48] sm:$0xff]  }
  0xea   : > { %3609 = vmatpush3.bf16.msra.mxu1 %v3831_v43  ;;  %v3843_v55 = vld [vmem:[%s4717_s8 + $0x98] sm:$0xff]   ;;  %v3846_v58 = vld [vmem:[%s4717_s8 + $0xd0] sm:$0xff]   ;;  %v3849_v61 = vld [vmem:[%s4717_s8 + $0x8] sm:$0xff]  }
  0xeb   : > { %3610 = vmatprep.subr.bf16.mxu1 %v3834_v46  ;;  %v3847_v59 = vld [vmem:[%s4717_s8 + $0x90] sm:$0xff]   ;;  %v3850_v62 = vld [vmem:[%s4717_s8 + $0xc8] sm:$0xff]   ;;  %v3852_v0 = vld [vmem:[%s4717_s8 + $0x40] sm:$0xff]  }
  0xec   : > { %3589 = vmatpush3.bf16.msra.mxu0 %v3833_v45  ;;  %v3851_v63 = vld [vmem:[%s4717_s8 + $0x88] sm:$0xff]   ;;  %v3853_v2 = vld [vmem:[%s4717_s8] sm:$0xff]   ;;  %v3895_v3 = vld [vmem:[%s4950_s0 + $0x14] ss:$72 sps:$4 sm:$0xff]  }
  0xed   : > { %3590 = vmatprep.subr.bf16.mxu0 %v3836_v48  ;;  %v3855_v1 = vld [vmem:[%s4950_s0] ss:$72 sps:$4 sm:$0xff]   ;;  %v3859_v7 = vld [vmem:[%s4717_s8 + $0x178] sm:$0xff]   ;;  %v3866_v11 = vld [vmem:[%s4717_s8 + $0x170] sm:$0xff]  }
  0xee   : > { %3611 = vmatpush3.bf16.msra.mxu1 %v3835_v47  ;;  %v3854_v4 = vld [vmem:[%s4717_s8 + $0xc0] sm:$0xff]   ;;  %v3860_v5 = vld [vmem:[%s4950_s0 + $0x8] ss:$72 sps:$4 sm:$0xff]   ;;  %v3863_v8 = vld [vmem:[%s4717_s8 + $0x138] sm:$0xff]  }
  0xef   : > { %3612 = vmatprep.subr.bf16.mxu1 %v3838_v50  ;;  %v3858_v6 = vld [vmem:[%s4717_s8 + $0x80] sm:$0xff]   ;;  %v3864_v9 = vld [vmem:[%s4717_s8 + $0x1f8] sm:$0xff]   ;;  %v3867_v12 = vld [vmem:[%s4717_s8 + $0x130] sm:$0xff]  }
  0xf0   : > { %3591 = vmatpush3.bf16.msra.mxu0 %v3837_v49  ;;  %v3865_v10 = vld [vmem:[%s4717_s8 + $0x1b8] sm:$0xff]   ;;  %v3868_v13 = vld [vmem:[%s4717_s8 + $0x1f0] sm:$0xff]   ;;  %v3870_v15 = vld [vmem:[%s4717_s8 + $0x168] sm:$0xff]  }
  0xf1   : > { %3592 = vmatprep.subr.bf16.mxu0 %v3840_v52  ;;  %v3869_v14 = vld [vmem:[%s4717_s8 + $0x1b0] sm:$0xff]   ;;  %v3871_v16 = vld [vmem:[%s4717_s8 + $0x128] sm:$0xff]   ;;  %v3874_v19 = vld [vmem:[%s4717_s8 + $0x160] sm:$0xff]  }
  0xf2   : > { %3613 = vmatpush3.bf16.msra.mxu1 %v3839_v51  ;;  %v3872_v17 = vld [vmem:[%s4717_s8 + $0x1e8] sm:$0xff]   ;;  %v3875_v20 = vld [vmem:[%s4717_s8 + $0x120] sm:$0xff]   ;;  %v3878_v23 = vld [vmem:[%s4717_s8 + $0x158] sm:$0xff]  }
  0xf3   : > { %3614 = vmatprep.subr.bf16.mxu1 %v3842_v54  ;;  %v3873_v18 = vld [vmem:[%s4717_s8 + $0x1a8] sm:$0xff]   ;;  %v3876_v21 = vld [vmem:[%s4717_s8 + $0x1e0] sm:$0xff]   ;;  %v3879_v24 = vld [vmem:[%s4717_s8 + $0x118] sm:$0xff]  }
  0xf4   : > { %3593 = vmatpush3.bf16.msra.mxu0 %v3841_v53  ;;  %v3877_v22 = vld [vmem:[%s4717_s8 + $0x1a0] sm:$0xff]   ;;  %v3880_v25 = vld [vmem:[%s4717_s8 + $0x1d8] sm:$0xff]   ;;  %v3882_v27 = vld [vmem:[%s4717_s8 + $0x150] sm:$0xff]  }
  0xf5   : > { %3594 = vmatprep.subr.bf16.mxu0 %v3844_v56  ;;  %v3881_v26 = vld [vmem:[%s4717_s8 + $0x198] sm:$0xff]   ;;  %v3883_v28 = vld [vmem:[%s4717_s8 + $0x110] sm:$0xff]   ;;  %v3886_v31 = vld [vmem:[%s4717_s8 + $0x148] sm:$0xff]  }
  0xf6   : > { %3615 = vmatpush3.bf16.msra.mxu1 %v3843_v55  ;;  %v3884_v29 = vld [vmem:[%s4717_s8 + $0x1d0] sm:$0xff]   ;;  %v3887_v32 = vld [vmem:[%s4717_s8 + $0x108] sm:$0xff]   ;;  %v3890_v35 = vld [vmem:[%s4717_s8 + $0x140] sm:$0xff]  }
  0xf7   : > { %3616 = vmatprep.subr.bf16.mxu1 %v3846_v58  ;;  %v3885_v30 = vld [vmem:[%s4717_s8 + $0x190] sm:$0xff]   ;;  %v3888_v33 = vld [vmem:[%s4717_s8 + $0x1c8] sm:$0xff]   ;;  %v3891_v37 = vld [vmem:[%s4717_s8 + $0x100] sm:$0xff]  }
  0xf8   : > { %3595 = vmatpush3.bf16.msra.mxu0 %v3845_v57  ;;  %v3889_v34 = vld [vmem:[%s4717_s8 + $0x188] sm:$0xff]   ;;  %v3893_v36 = vld [vmem:[%s4950_s0 + $0x10] ss:$72 sps:$4 sm:$0xff]   ;;  %v3892_v38 = vld [vmem:[%s4717_s8 + $0x1c0] sm:$0xff]  }
  0xf9   : > { %3596 = vmatprep.subr.bf16.mxu0 %v3848_v60  ;;  %v3896_v39 = vld [vmem:[%s4717_s8 + $0x180] sm:$0xff]   ;;  %v3897_v40 = vld [vmem:[%s4717_s8 + $0x278] sm:$0xff]   ;;  %v3904_v46 = vld [vmem:[%s4717_s8 + $0x270] sm:$0xff]  }
  0xfa   : > { %3617 = vmatpush3.bf16.msra.mxu1 %v3847_v59  ;;  %v3898_v41 = vld [vmem:[%s4950_s0 + $0x18] ss:$72 sps:$4 sm:$0xff]   ;;  %v3900_v42 = vld [vmem:[%s4950_s0 + $0x1c] ss:$72 sps:$4 sm:$0xff]   ;;  %v3905_v47 = vld [vmem:[%s4717_s8 + $0x230] sm:$0xff]  }
  0xfb   : > { %3618 = vmatprep.subr.bf16.mxu1 %v3850_v62  ;;  %v3901_v43 = vld [vmem:[%s4717_s8 + $0x238] sm:$0xff]   ;;  %v3906_v48 = vld [vmem:[%s4717_s8 + $0x2f0] sm:$0xff]   ;;  %v3908_v50 = vld [vmem:[%s4717_s8 + $0x268] sm:$0xff]  }
  0xfc   : > { %3597 = vmatpush3.bf16.msra.mxu0 %v3849_v61  ;;  %v3902_v44 = vld [vmem:[%s4717_s8 + $0x2f8] sm:$0xff]   ;;  %v3907_v49 = vld [vmem:[%s4717_s8 + $0x2b0] sm:$0xff]   ;;  %v3909_v51 = vld [vmem:[%s4717_s8 + $0x228] sm:$0xff]  }
  0xfd   : > { %3598 = vmatprep.subr.bf16.mxu0 %v3852_v0  ;;  %v3903_v45 = vld [vmem:[%s4717_s8 + $0x2b8] sm:$0xff]   ;;  %v3910_v52 = vld [vmem:[%s4717_s8 + $0x2e8] sm:$0xff]   ;;  %v3912_v54 = vld [vmem:[%s4717_s8 + $0x260] sm:$0xff]  }
  0xfe   : > { %3619 = vmatpush3.bf16.msra.mxu1 %v3851_v63  ;;  %v3911_v53 = vld [vmem:[%s4717_s8 + $0x2a8] sm:$0xff]   ;;  %v3913_v55 = vld [vmem:[%s4717_s8 + $0x220] sm:$0xff]   ;;  %v3916_v58 = vld [vmem:[%s4717_s8 + $0x258] sm:$0xff]  }
  0xff   : > { %3620 = vmatprep.subr.bf16.mxu1 %v3854_v4  ;;  %v3914_v56 = vld [vmem:[%s4717_s8 + $0x2e0] sm:$0xff]   ;;  %v3917_v59 = vld [vmem:[%s4717_s8 + $0x218] sm:$0xff]   ;;  %v3920_v62 = vld [vmem:[%s4717_s8 + $0x250] sm:$0xff]  }
 0x100   : > { %3599 = vmatpush3.bf16.msra.mxu0 %v3853_v2  ;;  %v3915_v57 = vld [vmem:[%s4717_s8 + $0x2a0] sm:$0xff]   ;;  %v3918_v60 = vld [vmem:[%s4717_s8 + $0x2d8] sm:$0xff]   ;;  %v3921_v63 = vld [vmem:[%s4717_s8 + $0x210] sm:$0xff]  }
 0x101   : > { %3628 = vmatprep.subr.bf16.mxu0 %v3859_v7  ;;  %v3919_v61 = vld [vmem:[%s4717_s8 + $0x298] sm:$0xff]   ;;  %v3922_v0 = vld [vmem:[%s4717_s8 + $0x2d0] sm:$0xff]   ;;  %v3924_v2 = vld [vmem:[%s4717_s8 + $0x248] sm:$0xff]  }
 0x102   : > { %3621 = vmatpush3.bf16.msra.mxu1 %v3858_v6  ;;  %v3926_v4 = vld [vmem:[%s4717_s8 + $0x2c8] sm:$0xff]   ;;  %v3928_v6 = vld [vmem:[%s4717_s8 + $0x240] sm:$0xff]  }
 0x103   : > { %2852 = vmatmul.mubr.bf16.vlgmr.msra.gmra.mxu0 %v3855_v1  ;;  %3650 = vmatprep.subr.bf16.mxu1 %v3864_v9  ;;  %v3923_v1 = vld [vmem:[%s4717_s8 + $0x290] sm:$0xff]   ;;  %v3929_v7 = vld [vmem:[%s4717_s8 + $0x200] sm:$0xff]  }
 0x104   : > { %3629 = vmatpush3.bf16.msra.mxu0 %v3863_v8  ;;  %2933 = vmatprep.mubr.bf16.mxu0 %v3895_v3  ;;  %v3925_v3 = vld [vmem:[%s4717_s8 + $0x208] sm:$0xff]   ;;  %v3930_v8 = vld [vmem:[%s4717_s8 + $0x2c0] sm:$0xff]  }
 0x105   : > { %2893 = vmatmul.mubr.bf16.vlgmr.msra.gmra.mxu1 %v3860_v5  ;;  %3630 = vmatprep.subr.bf16.mxu0 %v3866_v11  ;;  %v3927_v5 = vld [vmem:[%s4717_s8 + $0x288] sm:$0xff]   ;;  %v3934_v11 = vld [vmem:[%s4717_s8 + $0x280] sm:$0xff]  }
 0x106   : > { %3651 = vmatpush3.bf16.msra.mxu1 %v3865_v10  ;;  %2974 = vmatprep.mubr.bf16.mxu1 %v3900_v42  ;;  %v3931_v9 = vld [vmem:[%s4950_s0 + $0x20] ss:$72 sps:$4 sm:$0xff]   ;;  %v3933_v10 = vld [vmem:[%s4950_s0 + $0x24] ss:$72 sps:$4 sm:$0xff]  }
 0x107   : > { %3652 = vmatprep.subr.bf16.mxu1 %v3868_v13  ;;  %v3936_v13 = vld [vmem:[%s4950_s0 + $0x28] ss:$72 sps:$4 sm:$0xff]   ;;  %v3966_v42 = vld [vmem:[%s4717_s8 + $0x340] sm:$0xff]  }
 0x108   : > { %3631 = vmatpush3.bf16.msra.mxu0 %v3867_v12  ;;  %v3935_v12 = vld [vmem:[%s4717_s8 + $0x378] sm:$0xff]  }
 0x109   : > { %3632 = vmatprep.subr.bf16.mxu0 %v3870_v15  ;;  %v3939_v15 = vld [vmem:[%s4717_s8 + $0x338] sm:$0xff]  }
 0x10a   : > { %3653 = vmatpush3.bf16.msra.mxu1 %v3869_v14  ;;  %v3938_v14 = vld [vmem:[%s4950_s0 + $0x2c] ss:$72 sps:$4 sm:$0xff]  }
 0x10b   : > { %3654 = vmatprep.subr.bf16.mxu1 %v3872_v17  ;;  %v3941_v17 = vld [vmem:[%s4717_s8 + $0x3b8] sm:$0xff]  }
 0x10c   : > { %3633 = vmatpush3.bf16.msra.mxu0 %v3871_v16  ;;  %v3940_v16 = vld [vmem:[%s4717_s8 + $0x3f8] sm:$0xff]  }
 0x10d   : > { %3634 = vmatprep.subr.bf16.mxu0 %v3874_v19  ;;  %v3943_v19 = vld [vmem:[%s4717_s8 + $0x330] sm:$0xff]  }
 0x10e   : > { %3655 = vmatpush3.bf16.msra.mxu1 %v3873_v18  ;;  %v3942_v18 = vld [vmem:[%s4717_s8 + $0x370] sm:$0xff]  }
 0x10f   : > { %3656 = vmatprep.subr.bf16.mxu1 %v3876_v21  ;;  %v3945_v21 = vld [vmem:[%s4717_s8 + $0x3b0] sm:$0xff]  }
 0x110   : > { %3635 = vmatpush3.bf16.msra.mxu0 %v3875_v20  ;;  %v3944_v20 = vld [vmem:[%s4717_s8 + $0x3f0] sm:$0xff]  }
 0x111   : > { %3636 = vmatprep.subr.bf16.mxu0 %v3878_v23  ;;  %v3947_v23 = vld [vmem:[%s4717_s8 + $0x328] sm:$0xff]  }
 0x112   : > { %3657 = vmatpush3.bf16.msra.mxu1 %v3877_v22  ;;  %v3946_v22 = vld [vmem:[%s4717_s8 + $0x368] sm:$0xff]  }
 0x113   : > { %3658 = vmatprep.subr.bf16.mxu1 %v3880_v25  ;;  %v3949_v25 = vld [vmem:[%s4717_s8 + $0x3a8] sm:$0xff]  }
 0x114   : > { %3637 = vmatpush3.bf16.msra.mxu0 %v3879_v24  ;;  %v3948_v24 = vld [vmem:[%s4717_s8 + $0x3e8] sm:$0xff]  }
 0x115   : > { %3638 = vmatprep.subr.bf16.mxu0 %v3882_v27  ;;  %v3951_v27 = vld [vmem:[%s4717_s8 + $0x320] sm:$0xff]  }
 0x116   : > { %3659 = vmatpush3.bf16.msra.mxu1 %v3881_v26  ;;  %v3950_v26 = vld [vmem:[%s4717_s8 + $0x360] sm:$0xff]  }
 0x117   : > { %3660 = vmatprep.subr.bf16.mxu1 %v3884_v29  ;;  %v3953_v29 = vld [vmem:[%s4717_s8 + $0x3a0] sm:$0xff]  }
 0x118   : > { %3639 = vmatpush3.bf16.msra.mxu0 %v3883_v28  ;;  %v3952_v28 = vld [vmem:[%s4717_s8 + $0x3e0] sm:$0xff]  }
 0x119   : > { %3640 = vmatprep.subr.bf16.mxu0 %v3886_v31  ;;  %v3955_v31 = vld [vmem:[%s4717_s8 + $0x318] sm:$0xff]  }
 0x11a   : > { %3661 = vmatpush3.bf16.msra.mxu1 %v3885_v30  ;;  %v3954_v30 = vld [vmem:[%s4717_s8 + $0x358] sm:$0xff]  }
 0x11b   : > { %3662 = vmatprep.subr.bf16.mxu1 %v3888_v33  ;;  %v3957_v33 = vld [vmem:[%s4717_s8 + $0x398] sm:$0xff]  }
 0x11c   : > { %3641 = vmatpush3.bf16.msra.mxu0 %v3887_v32  ;;  %v3956_v32 = vld [vmem:[%s4717_s8 + $0x3d8] sm:$0xff]  }
 0x11d   : > { %3642 = vmatprep.subr.bf16.mxu0 %v3890_v35  ;;  %v3959_v35 = vld [vmem:[%s4717_s8 + $0x310] sm:$0xff]  }
 0x11e   : > { %3663 = vmatpush3.bf16.msra.mxu1 %v3889_v34  ;;  %v3958_v34 = vld [vmem:[%s4717_s8 + $0x350] sm:$0xff]  }
 0x11f   : > { %3664 = vmatprep.subr.bf16.mxu1 %v3892_v38  ;;  %v3962_v38 = vld [vmem:[%s4717_s8 + $0x348] sm:$0xff]  }
 0x120   : > { %3643 = vmatpush3.bf16.msra.mxu0 %v3891_v37  ;;  %v3961_v37 = vld [vmem:[%s4717_s8 + $0x390] sm:$0xff]  }
 0x121   : > { %3672 = vmatprep.subr.bf16.mxu0 %v3897_v40  ;;  %v3964_v40 = vld [vmem:[%s4717_s8 + $0x3c8] sm:$0xff]  }
 0x122   : > { %3665 = vmatpush3.bf16.msra.mxu1 %v3896_v39  ;;  %v3963_v39 = vld [vmem:[%s4717_s8 + $0x308] sm:$0xff]  }
 0x123   : > { %2934 = vmatmul.mubr.bf16.vlgmr.msra.gmra.mxu0 %v3893_v36  ;;  %3694 = vmatprep.subr.bf16.mxu1 %v3902_v44  ;;  %v3960_v36 = vld [vmem:[%s4717_s8 + $0x3d0] sm:$0xff]   ;;  %v3968_v44 = vld [vmem:[%s4717_s8 + $0x3c0] sm:$0xff]  }
 0x124   : > { %3673 = vmatpush3.bf16.msra.mxu0 %v3901_v43  ;;  %3015 = vmatprep.mubr.bf16.mxu0 %v3933_v10  ;;  %v3967_v43 = vld [vmem:[%s4717_s8 + $0x300] sm:$0xff]  }
 0x125   : > { %2975 = vmatmul.mubr.bf16.vlgmr.msra.gmra.mxu1 %v3898_v41  ;;  %3674 = vmatprep.subr.bf16.mxu0 %v3904_v46  ;;  %v3965_v41 = vld [vmem:[%s4717_s8 + $0x388] sm:$0xff]   ;;  %v3971_v46 = vld [vmem:[%s4950_s0 + $0x34] ss:$72 sps:$4 sm:$0xff]  }
 0x126   : > { %3695 = vmatpush3.bf16.msra.mxu1 %v3903_v45  ;;  %3056 = vmatprep.mubr.bf16.mxu1 %v3938_v14  ;;  %v3969_v45 = vld [vmem:[%s4950_s0 + $0x30] ss:$72 sps:$4 sm:$0xff]  }
 0x127   : > { %3696 = vmatprep.subr.bf16.mxu1 %v3906_v48  ;;  %v3973_v48 = vld [vmem:[%s4717_s8 + $0x478] sm:$0xff]  }
 0x128   : > { %3675 = vmatpush3.bf16.msra.mxu0 %v3905_v47  ;;  %v3972_v47 = vld [vmem:[%s4717_s8 + $0x380] sm:$0xff]  }
 0x129   : > { %3676 = vmatprep.subr.bf16.mxu0 %v3908_v50  ;;  %v3976_v50 = vld [vmem:[%s4950_s0 + $0x3c] ss:$72 sps:$4 sm:$0xff]  }
 0x12a   : > { %3697 = vmatpush3.bf16.msra.mxu1 %v3907_v49  ;;  %v3974_v49 = vld [vmem:[%s4950_s0 + $0x38] ss:$72 sps:$4 sm:$0xff]  }
 0x12b   : > { %3698 = vmatprep.subr.bf16.mxu1 %v3910_v52  ;;  %v3978_v52 = vld [vmem:[%s4717_s8 + $0x470] sm:$0xff]  }
 0x12c   : > { %3677 = vmatpush3.bf16.msra.mxu0 %v3909_v51  ;;  %v3977_v51 = vld [vmem:[%s4717_s8 + $0x438] sm:$0xff]  }
 0x12d   : > { %3678 = vmatprep.subr.bf16.mxu0 %v3912_v54  ;;  %v3980_v54 = vld [vmem:[%s4717_s8 + $0x468] sm:$0xff]  }
 0x12e   : > { %3699 = vmatpush3.bf16.msra.mxu1 %v3911_v53  ;;  %v3979_v53 = vld [vmem:[%s4717_s8 + $0x430] sm:$0xff]  }
 0x12f   : > { %3700 = vmatprep.subr.bf16.mxu1 %v3914_v56  ;;  %v3982_v56 = vld [vmem:[%s4717_s8 + $0x460] sm:$0xff]  }
 0x130   : > { %3679 = vmatpush3.bf16.msra.mxu0 %v3913_v55  ;;  %v3981_v55 = vld [vmem:[%s4717_s8 + $0x428] sm:$0xff]  }
 0x131   : > { %3680 = vmatprep.subr.bf16.mxu0 %v3916_v58  ;;  %v3984_v58 = vld [vmem:[%s4717_s8 + $0x458] sm:$0xff]  }
 0x132   : > { %3701 = vmatpush3.bf16.msra.mxu1 %v3915_v57  ;;  %v3983_v57 = vld [vmem:[%s4717_s8 + $0x420] sm:$0xff]  }
 0x133   : > { %3702 = vmatprep.subr.bf16.mxu1 %v3918_v60  ;;  %v3986_v60 = vld [vmem:[%s4717_s8 + $0x450] sm:$0xff]  }
 0x134   : > { %3681 = vmatpush3.bf16.msra.mxu0 %v3917_v59  ;;  %v3985_v59 = vld [vmem:[%s4717_s8 + $0x418] sm:$0xff]  }
 0x135   : > { %3682 = vmatprep.subr.bf16.mxu0 %v3920_v62  ;;  %v3987_v62 = vld [vmem:[%s4717_s8 + $0x410] sm:$0xff]  }
 0x136   : > { %3703 = vmatpush3.bf16.msra.mxu1 %v3919_v61  ;;  %v3994_v61 = vld [vmem:[%s4950_s0 + $0x44] ss:$72 sps:$4 sm:$0xff]  }
 0x137   : > { %3704 = vmatprep.subr.bf16.mxu1 %v3922_v0  ;;  %v3989_v0 = vld [vmem:[%s4717_s8 + $0x408] sm:$0xff]  }
 0x138   : > { %3683 = vmatpush3.bf16.msra.mxu0 %v3921_v63  ;;  %v3988_v63 = vld [vmem:[%s4717_s8 + $0x448] sm:$0xff]  }
 0x139   : > { %3684 = vmatprep.subr.bf16.mxu0 %v3924_v2  ;;  %v3991_v2 = vld [vmem:[%s4717_s8 + $0x400] sm:$0xff]  }
 0x13a   : > { %3705 = vmatpush3.bf16.msra.mxu1 %v3923_v1  ;;  %v3990_v1 = vld [vmem:[%s4717_s8 + $0x440] sm:$0xff]   ;;  %s4913_s8 = scalar_select %p1543_p11, %s4025_s20, 1 }
 0x13b   : > { %3706 = vmatprep.subr.bf16.mxu1 %v3926_v4 }
 0x13c   : > { %3685 = vmatpush3.bf16.msra.mxu0 %v3925_v3  ;;  %v3992_v3 = vld [vmem:[%s4950_s0 + $0x40] ss:$72 sps:$4 sm:$0xff]   ;;  %s1545_s13 = scalar_lea.vmem %s4952_s2, %s4913_s8  ;;  %s1548_s16 = scalar_lea.vmem %s4953_s3, %s4913_s8 }
 0x13d   : > { %3686 = vmatprep.subr.bf16.mxu0 %v3928_v6 }
 0x13e   : > { %3707 = vmatpush3.bf16.msra.mxu1 %v3927_v5 }
 0x13f   : > { %3708 = vmatprep.subr.bf16.mxu1 %v3930_v8 }
 0x140   : > { %3687 = vmatpush3.bf16.msra.mxu0 %v3929_v7 }
 0x141   : > { %3716 = vmatprep.subr.bf16.mxu0 %v3935_v12 }
 0x142   : > { %3709 = vmatpush3.bf16.msra.mxu1 %v3934_v11 }
 0x143   : > { %3016 = vmatmul.mubr.bf16.vlgmr.msra.gmra.mxu0 %v3931_v9  ;;  %3738 = vmatprep.subr.bf16.mxu1 %v3940_v16 }
 0x144   : > { %3717 = vmatpush3.bf16.msra.mxu0 %v3939_v15  ;;  %3097 = vmatprep.mubr.bf16.mxu0 %v3971_v46 }
 0x145   : > { %3057 = vmatmul.mubr.bf16.vlgmr.msra.gmra.mxu1 %v3936_v13  ;;  %3718 = vmatprep.subr.bf16.mxu0 %v3942_v18 }
 0x146   : > { %3739 = vmatpush3.bf16.msra.mxu1 %v3941_v17  ;;  %3138 = vmatprep.mubr.bf16.mxu1 %v3976_v50 }
 0x147   : > { %3740 = vmatprep.subr.bf16.mxu1 %v3944_v20 }
 0x148   : > { %3719 = vmatpush3.bf16.msra.mxu0 %v3943_v19 }
 0x149   : > { %3720 = vmatprep.subr.bf16.mxu0 %v3946_v22 }
 0x14a   : > { %3741 = vmatpush3.bf16.msra.mxu1 %v3945_v21 }
 0x14b   : > { %3742 = vmatprep.subr.bf16.mxu1 %v3948_v24  ;;  %v3403_v24 = vld [vmem:[%s1545_s13] ss:$0 sm:$0xff] }
 0x14c   : > { %3721 = vmatpush3.bf16.msra.mxu0 %v3947_v23 }
 0x14d   : > { %3722 = vmatprep.subr.bf16.mxu0 %v3950_v26 }
 0x14e   : > { %3743 = vmatpush3.bf16.msra.mxu1 %v3949_v25 }
 0x14f   : > { %3744 = vmatprep.subr.bf16.mxu1 %v3952_v28 }
 0x150   : > { %3723 = vmatpush3.bf16.msra.mxu0 %v3951_v27 }
 0x151   : > { %3724 = vmatprep.subr.bf16.mxu0 %v3954_v30 }
 0x152   : > { %3745 = vmatpush3.bf16.msra.mxu1 %v3953_v29 }
 0x153   : > { %3746 = vmatprep.subr.bf16.mxu1 %v3956_v32 }
 0x154   : > { %3725 = vmatpush3.bf16.msra.mxu0 %v3955_v31 }
 0x155   : > { %3726 = vmatprep.subr.bf16.mxu0 %v3958_v34 }
 0x156   : > { %3747 = vmatpush3.bf16.msra.mxu1 %v3957_v33 }
 0x157   : > { %3748 = vmatprep.subr.bf16.mxu1 %v3960_v36 }
 0x158   : > { %3727 = vmatpush3.bf16.msra.mxu0 %v3959_v35 }
 0x159   : > { %3728 = vmatprep.subr.bf16.mxu0 %v3962_v38 }
 0x15a   : > { %3749 = vmatpush3.bf16.msra.mxu1 %v3961_v37 }
 0x15b   : > { %3750 = vmatprep.subr.bf16.mxu1 %v3964_v40 }
 0x15c   : > { %3729 = vmatpush3.bf16.msra.mxu0 %v3963_v39 }
 0x15d   : > { %3730 = vmatprep.subr.bf16.mxu0 %v3966_v42 }
 0x15e   : > { %3751 = vmatpush3.bf16.msra.mxu1 %v3965_v41 }
 0x15f   : > { %3752 = vmatprep.subr.bf16.mxu1 %v3968_v44 }
 0x160   : > { %3731 = vmatpush3.bf16.msra.mxu0 %v3967_v43 }
 0x161   : > { %3760 = vmatprep.subr.bf16.mxu0 %v3973_v48 }
 0x162   : > { %3753 = vmatpush3.bf16.msra.mxu1 %v3972_v47 }
 0x163   : > { %3098 = vmatmul.mubr.bf16.vlgmr.msra.gmra.mxu0 %v3969_v45 }
 0x164   : > { %3761 = vmatpush3.bf16.msra.mxu0 %v3977_v51  ;;  %3179 = vmatprep.mubr.bf16.mxu0 %v3994_v61 }
 0x165   : > { %3139 = vmatmul.mubr.bf16.vlgmr.msra.gmra.mxu1 %v3974_v49  ;;  %3762 = vmatprep.subr.bf16.mxu0 %v3978_v52 }
 0x168   : > { %3763 = vmatpush3.bf16.msra.mxu0 %v3979_v53 }
 0x169   : > { %3764 = vmatprep.subr.bf16.mxu0 %v3980_v54 }
 0x16c   : > { %3765 = vmatpush3.bf16.msra.mxu0 %v3981_v55 }
 0x16d   : > { %3766 = vmatprep.subr.bf16.mxu0 %v3982_v56 }
 0x170   : > { %3767 = vmatpush3.bf16.msra.mxu0 %v3983_v57 }
 0x171   : > { %3768 = vmatprep.subr.bf16.mxu0 %v3984_v58 }
 0x174   : > { %3769 = vmatpush3.bf16.msra.mxu0 %v3985_v59 }
 0x175   : > { %3770 = vmatprep.subr.bf16.mxu0 %v3986_v60 }
 0x178   : > { %3771 = vmatpush3.bf16.msra.mxu0 %v3987_v62 }
 0x179   : > { %3772 = vmatprep.subr.bf16.mxu0 %v3988_v63  ;;  %v3576_v63 = vld [vmem:[%s1496_s15] sm:$0xff]  }
 0x17c   : > { %3773 = vmatpush3.bf16.msra.mxu0 %v3989_v0 }
 0x17d   : > { %3774 = vmatprep.subr.bf16.mxu0 %v3990_v1 }
 0x180   : > { %3775 = vmatpush3.bf16.msra.mxu0 %v3991_v2 }
 0x183   : > { %3180 = vmatmul.mubr.bf16.vlgmr.msra.gmra.mxu0 %v3992_v3 }
 0x1c3   : > { %v3600_v4 = vpop.f32.mrf.mxu0 }
 0x1c5   : > { %v3601_v5 = vpop.f32.mrf.mxu0  ;;  %v3622_v6 = vpop.f32.mrf.mxu1 }
 0x1c6   : > { %v3602_v23 = vadd.f32 %v3601_v5, %v3600_v4  ;;  %v3577_v4 = vunpack.c.l.bf16 %v3576_v63 }
 0x1c7   : > { %v3603_v7 = vpop.f32.mrf.mxu0  ;;  %v3623_v8 = vpop.f32.mrf.mxu1 }
 0x1c8   : > { %v2854_v27 = vadd.f32 %v3602_v23, %v3403_v24  ;;  %v3624_v28 = vadd.f32 %v3623_v8, %v3622_v6 }
 0x1c9   : > { %v3604_v9 = vpop.f32.mrf.mxu0  ;;  %v3625_v10 = vpop.f32.mrf.mxu1 }
 0x1ca   : > { %v3605_v29 = vadd.f32 %v3604_v9, %v3603_v7  ;;  %v2895_v34 = vadd.f32 %v3624_v28, %v2854_v27 }
 0x1cb   : > { %v3626_v12 = vpop.f32.mrf.mxu1 }
 0x1cc   : > { %v2857_v35 = vadd.f32 %v3605_v29, %v3403_v24  ;;  %v3627_v36 = vadd.f32 %v3626_v12, %v3625_v10 }
 0x1ce   : > { %v2898_v43 = vadd.f32 %v3627_v36, %v2857_v35 }
 0x1e3   : > { %v3644_v11 = vpop.f32.mrf.mxu0 }
 0x1e5   : > { %v3645_v13 = vpop.f32.mrf.mxu0  ;;  %v3666_v14 = vpop.f32.mrf.mxu1 }
 0x1e6   : > { %v3646_v32 = vadd.f32 %v3645_v13, %v3644_v11 }
 0x1e7   : > { %v3647_v15 = vpop.f32.mrf.mxu0  ;;  %v3667_v16 = vpop.f32.mrf.mxu1 }
 0x1e8   : > { %v2936_v38 = vadd.f32 %v3646_v32, %v2895_v34  ;;  %v3668_v39 = vadd.f32 %v3667_v16, %v3666_v14  ;;  %v3566_v16 = vld [vmem:[%s1548_s16] ss:$0 sm:$0xff] }
 0x1e9   : > { %v3648_v17 = vpop.f32.mrf.mxu0  ;;  %v3669_v18 = vpop.f32.mrf.mxu1 }
 0x1ea   : > { %v3649_v40 = vadd.f32 %v3648_v17, %v3647_v15  ;;  %v2977_v45 = vadd.f32 %v3668_v39, %v2936_v38  ;;  %v3578_v15 = vunpack.c.h.bf16 %v3576_v63 }
 0x1eb   : > { %v3670_v20 = vpop.f32.mrf.mxu1 }
 0x1ec   : > { %v2939_v46 = vadd.f32 %v3649_v40, %v2898_v43  ;;  %v3671_v47 = vadd.f32 %v3670_v20, %v3669_v18 }
 0x1ee   : > { %v2980_v53 = vadd.f32 %v3671_v47, %v2939_v46 }
 0x203   : > { %v3688_v19 = vpop.f32.mrf.mxu0 }
 0x205   : > { %v3689_v21 = vpop.f32.mrf.mxu0  ;;  %v3710_v22 = vpop.f32.mrf.mxu1 }
 0x206   : > { %v3690_v44 = vadd.f32 %v3689_v21, %v3688_v19 }
 0x207   : > { %v3691_v25 = vpop.f32.mrf.mxu0  ;;  %v3711_v26 = vpop.f32.mrf.mxu1 }
 0x208   : > { %v3018_v50 = vadd.f32 %v3690_v44, %v2977_v45  ;;  %v3712_v51 = vadd.f32 %v3711_v26, %v3710_v22 }
 0x209   : > { %v3692_v30 = vpop.f32.mrf.mxu0  ;;  %v3713_v31 = vpop.f32.mrf.mxu1 }
 0x20a   : > { %v3693_v52 = vadd.f32 %v3692_v30, %v3691_v25  ;;  %v3059_v57 = vadd.f32 %v3712_v51, %v3018_v50 }
 0x20b   : > { %v3714_v37 = vpop.f32.mrf.mxu1 }
 0x20c   : > { %v3021_v58 = vadd.f32 %v3693_v52, %v2980_v53  ;;  %v3715_v59 = vadd.f32 %v3714_v37, %v3713_v31 }
 0x20e   : > { %v3062_v2 = vadd.f32 %v3715_v59, %v3021_v58 }
 0x223   : > { %v3732_v33 = vpop.f32.mrf.mxu0 }
 0x225   : > { %v3733_v41 = vpop.f32.mrf.mxu0  ;;  %v3754_v42 = vpop.f32.mrf.mxu1 }
 0x226   : > { %v3734_v54 = vadd.f32 %v3733_v41, %v3732_v33 }
 0x227   : > { %v3735_v48 = vpop.f32.mrf.mxu0  ;;  %v3755_v49 = vpop.f32.mrf.mxu1 }
 0x228   : > { %v3100_v60 = vadd.f32 %v3734_v54, %v3059_v57  ;;  %v3756_v61 = vadd.f32 %v3755_v49, %v3754_v42 }
 0x229   : > { %v3736_v55 = vpop.f32.mrf.mxu0  ;;  %v3757_v56 = vpop.f32.mrf.mxu1 }
 0x22a   : > { %v3737_v62 = vadd.f32 %v3736_v55, %v3735_v48  ;;  %v3141_v5 = vadd.f32 %v3756_v61, %v3100_v60 }
 0x22b   : > { %v3758_v0 = vpop.f32.mrf.mxu1 }
 0x22c   : > { %v3103_v6 = vadd.f32 %v3737_v62, %v3062_v2  ;;  %v3759_v7 = vadd.f32 %v3758_v0, %v3757_v56 }
 0x22e   : > { %v3144_v12 = vadd.f32 %v3759_v7, %v3103_v6 }
 0x243   : > { %v3776_v1 = vpop.f32.mrf.mxu0 }
 0x245   : > { %v3777_v3 = vpop.f32.mrf.mxu0 }
 0x246   : > { %v3778_v8 = vadd.f32 %v3777_v3, %v3776_v1 }
 0x247   : > { %v3779_v9 = vpop.f32.mrf.mxu0 }
 0x248   : > { %v3182_v10 = vadd.f32 %v3778_v8, %v3141_v5 }
 0x249   : > { %v3780_v11 = vpop.f32.mrf.mxu0 }
 0x24a   : > { %v3192_v13 = vadd.f32 %v3577_v4, %v3182_v10  ;;  %v3781_v14 = vadd.f32 %v3780_v11, %v3779_v9 }
 0x24c   : > { %v3185_v17 = vadd.f32 %v3781_v14, %v3144_v12  ;;  %v3201_v18 = vmul.f32 %v3566_v16, %v3192_v13 }
 0x24e   : > { %v3193_v19 = vadd.f32 %v3578_v15, %v3185_v17  ;;  %v3203_v21 = vmax.f32 %v3192_v13, %v3201_v18 }
 0x250   : > { %v3202_v20 = vmul.f32 %v3566_v16, %v3193_v19 }
 0x252   : > { %v3204_v22 = vmax.f32 %v3193_v19, %v3202_v20  ;;  %3221 = sbr.rel (!%p4104_p6) target bundleno = 607 (0x25f), region = 126 }
 0x254   : > { %v3582_v23 = vpack.c.bf16 %v3204_v22, %v3203_v21 }
 0x256   : > { %3583 = vst [vmem:[%s1535_s17] sm:$0xff] %v3582_v23  }
 0x25d   : > { %v3243_v24 = vld [vmem:[%s1535_s17] sm:$0xf]  ;;  %v3245_v25 = vld [vmem:[%s1535_s17 + $0x4] sm:$0xf] }
 0x25e   : > { %3244 = vst [vmem:[%s3226_s30] sm:$0xf] %v3243_v24  ;;  %3246 = vst [vmem:[%s3226_s30 + $0x8] sm:$0xf] %v3245_v25 }
 0x25f PF: > { %s15_s22 = sadd.s32 1, %s4033_s22   ;;  %s4958_s18 = smov %s4021_s19 }
 0x260   : > { %p12_p12 = scmp.ge.s32.totalorder %s15_s22, 4   ;;  %s4959_s19 = smov %s4109_s29 }
 0x261   : > { %s4960_s20 = smov %s4029_s21  ;;  %s4961_s21 = smov %s4963_s23 }
 0x262   :  { %14 = sbr.rel (!%p12_p12) target bundleno = 3 (0x3), region = 215 }

// kernel: forward.41
= control target key start
LH: loop header
LB: loop body
LE: loop exit
PB: predicated region body
PF: predicated region fallthrough
CT: control target
= control target key end

     0   :  { %s3927_s15 = smov 0   ;;  %s3929_s16 = smov 0   ;;  %s4795_s0 = inlined_call_operand.vmem [shape: bf16[16,2304], index: 0, kind: input, shape index: {}]   ;;  %s4796_s1 = inlined_call_operand.vmem [shape: bf16[2304,256], index: 1, kind: input, shape index: {}]   ;;  %s4797_s2 = inlined_call_operand.vmem [shape: f32[1,256], index: 2, kind: input, shape index: {}]   ;;  %s4798_s3 = inlined_call_operand.vmem [shape: f32[1,256], index: 3, kind: input, shape index: {}]   ;;  %s4799_s4 = inlined_call_operand.vmem [shape: bf16[16,256], index: 4, kind: output, shape index: {}]  }
   0x1   :  { %s3931_s17 = smov 0   ;;  %s3933_s18 = smov 0  }
   0x2   :  { %s3935_s19 = smov 0  }
   0x3 LB: > { %s23_s20 = sadd.s32 1, %s3896_s18  ;;  %s3266_s21 = sadd.s32 4294967295, %s3900_s19   ;;  %s3900_s19 = sphi %s3935_s19, %s14_s19   ;;  %s3896_s18 = sphi %s3933_s18, %s4804_s18   ;;  %s3892_s17 = sphi %s3931_s17, %s4803_s17   ;;  %s3888_s16 = sphi %s3929_s16, %s4802_s16   ;;  %s3884_s15 = sphi %s3927_s15, %s4801_s15  }
   0x4   : > { %p24_p0 = scmp.ge.s32.totalorder %s23_s20, 2  ;;  %p66_p1 = scmp.ne.s32.totalorder %s3888_s16, %s3884_s15 }
   0x5   : > { %p67_p2 = scmp.eq.s32.totalorder %s3900_s19, 0  ;;  %p150_p4 = scmp.eq.s32.totalorder %s3266_s21, 1 }
   0x6   : > { %s4806_s20 = smov (%p24_p0, %s23_s20), 0  ;;  %s59_s23 = sadd.s32 1, %s3888_s16 }
   0x7   : > { %p68_p3 = por %p67_p2, %p66_p1  ;;  %s56_s22 = ssub.s32 %s3896_s18, %s4806_s20 }
   0x8   : > { %p57_p5 = scmp.eq.s32.totalorder %s56_s22, 0  ;;  %p3962_p6 = por %p150_p4, %p66_p1 }
   0x9   : > { %p3270_p7 = scmp.ge.s32.totalorder %s3900_s19, 2 }
   0xa   : > { %s3967_s25 = scalar_select %p57_p5, %s3888_s16, %s59_s23  }
   0xb   : > { %182 = sbr.rel (%p3270_p7) target bundleno = 212 (0xd4), region = 20 }
  0x10   : > { %185 = sbr.rel (!%p68_p3) target bundleno = 212 (0xd4), region = 24  ;;  %s187_s26 = sand.u32 (%p68_p3), 1, %s3888_s16  }
  0x11   : > { %s3271_s27 = sshll.u32 (%p68_p3), %s3896_s18, 2  ;;  %s3649_s28 = smul.u32 (%p68_p3), 1152, %s187_s26 }
  0x12   : > { %s3975_s5 = scalar_lea.vmem (%p68_p3), %s4796_s1, %s3271_s27 }
  0x13   : > { %v208_v0 = vld [vmem:[%s3975_s5] sm:$0xf] (%p68_p3)  ;;  %v210_v1 = vld [vmem:[%s3975_s5 + $0x8] sm:$0xf] (%p68_p3)  ;;  %v212_v2 = vld [vmem:[%s3975_s5 + $0x10] sm:$0xf] (%p68_p3) }
  0x14   : > { %v214_v3 = vld [vmem:[%s3975_s5 + $0x18] sm:$0xf] (%p68_p3)  ;;  %v216_v4 = vld [vmem:[%s3975_s5 + $0x20] sm:$0xf] (%p68_p3)  ;;  %s3982_s6 = scalar_lea.vmem (%p68_p3), [#allocation2], %s3649_s28 }
  0x15   : > { %209 = vst [vmem:[%s3982_s6] sm:$0xf] %v208_v0  ;;  %211 = vst [vmem:[%s3982_s6 + $0x4] sm:$0xf] %v210_v1  ;;  %v218_v5 = vld [vmem:[%s3975_s5 + $0x28] sm:$0xf] }
  0x16   : > { %213 = vst [vmem:[%s3982_s6 + $0x8] sm:$0xf] %v212_v2  ;;  %215 = vst [vmem:[%s3982_s6 + $0xc] sm:$0xf] %v214_v3  ;;  %v220_v6 = vld [vmem:[%s3975_s5 + $0x30] sm:$0xf] }
  0x17   : > { %217 = vst [vmem:[%s3982_s6 + $0x10] sm:$0xf] %v216_v4  ;;  %v222_v7 = vld [vmem:[%s3975_s5 + $0x38] sm:$0xf]  ;;  %219 = vst [vmem:[%s3982_s6 + $0x14] sm:$0xf] %v218_v5 }
  0x18   : > { %221 = vst [vmem:[%s3982_s6 + $0x18] sm:$0xf] %v220_v6  ;;  %223 = vst [vmem:[%s3982_s6 + $0x1c] sm:$0xf] %v222_v7  ;;  %v224_v8 = vld [vmem:[%s3975_s5 + $0x40] sm:$0xf] }
  0x19   : > { %v226_v9 = vld [vmem:[%s3975_s5 + $0x48] sm:$0xf]  ;;  %v228_v10 = vld [vmem:[%s3975_s5 + $0x50] sm:$0xf]  ;;  %225 = vst [vmem:[%s3982_s6 + $0x20] sm:$0xf] %v224_v8 }
  0x1a   : > { %227 = vst [vmem:[%s3982_s6 + $0x24] sm:$0xf] %v226_v9  ;;  %229 = vst [vmem:[%s3982_s6 + $0x28] sm:$0xf] %v228_v10  ;;  %v230_v11 = vld [vmem:[%s3975_s5 + $0x58] sm:$0xf] }
  0x1b   : > { %v232_v12 = vld [vmem:[%s3975_s5 + $0x60] sm:$0xf]  ;;  %v234_v13 = vld [vmem:[%s3975_s5 + $0x68] sm:$0xf]  ;;  %231 = vst [vmem:[%s3982_s6 + $0x2c] sm:$0xf] %v230_v11 }
  0x1c   : > { %233 = vst [vmem:[%s3982_s6 + $0x30] sm:$0xf] %v232_v12  ;;  %235 = vst [vmem:[%s3982_s6 + $0x34] sm:$0xf] %v234_v13  ;;  %v236_v14 = vld [vmem:[%s3975_s5 + $0x70] sm:$0xf] }
  0x1d   : > { %v238_v15 = vld [vmem:[%s3975_s5 + $0x78] sm:$0xf]  ;;  %v240_v16 = vld [vmem:[%s3975_s5 + $0x80] sm:$0xf]  ;;  %237 = vst [vmem:[%s3982_s6 + $0x38] sm:$0xf] %v236_v14 }
  0x1e   : > { %239 = vst [vmem:[%s3982_s6 + $0x3c] sm:$0xf] %v238_v15  ;;  %241 = vst [vmem:[%s3982_s6 + $0x40] sm:$0xf] %v240_v16  ;;  %v242_v17 = vld [vmem:[%s3975_s5 + $0x88] sm:$0xf] }
  0x1f   : > { %v244_v18 = vld [vmem:[%s3975_s5 + $0x90] sm:$0xf]  ;;  %v246_v19 = vld [vmem:[%s3975_s5 + $0x98] sm:$0xf]  ;;  %243 = vst [vmem:[%s3982_s6 + $0x44] sm:$0xf] %v242_v17 }
  0x20   : > { %245 = vst [vmem:[%s3982_s6 + $0x48] sm:$0xf] %v244_v18  ;;  %247 = vst [vmem:[%s3982_s6 + $0x4c] sm:$0xf] %v246_v19  ;;  %v248_v20 = vld [vmem:[%s3975_s5 + $0xa0] sm:$0xf] }
  0x21   : > { %v250_v21 = vld [vmem:[%s3975_s5 + $0xa8] sm:$0xf]  ;;  %v252_v22 = vld [vmem:[%s3975_s5 + $0xb0] sm:$0xf]  ;;  %249 = vst [vmem:[%s3982_s6 + $0x50] sm:$0xf] %v248_v20 }
  0x22   : > { %251 = vst [vmem:[%s3982_s6 + $0x54] sm:$0xf] %v250_v21  ;;  %253 = vst [vmem:[%s3982_s6 + $0x58] sm:$0xf] %v252_v22  ;;  %v254_v23 = vld [vmem:[%s3975_s5 + $0xb8] sm:$0xf] }
  0x23   : > { %v256_v24 = vld [vmem:[%s3975_s5 + $0xc0] sm:$0xf]  ;;  %v258_v25 = vld [vmem:[%s3975_s5 + $0xc8] sm:$0xf]  ;;  %255 = vst [vmem:[%s3982_s6 + $0x5c] sm:$0xf] %v254_v23 }
  0x24   : > { %257 = vst [vmem:[%s3982_s6 + $0x60] sm:$0xf] %v256_v24  ;;  %259 = vst [vmem:[%s3982_s6 + $0x64] sm:$0xf] %v258_v25  ;;  %v260_v26 = vld [vmem:[%s3975_s5 + $0xd0] sm:$0xf] }
  0x25   : > { %v262_v27 = vld [vmem:[%s3975_s5 + $0xd8] sm:$0xf]  ;;  %v264_v28 = vld [vmem:[%s3975_s5 + $0xe0] sm:$0xf]  ;;  %261 = vst [vmem:[%s3982_s6 + $0x68] sm:$0xf] %v260_v26 }
  0x26   : > { %263 = vst [vmem:[%s3982_s6 + $0x6c] sm:$0xf] %v262_v27  ;;  %265 = vst [vmem:[%s3982_s6 + $0x70] sm:$0xf] %v264_v28  ;;  %v266_v29 = vld [vmem:[%s3975_s5 + $0xe8] sm:$0xf] }
  0x27   : > { %v268_v30 = vld [vmem:[%s3975_s5 + $0xf0] sm:$0xf]  ;;  %v270_v31 = vld [vmem:[%s3975_s5 + $0xf8] sm:$0xf]  ;;  %267 = vst [vmem:[%s3982_s6 + $0x74] sm:$0xf] %v266_v29 }
  0x28   : > { %269 = vst [vmem:[%s3982_s6 + $0x78] sm:$0xf] %v268_v30  ;;  %271 = vst [vmem:[%s3982_s6 + $0x7c] sm:$0xf] %v270_v31  ;;  %v272_v32 = vld [vmem:[%s3975_s5 + $0x100] sm:$0xf] }
  0x29   : > { %v274_v33 = vld [vmem:[%s3975_s5 + $0x108] sm:$0xf]  ;;  %v276_v34 = vld [vmem:[%s3975_s5 + $0x110] sm:$0xf]  ;;  %273 = vst [vmem:[%s3982_s6 + $0x80] sm:$0xf] %v272_v32 }
  0x2a   : > { %275 = vst [vmem:[%s3982_s6 + $0x84] sm:$0xf] %v274_v33  ;;  %277 = vst [vmem:[%s3982_s6 + $0x88] sm:$0xf] %v276_v34  ;;  %v278_v35 = vld [vmem:[%s3975_s5 + $0x118] sm:$0xf] }
  0x2b   : > { %v280_v36 = vld [vmem:[%s3975_s5 + $0x120] sm:$0xf]  ;;  %v282_v37 = vld [vmem:[%s3975_s5 + $0x128] sm:$0xf]  ;;  %279 = vst [vmem:[%s3982_s6 + $0x8c] sm:$0xf] %v278_v35 }
  0x2c   : > { %281 = vst [vmem:[%s3982_s6 + $0x90] sm:$0xf] %v280_v36  ;;  %283 = vst [vmem:[%s3982_s6 + $0x94] sm:$0xf] %v282_v37  ;;  %v284_v38 = vld [vmem:[%s3975_s5 + $0x130] sm:$0xf] }
  0x2d   : > { %v286_v39 = vld [vmem:[%s3975_s5 + $0x138] sm:$0xf]  ;;  %v288_v40 = vld [vmem:[%s3975_s5 + $0x140] sm:$0xf]  ;;  %285 = vst [vmem:[%s3982_s6 + $0x98] sm:$0xf] %v284_v38 }
  0x2e   : > { %287 = vst [vmem:[%s3982_s6 + $0x9c] sm:$0xf] %v286_v39  ;;  %289 = vst [vmem:[%s3982_s6 + $0xa0] sm:$0xf] %v288_v40  ;;  %v290_v41 = vld [vmem:[%s3975_s5 + $0x148] sm:$0xf] }
  0x2f   : > { %v292_v42 = vld [vmem:[%s3975_s5 + $0x150] sm:$0xf]  ;;  %v294_v43 = vld [vmem:[%s3975_s5 + $0x158] sm:$0xf]  ;;  %291 = vst [vmem:[%s3982_s6 + $0xa4] sm:$0xf] %v290_v41 }
  0x30   : > { %293 = vst [vmem:[%s3982_s6 + $0xa8] sm:$0xf] %v292_v42  ;;  %295 = vst [vmem:[%s3982_s6 + $0xac] sm:$0xf] %v294_v43  ;;  %v296_v44 = vld [vmem:[%s3975_s5 + $0x160] sm:$0xf] }
  0x31   : > { %v298_v45 = vld [vmem:[%s3975_s5 + $0x168] sm:$0xf]  ;;  %v300_v46 = vld [vmem:[%s3975_s5 + $0x170] sm:$0xf]  ;;  %297 = vst [vmem:[%s3982_s6 + $0xb0] sm:$0xf] %v296_v44 }
  0x32   : > { %299 = vst [vmem:[%s3982_s6 + $0xb4] sm:$0xf] %v298_v45  ;;  %301 = vst [vmem:[%s3982_s6 + $0xb8] sm:$0xf] %v300_v46  ;;  %v302_v47 = vld [vmem:[%s3975_s5 + $0x178] sm:$0xf] }
  0x33   : > { %v304_v48 = vld [vmem:[%s3975_s5 + $0x180] sm:$0xf]  ;;  %v306_v49 = vld [vmem:[%s3975_s5 + $0x188] sm:$0xf]  ;;  %303 = vst [vmem:[%s3982_s6 + $0xbc] sm:$0xf] %v302_v47 }
  0x34   : > { %305 = vst [vmem:[%s3982_s6 + $0xc0] sm:$0xf] %v304_v48  ;;  %307 = vst [vmem:[%s3982_s6 + $0xc4] sm:$0xf] %v306_v49  ;;  %v308_v50 = vld [vmem:[%s3975_s5 + $0x190] sm:$0xf] }
  0x35   : > { %v310_v51 = vld [vmem:[%s3975_s5 + $0x198] sm:$0xf]  ;;  %v312_v52 = vld [vmem:[%s3975_s5 + $0x1a0] sm:$0xf]  ;;  %309 = vst [vmem:[%s3982_s6 + $0xc8] sm:$0xf] %v308_v50 }
  0x36   : > { %311 = vst [vmem:[%s3982_s6 + $0xcc] sm:$0xf] %v310_v51  ;;  %313 = vst [vmem:[%s3982_s6 + $0xd0] sm:$0xf] %v312_v52  ;;  %v314_v53 = vld [vmem:[%s3975_s5 + $0x1a8] sm:$0xf] }
  0x37   : > { %v316_v54 = vld [vmem:[%s3975_s5 + $0x1b0] sm:$0xf]  ;;  %v318_v55 = vld [vmem:[%s3975_s5 + $0x1b8] sm:$0xf]  ;;  %315 = vst [vmem:[%s3982_s6 + $0xd4] sm:$0xf] %v314_v53 }
  0x38   : > { %317 = vst [vmem:[%s3982_s6 + $0xd8] sm:$0xf] %v316_v54  ;;  %319 = vst [vmem:[%s3982_s6 + $0xdc] sm:$0xf] %v318_v55  ;;  %v320_v56 = vld [vmem:[%s3975_s5 + $0x1c0] sm:$0xf] }
  0x39   : > { %v322_v57 = vld [vmem:[%s3975_s5 + $0x1c8] sm:$0xf]  ;;  %v324_v58 = vld [vmem:[%s3975_s5 + $0x1d0] sm:$0xf]  ;;  %321 = vst [vmem:[%s3982_s6 + $0xe0] sm:$0xf] %v320_v56 }
  0x3a   : > { %323 = vst [vmem:[%s3982_s6 + $0xe4] sm:$0xf] %v322_v57  ;;  %325 = vst [vmem:[%s3982_s6 + $0xe8] sm:$0xf] %v324_v58  ;;  %v326_v59 = vld [vmem:[%s3975_s5 + $0x1d8] sm:$0xf] }
  0x3b   : > { %v328_v60 = vld [vmem:[%s3975_s5 + $0x1e0] sm:$0xf]  ;;  %v330_v61 = vld [vmem:[%s3975_s5 + $0x1e8] sm:$0xf]  ;;  %327 = vst [vmem:[%s3982_s6 + $0xec] sm:$0xf] %v326_v59 }
  0x3c   : > { %329 = vst [vmem:[%s3982_s6 + $0xf0] sm:$0xf] %v328_v60  ;;  %331 = vst [vmem:[%s3982_s6 + $0xf4] sm:$0xf] %v330_v61  ;;  %v332_v62 = vld [vmem:[%s3975_s5 + $0x1f0] sm:$0xf] }
  0x3d   : > { %v334_v63 = vld [vmem:[%s3975_s5 + $0x1f8] sm:$0xf]  ;;  %v336_v0 = vld [vmem:[%s3975_s5 + $0x200] sm:$0xf]  ;;  %333 = vst [vmem:[%s3982_s6 + $0xf8] sm:$0xf] %v332_v62 }
  0x3e   : > { %335 = vst [vmem:[%s3982_s6 + $0xfc] sm:$0xf] %v334_v63  ;;  %337 = vst [vmem:[%s3982_s6 + $0x100] sm:$0xf] %v336_v0  ;;  %v338_v1 = vld [vmem:[%s3975_s5 + $0x208] sm:$0xf] }
  0x3f   : > { %v340_v2 = vld [vmem:[%s3975_s5 + $0x210] sm:$0xf]  ;;  %v342_v3 = vld [vmem:[%s3975_s5 + $0x218] sm:$0xf]  ;;  %339 = vst [vmem:[%s3982_s6 + $0x104] sm:$0xf] %v338_v1 }
  0x40   : > { %341 = vst [vmem:[%s3982_s6 + $0x108] sm:$0xf] %v340_v2  ;;  %343 = vst [vmem:[%s3982_s6 + $0x10c] sm:$0xf] %v342_v3  ;;  %v344_v4 = vld [vmem:[%s3975_s5 + $0x220] sm:$0xf] }
  0x41   : > { %v346_v5 = vld [vmem:[%s3975_s5 + $0x228] sm:$0xf]  ;;  %v348_v6 = vld [vmem:[%s3975_s5 + $0x230] sm:$0xf]  ;;  %345 = vst [vmem:[%s3982_s6 + $0x110] sm:$0xf] %v344_v4 }
  0x42   : > { %347 = vst [vmem:[%s3982_s6 + $0x114] sm:$0xf] %v346_v5  ;;  %349 = vst [vmem:[%s3982_s6 + $0x118] sm:$0xf] %v348_v6  ;;  %v350_v7 = vld [vmem:[%s3975_s5 + $0x238] sm:$0xf] }
  0x43   : > { %v352_v8 = vld [vmem:[%s3975_s5 + $0x240] sm:$0xf]  ;;  %v354_v9 = vld [vmem:[%s3975_s5 + $0x248] sm:$0xf]  ;;  %351 = vst [vmem:[%s3982_s6 + $0x11c] sm:$0xf] %v350_v7 }
  0x44   : > { %353 = vst [vmem:[%s3982_s6 + $0x120] sm:$0xf] %v352_v8  ;;  %355 = vst [vmem:[%s3982_s6 + $0x124] sm:$0xf] %v354_v9  ;;  %v356_v10 = vld [vmem:[%s3975_s5 + $0x250] sm:$0xf] }
  0x45   : > { %v358_v11 = vld [vmem:[%s3975_s5 + $0x258] sm:$0xf]  ;;  %v360_v12 = vld [vmem:[%s3975_s5 + $0x260] sm:$0xf]  ;;  %357 = vst [vmem:[%s3982_s6 + $0x128] sm:$0xf] %v356_v10 }
  0x46   : > { %359 = vst [vmem:[%s3982_s6 + $0x12c] sm:$0xf] %v358_v11  ;;  %361 = vst [vmem:[%s3982_s6 + $0x130] sm:$0xf] %v360_v12  ;;  %v362_v13 = vld [vmem:[%s3975_s5 + $0x268] sm:$0xf] }
  0x47   : > { %v364_v14 = vld [vmem:[%s3975_s5 + $0x270] sm:$0xf]  ;;  %v366_v15 = vld [vmem:[%s3975_s5 + $0x278] sm:$0xf]  ;;  %363 = vst [vmem:[%s3982_s6 + $0x134] sm:$0xf] %v362_v13 }
  0x48   : > { %365 = vst [vmem:[%s3982_s6 + $0x138] sm:$0xf] %v364_v14  ;;  %367 = vst [vmem:[%s3982_s6 + $0x13c] sm:$0xf] %v366_v15  ;;  %v368_v16 = vld [vmem:[%s3975_s5 + $0x280] sm:$0xf] }
  0x49   : > { %v370_v17 = vld [vmem:[%s3975_s5 + $0x288] sm:$0xf]  ;;  %v372_v18 = vld [vmem:[%s3975_s5 + $0x290] sm:$0xf]  ;;  %369 = vst [vmem:[%s3982_s6 + $0x140] sm:$0xf] %v368_v16 }
  0x4a   : > { %371 = vst [vmem:[%s3982_s6 + $0x144] sm:$0xf] %v370_v17  ;;  %373 = vst [vmem:[%s3982_s6 + $0x148] sm:$0xf] %v372_v18  ;;  %v374_v19 = vld [vmem:[%s3975_s5 + $0x298] sm:$0xf] }
  0x4b   : > { %v376_v20 = vld [vmem:[%s3975_s5 + $0x2a0] sm:$0xf]  ;;  %v378_v21 = vld [vmem:[%s3975_s5 + $0x2a8] sm:$0xf]  ;;  %375 = vst [vmem:[%s3982_s6 + $0x14c] sm:$0xf] %v374_v19 }
  0x4c   : > { %377 = vst [vmem:[%s3982_s6 + $0x150] sm:$0xf] %v376_v20  ;;  %379 = vst [vmem:[%s3982_s6 + $0x154] sm:$0xf] %v378_v21  ;;  %v380_v22 = vld [vmem:[%s3975_s5 + $0x2b0] sm:$0xf] }
  0x4d   : > { %v382_v23 = vld [vmem:[%s3975_s5 + $0x2b8] sm:$0xf]  ;;  %v384_v24 = vld [vmem:[%s3975_s5 + $0x2c0] sm:$0xf]  ;;  %381 = vst [vmem:[%s3982_s6 + $0x158] sm:$0xf] %v380_v22 }
  0x4e   : > { %383 = vst [vmem:[%s3982_s6 + $0x15c] sm:$0xf] %v382_v23  ;;  %385 = vst [vmem:[%s3982_s6 + $0x160] sm:$0xf] %v384_v24  ;;  %v386_v25 = vld [vmem:[%s3975_s5 + $0x2c8] sm:$0xf] }
  0x4f   : > { %v388_v26 = vld [vmem:[%s3975_s5 + $0x2d0] sm:$0xf]  ;;  %v390_v27 = vld [vmem:[%s3975_s5 + $0x2d8] sm:$0xf]  ;;  %387 = vst [vmem:[%s3982_s6 + $0x164] sm:$0xf] %v386_v25 }
  0x50   : > { %389 = vst [vmem:[%s3982_s6 + $0x168] sm:$0xf] %v388_v26  ;;  %391 = vst [vmem:[%s3982_s6 + $0x16c] sm:$0xf] %v390_v27  ;;  %v392_v28 = vld [vmem:[%s3975_s5 + $0x2e0] sm:$0xf] }
  0x51   : > { %v394_v29 = vld [vmem:[%s3975_s5 + $0x2e8] sm:$0xf]  ;;  %v396_v30 = vld [vmem:[%s3975_s5 + $0x2f0] sm:$0xf]  ;;  %393 = vst [vmem:[%s3982_s6 + $0x170] sm:$0xf] %v392_v28 }
  0x52   : > { %395 = vst [vmem:[%s3982_s6 + $0x174] sm:$0xf] %v394_v29  ;;  %397 = vst [vmem:[%s3982_s6 + $0x178] sm:$0xf] %v396_v30  ;;  %v398_v31 = vld [vmem:[%s3975_s5 + $0x2f8] sm:$0xf] }
  0x53   : > { %v400_v32 = vld [vmem:[%s3975_s5 + $0x300] sm:$0xf]  ;;  %v402_v33 = vld [vmem:[%s3975_s5 + $0x308] sm:$0xf]  ;;  %399 = vst [vmem:[%s3982_s6 + $0x17c] sm:$0xf] %v398_v31 }
  0x54   : > { %401 = vst [vmem:[%s3982_s6 + $0x180] sm:$0xf] %v400_v32  ;;  %403 = vst [vmem:[%s3982_s6 + $0x184] sm:$0xf] %v402_v33  ;;  %v404_v34 = vld [vmem:[%s3975_s5 + $0x310] sm:$0xf] }
  0x55   : > { %v406_v35 = vld [vmem:[%s3975_s5 + $0x318] sm:$0xf]  ;;  %v408_v36 = vld [vmem:[%s3975_s5 + $0x320] sm:$0xf]  ;;  %405 = vst [vmem:[%s3982_s6 + $0x188] sm:$0xf] %v404_v34 }
  0x56   : > { %407 = vst [vmem:[%s3982_s6 + $0x18c] sm:$0xf] %v406_v35  ;;  %409 = vst [vmem:[%s3982_s6 + $0x190] sm:$0xf] %v408_v36  ;;  %v410_v37 = vld [vmem:[%s3975_s5 + $0x328] sm:$0xf] }
  0x57   : > { %v412_v38 = vld [vmem:[%s3975_s5 + $0x330] sm:$0xf]  ;;  %v414_v39 = vld [vmem:[%s3975_s5 + $0x338] sm:$0xf]  ;;  %411 = vst [vmem:[%s3982_s6 + $0x194] sm:$0xf] %v410_v37 }
  0x58   : > { %413 = vst [vmem:[%s3982_s6 + $0x198] sm:$0xf] %v412_v38  ;;  %415 = vst [vmem:[%s3982_s6 + $0x19c] sm:$0xf] %v414_v39  ;;  %v416_v40 = vld [vmem:[%s3975_s5 + $0x340] sm:$0xf] }
  0x59   : > { %v418_v41 = vld [vmem:[%s3975_s5 + $0x348] sm:$0xf]  ;;  %v420_v42 = vld [vmem:[%s3975_s5 + $0x350] sm:$0xf]  ;;  %417 = vst [vmem:[%s3982_s6 + $0x1a0] sm:$0xf] %v416_v40 }
  0x5a   : > { %419 = vst [vmem:[%s3982_s6 + $0x1a4] sm:$0xf] %v418_v41  ;;  %421 = vst [vmem:[%s3982_s6 + $0x1a8] sm:$0xf] %v420_v42  ;;  %v422_v43 = vld [vmem:[%s3975_s5 + $0x358] sm:$0xf] }
  0x5b   : > { %v424_v44 = vld [vmem:[%s3975_s5 + $0x360] sm:$0xf]  ;;  %v426_v45 = vld [vmem:[%s3975_s5 + $0x368] sm:$0xf]  ;;  %423 = vst [vmem:[%s3982_s6 + $0x1ac] sm:$0xf] %v422_v43 }
  0x5c   : > { %425 = vst [vmem:[%s3982_s6 + $0x1b0] sm:$0xf] %v424_v44  ;;  %427 = vst [vmem:[%s3982_s6 + $0x1b4] sm:$0xf] %v426_v45  ;;  %v428_v46 = vld [vmem:[%s3975_s5 + $0x370] sm:$0xf] }
  0x5d   : > { %v430_v47 = vld [vmem:[%s3975_s5 + $0x378] sm:$0xf]  ;;  %v432_v48 = vld [vmem:[%s3975_s5 + $0x380] sm:$0xf]  ;;  %429 = vst [vmem:[%s3982_s6 + $0x1b8] sm:$0xf] %v428_v46 }
  0x5e   : > { %431 = vst [vmem:[%s3982_s6 + $0x1bc] sm:$0xf] %v430_v47  ;;  %433 = vst [vmem:[%s3982_s6 + $0x1c0] sm:$0xf] %v432_v48  ;;  %v434_v49 = vld [vmem:[%s3975_s5 + $0x388] sm:$0xf] }
  0x5f   : > { %v436_v50 = vld [vmem:[%s3975_s5 + $0x390] sm:$0xf]  ;;  %v438_v51 = vld [vmem:[%s3975_s5 + $0x398] sm:$0xf]  ;;  %435 = vst [vmem:[%s3982_s6 + $0x1c4] sm:$0xf] %v434_v49 }
  0x60   : > { %437 = vst [vmem:[%s3982_s6 + $0x1c8] sm:$0xf] %v436_v50  ;;  %439 = vst [vmem:[%s3982_s6 + $0x1cc] sm:$0xf] %v438_v51  ;;  %v440_v52 = vld [vmem:[%s3975_s5 + $0x3a0] sm:$0xf] }
  0x61   : > { %v442_v53 = vld [vmem:[%s3975_s5 + $0x3a8] sm:$0xf]  ;;  %v444_v54 = vld [vmem:[%s3975_s5 + $0x3b0] sm:$0xf]  ;;  %441 = vst [vmem:[%s3982_s6 + $0x1d0] sm:$0xf] %v440_v52 }
  0x62   : > { %443 = vst [vmem:[%s3982_s6 + $0x1d4] sm:$0xf] %v442_v53  ;;  %445 = vst [vmem:[%s3982_s6 + $0x1d8] sm:$0xf] %v444_v54  ;;  %v446_v55 = vld [vmem:[%s3975_s5 + $0x3b8] sm:$0xf] }
  0x63   : > { %v448_v56 = vld [vmem:[%s3975_s5 + $0x3c0] sm:$0xf]  ;;  %v450_v57 = vld [vmem:[%s3975_s5 + $0x3c8] sm:$0xf]  ;;  %447 = vst [vmem:[%s3982_s6 + $0x1dc] sm:$0xf] %v446_v55 }
  0x64   : > { %449 = vst [vmem:[%s3982_s6 + $0x1e0] sm:$0xf] %v448_v56  ;;  %451 = vst [vmem:[%s3982_s6 + $0x1e4] sm:$0xf] %v450_v57  ;;  %v452_v58 = vld [vmem:[%s3975_s5 + $0x3d0] sm:$0xf] }
  0x65   : > { %v454_v59 = vld [vmem:[%s3975_s5 + $0x3d8] sm:$0xf]  ;;  %v456_v60 = vld [vmem:[%s3975_s5 + $0x3e0] sm:$0xf]  ;;  %453 = vst [vmem:[%s3982_s6 + $0x1e8] sm:$0xf] %v452_v58 }
  0x66   : > { %455 = vst [vmem:[%s3982_s6 + $0x1ec] sm:$0xf] %v454_v59  ;;  %457 = vst [vmem:[%s3982_s6 + $0x1f0] sm:$0xf] %v456_v60  ;;  %v458_v61 = vld [vmem:[%s3975_s5 + $0x3e8] sm:$0xf] }
  0x67   : > { %v460_v62 = vld [vmem:[%s3975_s5 + $0x3f0] sm:$0xf]  ;;  %v462_v63 = vld [vmem:[%s3975_s5 + $0x3f8] sm:$0xf]  ;;  %459 = vst [vmem:[%s3982_s6 + $0x1f4] sm:$0xf] %v458_v61 }
  0x68   : > { %461 = vst [vmem:[%s3982_s6 + $0x1f8] sm:$0xf] %v460_v62  ;;  %463 = vst [vmem:[%s3982_s6 + $0x1fc] sm:$0xf] %v462_v63  ;;  %v464_v0 = vld [vmem:[%s3975_s5 + $0x400] sm:$0xf] }
  0x69   : > { %v466_v1 = vld [vmem:[%s3975_s5 + $0x408] sm:$0xf]  ;;  %v468_v2 = vld [vmem:[%s3975_s5 + $0x410] sm:$0xf]  ;;  %465 = vst [vmem:[%s3982_s6 + $0x200] sm:$0xf] %v464_v0 }
  0x6a   : > { %467 = vst [vmem:[%s3982_s6 + $0x204] sm:$0xf] %v466_v1  ;;  %469 = vst [vmem:[%s3982_s6 + $0x208] sm:$0xf] %v468_v2  ;;  %v470_v3 = vld [vmem:[%s3975_s5 + $0x418] sm:$0xf] }
  0x6b   : > { %v472_v4 = vld [vmem:[%s3975_s5 + $0x420] sm:$0xf]  ;;  %v474_v5 = vld [vmem:[%s3975_s5 + $0x428] sm:$0xf]  ;;  %471 = vst [vmem:[%s3982_s6 + $0x20c] sm:$0xf] %v470_v3 }
  0x6c   : > { %473 = vst [vmem:[%s3982_s6 + $0x210] sm:$0xf] %v472_v4  ;;  %475 = vst [vmem:[%s3982_s6 + $0x214] sm:$0xf] %v474_v5  ;;  %v476_v6 = vld [vmem:[%s3975_s5 + $0x430] sm:$0xf] }
  0x6d   : > { %v478_v7 = vld [vmem:[%s3975_s5 + $0x438] sm:$0xf]  ;;  %v480_v8 = vld [vmem:[%s3975_s5 + $0x440] sm:$0xf]  ;;  %477 = vst [vmem:[%s3982_s6 + $0x218] sm:$0xf] %v476_v6 }
  0x6e   : > { %479 = vst [vmem:[%s3982_s6 + $0x21c] sm:$0xf] %v478_v7  ;;  %481 = vst [vmem:[%s3982_s6 + $0x220] sm:$0xf] %v480_v8  ;;  %v482_v9 = vld [vmem:[%s3975_s5 + $0x448] sm:$0xf] }
  0x6f   : > { %v484_v10 = vld [vmem:[%s3975_s5 + $0x450] sm:$0xf]  ;;  %v486_v11 = vld [vmem:[%s3975_s5 + $0x458] sm:$0xf]  ;;  %483 = vst [vmem:[%s3982_s6 + $0x224] sm:$0xf] %v482_v9 }
  0x70   : > { %485 = vst [vmem:[%s3982_s6 + $0x228] sm:$0xf] %v484_v10  ;;  %487 = vst [vmem:[%s3982_s6 + $0x22c] sm:$0xf] %v486_v11  ;;  %v488_v12 = vld [vmem:[%s3975_s5 + $0x460] sm:$0xf] }
  0x71   : > { %v490_v13 = vld [vmem:[%s3975_s5 + $0x468] sm:$0xf]  ;;  %v492_v14 = vld [vmem:[%s3975_s5 + $0x470] sm:$0xf]  ;;  %489 = vst [vmem:[%s3982_s6 + $0x230] sm:$0xf] %v488_v12 }
  0x72   : > { %491 = vst [vmem:[%s3982_s6 + $0x234] sm:$0xf] %v490_v13  ;;  %493 = vst [vmem:[%s3982_s6 + $0x238] sm:$0xf] %v492_v14  ;;  %v494_v15 = vld [vmem:[%s3975_s5 + $0x478] sm:$0xf] }
  0x73   : > { %v496_v16 = vld [vmem:[%s3975_s5 + $0x480] sm:$0xf]  ;;  %v498_v17 = vld [vmem:[%s3975_s5 + $0x488] sm:$0xf]  ;;  %495 = vst [vmem:[%s3982_s6 + $0x23c] sm:$0xf] %v494_v15 }
  0x74   : > { %497 = vst [vmem:[%s3982_s6 + $0x240] sm:$0xf] %v496_v16  ;;  %499 = vst [vmem:[%s3982_s6 + $0x244] sm:$0xf] %v498_v17  ;;  %v500_v18 = vld [vmem:[%s3975_s5 + $0x490] sm:$0xf] }
  0x75   : > { %v502_v19 = vld [vmem:[%s3975_s5 + $0x498] sm:$0xf]  ;;  %v504_v20 = vld [vmem:[%s3975_s5 + $0x4a0] sm:$0xf]  ;;  %501 = vst [vmem:[%s3982_s6 + $0x248] sm:$0xf] %v500_v18 }
  0x76   : > { %503 = vst [vmem:[%s3982_s6 + $0x24c] sm:$0xf] %v502_v19  ;;  %505 = vst [vmem:[%s3982_s6 + $0x250] sm:$0xf] %v504_v20  ;;  %v506_v21 = vld [vmem:[%s3975_s5 + $0x4a8] sm:$0xf] }
  0x77   : > { %v508_v22 = vld [vmem:[%s3975_s5 + $0x4b0] sm:$0xf]  ;;  %v510_v23 = vld [vmem:[%s3975_s5 + $0x4b8] sm:$0xf]  ;;  %507 = vst [vmem:[%s3982_s6 + $0x254] sm:$0xf] %v506_v21 }
  0x78   : > { %509 = vst [vmem:[%s3982_s6 + $0x258] sm:$0xf] %v508_v22  ;;  %511 = vst [vmem:[%s3982_s6 + $0x25c] sm:$0xf] %v510_v23  ;;  %v512_v24 = vld [vmem:[%s3975_s5 + $0x4c0] sm:$0xf] }
  0x79   : > { %v514_v25 = vld [vmem:[%s3975_s5 + $0x4c8] sm:$0xf]  ;;  %v516_v26 = vld [vmem:[%s3975_s5 + $0x4d0] sm:$0xf]  ;;  %513 = vst [vmem:[%s3982_s6 + $0x260] sm:$0xf] %v512_v24 }
  0x7a   : > { %515 = vst [vmem:[%s3982_s6 + $0x264] sm:$0xf] %v514_v25  ;;  %517 = vst [vmem:[%s3982_s6 + $0x268] sm:$0xf] %v516_v26  ;;  %v518_v27 = vld [vmem:[%s3975_s5 + $0x4d8] sm:$0xf] }
  0x7b   : > { %v520_v28 = vld [vmem:[%s3975_s5 + $0x4e0] sm:$0xf]  ;;  %v522_v29 = vld [vmem:[%s3975_s5 + $0x4e8] sm:$0xf]  ;;  %519 = vst [vmem:[%s3982_s6 + $0x26c] sm:$0xf] %v518_v27 }
  0x7c   : > { %521 = vst [vmem:[%s3982_s6 + $0x270] sm:$0xf] %v520_v28  ;;  %523 = vst [vmem:[%s3982_s6 + $0x274] sm:$0xf] %v522_v29  ;;  %v524_v30 = vld [vmem:[%s3975_s5 + $0x4f0] sm:$0xf] }
  0x7d   : > { %v526_v31 = vld [vmem:[%s3975_s5 + $0x4f8] sm:$0xf]  ;;  %v528_v32 = vld [vmem:[%s3975_s5 + $0x500] sm:$0xf]  ;;  %525 = vst [vmem:[%s3982_s6 + $0x278] sm:$0xf] %v524_v30 }
  0x7e   : > { %527 = vst [vmem:[%s3982_s6 + $0x27c] sm:$0xf] %v526_v31  ;;  %529 = vst [vmem:[%s3982_s6 + $0x280] sm:$0xf] %v528_v32  ;;  %v530_v33 = vld [vmem:[%s3975_s5 + $0x508] sm:$0xf] }
  0x7f   : > { %v532_v34 = vld [vmem:[%s3975_s5 + $0x510] sm:$0xf]  ;;  %v534_v35 = vld [vmem:[%s3975_s5 + $0x518] sm:$0xf]  ;;  %531 = vst [vmem:[%s3982_s6 + $0x284] sm:$0xf] %v530_v33 }
  0x80   : > { %533 = vst [vmem:[%s3982_s6 + $0x288] sm:$0xf] %v532_v34  ;;  %535 = vst [vmem:[%s3982_s6 + $0x28c] sm:$0xf] %v534_v35  ;;  %v536_v36 = vld [vmem:[%s3975_s5 + $0x520] sm:$0xf] }
  0x81   : > { %v538_v37 = vld [vmem:[%s3975_s5 + $0x528] sm:$0xf]  ;;  %v540_v38 = vld [vmem:[%s3975_s5 + $0x530] sm:$0xf]  ;;  %537 = vst [vmem:[%s3982_s6 + $0x290] sm:$0xf] %v536_v36 }
  0x82   : > { %539 = vst [vmem:[%s3982_s6 + $0x294] sm:$0xf] %v538_v37  ;;  %541 = vst [vmem:[%s3982_s6 + $0x298] sm:$0xf] %v540_v38  ;;  %v542_v39 = vld [vmem:[%s3975_s5 + $0x538] sm:$0xf] }
  0x83   : > { %v544_v40 = vld [vmem:[%s3975_s5 + $0x540] sm:$0xf]  ;;  %v546_v41 = vld [vmem:[%s3975_s5 + $0x548] sm:$0xf]  ;;  %543 = vst [vmem:[%s3982_s6 + $0x29c] sm:$0xf] %v542_v39 }
  0x84   : > { %545 = vst [vmem:[%s3982_s6 + $0x2a0] sm:$0xf] %v544_v40  ;;  %547 = vst [vmem:[%s3982_s6 + $0x2a4] sm:$0xf] %v546_v41  ;;  %v548_v42 = vld [vmem:[%s3975_s5 + $0x550] sm:$0xf] }
  0x85   : > { %v550_v43 = vld [vmem:[%s3975_s5 + $0x558] sm:$0xf]  ;;  %v552_v44 = vld [vmem:[%s3975_s5 + $0x560] sm:$0xf]  ;;  %549 = vst [vmem:[%s3982_s6 + $0x2a8] sm:$0xf] %v548_v42 }
  0x86   : > { %551 = vst [vmem:[%s3982_s6 + $0x2ac] sm:$0xf] %v550_v43  ;;  %553 = vst [vmem:[%s3982_s6 + $0x2b0] sm:$0xf] %v552_v44  ;;  %v554_v45 = vld [vmem:[%s3975_s5 + $0x568] sm:$0xf] }
  0x87   : > { %v556_v46 = vld [vmem:[%s3975_s5 + $0x570] sm:$0xf]  ;;  %v558_v47 = vld [vmem:[%s3975_s5 + $0x578] sm:$0xf]  ;;  %555 = vst [vmem:[%s3982_s6 + $0x2b4] sm:$0xf] %v554_v45 }
  0x88   : > { %557 = vst [vmem:[%s3982_s6 + $0x2b8] sm:$0xf] %v556_v46  ;;  %559 = vst [vmem:[%s3982_s6 + $0x2bc] sm:$0xf] %v558_v47  ;;  %v560_v48 = vld [vmem:[%s3975_s5 + $0x580] sm:$0xf] }
  0x89   : > { %v562_v49 = vld [vmem:[%s3975_s5 + $0x588] sm:$0xf]  ;;  %v564_v50 = vld [vmem:[%s3975_s5 + $0x590] sm:$0xf]  ;;  %561 = vst [vmem:[%s3982_s6 + $0x2c0] sm:$0xf] %v560_v48 }
  0x8a   : > { %563 = vst [vmem:[%s3982_s6 + $0x2c4] sm:$0xf] %v562_v49  ;;  %565 = vst [vmem:[%s3982_s6 + $0x2c8] sm:$0xf] %v564_v50  ;;  %v566_v51 = vld [vmem:[%s3975_s5 + $0x598] sm:$0xf] }
  0x8b   : > { %v568_v52 = vld [vmem:[%s3975_s5 + $0x5a0] sm:$0xf]  ;;  %v570_v53 = vld [vmem:[%s3975_s5 + $0x5a8] sm:$0xf]  ;;  %567 = vst [vmem:[%s3982_s6 + $0x2cc] sm:$0xf] %v566_v51 }
  0x8c   : > { %569 = vst [vmem:[%s3982_s6 + $0x2d0] sm:$0xf] %v568_v52  ;;  %571 = vst [vmem:[%s3982_s6 + $0x2d4] sm:$0xf] %v570_v53  ;;  %v572_v54 = vld [vmem:[%s3975_s5 + $0x5b0] sm:$0xf] }
  0x8d   : > { %v574_v55 = vld [vmem:[%s3975_s5 + $0x5b8] sm:$0xf]  ;;  %v576_v56 = vld [vmem:[%s3975_s5 + $0x5c0] sm:$0xf]  ;;  %573 = vst [vmem:[%s3982_s6 + $0x2d8] sm:$0xf] %v572_v54 }
  0x8e   : > { %575 = vst [vmem:[%s3982_s6 + $0x2dc] sm:$0xf] %v574_v55  ;;  %577 = vst [vmem:[%s3982_s6 + $0x2e0] sm:$0xf] %v576_v56  ;;  %v578_v57 = vld [vmem:[%s3975_s5 + $0x5c8] sm:$0xf] }
  0x8f   : > { %v580_v58 = vld [vmem:[%s3975_s5 + $0x5d0] sm:$0xf]  ;;  %v582_v59 = vld [vmem:[%s3975_s5 + $0x5d8] sm:$0xf]  ;;  %579 = vst [vmem:[%s3982_s6 + $0x2e4] sm:$0xf] %v578_v57 }
  0x90   : > { %581 = vst [vmem:[%s3982_s6 + $0x2e8] sm:$0xf] %v580_v58  ;;  %583 = vst [vmem:[%s3982_s6 + $0x2ec] sm:$0xf] %v582_v59  ;;  %v584_v60 = vld [vmem:[%s3975_s5 + $0x5e0] sm:$0xf] }
  0x91   : > { %v586_v61 = vld [vmem:[%s3975_s5 + $0x5e8] sm:$0xf]  ;;  %v588_v62 = vld [vmem:[%s3975_s5 + $0x5f0] sm:$0xf]  ;;  %585 = vst [vmem:[%s3982_s6 + $0x2f0] sm:$0xf] %v584_v60 }
  0x92   : > { %587 = vst [vmem:[%s3982_s6 + $0x2f4] sm:$0xf] %v586_v61  ;;  %589 = vst [vmem:[%s3982_s6 + $0x2f8] sm:$0xf] %v588_v62  ;;  %v590_v63 = vld [vmem:[%s3975_s5 + $0x5f8] sm:$0xf] }
  0x93   : > { %v592_v0 = vld [vmem:[%s3975_s5 + $0x600] sm:$0xf]  ;;  %v594_v1 = vld [vmem:[%s3975_s5 + $0x608] sm:$0xf]  ;;  %591 = vst [vmem:[%s3982_s6 + $0x2fc] sm:$0xf] %v590_v63 }
  0x94   : > { %593 = vst [vmem:[%s3982_s6 + $0x300] sm:$0xf] %v592_v0  ;;  %595 = vst [vmem:[%s3982_s6 + $0x304] sm:$0xf] %v594_v1  ;;  %v596_v2 = vld [vmem:[%s3975_s5 + $0x610] sm:$0xf] }
  0x95   : > { %v598_v3 = vld [vmem:[%s3975_s5 + $0x618] sm:$0xf]  ;;  %v600_v4 = vld [vmem:[%s3975_s5 + $0x620] sm:$0xf]  ;;  %597 = vst [vmem:[%s3982_s6 + $0x308] sm:$0xf] %v596_v2 }
  0x96   : > { %599 = vst [vmem:[%s3982_s6 + $0x30c] sm:$0xf] %v598_v3  ;;  %601 = vst [vmem:[%s3982_s6 + $0x310] sm:$0xf] %v600_v4  ;;  %v602_v5 = vld [vmem:[%s3975_s5 + $0x628] sm:$0xf] }
  0x97   : > { %v604_v6 = vld [vmem:[%s3975_s5 + $0x630] sm:$0xf]  ;;  %v606_v7 = vld [vmem:[%s3975_s5 + $0x638] sm:$0xf]  ;;  %603 = vst [vmem:[%s3982_s6 + $0x314] sm:$0xf] %v602_v5 }
  0x98   : > { %605 = vst [vmem:[%s3982_s6 + $0x318] sm:$0xf] %v604_v6  ;;  %607 = vst [vmem:[%s3982_s6 + $0x31c] sm:$0xf] %v606_v7  ;;  %v608_v8 = vld [vmem:[%s3975_s5 + $0x640] sm:$0xf] }
  0x99   : > { %v610_v9 = vld [vmem:[%s3975_s5 + $0x648] sm:$0xf]  ;;  %v612_v10 = vld [vmem:[%s3975_s5 + $0x650] sm:$0xf]  ;;  %609 = vst [vmem:[%s3982_s6 + $0x320] sm:$0xf] %v608_v8 }
  0x9a   : > { %611 = vst [vmem:[%s3982_s6 + $0x324] sm:$0xf] %v610_v9  ;;  %613 = vst [vmem:[%s3982_s6 + $0x328] sm:$0xf] %v612_v10  ;;  %v614_v11 = vld [vmem:[%s3975_s5 + $0x658] sm:$0xf] }
  0x9b   : > { %v616_v12 = vld [vmem:[%s3975_s5 + $0x660] sm:$0xf]  ;;  %v618_v13 = vld [vmem:[%s3975_s5 + $0x668] sm:$0xf]  ;;  %615 = vst [vmem:[%s3982_s6 + $0x32c] sm:$0xf] %v614_v11 }
  0x9c   : > { %617 = vst [vmem:[%s3982_s6 + $0x330] sm:$0xf] %v616_v12  ;;  %619 = vst [vmem:[%s3982_s6 + $0x334] sm:$0xf] %v618_v13  ;;  %v620_v14 = vld [vmem:[%s3975_s5 + $0x670] sm:$0xf] }
  0x9d   : > { %v622_v15 = vld [vmem:[%s3975_s5 + $0x678] sm:$0xf]  ;;  %v624_v16 = vld [vmem:[%s3975_s5 + $0x680] sm:$0xf]  ;;  %621 = vst [vmem:[%s3982_s6 + $0x338] sm:$0xf] %v620_v14 }
  0x9e   : > { %623 = vst [vmem:[%s3982_s6 + $0x33c] sm:$0xf] %v622_v15  ;;  %625 = vst [vmem:[%s3982_s6 + $0x340] sm:$0xf] %v624_v16  ;;  %v626_v17 = vld [vmem:[%s3975_s5 + $0x688] sm:$0xf] }
  0x9f   : > { %v628_v18 = vld [vmem:[%s3975_s5 + $0x690] sm:$0xf]  ;;  %v630_v19 = vld [vmem:[%s3975_s5 + $0x698] sm:$0xf]  ;;  %627 = vst [vmem:[%s3982_s6 + $0x344] sm:$0xf] %v626_v17 }
  0xa0   : > { %629 = vst [vmem:[%s3982_s6 + $0x348] sm:$0xf] %v628_v18  ;;  %631 = vst [vmem:[%s3982_s6 + $0x34c] sm:$0xf] %v630_v19  ;;  %v632_v20 = vld [vmem:[%s3975_s5 + $0x6a0] sm:$0xf] }
  0xa1   : > { %v634_v21 = vld [vmem:[%s3975_s5 + $0x6a8] sm:$0xf]  ;;  %v636_v22 = vld [vmem:[%s3975_s5 + $0x6b0] sm:$0xf]  ;;  %633 = vst [vmem:[%s3982_s6 + $0x350] sm:$0xf] %v632_v20 }
  0xa2   : > { %635 = vst [vmem:[%s3982_s6 + $0x354] sm:$0xf] %v634_v21  ;;  %637 = vst [vmem:[%s3982_s6 + $0x358] sm:$0xf] %v636_v22  ;;  %v638_v23 = vld [vmem:[%s3975_s5 + $0x6b8] sm:$0xf] }
  0xa3   : > { %v640_v24 = vld [vmem:[%s3975_s5 + $0x6c0] sm:$0xf]  ;;  %v642_v25 = vld [vmem:[%s3975_s5 + $0x6c8] sm:$0xf]  ;;  %639 = vst [vmem:[%s3982_s6 + $0x35c] sm:$0xf] %v638_v23 }
  0xa4   : > { %641 = vst [vmem:[%s3982_s6 + $0x360] sm:$0xf] %v640_v24  ;;  %643 = vst [vmem:[%s3982_s6 + $0x364] sm:$0xf] %v642_v25  ;;  %v644_v26 = vld [vmem:[%s3975_s5 + $0x6d0] sm:$0xf] }
  0xa5   : > { %v646_v27 = vld [vmem:[%s3975_s5 + $0x6d8] sm:$0xf]  ;;  %v648_v28 = vld [vmem:[%s3975_s5 + $0x6e0] sm:$0xf]  ;;  %645 = vst [vmem:[%s3982_s6 + $0x368] sm:$0xf] %v644_v26 }
  0xa6   : > { %647 = vst [vmem:[%s3982_s6 + $0x36c] sm:$0xf] %v646_v27  ;;  %649 = vst [vmem:[%s3982_s6 + $0x370] sm:$0xf] %v648_v28  ;;  %v650_v29 = vld [vmem:[%s3975_s5 + $0x6e8] sm:$0xf] }
  0xa7   : > { %v652_v30 = vld [vmem:[%s3975_s5 + $0x6f0] sm:$0xf]  ;;  %v654_v31 = vld [vmem:[%s3975_s5 + $0x6f8] sm:$0xf]  ;;  %651 = vst [vmem:[%s3982_s6 + $0x374] sm:$0xf] %v650_v29 }
  0xa8   : > { %653 = vst [vmem:[%s3982_s6 + $0x378] sm:$0xf] %v652_v30  ;;  %655 = vst [vmem:[%s3982_s6 + $0x37c] sm:$0xf] %v654_v31  ;;  %v656_v32 = vld [vmem:[%s3975_s5 + $0x700] sm:$0xf] }
  0xa9   : > { %v658_v33 = vld [vmem:[%s3975_s5 + $0x708] sm:$0xf]  ;;  %v660_v34 = vld [vmem:[%s3975_s5 + $0x710] sm:$0xf]  ;;  %657 = vst [vmem:[%s3982_s6 + $0x380] sm:$0xf] %v656_v32 }
  0xaa   : > { %659 = vst [vmem:[%s3982_s6 + $0x384] sm:$0xf] %v658_v33  ;;  %661 = vst [vmem:[%s3982_s6 + $0x388] sm:$0xf] %v660_v34  ;;  %v662_v35 = vld [vmem:[%s3975_s5 + $0x718] sm:$0xf] }
  0xab   : > { %v664_v36 = vld [vmem:[%s3975_s5 + $0x720] sm:$0xf]  ;;  %v666_v37 = vld [vmem:[%s3975_s5 + $0x728] sm:$0xf]  ;;  %663 = vst [vmem:[%s3982_s6 + $0x38c] sm:$0xf] %v662_v35 }
  0xac   : > { %665 = vst [vmem:[%s3982_s6 + $0x390] sm:$0xf] %v664_v36  ;;  %667 = vst [vmem:[%s3982_s6 + $0x394] sm:$0xf] %v666_v37  ;;  %v668_v38 = vld [vmem:[%s3975_s5 + $0x730] sm:$0xf] }
  0xad   : > { %v670_v39 = vld [vmem:[%s3975_s5 + $0x738] sm:$0xf]  ;;  %v672_v40 = vld [vmem:[%s3975_s5 + $0x740] sm:$0xf]  ;;  %669 = vst [vmem:[%s3982_s6 + $0x398] sm:$0xf] %v668_v38 }
  0xae   : > { %671 = vst [vmem:[%s3982_s6 + $0x39c] sm:$0xf] %v670_v39  ;;  %673 = vst [vmem:[%s3982_s6 + $0x3a0] sm:$0xf] %v672_v40  ;;  %v674_v41 = vld [vmem:[%s3975_s5 + $0x748] sm:$0xf] }
  0xaf   : > { %v676_v42 = vld [vmem:[%s3975_s5 + $0x750] sm:$0xf]  ;;  %v678_v43 = vld [vmem:[%s3975_s5 + $0x758] sm:$0xf]  ;;  %675 = vst [vmem:[%s3982_s6 + $0x3a4] sm:$0xf] %v674_v41 }
  0xb0   : > { %677 = vst [vmem:[%s3982_s6 + $0x3a8] sm:$0xf] %v676_v42  ;;  %679 = vst [vmem:[%s3982_s6 + $0x3ac] sm:$0xf] %v678_v43  ;;  %v680_v44 = vld [vmem:[%s3975_s5 + $0x760] sm:$0xf] }
  0xb1   : > { %v682_v45 = vld [vmem:[%s3975_s5 + $0x768] sm:$0xf]  ;;  %v684_v46 = vld [vmem:[%s3975_s5 + $0x770] sm:$0xf]  ;;  %681 = vst [vmem:[%s3982_s6 + $0x3b0] sm:$0xf] %v680_v44 }
  0xb2   : > { %683 = vst [vmem:[%s3982_s6 + $0x3b4] sm:$0xf] %v682_v45  ;;  %685 = vst [vmem:[%s3982_s6 + $0x3b8] sm:$0xf] %v684_v46  ;;  %v686_v47 = vld [vmem:[%s3975_s5 + $0x778] sm:$0xf] }
  0xb3   : > { %v688_v48 = vld [vmem:[%s3975_s5 + $0x780] sm:$0xf]  ;;  %v690_v49 = vld [vmem:[%s3975_s5 + $0x788] sm:$0xf]  ;;  %687 = vst [vmem:[%s3982_s6 + $0x3bc] sm:$0xf] %v686_v47 }
  0xb4   : > { %689 = vst [vmem:[%s3982_s6 + $0x3c0] sm:$0xf] %v688_v48  ;;  %691 = vst [vmem:[%s3982_s6 + $0x3c4] sm:$0xf] %v690_v49  ;;  %v692_v50 = vld [vmem:[%s3975_s5 + $0x790] sm:$0xf] }
  0xb5   : > { %v694_v51 = vld [vmem:[%s3975_s5 + $0x798] sm:$0xf]  ;;  %v696_v52 = vld [vmem:[%s3975_s5 + $0x7a0] sm:$0xf]  ;;  %693 = vst [vmem:[%s3982_s6 + $0x3c8] sm:$0xf] %v692_v50 }
  0xb6   : > { %695 = vst [vmem:[%s3982_s6 + $0x3cc] sm:$0xf] %v694_v51  ;;  %697 = vst [vmem:[%s3982_s6 + $0x3d0] sm:$0xf] %v696_v52  ;;  %v698_v53 = vld [vmem:[%s3975_s5 + $0x7a8] sm:$0xf] }
  0xb7   : > { %v700_v54 = vld [vmem:[%s3975_s5 + $0x7b0] sm:$0xf]  ;;  %v702_v55 = vld [vmem:[%s3975_s5 + $0x7b8] sm:$0xf]  ;;  %699 = vst [vmem:[%s3982_s6 + $0x3d4] sm:$0xf] %v698_v53 }
  0xb8   : > { %701 = vst [vmem:[%s3982_s6 + $0x3d8] sm:$0xf] %v700_v54  ;;  %703 = vst [vmem:[%s3982_s6 + $0x3dc] sm:$0xf] %v702_v55  ;;  %v704_v56 = vld [vmem:[%s3975_s5 + $0x7c0] sm:$0xf] }
  0xb9   : > { %v706_v57 = vld [vmem:[%s3975_s5 + $0x7c8] sm:$0xf]  ;;  %v708_v58 = vld [vmem:[%s3975_s5 + $0x7d0] sm:$0xf]  ;;  %705 = vst [vmem:[%s3982_s6 + $0x3e0] sm:$0xf] %v704_v56 }
  0xba   : > { %707 = vst [vmem:[%s3982_s6 + $0x3e4] sm:$0xf] %v706_v57  ;;  %709 = vst [vmem:[%s3982_s6 + $0x3e8] sm:$0xf] %v708_v58  ;;  %v710_v59 = vld [vmem:[%s3975_s5 + $0x7d8] sm:$0xf] }
  0xbb   : > { %v712_v60 = vld [vmem:[%s3975_s5 + $0x7e0] sm:$0xf]  ;;  %v714_v61 = vld [vmem:[%s3975_s5 + $0x7e8] sm:$0xf]  ;;  %711 = vst [vmem:[%s3982_s6 + $0x3ec] sm:$0xf] %v710_v59 }
  0xbc   : > { %713 = vst [vmem:[%s3982_s6 + $0x3f0] sm:$0xf] %v712_v60  ;;  %715 = vst [vmem:[%s3982_s6 + $0x3f4] sm:$0xf] %v714_v61  ;;  %v716_v62 = vld [vmem:[%s3975_s5 + $0x7f0] sm:$0xf] }
  0xbd   : > { %v718_v63 = vld [vmem:[%s3975_s5 + $0x7f8] sm:$0xf]  ;;  %v720_v0 = vld [vmem:[%s3975_s5 + $0x800] sm:$0xf]  ;;  %717 = vst [vmem:[%s3982_s6 + $0x3f8] sm:$0xf] %v716_v62 }
  0xbe   : > { %719 = vst [vmem:[%s3982_s6 + $0x3fc] sm:$0xf] %v718_v63  ;;  %721 = vst [vmem:[%s3982_s6 + $0x400] sm:$0xf] %v720_v0  ;;  %v722_v1 = vld [vmem:[%s3975_s5 + $0x808] sm:$0xf] }
  0xbf   : > { %v724_v2 = vld [vmem:[%s3975_s5 + $0x810] sm:$0xf]  ;;  %v726_v3 = vld [vmem:[%s3975_s5 + $0x818] sm:$0xf]  ;;  %723 = vst [vmem:[%s3982_s6 + $0x404] sm:$0xf] %v722_v1 }
  0xc0   : > { %725 = vst [vmem:[%s3982_s6 + $0x408] sm:$0xf] %v724_v2  ;;  %727 = vst [vmem:[%s3982_s6 + $0x40c] sm:$0xf] %v726_v3  ;;  %v728_v4 = vld [vmem:[%s3975_s5 + $0x820] sm:$0xf] }
  0xc1   : > { %v730_v5 = vld [vmem:[%s3975_s5 + $0x828] sm:$0xf]  ;;  %v732_v6 = vld [vmem:[%s3975_s5 + $0x830] sm:$0xf]  ;;  %729 = vst [vmem:[%s3982_s6 + $0x410] sm:$0xf] %v728_v4 }
  0xc2   : > { %731 = vst [vmem:[%s3982_s6 + $0x414] sm:$0xf] %v730_v5  ;;  %733 = vst [vmem:[%s3982_s6 + $0x418] sm:$0xf] %v732_v6  ;;  %v734_v7 = vld [vmem:[%s3975_s5 + $0x838] sm:$0xf] }
  0xc3   : > { %v736_v8 = vld [vmem:[%s3975_s5 + $0x840] sm:$0xf]  ;;  %v738_v9 = vld [vmem:[%s3975_s5 + $0x848] sm:$0xf]  ;;  %735 = vst [vmem:[%s3982_s6 + $0x41c] sm:$0xf] %v734_v7 }
  0xc4   : > { %737 = vst [vmem:[%s3982_s6 + $0x420] sm:$0xf] %v736_v8  ;;  %739 = vst [vmem:[%s3982_s6 + $0x424] sm:$0xf] %v738_v9  ;;  %v740_v10 = vld [vmem:[%s3975_s5 + $0x850] sm:$0xf] }
  0xc5   : > { %v742_v11 = vld [vmem:[%s3975_s5 + $0x858] sm:$0xf]  ;;  %v744_v12 = vld [vmem:[%s3975_s5 + $0x860] sm:$0xf]  ;;  %741 = vst [vmem:[%s3982_s6 + $0x428] sm:$0xf] %v740_v10 }
  0xc6   : > { %743 = vst [vmem:[%s3982_s6 + $0x42c] sm:$0xf] %v742_v11  ;;  %745 = vst [vmem:[%s3982_s6 + $0x430] sm:$0xf] %v744_v12  ;;  %v746_v13 = vld [vmem:[%s3975_s5 + $0x868] sm:$0xf] }
  0xc7   : > { %v748_v14 = vld [vmem:[%s3975_s5 + $0x870] sm:$0xf]  ;;  %v750_v15 = vld [vmem:[%s3975_s5 + $0x878] sm:$0xf]  ;;  %747 = vst [vmem:[%s3982_s6 + $0x434] sm:$0xf] %v746_v13 }
  0xc8   : > { %749 = vst [vmem:[%s3982_s6 + $0x438] sm:$0xf] %v748_v14  ;;  %751 = vst [vmem:[%s3982_s6 + $0x43c] sm:$0xf] %v750_v15  ;;  %v752_v16 = vld [vmem:[%s3975_s5 + $0x880] sm:$0xf] }
  0xc9   : > { %v754_v17 = vld [vmem:[%s3975_s5 + $0x888] sm:$0xf]  ;;  %v756_v18 = vld [vmem:[%s3975_s5 + $0x890] sm:$0xf]  ;;  %753 = vst [vmem:[%s3982_s6 + $0x440] sm:$0xf] %v752_v16 }
  0xca   : > { %755 = vst [vmem:[%s3982_s6 + $0x444] sm:$0xf] %v754_v17  ;;  %757 = vst [vmem:[%s3982_s6 + $0x448] sm:$0xf] %v756_v18  ;;  %v758_v19 = vld [vmem:[%s3975_s5 + $0x898] sm:$0xf] }
  0xcb   : > { %v760_v20 = vld [vmem:[%s3975_s5 + $0x8a0] sm:$0xf]  ;;  %v762_v21 = vld [vmem:[%s3975_s5 + $0x8a8] sm:$0xf]  ;;  %759 = vst [vmem:[%s3982_s6 + $0x44c] sm:$0xf] %v758_v19 }
  0xcc   : > { %761 = vst [vmem:[%s3982_s6 + $0x450] sm:$0xf] %v760_v20  ;;  %763 = vst [vmem:[%s3982_s6 + $0x454] sm:$0xf] %v762_v21  ;;  %v764_v22 = vld [vmem:[%s3975_s5 + $0x8b0] sm:$0xf] }
  0xcd   : > { %v766_v23 = vld [vmem:[%s3975_s5 + $0x8b8] sm:$0xf]  ;;  %v768_v24 = vld [vmem:[%s3975_s5 + $0x8c0] sm:$0xf]  ;;  %765 = vst [vmem:[%s3982_s6 + $0x458] sm:$0xf] %v764_v22 }
  0xce   : > { %767 = vst [vmem:[%s3982_s6 + $0x45c] sm:$0xf] %v766_v23  ;;  %769 = vst [vmem:[%s3982_s6 + $0x460] sm:$0xf] %v768_v24  ;;  %v770_v25 = vld [vmem:[%s3975_s5 + $0x8c8] sm:$0xf] }
  0xcf   : > { %v772_v26 = vld [vmem:[%s3975_s5 + $0x8d0] sm:$0xf]  ;;  %v774_v27 = vld [vmem:[%s3975_s5 + $0x8d8] sm:$0xf]  ;;  %771 = vst [vmem:[%s3982_s6 + $0x464] sm:$0xf] %v770_v25 }
  0xd0   : > { %773 = vst [vmem:[%s3982_s6 + $0x468] sm:$0xf] %v772_v26  ;;  %775 = vst [vmem:[%s3982_s6 + $0x46c] sm:$0xf] %v774_v27  ;;  %v776_v28 = vld [vmem:[%s3975_s5 + $0x8e0] sm:$0xf] }
  0xd1   : > { %v778_v29 = vld [vmem:[%s3975_s5 + $0x8e8] sm:$0xf]  ;;  %v780_v30 = vld [vmem:[%s3975_s5 + $0x8f0] sm:$0xf]  ;;  %777 = vst [vmem:[%s3982_s6 + $0x470] sm:$0xf] %v776_v28 }
  0xd2   : > { %779 = vst [vmem:[%s3982_s6 + $0x474] sm:$0xf] %v778_v29  ;;  %781 = vst [vmem:[%s3982_s6 + $0x478] sm:$0xf] %v780_v30  ;;  %v782_v31 = vld [vmem:[%s3975_s5 + $0x8f8] sm:$0xf] }
  0xd3   : > { %783 = vst [vmem:[%s3982_s6 + $0x47c] sm:$0xf] %v782_v31 }
  0xd4 PF: > { %p3272_p8 = scmp.ge.s32.totalorder %s3900_s19, 1  ;;  %p1394_p9 = scmp.lt.s32.totalorder %s3900_s19, 3 }
  0xd6   : > { %p1395_p10 = pnand %p3272_p8, %p1394_p9 }
  0xd7   : > { %s1401_s7 = sand.u32 (!%p1395_p10), 1, %s3884_s15   ;;  %p1444_p11 = scmp.lt.s32.totalorder (!%p1395_p10), %s3892_s17, 1 }
  0xd8   : > { %1398 = sbr.rel (%p1395_p10) target bundleno = 600 (0x258), region = 73  ;;  %s3273_s28 = sshll.u32 (!%p1395_p10), %s1401_s7, 3 }
  0xd9   : > { %s3650_s8 = smul.u32 (!%p1395_p10), 1152, %s1401_s7  ;;  %s1436_s29 = scalar_lea.vmem (!%p1395_p10), [#allocation3], %s3273_s28 }
  0xdb   : > { %s4566_s13 = scalar_lea.vmem (!%p1395_p10), [#allocation2], %s3650_s8 }
  0xdd   : > { %v3724_v32 = vld [vmem:[%s4795_s0 + $0x4] ss:$72 sps:$4 sm:$0xff]   ;;  %v3691_v34 = vld [vmem:[%s4566_s13 + $0x78] sm:$0xff]   ;;  %v3695_v38 = vld [vmem:[%s4566_s13 + $0x70] sm:$0xff]   ;;  %s3441_s30 = sshll.u32 (%p3962_p6), %s3892_s17, 2 }
  0xde   : > { %v3729_v33 = vld [vmem:[%s4795_s0 + $0xc] ss:$72 sps:$4 sm:$0xff]   ;;  %2751 = vmatprep.mubr.bf16.mxu0 %v3724_v32  ;;  %v3692_v35 = vld [vmem:[%s4566_s13 + $0x38] sm:$0xff]   ;;  %3451 = vmatprep.subr.bf16.mxu0 %v3691_v34  ;;  %v3703_v46 = vld [vmem:[%s4566_s13 + $0x60] sm:$0xff]   ;;  %s3120_s8 = scalar_lea.vmem (%p3962_p6), %s4799_s4, %s3441_s30 }
  0xdf   : > { %2792 = vmatprep.mubr.bf16.mxu1 %v3729_v33  ;;  %v3693_v36 = vld [vmem:[%s4566_s13 + $0xf8] sm:$0xff]   ;;  %3452 = vmatpush3.bf16.msra.mxu0 %v3692_v35  ;;  %v3696_v39 = vld [vmem:[%s4566_s13 + $0x30] sm:$0xff]   ;;  %v3699_v42 = vld [vmem:[%s4566_s13 + $0x68] sm:$0xff]  }
  0xe0   : > { %v3694_v37 = vld [vmem:[%s4566_s13 + $0xb8] sm:$0xff]   ;;  %3473 = vmatprep.subr.bf16.mxu1 %v3693_v36  ;;  %3453 = vmatprep.subr.bf16.mxu0 %v3695_v38  ;;  %v3697_v40 = vld [vmem:[%s4566_s13 + $0xf0] sm:$0xff]   ;;  %v3700_v43 = vld [vmem:[%s4566_s13 + $0x28] sm:$0xff]  }
  0xe1   : > { %3474 = vmatpush3.bf16.msra.mxu1 %v3694_v37  ;;  %v3698_v41 = vld [vmem:[%s4566_s13 + $0xb0] sm:$0xff]   ;;  %v3701_v44 = vld [vmem:[%s4566_s13 + $0xe8] sm:$0xff]   ;;  %v3704_v47 = vld [vmem:[%s4566_s13 + $0x20] sm:$0xff]  }
  0xe2   : > { %3475 = vmatprep.subr.bf16.mxu1 %v3697_v40  ;;  %v3702_v45 = vld [vmem:[%s4566_s13 + $0xa8] sm:$0xff]   ;;  %v3705_v48 = vld [vmem:[%s4566_s13 + $0xe0] sm:$0xff]   ;;  %v3707_v50 = vld [vmem:[%s4566_s13 + $0x58] sm:$0xff]  }
  0xe3   : > { %3454 = vmatpush3.bf16.msra.mxu0 %v3696_v39  ;;  %v3706_v49 = vld [vmem:[%s4566_s13 + $0xa0] sm:$0xff]   ;;  %v3708_v51 = vld [vmem:[%s4566_s13 + $0x18] sm:$0xff]   ;;  %v3711_v54 = vld [vmem:[%s4566_s13 + $0x50] sm:$0xff]  }
  0xe4   : > { %3455 = vmatprep.subr.bf16.mxu0 %v3699_v42  ;;  %v3709_v52 = vld [vmem:[%s4566_s13 + $0xd8] sm:$0xff]   ;;  %v3712_v55 = vld [vmem:[%s4566_s13 + $0x10] sm:$0xff]   ;;  %v3715_v58 = vld [vmem:[%s4566_s13 + $0x48] sm:$0xff]  }
  0xe5   : > { %3476 = vmatpush3.bf16.msra.mxu1 %v3698_v41  ;;  %v3710_v53 = vld [vmem:[%s4566_s13 + $0x98] sm:$0xff]   ;;  %v3713_v56 = vld [vmem:[%s4566_s13 + $0xd0] sm:$0xff]   ;;  %v3716_v59 = vld [vmem:[%s4566_s13 + $0x8] sm:$0xff]  }
  0xe6   : > { %3477 = vmatprep.subr.bf16.mxu1 %v3701_v44  ;;  %v3714_v57 = vld [vmem:[%s4566_s13 + $0x90] sm:$0xff]   ;;  %v3717_v60 = vld [vmem:[%s4566_s13 + $0xc8] sm:$0xff]   ;;  %v3719_v62 = vld [vmem:[%s4566_s13 + $0x40] sm:$0xff]  }
  0xe7   : > { %3456 = vmatpush3.bf16.msra.mxu0 %v3700_v43  ;;  %v3718_v61 = vld [vmem:[%s4566_s13 + $0x88] sm:$0xff]   ;;  %v3720_v0 = vld [vmem:[%s4566_s13] sm:$0xff]   ;;  %v3762_v1 = vld [vmem:[%s4795_s0 + $0x14] ss:$72 sps:$4 sm:$0xff]  }
  0xe8   : > { %3457 = vmatprep.subr.bf16.mxu0 %v3703_v46  ;;  %v3722_v63 = vld [vmem:[%s4795_s0] ss:$72 sps:$4 sm:$0xff]   ;;  %v3726_v5 = vld [vmem:[%s4566_s13 + $0x178] sm:$0xff]   ;;  %v3733_v9 = vld [vmem:[%s4566_s13 + $0x170] sm:$0xff]  }
  0xe9   : > { %3478 = vmatpush3.bf16.msra.mxu1 %v3702_v45  ;;  %v3721_v2 = vld [vmem:[%s4566_s13 + $0xc0] sm:$0xff]   ;;  %v3727_v3 = vld [vmem:[%s4795_s0 + $0x8] ss:$72 sps:$4 sm:$0xff]   ;;  %v3730_v6 = vld [vmem:[%s4566_s13 + $0x138] sm:$0xff]  }
  0xea   : > { %3479 = vmatprep.subr.bf16.mxu1 %v3705_v48  ;;  %v3725_v4 = vld [vmem:[%s4566_s13 + $0x80] sm:$0xff]   ;;  %v3731_v7 = vld [vmem:[%s4566_s13 + $0x1f8] sm:$0xff]   ;;  %v3734_v10 = vld [vmem:[%s4566_s13 + $0x130] sm:$0xff]  }
  0xeb   : > { %3458 = vmatpush3.bf16.msra.mxu0 %v3704_v47  ;;  %v3732_v8 = vld [vmem:[%s4566_s13 + $0x1b8] sm:$0xff]   ;;  %v3735_v11 = vld [vmem:[%s4566_s13 + $0x1f0] sm:$0xff]   ;;  %v3737_v13 = vld [vmem:[%s4566_s13 + $0x168] sm:$0xff]  }
  0xec   : > { %3459 = vmatprep.subr.bf16.mxu0 %v3707_v50  ;;  %v3736_v12 = vld [vmem:[%s4566_s13 + $0x1b0] sm:$0xff]   ;;  %v3738_v14 = vld [vmem:[%s4566_s13 + $0x128] sm:$0xff]   ;;  %v3741_v17 = vld [vmem:[%s4566_s13 + $0x160] sm:$0xff]  }
  0xed   : > { %3480 = vmatpush3.bf16.msra.mxu1 %v3706_v49  ;;  %v3739_v15 = vld [vmem:[%s4566_s13 + $0x1e8] sm:$0xff]   ;;  %v3742_v18 = vld [vmem:[%s4566_s13 + $0x120] sm:$0xff]   ;;  %v3745_v21 = vld [vmem:[%s4566_s13 + $0x158] sm:$0xff]  }
  0xee   : > { %3481 = vmatprep.subr.bf16.mxu1 %v3709_v52  ;;  %v3740_v16 = vld [vmem:[%s4566_s13 + $0x1a8] sm:$0xff]   ;;  %v3743_v19 = vld [vmem:[%s4566_s13 + $0x1e0] sm:$0xff]   ;;  %v3746_v22 = vld [vmem:[%s4566_s13 + $0x118] sm:$0xff]  }
  0xef   : > { %3460 = vmatpush3.bf16.msra.mxu0 %v3708_v51  ;;  %v3744_v20 = vld [vmem:[%s4566_s13 + $0x1a0] sm:$0xff]   ;;  %v3747_v23 = vld [vmem:[%s4566_s13 + $0x1d8] sm:$0xff]   ;;  %v3749_v25 = vld [vmem:[%s4566_s13 + $0x150] sm:$0xff]  }
  0xf0   : > { %3461 = vmatprep.subr.bf16.mxu0 %v3711_v54  ;;  %v3748_v24 = vld [vmem:[%s4566_s13 + $0x198] sm:$0xff]   ;;  %v3750_v26 = vld [vmem:[%s4566_s13 + $0x110] sm:$0xff]   ;;  %v3753_v29 = vld [vmem:[%s4566_s13 + $0x148] sm:$0xff]  }
  0xf1   : > { %3482 = vmatpush3.bf16.msra.mxu1 %v3710_v53  ;;  %v3751_v27 = vld [vmem:[%s4566_s13 + $0x1d0] sm:$0xff]   ;;  %v3754_v30 = vld [vmem:[%s4566_s13 + $0x108] sm:$0xff]   ;;  %v3757_v33 = vld [vmem:[%s4566_s13 + $0x140] sm:$0xff]  }
  0xf2   : > { %3483 = vmatprep.subr.bf16.mxu1 %v3713_v56  ;;  %v3752_v28 = vld [vmem:[%s4566_s13 + $0x190] sm:$0xff]   ;;  %v3755_v31 = vld [vmem:[%s4566_s13 + $0x1c8] sm:$0xff]   ;;  %v3758_v35 = vld [vmem:[%s4566_s13 + $0x100] sm:$0xff]  }
  0xf3   : > { %3462 = vmatpush3.bf16.msra.mxu0 %v3712_v55  ;;  %v3756_v32 = vld [vmem:[%s4566_s13 + $0x188] sm:$0xff]   ;;  %v3760_v34 = vld [vmem:[%s4795_s0 + $0x10] ss:$72 sps:$4 sm:$0xff]   ;;  %v3759_v36 = vld [vmem:[%s4566_s13 + $0x1c0] sm:$0xff]  }
  0xf4   : > { %3463 = vmatprep.subr.bf16.mxu0 %v3715_v58  ;;  %v3763_v37 = vld [vmem:[%s4566_s13 + $0x180] sm:$0xff]   ;;  %v3764_v38 = vld [vmem:[%s4566_s13 + $0x278] sm:$0xff]   ;;  %v3771_v44 = vld [vmem:[%s4566_s13 + $0x270] sm:$0xff]  }
  0xf5   : > { %3484 = vmatpush3.bf16.msra.mxu1 %v3714_v57  ;;  %v3765_v39 = vld [vmem:[%s4795_s0 + $0x18] ss:$72 sps:$4 sm:$0xff]   ;;  %v3767_v40 = vld [vmem:[%s4795_s0 + $0x1c] ss:$72 sps:$4 sm:$0xff]   ;;  %v3772_v45 = vld [vmem:[%s4566_s13 + $0x230] sm:$0xff]  }
  0xf6   : > { %3485 = vmatprep.subr.bf16.mxu1 %v3717_v60  ;;  %v3768_v41 = vld [vmem:[%s4566_s13 + $0x238] sm:$0xff]   ;;  %v3773_v46 = vld [vmem:[%s4566_s13 + $0x2f0] sm:$0xff]   ;;  %v3775_v48 = vld [vmem:[%s4566_s13 + $0x268] sm:$0xff]  }
  0xf7   : > { %3464 = vmatpush3.bf16.msra.mxu0 %v3716_v59  ;;  %v3769_v42 = vld [vmem:[%s4566_s13 + $0x2f8] sm:$0xff]   ;;  %v3774_v47 = vld [vmem:[%s4566_s13 + $0x2b0] sm:$0xff]   ;;  %v3776_v49 = vld [vmem:[%s4566_s13 + $0x228] sm:$0xff]  }
  0xf8   : > { %3465 = vmatprep.subr.bf16.mxu0 %v3719_v62  ;;  %v3770_v43 = vld [vmem:[%s4566_s13 + $0x2b8] sm:$0xff]   ;;  %v3777_v50 = vld [vmem:[%s4566_s13 + $0x2e8] sm:$0xff]   ;;  %v3779_v52 = vld [vmem:[%s4566_s13 + $0x260] sm:$0xff]  }
  0xf9   : > { %3486 = vmatpush3.bf16.msra.mxu1 %v3718_v61  ;;  %v3778_v51 = vld [vmem:[%s4566_s13 + $0x2a8] sm:$0xff]   ;;  %v3780_v53 = vld [vmem:[%s4566_s13 + $0x220] sm:$0xff]   ;;  %v3783_v56 = vld [vmem:[%s4566_s13 + $0x258] sm:$0xff]  }
  0xfa   : > { %3487 = vmatprep.subr.bf16.mxu1 %v3721_v2  ;;  %v3781_v54 = vld [vmem:[%s4566_s13 + $0x2e0] sm:$0xff]   ;;  %v3784_v57 = vld [vmem:[%s4566_s13 + $0x218] sm:$0xff]   ;;  %v3787_v60 = vld [vmem:[%s4566_s13 + $0x250] sm:$0xff]  }
  0xfb   : > { %3466 = vmatpush3.bf16.msra.mxu0 %v3720_v0  ;;  %v3782_v55 = vld [vmem:[%s4566_s13 + $0x2a0] sm:$0xff]   ;;  %v3785_v58 = vld [vmem:[%s4566_s13 + $0x2d8] sm:$0xff]   ;;  %v3788_v61 = vld [vmem:[%s4566_s13 + $0x210] sm:$0xff]  }
  0xfc   : > { %3495 = vmatprep.subr.bf16.mxu0 %v3726_v5  ;;  %v3786_v59 = vld [vmem:[%s4566_s13 + $0x298] sm:$0xff]   ;;  %v3789_v62 = vld [vmem:[%s4566_s13 + $0x2d0] sm:$0xff]   ;;  %v3791_v0 = vld [vmem:[%s4566_s13 + $0x248] sm:$0xff]  }
  0xfd   : > { %3488 = vmatpush3.bf16.msra.mxu1 %v3725_v4  ;;  %v3793_v2 = vld [vmem:[%s4566_s13 + $0x2c8] sm:$0xff]   ;;  %v3795_v4 = vld [vmem:[%s4566_s13 + $0x240] sm:$0xff]  }
  0xfe   : > { %2752 = vmatmul.mubr.bf16.vlgmr.msra.gmra.mxu0 %v3722_v63  ;;  %3517 = vmatprep.subr.bf16.mxu1 %v3731_v7  ;;  %v3790_v63 = vld [vmem:[%s4566_s13 + $0x290] sm:$0xff]   ;;  %v3796_v5 = vld [vmem:[%s4566_s13 + $0x200] sm:$0xff]  }
  0xff   : > { %3496 = vmatpush3.bf16.msra.mxu0 %v3730_v6  ;;  %2833 = vmatprep.mubr.bf16.mxu0 %v3762_v1  ;;  %v3792_v1 = vld [vmem:[%s4566_s13 + $0x208] sm:$0xff]   ;;  %v3797_v6 = vld [vmem:[%s4566_s13 + $0x2c0] sm:$0xff]  }
 0x100   : > { %2793 = vmatmul.mubr.bf16.vlgmr.msra.gmra.mxu1 %v3727_v3  ;;  %3497 = vmatprep.subr.bf16.mxu0 %v3733_v9  ;;  %v3794_v3 = vld [vmem:[%s4566_s13 + $0x288] sm:$0xff]   ;;  %v3801_v9 = vld [vmem:[%s4566_s13 + $0x280] sm:$0xff]  }
 0x101   : > { %3518 = vmatpush3.bf16.msra.mxu1 %v3732_v8  ;;  %2874 = vmatprep.mubr.bf16.mxu1 %v3767_v40  ;;  %v3798_v7 = vld [vmem:[%s4795_s0 + $0x20] ss:$72 sps:$4 sm:$0xff]   ;;  %v3800_v8 = vld [vmem:[%s4795_s0 + $0x24] ss:$72 sps:$4 sm:$0xff]  }
 0x102   : > { %3519 = vmatprep.subr.bf16.mxu1 %v3735_v11  ;;  %v3803_v11 = vld [vmem:[%s4795_s0 + $0x28] ss:$72 sps:$4 sm:$0xff]   ;;  %v3833_v40 = vld [vmem:[%s4566_s13 + $0x340] sm:$0xff]  }
 0x103   : > { %3498 = vmatpush3.bf16.msra.mxu0 %v3734_v10  ;;  %v3802_v10 = vld [vmem:[%s4566_s13 + $0x378] sm:$0xff]  }
 0x104   : > { %3499 = vmatprep.subr.bf16.mxu0 %v3737_v13  ;;  %v3806_v13 = vld [vmem:[%s4566_s13 + $0x338] sm:$0xff]  }
 0x105   : > { %3520 = vmatpush3.bf16.msra.mxu1 %v3736_v12  ;;  %v3805_v12 = vld [vmem:[%s4795_s0 + $0x2c] ss:$72 sps:$4 sm:$0xff]  }
 0x106   : > { %3521 = vmatprep.subr.bf16.mxu1 %v3739_v15  ;;  %v3808_v15 = vld [vmem:[%s4566_s13 + $0x3b8] sm:$0xff]  }
 0x107   : > { %3500 = vmatpush3.bf16.msra.mxu0 %v3738_v14  ;;  %v3807_v14 = vld [vmem:[%s4566_s13 + $0x3f8] sm:$0xff]  }
 0x108   : > { %3501 = vmatprep.subr.bf16.mxu0 %v3741_v17  ;;  %v3810_v17 = vld [vmem:[%s4566_s13 + $0x330] sm:$0xff]  }
 0x109   : > { %3522 = vmatpush3.bf16.msra.mxu1 %v3740_v16  ;;  %v3809_v16 = vld [vmem:[%s4566_s13 + $0x370] sm:$0xff]  }
 0x10a   : > { %3523 = vmatprep.subr.bf16.mxu1 %v3743_v19  ;;  %v3812_v19 = vld [vmem:[%s4566_s13 + $0x3b0] sm:$0xff]  }
 0x10b   : > { %3502 = vmatpush3.bf16.msra.mxu0 %v3742_v18  ;;  %v3811_v18 = vld [vmem:[%s4566_s13 + $0x3f0] sm:$0xff]  }
 0x10c   : > { %3503 = vmatprep.subr.bf16.mxu0 %v3745_v21  ;;  %v3814_v21 = vld [vmem:[%s4566_s13 + $0x328] sm:$0xff]  }
 0x10d   : > { %3524 = vmatpush3.bf16.msra.mxu1 %v3744_v20  ;;  %v3813_v20 = vld [vmem:[%s4566_s13 + $0x368] sm:$0xff]  }
 0x10e   : > { %3525 = vmatprep.subr.bf16.mxu1 %v3747_v23  ;;  %v3816_v23 = vld [vmem:[%s4566_s13 + $0x3a8] sm:$0xff]  }
 0x10f   : > { %3504 = vmatpush3.bf16.msra.mxu0 %v3746_v22  ;;  %v3815_v22 = vld [vmem:[%s4566_s13 + $0x3e8] sm:$0xff]  }
 0x110   : > { %3505 = vmatprep.subr.bf16.mxu0 %v3749_v25  ;;  %v3818_v25 = vld [vmem:[%s4566_s13 + $0x320] sm:$0xff]  }
 0x111   : > { %3526 = vmatpush3.bf16.msra.mxu1 %v3748_v24  ;;  %v3817_v24 = vld [vmem:[%s4566_s13 + $0x360] sm:$0xff]  }
 0x112   : > { %3527 = vmatprep.subr.bf16.mxu1 %v3751_v27  ;;  %v3820_v27 = vld [vmem:[%s4566_s13 + $0x3a0] sm:$0xff]  }
 0x113   : > { %3506 = vmatpush3.bf16.msra.mxu0 %v3750_v26  ;;  %v3819_v26 = vld [vmem:[%s4566_s13 + $0x3e0] sm:$0xff]  }
 0x114   : > { %3507 = vmatprep.subr.bf16.mxu0 %v3753_v29  ;;  %v3822_v29 = vld [vmem:[%s4566_s13 + $0x318] sm:$0xff]  }
 0x115   : > { %3528 = vmatpush3.bf16.msra.mxu1 %v3752_v28  ;;  %v3821_v28 = vld [vmem:[%s4566_s13 + $0x358] sm:$0xff]  }
 0x116   : > { %3529 = vmatprep.subr.bf16.mxu1 %v3755_v31  ;;  %v3824_v31 = vld [vmem:[%s4566_s13 + $0x398] sm:$0xff]  }
 0x117   : > { %3508 = vmatpush3.bf16.msra.mxu0 %v3754_v30  ;;  %v3823_v30 = vld [vmem:[%s4566_s13 + $0x3d8] sm:$0xff]  }
 0x118   : > { %3509 = vmatprep.subr.bf16.mxu0 %v3757_v33  ;;  %v3826_v33 = vld [vmem:[%s4566_s13 + $0x310] sm:$0xff]  }
 0x119   : > { %3530 = vmatpush3.bf16.msra.mxu1 %v3756_v32  ;;  %v3825_v32 = vld [vmem:[%s4566_s13 + $0x350] sm:$0xff]  }
 0x11a   : > { %3531 = vmatprep.subr.bf16.mxu1 %v3759_v36  ;;  %v3829_v36 = vld [vmem:[%s4566_s13 + $0x348] sm:$0xff]  }
 0x11b   : > { %3510 = vmatpush3.bf16.msra.mxu0 %v3758_v35  ;;  %v3828_v35 = vld [vmem:[%s4566_s13 + $0x390] sm:$0xff]  }
 0x11c   : > { %3539 = vmatprep.subr.bf16.mxu0 %v3764_v38  ;;  %v3831_v38 = vld [vmem:[%s4566_s13 + $0x3c8] sm:$0xff]  }
 0x11d   : > { %3532 = vmatpush3.bf16.msra.mxu1 %v3763_v37  ;;  %v3830_v37 = vld [vmem:[%s4566_s13 + $0x308] sm:$0xff]  }
 0x11e   : > { %2834 = vmatmul.mubr.bf16.vlgmr.msra.gmra.mxu0 %v3760_v34  ;;  %3561 = vmatprep.subr.bf16.mxu1 %v3769_v42  ;;  %v3827_v34 = vld [vmem:[%s4566_s13 + $0x3d0] sm:$0xff]   ;;  %v3835_v42 = vld [vmem:[%s4566_s13 + $0x3c0] sm:$0xff]  }
 0x11f   : > { %3540 = vmatpush3.bf16.msra.mxu0 %v3768_v41  ;;  %2915 = vmatprep.mubr.bf16.mxu0 %v3800_v8  ;;  %v3834_v41 = vld [vmem:[%s4566_s13 + $0x300] sm:$0xff]  }
 0x120   : > { %2875 = vmatmul.mubr.bf16.vlgmr.msra.gmra.mxu1 %v3765_v39  ;;  %3541 = vmatprep.subr.bf16.mxu0 %v3771_v44  ;;  %v3832_v39 = vld [vmem:[%s4566_s13 + $0x388] sm:$0xff]   ;;  %v3838_v44 = vld [vmem:[%s4795_s0 + $0x34] ss:$72 sps:$4 sm:$0xff]  }
 0x121   : > { %3562 = vmatpush3.bf16.msra.mxu1 %v3770_v43  ;;  %2956 = vmatprep.mubr.bf16.mxu1 %v3805_v12  ;;  %v3836_v43 = vld [vmem:[%s4795_s0 + $0x30] ss:$72 sps:$4 sm:$0xff]  }
 0x122   : > { %3563 = vmatprep.subr.bf16.mxu1 %v3773_v46  ;;  %v3840_v46 = vld [vmem:[%s4566_s13 + $0x478] sm:$0xff]  }
 0x123   : > { %3542 = vmatpush3.bf16.msra.mxu0 %v3772_v45  ;;  %v3839_v45 = vld [vmem:[%s4566_s13 + $0x380] sm:$0xff]  }
 0x124   : > { %3543 = vmatprep.subr.bf16.mxu0 %v3775_v48  ;;  %v3843_v48 = vld [vmem:[%s4795_s0 + $0x3c] ss:$72 sps:$4 sm:$0xff]  }
 0x125   : > { %3564 = vmatpush3.bf16.msra.mxu1 %v3774_v47  ;;  %v3841_v47 = vld [vmem:[%s4795_s0 + $0x38] ss:$72 sps:$4 sm:$0xff]  }
 0x126   : > { %3565 = vmatprep.subr.bf16.mxu1 %v3777_v50  ;;  %v3845_v50 = vld [vmem:[%s4566_s13 + $0x470] sm:$0xff]  }
 0x127   : > { %3544 = vmatpush3.bf16.msra.mxu0 %v3776_v49  ;;  %v3844_v49 = vld [vmem:[%s4566_s13 + $0x438] sm:$0xff]  }
 0x128   : > { %3545 = vmatprep.subr.bf16.mxu0 %v3779_v52  ;;  %v3847_v52 = vld [vmem:[%s4566_s13 + $0x468] sm:$0xff]  }
 0x129   : > { %3566 = vmatpush3.bf16.msra.mxu1 %v3778_v51  ;;  %v3846_v51 = vld [vmem:[%s4566_s13 + $0x430] sm:$0xff]  }
 0x12a   : > { %3567 = vmatprep.subr.bf16.mxu1 %v3781_v54  ;;  %v3849_v54 = vld [vmem:[%s4566_s13 + $0x460] sm:$0xff]  }
 0x12b   : > { %3546 = vmatpush3.bf16.msra.mxu0 %v3780_v53  ;;  %v3848_v53 = vld [vmem:[%s4566_s13 + $0x428] sm:$0xff]  }
 0x12c   : > { %3547 = vmatprep.subr.bf16.mxu0 %v3783_v56  ;;  %v3851_v56 = vld [vmem:[%s4566_s13 + $0x458] sm:$0xff]  }
 0x12d   : > { %3568 = vmatpush3.bf16.msra.mxu1 %v3782_v55  ;;  %v3850_v55 = vld [vmem:[%s4566_s13 + $0x420] sm:$0xff]  }
 0x12e   : > { %3569 = vmatprep.subr.bf16.mxu1 %v3785_v58  ;;  %v3853_v58 = vld [vmem:[%s4566_s13 + $0x450] sm:$0xff]  }
 0x12f   : > { %3548 = vmatpush3.bf16.msra.mxu0 %v3784_v57  ;;  %v3852_v57 = vld [vmem:[%s4566_s13 + $0x418] sm:$0xff]  }
 0x130   : > { %3549 = vmatprep.subr.bf16.mxu0 %v3787_v60  ;;  %v3854_v60 = vld [vmem:[%s4566_s13 + $0x410] sm:$0xff]  }
 0x131   : > { %3570 = vmatpush3.bf16.msra.mxu1 %v3786_v59  ;;  %v3861_v59 = vld [vmem:[%s4795_s0 + $0x44] ss:$72 sps:$4 sm:$0xff]  }
 0x132   : > { %3571 = vmatprep.subr.bf16.mxu1 %v3789_v62  ;;  %v3856_v62 = vld [vmem:[%s4566_s13 + $0x408] sm:$0xff]  }
 0x133   : > { %3550 = vmatpush3.bf16.msra.mxu0 %v3788_v61  ;;  %v3855_v61 = vld [vmem:[%s4566_s13 + $0x448] sm:$0xff]  }
 0x134   : > { %3551 = vmatprep.subr.bf16.mxu0 %v3791_v0  ;;  %v3858_v0 = vld [vmem:[%s4566_s13 + $0x400] sm:$0xff]  }
 0x135   : > { %3572 = vmatpush3.bf16.msra.mxu1 %v3790_v63  ;;  %v3857_v63 = vld [vmem:[%s4566_s13 + $0x440] sm:$0xff]   ;;  %s4762_s13 = scalar_select %p1444_p11, %s3892_s17, 1 }
 0x136   : > { %3573 = vmatprep.subr.bf16.mxu1 %v3793_v2 }
 0x137   : > { %3552 = vmatpush3.bf16.msra.mxu0 %v3792_v1  ;;  %v3859_v1 = vld [vmem:[%s4795_s0 + $0x40] ss:$72 sps:$4 sm:$0xff]   ;;  %s1446_s22 = scalar_lea.vmem %s4797_s2, %s4762_s13  ;;  %s1449_s27 = scalar_lea.vmem %s4798_s3, %s4762_s13 }
 0x138   : > { %3553 = vmatprep.subr.bf16.mxu0 %v3795_v4 }
 0x139   : > { %3574 = vmatpush3.bf16.msra.mxu1 %v3794_v3 }
 0x13a   : > { %3575 = vmatprep.subr.bf16.mxu1 %v3797_v6 }
 0x13b   : > { %3554 = vmatpush3.bf16.msra.mxu0 %v3796_v5 }
 0x13c   : > { %3583 = vmatprep.subr.bf16.mxu0 %v3802_v10 }
 0x13d   : > { %3576 = vmatpush3.bf16.msra.mxu1 %v3801_v9 }
 0x13e   : > { %2916 = vmatmul.mubr.bf16.vlgmr.msra.gmra.mxu0 %v3798_v7  ;;  %3605 = vmatprep.subr.bf16.mxu1 %v3807_v14 }
 0x13f   : > { %3584 = vmatpush3.bf16.msra.mxu0 %v3806_v13  ;;  %2997 = vmatprep.mubr.bf16.mxu0 %v3838_v44 }
 0x140   : > { %2957 = vmatmul.mubr.bf16.vlgmr.msra.gmra.mxu1 %v3803_v11  ;;  %3585 = vmatprep.subr.bf16.mxu0 %v3809_v16 }
 0x141   : > { %3606 = vmatpush3.bf16.msra.mxu1 %v3808_v15  ;;  %3038 = vmatprep.mubr.bf16.mxu1 %v3843_v48 }
 0x142   : > { %3607 = vmatprep.subr.bf16.mxu1 %v3811_v18 }
 0x143   : > { %3586 = vmatpush3.bf16.msra.mxu0 %v3810_v17 }
 0x144   : > { %3587 = vmatprep.subr.bf16.mxu0 %v3813_v20 }
 0x145   : > { %3608 = vmatpush3.bf16.msra.mxu1 %v3812_v19 }
 0x146   : > { %3609 = vmatprep.subr.bf16.mxu1 %v3815_v22  ;;  %v3274_v22 = vld [vmem:[%s1446_s22] ss:$0 sm:$0xff] }
 0x147   : > { %3588 = vmatpush3.bf16.msra.mxu0 %v3814_v21 }
 0x148   : > { %3589 = vmatprep.subr.bf16.mxu0 %v3817_v24 }
 0x149   : > { %3610 = vmatpush3.bf16.msra.mxu1 %v3816_v23 }
 0x14a   : > { %3611 = vmatprep.subr.bf16.mxu1 %v3819_v26 }
 0x14b   : > { %3590 = vmatpush3.bf16.msra.mxu0 %v3818_v25 }
 0x14c   : > { %3591 = vmatprep.subr.bf16.mxu0 %v3821_v28 }
 0x14d   : > { %3612 = vmatpush3.bf16.msra.mxu1 %v3820_v27 }
 0x14e   : > { %3613 = vmatprep.subr.bf16.mxu1 %v3823_v30 }
 0x14f   : > { %3592 = vmatpush3.bf16.msra.mxu0 %v3822_v29 }
 0x150   : > { %3593 = vmatprep.subr.bf16.mxu0 %v3825_v32 }
 0x151   : > { %3614 = vmatpush3.bf16.msra.mxu1 %v3824_v31 }
 0x152   : > { %3615 = vmatprep.subr.bf16.mxu1 %v3827_v34 }
 0x153   : > { %3594 = vmatpush3.bf16.msra.mxu0 %v3826_v33 }
 0x154   : > { %3595 = vmatprep.subr.bf16.mxu0 %v3829_v36 }
 0x155   : > { %3616 = vmatpush3.bf16.msra.mxu1 %v3828_v35 }
 0x156   : > { %3617 = vmatprep.subr.bf16.mxu1 %v3831_v38 }
 0x157   : > { %3596 = vmatpush3.bf16.msra.mxu0 %v3830_v37 }
 0x158   : > { %3597 = vmatprep.subr.bf16.mxu0 %v3833_v40 }
 0x159   : > { %3618 = vmatpush3.bf16.msra.mxu1 %v3832_v39 }
 0x15a   : > { %3619 = vmatprep.subr.bf16.mxu1 %v3835_v42 }
 0x15b   : > { %3598 = vmatpush3.bf16.msra.mxu0 %v3834_v41 }
 0x15c   : > { %3627 = vmatprep.subr.bf16.mxu0 %v3840_v46 }
 0x15d   : > { %3620 = vmatpush3.bf16.msra.mxu1 %v3839_v45 }
 0x15e   : > { %2998 = vmatmul.mubr.bf16.vlgmr.msra.gmra.mxu0 %v3836_v43 }
 0x15f   : > { %3628 = vmatpush3.bf16.msra.mxu0 %v3844_v49  ;;  %3079 = vmatprep.mubr.bf16.mxu0 %v3861_v59 }
 0x160   : > { %3039 = vmatmul.mubr.bf16.vlgmr.msra.gmra.mxu1 %v3841_v47  ;;  %3629 = vmatprep.subr.bf16.mxu0 %v3845_v50 }
 0x163   : > { %3630 = vmatpush3.bf16.msra.mxu0 %v3846_v51 }
 0x164   : > { %3631 = vmatprep.subr.bf16.mxu0 %v3847_v52 }
 0x167   : > { %3632 = vmatpush3.bf16.msra.mxu0 %v3848_v53 }
 0x168   : > { %3633 = vmatprep.subr.bf16.mxu0 %v3849_v54 }
 0x16b   : > { %3634 = vmatpush3.bf16.msra.mxu0 %v3850_v55 }
 0x16c   : > { %3635 = vmatprep.subr.bf16.mxu0 %v3851_v56 }
 0x16f   : > { %3636 = vmatpush3.bf16.msra.mxu0 %v3852_v57 }
 0x170   : > { %3637 = vmatprep.subr.bf16.mxu0 %v3853_v58 }
 0x173   : > { %3638 = vmatpush3.bf16.msra.mxu0 %v3854_v60 }
 0x174   : > { %3639 = vmatprep.subr.bf16.mxu0 %v3855_v61 }
 0x177   : > { %3640 = vmatpush3.bf16.msra.mxu0 %v3856_v62 }
 0x178   : > { %3641 = vmatprep.subr.bf16.mxu0 %v3857_v63 }
 0x17b   : > { %3642 = vmatpush3.bf16.msra.mxu0 %v3858_v0 }
 0x17e   : > { %3080 = vmatmul.mubr.bf16.vlgmr.msra.gmra.mxu0 %v3859_v1 }
 0x1be   : > { %v3467_v2 = vpop.f32.mrf.mxu0 }
 0x1c0   : > { %v3468_v3 = vpop.f32.mrf.mxu0  ;;  %v3489_v4 = vpop.f32.mrf.mxu1 }
 0x1c1   : > { %v3469_v21 = vadd.f32 %v3468_v3, %v3467_v2 }
 0x1c2   : > { %v3470_v5 = vpop.f32.mrf.mxu0  ;;  %v3490_v6 = vpop.f32.mrf.mxu1 }
 0x1c3   : > { %v2754_v25 = vadd.f32 %v3469_v21, %v3274_v22  ;;  %v3491_v26 = vadd.f32 %v3490_v6, %v3489_v4 }
 0x1c4   : > { %v3471_v7 = vpop.f32.mrf.mxu0  ;;  %v3492_v8 = vpop.f32.mrf.mxu1 }
 0x1c5   : > { %v3472_v27 = vadd.f32 %v3471_v7, %v3470_v5  ;;  %v2795_v32 = vadd.f32 %v3491_v26, %v2754_v25  ;;  %v3437_v7 = vld [vmem:[%s1449_s27] ss:$0 sm:$0xff] }
 0x1c6   : > { %v3493_v10 = vpop.f32.mrf.mxu1 }
 0x1c7   : > { %v2757_v33 = vadd.f32 %v3472_v27, %v3274_v22  ;;  %v3494_v34 = vadd.f32 %v3493_v10, %v3492_v8 }
 0x1c9   : > { %v2798_v41 = vadd.f32 %v3494_v34, %v2757_v33 }
 0x1de   : > { %v3511_v9 = vpop.f32.mrf.mxu0 }
 0x1e0   : > { %v3512_v11 = vpop.f32.mrf.mxu0  ;;  %v3533_v12 = vpop.f32.mrf.mxu1 }
 0x1e1   : > { %v3513_v30 = vadd.f32 %v3512_v11, %v3511_v9 }
 0x1e2   : > { %v3514_v13 = vpop.f32.mrf.mxu0  ;;  %v3534_v14 = vpop.f32.mrf.mxu1 }
 0x1e3   : > { %v2836_v36 = vadd.f32 %v3513_v30, %v2795_v32  ;;  %v3535_v37 = vadd.f32 %v3534_v14, %v3533_v12 }
 0x1e4   : > { %v3515_v15 = vpop.f32.mrf.mxu0  ;;  %v3536_v16 = vpop.f32.mrf.mxu1 }
 0x1e5   : > { %v3516_v38 = vadd.f32 %v3515_v15, %v3514_v13  ;;  %v2877_v43 = vadd.f32 %v3535_v37, %v2836_v36 }
 0x1e6   : > { %v3537_v18 = vpop.f32.mrf.mxu1 }
 0x1e7   : > { %v2839_v44 = vadd.f32 %v3516_v38, %v2798_v41  ;;  %v3538_v45 = vadd.f32 %v3537_v18, %v3536_v16 }
 0x1e9   : > { %v2880_v51 = vadd.f32 %v3538_v45, %v2839_v44 }
 0x1fe   : > { %v3555_v17 = vpop.f32.mrf.mxu0 }
 0x200   : > { %v3556_v19 = vpop.f32.mrf.mxu0  ;;  %v3577_v20 = vpop.f32.mrf.mxu1 }
 0x201   : > { %v3557_v42 = vadd.f32 %v3556_v19, %v3555_v17 }
 0x202   : > { %v3558_v23 = vpop.f32.mrf.mxu0  ;;  %v3578_v24 = vpop.f32.mrf.mxu1 }
 0x203   : > { %v2918_v48 = vadd.f32 %v3557_v42, %v2877_v43  ;;  %v3579_v49 = vadd.f32 %v3578_v24, %v3577_v20 }
 0x204   : > { %v3559_v28 = vpop.f32.mrf.mxu0  ;;  %v3580_v29 = vpop.f32.mrf.mxu1 }
 0x205   : > { %v3560_v50 = vadd.f32 %v3559_v28, %v3558_v23  ;;  %v2959_v55 = vadd.f32 %v3579_v49, %v2918_v48 }
 0x206   : > { %v3581_v35 = vpop.f32.mrf.mxu1 }
 0x207   : > { %v2921_v56 = vadd.f32 %v3560_v50, %v2880_v51  ;;  %v3582_v57 = vadd.f32 %v3581_v35, %v3580_v29 }
 0x209   : > { %v2962_v63 = vadd.f32 %v3582_v57, %v2921_v56 }
 0x21e   : > { %v3599_v31 = vpop.f32.mrf.mxu0 }
 0x220   : > { %v3600_v39 = vpop.f32.mrf.mxu0  ;;  %v3621_v40 = vpop.f32.mrf.mxu1 }
 0x221   : > { %v3601_v52 = vadd.f32 %v3600_v39, %v3599_v31 }
 0x222   : > { %v3602_v46 = vpop.f32.mrf.mxu0  ;;  %v3622_v47 = vpop.f32.mrf.mxu1 }
 0x223   : > { %v3000_v58 = vadd.f32 %v3601_v52, %v2959_v55  ;;  %v3623_v59 = vadd.f32 %v3622_v47, %v3621_v40 }
 0x224   : > { %v3603_v53 = vpop.f32.mrf.mxu0  ;;  %v3624_v54 = vpop.f32.mrf.mxu1 }
 0x225   : > { %v3604_v60 = vadd.f32 %v3603_v53, %v3602_v46  ;;  %v3041_v1 = vadd.f32 %v3623_v59, %v3000_v58 }
 0x226   : > { %v3625_v61 = vpop.f32.mrf.mxu1 }
 0x227   : > { %v3003_v2 = vadd.f32 %v3604_v60, %v2962_v63  ;;  %v3626_v3 = vadd.f32 %v3625_v61, %v3624_v54 }
 0x229   : > { %v3044_v9 = vadd.f32 %v3626_v3, %v3003_v2 }
 0x23e   : > { %v3643_v62 = vpop.f32.mrf.mxu0 }
 0x240   : > { %v3644_v0 = vpop.f32.mrf.mxu0 }
 0x241   : > { %v3645_v4 = vadd.f32 %v3644_v0, %v3643_v62 }
 0x242   : > { %v3646_v5 = vpop.f32.mrf.mxu0 }
 0x243   : > { %v3082_v6 = vadd.f32 %v3645_v4, %v3041_v1 }
 0x244   : > { %v3647_v8 = vpop.f32.mrf.mxu0 }
 0x245   : > { %v3648_v10 = vadd.f32 %v3647_v8, %v3646_v5  ;;  %v3095_v11 = vmul.f32 %v3437_v7, %v3082_v6 }
 0x247   : > { %v3085_v12 = vadd.f32 %v3648_v10, %v3044_v9  ;;  %v3097_v14 = vmax.f32 %v3082_v6, %v3095_v11 }
 0x249   : > { %v3096_v13 = vmul.f32 %v3437_v7, %v3085_v12 }
 0x24b   : > { %v3098_v15 = vmax.f32 %v3085_v12, %v3096_v13  ;;  %3115 = sbr.rel (!%p3962_p6) target bundleno = 600 (0x258), region = 81 }
 0x24d   : > { %v3449_v16 = vpack.c.bf16 %v3098_v15, %v3097_v14 }
 0x24f   : > { %3450 = vst [vmem:[%s1436_s29] sm:$0xff] %v3449_v16  }
 0x256   : > { %v3137_v17 = vld [vmem:[%s1436_s29] sm:$0xf]  ;;  %v3139_v18 = vld [vmem:[%s1436_s29 + $0x4] sm:$0xf] }
 0x257   : > { %3138 = vst [vmem:[%s3120_s8] sm:$0xf] %v3137_v17  ;;  %3140 = vst [vmem:[%s3120_s8 + $0x8] sm:$0xf] %v3139_v18 }
 0x258 PF: > { %s14_s19 = sadd.s32 1, %s3900_s19   ;;  %s4801_s15 = smov %s3888_s16 }
 0x259   : > { %p11_p12 = scmp.ge.s32.totalorder %s14_s19, 4   ;;  %s4802_s16 = smov %s3967_s25 }
 0x25a   : > { %s4803_s17 = smov %s3896_s18  ;;  %s4804_s18 = smov %s4806_s20 }
 0x25b   :  { %13 = sbr.rel (!%p11_p12) target bundleno = 3 (0x3), region = 162 }

// kernel: forward.43
= control target key start
LH: loop header
LB: loop body
LE: loop exit
PB: predicated region body
PF: predicated region fallthrough
CT: control target
= control target key end

     0   :  { %s2075_s15 = smov 0   ;;  %s2077_s16 = smov 0   ;;  %s2545_s0 = inlined_call_operand.vmem [shape: bf16[16,1024], index: 0, kind: input, shape index: {}]   ;;  %s2546_s1 = inlined_call_operand.vmem [shape: bf16[1024,512], index: 1, kind: input, shape index: {}]   ;;  %s2547_s2 = inlined_call_operand.vmem [shape: f32[1,512], index: 2, kind: input, shape index: {}]   ;;  %s2548_s3 = inlined_call_operand.vmem [shape: f32[1,512], index: 3, kind: input, shape index: {}]   ;;  %s2549_s4 = inlined_call_operand.vmem [shape: bf16[16,512], index: 4, kind: output, shape index: {}]  }
   0x1   :  { %s2079_s17 = smov 0   ;;  %s2081_s18 = smov 0  }
   0x2   :  { %s2083_s19 = smov 0  }
   0x3 LB: > { %s23_s20 = sadd.s32 1, %s2044_s18  ;;  %s1721_s21 = sadd.s32 4294967295, %s2048_s19   ;;  %s2048_s19 = sphi %s2083_s19, %s14_s19   ;;  %s2044_s18 = sphi %s2081_s18, %s2554_s18   ;;  %s2040_s17 = sphi %s2079_s17, %s2553_s17   ;;  %s2036_s16 = sphi %s2077_s16, %s2552_s16   ;;  %s2032_s15 = sphi %s2075_s15, %s2551_s15  }
   0x4   : > { %p24_p0 = scmp.ge.s32.totalorder %s23_s20, 4  ;;  %p66_p1 = scmp.ne.s32.totalorder %s2036_s16, %s2032_s15 }
   0x5   : > { %p67_p2 = scmp.eq.s32.totalorder %s2048_s19, 0  ;;  %p150_p4 = scmp.eq.s32.totalorder %s1721_s21, 3 }
   0x6   : > { %s2556_s20 = smov (%p24_p0, %s23_s20), 0  ;;  %s59_s23 = sadd.s32 1, %s2036_s16 }
   0x7   : > { %p68_p3 = por %p67_p2, %p66_p1  ;;  %s56_s22 = ssub.s32 %s2044_s18, %s2556_s20 }
   0x8   : > { %p57_p5 = scmp.eq.s32.totalorder %s56_s22, 0  ;;  %p2110_p6 = por %p150_p4, %p66_p1 }
   0x9   : > { %p1725_p7 = scmp.ge.s32.totalorder %s2048_s19, 4 }
   0xa   : > { %s2115_s25 = scalar_select %p57_p5, %s2036_s16, %s59_s23  }
   0xb   : > { %182 = sbr.rel (%p1725_p7) target bundleno = 105 (0x69), region = 20 }
  0x10   : > { %185 = sbr.rel (!%p68_p3) target bundleno = 105 (0x69), region = 24  ;;  %s187_s26 = sand.u32 (%p68_p3), 1, %s2036_s16  }
  0x11   : > { %s1727_s27 = sshll.u32 (%p68_p3), %s2044_s18, 2  ;;  %s1726_s28 = sshll.u32 (%p68_p3), %s187_s26, 9 }
  0x12   : > { %s2123_s5 = scalar_lea.vmem (%p68_p3), %s2546_s1, %s1727_s27  ;;  %s2127_s6 = scalar_lea.vmem (%p68_p3), [#allocation2], %s1726_s28 }
  0x13   : > { %v208_v0 = vld [vmem:[%s2123_s5] sm:$0xf] (%p68_p3)  ;;  %v210_v1 = vld [vmem:[%s2123_s5 + $0x10] sm:$0xf] (%p68_p3) }
  0x14   : > { %209 = vst [vmem:[%s2127_s6] sm:$0xf] (%p68_p3), %v208_v0  ;;  %211 = vst [vmem:[%s2127_s6 + $0x4] sm:$0xf] (%p68_p3), %v210_v1  ;;  %v212_v2 = vld [vmem:[%s2123_s5 + $0x20] sm:$0xf] (%p68_p3) }
  0x15   : > { %v214_v3 = vld [vmem:[%s2123_s5 + $0x30] sm:$0xf]  ;;  %v216_v4 = vld [vmem:[%s2123_s5 + $0x40] sm:$0xf]  ;;  %213 = vst [vmem:[%s2127_s6 + $0x8] sm:$0xf] %v212_v2 }
  0x16   : > { %215 = vst [vmem:[%s2127_s6 + $0xc] sm:$0xf] %v214_v3  ;;  %217 = vst [vmem:[%s2127_s6 + $0x10] sm:$0xf] %v216_v4  ;;  %v218_v5 = vld [vmem:[%s2123_s5 + $0x50] sm:$0xf] }
  0x17   : > { %v220_v6 = vld [vmem:[%s2123_s5 + $0x60] sm:$0xf]  ;;  %v222_v7 = vld [vmem:[%s2123_s5 + $0x70] sm:$0xf]  ;;  %219 = vst [vmem:[%s2127_s6 + $0x14] sm:$0xf] %v218_v5 }
  0x18   : > { %221 = vst [vmem:[%s2127_s6 + $0x18] sm:$0xf] %v220_v6  ;;  %223 = vst [vmem:[%s2127_s6 + $0x1c] sm:$0xf] %v222_v7  ;;  %v224_v8 = vld [vmem:[%s2123_s5 + $0x80] sm:$0xf] }
  0x19   : > { %v226_v9 = vld [vmem:[%s2123_s5 + $0x90] sm:$0xf]  ;;  %v228_v10 = vld [vmem:[%s2123_s5 + $0xa0] sm:$0xf]  ;;  %225 = vst [vmem:[%s2127_s6 + $0x20] sm:$0xf] %v224_v8 }
  0x1a   : > { %227 = vst [vmem:[%s2127_s6 + $0x24] sm:$0xf] %v226_v9  ;;  %229 = vst [vmem:[%s2127_s6 + $0x28] sm:$0xf] %v228_v10  ;;  %v230_v11 = vld [vmem:[%s2123_s5 + $0xb0] sm:$0xf] }
  0x1b   : > { %v232_v12 = vld [vmem:[%s2123_s5 + $0xc0] sm:$0xf]  ;;  %v234_v13 = vld [vmem:[%s2123_s5 + $0xd0] sm:$0xf]  ;;  %231 = vst [vmem:[%s2127_s6 + $0x2c] sm:$0xf] %v230_v11 }
  0x1c   : > { %233 = vst [vmem:[%s2127_s6 + $0x30] sm:$0xf] %v232_v12  ;;  %235 = vst [vmem:[%s2127_s6 + $0x34] sm:$0xf] %v234_v13  ;;  %v236_v14 = vld [vmem:[%s2123_s5 + $0xe0] sm:$0xf] }
  0x1d   : > { %v238_v15 = vld [vmem:[%s2123_s5 + $0xf0] sm:$0xf]  ;;  %v240_v16 = vld [vmem:[%s2123_s5 + $0x100] sm:$0xf]  ;;  %237 = vst [vmem:[%s2127_s6 + $0x38] sm:$0xf] %v236_v14 }
  0x1e   : > { %239 = vst [vmem:[%s2127_s6 + $0x3c] sm:$0xf] %v238_v15  ;;  %241 = vst [vmem:[%s2127_s6 + $0x40] sm:$0xf] %v240_v16  ;;  %v242_v17 = vld [vmem:[%s2123_s5 + $0x110] sm:$0xf] }
  0x1f   : > { %v244_v18 = vld [vmem:[%s2123_s5 + $0x120] sm:$0xf]  ;;  %v246_v19 = vld [vmem:[%s2123_s5 + $0x130] sm:$0xf]  ;;  %243 = vst [vmem:[%s2127_s6 + $0x44] sm:$0xf] %v242_v17 }
  0x20   : > { %245 = vst [vmem:[%s2127_s6 + $0x48] sm:$0xf] %v244_v18  ;;  %247 = vst [vmem:[%s2127_s6 + $0x4c] sm:$0xf] %v246_v19  ;;  %v248_v20 = vld [vmem:[%s2123_s5 + $0x140] sm:$0xf] }
  0x21   : > { %v250_v21 = vld [vmem:[%s2123_s5 + $0x150] sm:$0xf]  ;;  %v252_v22 = vld [vmem:[%s2123_s5 + $0x160] sm:$0xf]  ;;  %249 = vst [vmem:[%s2127_s6 + $0x50] sm:$0xf] %v248_v20 }
  0x22   : > { %251 = vst [vmem:[%s2127_s6 + $0x54] sm:$0xf] %v250_v21  ;;  %253 = vst [vmem:[%s2127_s6 + $0x58] sm:$0xf] %v252_v22  ;;  %v254_v23 = vld [vmem:[%s2123_s5 + $0x170] sm:$0xf] }
  0x23   : > { %v256_v24 = vld [vmem:[%s2123_s5 + $0x180] sm:$0xf]  ;;  %v258_v25 = vld [vmem:[%s2123_s5 + $0x190] sm:$0xf]  ;;  %255 = vst [vmem:[%s2127_s6 + $0x5c] sm:$0xf] %v254_v23 }
  0x24   : > { %257 = vst [vmem:[%s2127_s6 + $0x60] sm:$0xf] %v256_v24  ;;  %259 = vst [vmem:[%s2127_s6 + $0x64] sm:$0xf] %v258_v25  ;;  %v260_v26 = vld [vmem:[%s2123_s5 + $0x1a0] sm:$0xf] }
  0x25   : > { %v262_v27 = vld [vmem:[%s2123_s5 + $0x1b0] sm:$0xf]  ;;  %v264_v28 = vld [vmem:[%s2123_s5 + $0x1c0] sm:$0xf]  ;;  %261 = vst [vmem:[%s2127_s6 + $0x68] sm:$0xf] %v260_v26 }
  0x26   : > { %263 = vst [vmem:[%s2127_s6 + $0x6c] sm:$0xf] %v262_v27  ;;  %265 = vst [vmem:[%s2127_s6 + $0x70] sm:$0xf] %v264_v28  ;;  %v266_v29 = vld [vmem:[%s2123_s5 + $0x1d0] sm:$0xf] }
  0x27   : > { %v268_v30 = vld [vmem:[%s2123_s5 + $0x1e0] sm:$0xf]  ;;  %v270_v31 = vld [vmem:[%s2123_s5 + $0x1f0] sm:$0xf]  ;;  %267 = vst [vmem:[%s2127_s6 + $0x74] sm:$0xf] %v266_v29 }
  0x28   : > { %269 = vst [vmem:[%s2127_s6 + $0x78] sm:$0xf] %v268_v30  ;;  %271 = vst [vmem:[%s2127_s6 + $0x7c] sm:$0xf] %v270_v31  ;;  %v272_v32 = vld [vmem:[%s2123_s5 + $0x200] sm:$0xf] }
  0x29   : > { %v274_v33 = vld [vmem:[%s2123_s5 + $0x210] sm:$0xf]  ;;  %v276_v34 = vld [vmem:[%s2123_s5 + $0x220] sm:$0xf]  ;;  %273 = vst [vmem:[%s2127_s6 + $0x80] sm:$0xf] %v272_v32 }
  0x2a   : > { %275 = vst [vmem:[%s2127_s6 + $0x84] sm:$0xf] %v274_v33  ;;  %277 = vst [vmem:[%s2127_s6 + $0x88] sm:$0xf] %v276_v34  ;;  %v278_v35 = vld [vmem:[%s2123_s5 + $0x230] sm:$0xf] }
  0x2b   : > { %v280_v36 = vld [vmem:[%s2123_s5 + $0x240] sm:$0xf]  ;;  %v282_v37 = vld [vmem:[%s2123_s5 + $0x250] sm:$0xf]  ;;  %279 = vst [vmem:[%s2127_s6 + $0x8c] sm:$0xf] %v278_v35 }
  0x2c   : > { %281 = vst [vmem:[%s2127_s6 + $0x90] sm:$0xf] %v280_v36  ;;  %283 = vst [vmem:[%s2127_s6 + $0x94] sm:$0xf] %v282_v37  ;;  %v284_v38 = vld [vmem:[%s2123_s5 + $0x260] sm:$0xf] }
  0x2d   : > { %v286_v39 = vld [vmem:[%s2123_s5 + $0x270] sm:$0xf]  ;;  %v288_v40 = vld [vmem:[%s2123_s5 + $0x280] sm:$0xf]  ;;  %285 = vst [vmem:[%s2127_s6 + $0x98] sm:$0xf] %v284_v38 }
  0x2e   : > { %287 = vst [vmem:[%s2127_s6 + $0x9c] sm:$0xf] %v286_v39  ;;  %289 = vst [vmem:[%s2127_s6 + $0xa0] sm:$0xf] %v288_v40  ;;  %v290_v41 = vld [vmem:[%s2123_s5 + $0x290] sm:$0xf] }
  0x2f   : > { %v292_v42 = vld [vmem:[%s2123_s5 + $0x2a0] sm:$0xf]  ;;  %v294_v43 = vld [vmem:[%s2123_s5 + $0x2b0] sm:$0xf]  ;;  %291 = vst [vmem:[%s2127_s6 + $0xa4] sm:$0xf] %v290_v41 }
  0x30   : > { %293 = vst [vmem:[%s2127_s6 + $0xa8] sm:$0xf] %v292_v42  ;;  %295 = vst [vmem:[%s2127_s6 + $0xac] sm:$0xf] %v294_v43  ;;  %v296_v44 = vld [vmem:[%s2123_s5 + $0x2c0] sm:$0xf] }
  0x31   : > { %v298_v45 = vld [vmem:[%s2123_s5 + $0x2d0] sm:$0xf]  ;;  %v300_v46 = vld [vmem:[%s2123_s5 + $0x2e0] sm:$0xf]  ;;  %297 = vst [vmem:[%s2127_s6 + $0xb0] sm:$0xf] %v296_v44 }
  0x32   : > { %299 = vst [vmem:[%s2127_s6 + $0xb4] sm:$0xf] %v298_v45  ;;  %301 = vst [vmem:[%s2127_s6 + $0xb8] sm:$0xf] %v300_v46  ;;  %v302_v47 = vld [vmem:[%s2123_s5 + $0x2f0] sm:$0xf] }
  0x33   : > { %v304_v48 = vld [vmem:[%s2123_s5 + $0x300] sm:$0xf]  ;;  %v306_v49 = vld [vmem:[%s2123_s5 + $0x310] sm:$0xf]  ;;  %303 = vst [vmem:[%s2127_s6 + $0xbc] sm:$0xf] %v302_v47 }
  0x34   : > { %305 = vst [vmem:[%s2127_s6 + $0xc0] sm:$0xf] %v304_v48  ;;  %307 = vst [vmem:[%s2127_s6 + $0xc4] sm:$0xf] %v306_v49  ;;  %v308_v50 = vld [vmem:[%s2123_s5 + $0x320] sm:$0xf] }
  0x35   : > { %v310_v51 = vld [vmem:[%s2123_s5 + $0x330] sm:$0xf]  ;;  %v312_v52 = vld [vmem:[%s2123_s5 + $0x340] sm:$0xf]  ;;  %309 = vst [vmem:[%s2127_s6 + $0xc8] sm:$0xf] %v308_v50 }
  0x36   : > { %311 = vst [vmem:[%s2127_s6 + $0xcc] sm:$0xf] %v310_v51  ;;  %313 = vst [vmem:[%s2127_s6 + $0xd0] sm:$0xf] %v312_v52  ;;  %v314_v53 = vld [vmem:[%s2123_s5 + $0x350] sm:$0xf] }
  0x37   : > { %v316_v54 = vld [vmem:[%s2123_s5 + $0x360] sm:$0xf]  ;;  %v318_v55 = vld [vmem:[%s2123_s5 + $0x370] sm:$0xf]  ;;  %315 = vst [vmem:[%s2127_s6 + $0xd4] sm:$0xf] %v314_v53 }
  0x38   : > { %317 = vst [vmem:[%s2127_s6 + $0xd8] sm:$0xf] %v316_v54  ;;  %319 = vst [vmem:[%s2127_s6 + $0xdc] sm:$0xf] %v318_v55  ;;  %v320_v56 = vld [vmem:[%s2123_s5 + $0x380] sm:$0xf] }
  0x39   : > { %v322_v57 = vld [vmem:[%s2123_s5 + $0x390] sm:$0xf]  ;;  %v324_v58 = vld [vmem:[%s2123_s5 + $0x3a0] sm:$0xf]  ;;  %321 = vst [vmem:[%s2127_s6 + $0xe0] sm:$0xf] %v320_v56 }
  0x3a   : > { %323 = vst [vmem:[%s2127_s6 + $0xe4] sm:$0xf] %v322_v57  ;;  %325 = vst [vmem:[%s2127_s6 + $0xe8] sm:$0xf] %v324_v58  ;;  %v326_v59 = vld [vmem:[%s2123_s5 + $0x3b0] sm:$0xf] }
  0x3b   : > { %v328_v60 = vld [vmem:[%s2123_s5 + $0x3c0] sm:$0xf]  ;;  %v330_v61 = vld [vmem:[%s2123_s5 + $0x3d0] sm:$0xf]  ;;  %327 = vst [vmem:[%s2127_s6 + $0xec] sm:$0xf] %v326_v59 }
  0x3c   : > { %329 = vst [vmem:[%s2127_s6 + $0xf0] sm:$0xf] %v328_v60  ;;  %331 = vst [vmem:[%s2127_s6 + $0xf4] sm:$0xf] %v330_v61  ;;  %v332_v62 = vld [vmem:[%s2123_s5 + $0x3e0] sm:$0xf] }
  0x3d   : > { %v334_v63 = vld [vmem:[%s2123_s5 + $0x3f0] sm:$0xf]  ;;  %v336_v0 = vld [vmem:[%s2123_s5 + $0x400] sm:$0xf]  ;;  %333 = vst [vmem:[%s2127_s6 + $0xf8] sm:$0xf] %v332_v62 }
  0x3e   : > { %335 = vst [vmem:[%s2127_s6 + $0xfc] sm:$0xf] %v334_v63  ;;  %337 = vst [vmem:[%s2127_s6 + $0x100] sm:$0xf] %v336_v0  ;;  %v338_v1 = vld [vmem:[%s2123_s5 + $0x410] sm:$0xf] }
  0x3f   : > { %v340_v2 = vld [vmem:[%s2123_s5 + $0x420] sm:$0xf]  ;;  %v342_v3 = vld [vmem:[%s2123_s5 + $0x430] sm:$0xf]  ;;  %339 = vst [vmem:[%s2127_s6 + $0x104] sm:$0xf] %v338_v1 }
  0x40   : > { %341 = vst [vmem:[%s2127_s6 + $0x108] sm:$0xf] %v340_v2  ;;  %343 = vst [vmem:[%s2127_s6 + $0x10c] sm:$0xf] %v342_v3  ;;  %v344_v4 = vld [vmem:[%s2123_s5 + $0x440] sm:$0xf] }
  0x41   : > { %v346_v5 = vld [vmem:[%s2123_s5 + $0x450] sm:$0xf]  ;;  %v348_v6 = vld [vmem:[%s2123_s5 + $0x460] sm:$0xf]  ;;  %345 = vst [vmem:[%s2127_s6 + $0x110] sm:$0xf] %v344_v4 }
  0x42   : > { %347 = vst [vmem:[%s2127_s6 + $0x114] sm:$0xf] %v346_v5  ;;  %349 = vst [vmem:[%s2127_s6 + $0x118] sm:$0xf] %v348_v6  ;;  %v350_v7 = vld [vmem:[%s2123_s5 + $0x470] sm:$0xf] }
  0x43   : > { %v352_v8 = vld [vmem:[%s2123_s5 + $0x480] sm:$0xf]  ;;  %v354_v9 = vld [vmem:[%s2123_s5 + $0x490] sm:$0xf]  ;;  %351 = vst [vmem:[%s2127_s6 + $0x11c] sm:$0xf] %v350_v7 }
  0x44   : > { %353 = vst [vmem:[%s2127_s6 + $0x120] sm:$0xf] %v352_v8  ;;  %355 = vst [vmem:[%s2127_s6 + $0x124] sm:$0xf] %v354_v9  ;;  %v356_v10 = vld [vmem:[%s2123_s5 + $0x4a0] sm:$0xf] }
  0x45   : > { %v358_v11 = vld [vmem:[%s2123_s5 + $0x4b0] sm:$0xf]  ;;  %v360_v12 = vld [vmem:[%s2123_s5 + $0x4c0] sm:$0xf]  ;;  %357 = vst [vmem:[%s2127_s6 + $0x128] sm:$0xf] %v356_v10 }
  0x46   : > { %359 = vst [vmem:[%s2127_s6 + $0x12c] sm:$0xf] %v358_v11  ;;  %361 = vst [vmem:[%s2127_s6 + $0x130] sm:$0xf] %v360_v12  ;;  %v362_v13 = vld [vmem:[%s2123_s5 + $0x4d0] sm:$0xf] }
  0x47   : > { %v364_v14 = vld [vmem:[%s2123_s5 + $0x4e0] sm:$0xf]  ;;  %v366_v15 = vld [vmem:[%s2123_s5 + $0x4f0] sm:$0xf]  ;;  %363 = vst [vmem:[%s2127_s6 + $0x134] sm:$0xf] %v362_v13 }
  0x48   : > { %365 = vst [vmem:[%s2127_s6 + $0x138] sm:$0xf] %v364_v14  ;;  %367 = vst [vmem:[%s2127_s6 + $0x13c] sm:$0xf] %v366_v15  ;;  %v368_v16 = vld [vmem:[%s2123_s5 + $0x500] sm:$0xf] }
  0x49   : > { %v370_v17 = vld [vmem:[%s2123_s5 + $0x510] sm:$0xf]  ;;  %v372_v18 = vld [vmem:[%s2123_s5 + $0x520] sm:$0xf]  ;;  %369 = vst [vmem:[%s2127_s6 + $0x140] sm:$0xf] %v368_v16 }
  0x4a   : > { %371 = vst [vmem:[%s2127_s6 + $0x144] sm:$0xf] %v370_v17  ;;  %373 = vst [vmem:[%s2127_s6 + $0x148] sm:$0xf] %v372_v18  ;;  %v374_v19 = vld [vmem:[%s2123_s5 + $0x530] sm:$0xf] }
  0x4b   : > { %v376_v20 = vld [vmem:[%s2123_s5 + $0x540] sm:$0xf]  ;;  %v378_v21 = vld [vmem:[%s2123_s5 + $0x550] sm:$0xf]  ;;  %375 = vst [vmem:[%s2127_s6 + $0x14c] sm:$0xf] %v374_v19 }
  0x4c   : > { %377 = vst [vmem:[%s2127_s6 + $0x150] sm:$0xf] %v376_v20  ;;  %379 = vst [vmem:[%s2127_s6 + $0x154] sm:$0xf] %v378_v21  ;;  %v380_v22 = vld [vmem:[%s2123_s5 + $0x560] sm:$0xf] }
  0x4d   : > { %v382_v23 = vld [vmem:[%s2123_s5 + $0x570] sm:$0xf]  ;;  %v384_v24 = vld [vmem:[%s2123_s5 + $0x580] sm:$0xf]  ;;  %381 = vst [vmem:[%s2127_s6 + $0x158] sm:$0xf] %v380_v22 }
  0x4e   : > { %383 = vst [vmem:[%s2127_s6 + $0x15c] sm:$0xf] %v382_v23  ;;  %385 = vst [vmem:[%s2127_s6 + $0x160] sm:$0xf] %v384_v24  ;;  %v386_v25 = vld [vmem:[%s2123_s5 + $0x590] sm:$0xf] }
  0x4f   : > { %v388_v26 = vld [vmem:[%s2123_s5 + $0x5a0] sm:$0xf]  ;;  %v390_v27 = vld [vmem:[%s2123_s5 + $0x5b0] sm:$0xf]  ;;  %387 = vst [vmem:[%s2127_s6 + $0x164] sm:$0xf] %v386_v25 }
  0x50   : > { %389 = vst [vmem:[%s2127_s6 + $0x168] sm:$0xf] %v388_v26  ;;  %391 = vst [vmem:[%s2127_s6 + $0x16c] sm:$0xf] %v390_v27  ;;  %v392_v28 = vld [vmem:[%s2123_s5 + $0x5c0] sm:$0xf] }
  0x51   : > { %v394_v29 = vld [vmem:[%s2123_s5 + $0x5d0] sm:$0xf]  ;;  %v396_v30 = vld [vmem:[%s2123_s5 + $0x5e0] sm:$0xf]  ;;  %393 = vst [vmem:[%s2127_s6 + $0x170] sm:$0xf] %v392_v28 }
  0x52   : > { %395 = vst [vmem:[%s2127_s6 + $0x174] sm:$0xf] %v394_v29  ;;  %397 = vst [vmem:[%s2127_s6 + $0x178] sm:$0xf] %v396_v30  ;;  %v398_v31 = vld [vmem:[%s2123_s5 + $0x5f0] sm:$0xf] }
  0x53   : > { %v400_v32 = vld [vmem:[%s2123_s5 + $0x600] sm:$0xf]  ;;  %v402_v33 = vld [vmem:[%s2123_s5 + $0x610] sm:$0xf]  ;;  %399 = vst [vmem:[%s2127_s6 + $0x17c] sm:$0xf] %v398_v31 }
  0x54   : > { %401 = vst [vmem:[%s2127_s6 + $0x180] sm:$0xf] %v400_v32  ;;  %403 = vst [vmem:[%s2127_s6 + $0x184] sm:$0xf] %v402_v33  ;;  %v404_v34 = vld [vmem:[%s2123_s5 + $0x620] sm:$0xf] }
  0x55   : > { %v406_v35 = vld [vmem:[%s2123_s5 + $0x630] sm:$0xf]  ;;  %v408_v36 = vld [vmem:[%s2123_s5 + $0x640] sm:$0xf]  ;;  %405 = vst [vmem:[%s2127_s6 + $0x188] sm:$0xf] %v404_v34 }
  0x56   : > { %407 = vst [vmem:[%s2127_s6 + $0x18c] sm:$0xf] %v406_v35  ;;  %409 = vst [vmem:[%s2127_s6 + $0x190] sm:$0xf] %v408_v36  ;;  %v410_v37 = vld [vmem:[%s2123_s5 + $0x650] sm:$0xf] }
  0x57   : > { %v412_v38 = vld [vmem:[%s2123_s5 + $0x660] sm:$0xf]  ;;  %v414_v39 = vld [vmem:[%s2123_s5 + $0x670] sm:$0xf]  ;;  %411 = vst [vmem:[%s2127_s6 + $0x194] sm:$0xf] %v410_v37 }
  0x58   : > { %413 = vst [vmem:[%s2127_s6 + $0x198] sm:$0xf] %v412_v38  ;;  %415 = vst [vmem:[%s2127_s6 + $0x19c] sm:$0xf] %v414_v39  ;;  %v416_v40 = vld [vmem:[%s2123_s5 + $0x680] sm:$0xf] }
  0x59   : > { %v418_v41 = vld [vmem:[%s2123_s5 + $0x690] sm:$0xf]  ;;  %v420_v42 = vld [vmem:[%s2123_s5 + $0x6a0] sm:$0xf]  ;;  %417 = vst [vmem:[%s2127_s6 + $0x1a0] sm:$0xf] %v416_v40 }
  0x5a   : > { %419 = vst [vmem:[%s2127_s6 + $0x1a4] sm:$0xf] %v418_v41  ;;  %421 = vst [vmem:[%s2127_s6 + $0x1a8] sm:$0xf] %v420_v42  ;;  %v422_v43 = vld [vmem:[%s2123_s5 + $0x6b0] sm:$0xf] }
  0x5b   : > { %v424_v44 = vld [vmem:[%s2123_s5 + $0x6c0] sm:$0xf]  ;;  %v426_v45 = vld [vmem:[%s2123_s5 + $0x6d0] sm:$0xf]  ;;  %423 = vst [vmem:[%s2127_s6 + $0x1ac] sm:$0xf] %v422_v43 }
  0x5c   : > { %425 = vst [vmem:[%s2127_s6 + $0x1b0] sm:$0xf] %v424_v44  ;;  %427 = vst [vmem:[%s2127_s6 + $0x1b4] sm:$0xf] %v426_v45  ;;  %v428_v46 = vld [vmem:[%s2123_s5 + $0x6e0] sm:$0xf] }
  0x5d   : > { %v430_v47 = vld [vmem:[%s2123_s5 + $0x6f0] sm:$0xf]  ;;  %v432_v48 = vld [vmem:[%s2123_s5 + $0x700] sm:$0xf]  ;;  %429 = vst [vmem:[%s2127_s6 + $0x1b8] sm:$0xf] %v428_v46 }
  0x5e   : > { %431 = vst [vmem:[%s2127_s6 + $0x1bc] sm:$0xf] %v430_v47  ;;  %433 = vst [vmem:[%s2127_s6 + $0x1c0] sm:$0xf] %v432_v48  ;;  %v434_v49 = vld [vmem:[%s2123_s5 + $0x710] sm:$0xf] }
  0x5f   : > { %v436_v50 = vld [vmem:[%s2123_s5 + $0x720] sm:$0xf]  ;;  %v438_v51 = vld [vmem:[%s2123_s5 + $0x730] sm:$0xf]  ;;  %435 = vst [vmem:[%s2127_s6 + $0x1c4] sm:$0xf] %v434_v49 }
  0x60   : > { %437 = vst [vmem:[%s2127_s6 + $0x1c8] sm:$0xf] %v436_v50  ;;  %439 = vst [vmem:[%s2127_s6 + $0x1cc] sm:$0xf] %v438_v51  ;;  %v440_v52 = vld [vmem:[%s2123_s5 + $0x740] sm:$0xf] }
  0x61   : > { %v442_v53 = vld [vmem:[%s2123_s5 + $0x750] sm:$0xf]  ;;  %v444_v54 = vld [vmem:[%s2123_s5 + $0x760] sm:$0xf]  ;;  %441 = vst [vmem:[%s2127_s6 + $0x1d0] sm:$0xf] %v440_v52 }
  0x62   : > { %443 = vst [vmem:[%s2127_s6 + $0x1d4] sm:$0xf] %v442_v53  ;;  %445 = vst [vmem:[%s2127_s6 + $0x1d8] sm:$0xf] %v444_v54  ;;  %v446_v55 = vld [vmem:[%s2123_s5 + $0x770] sm:$0xf] }
  0x63   : > { %v448_v56 = vld [vmem:[%s2123_s5 + $0x780] sm:$0xf]  ;;  %v450_v57 = vld [vmem:[%s2123_s5 + $0x790] sm:$0xf]  ;;  %447 = vst [vmem:[%s2127_s6 + $0x1dc] sm:$0xf] %v446_v55 }
  0x64   : > { %449 = vst [vmem:[%s2127_s6 + $0x1e0] sm:$0xf] %v448_v56  ;;  %451 = vst [vmem:[%s2127_s6 + $0x1e4] sm:$0xf] %v450_v57  ;;  %v452_v58 = vld [vmem:[%s2123_s5 + $0x7a0] sm:$0xf] }
  0x65   : > { %v454_v59 = vld [vmem:[%s2123_s5 + $0x7b0] sm:$0xf]  ;;  %v456_v60 = vld [vmem:[%s2123_s5 + $0x7c0] sm:$0xf]  ;;  %453 = vst [vmem:[%s2127_s6 + $0x1e8] sm:$0xf] %v452_v58 }
  0x66   : > { %455 = vst [vmem:[%s2127_s6 + $0x1ec] sm:$0xf] %v454_v59  ;;  %457 = vst [vmem:[%s2127_s6 + $0x1f0] sm:$0xf] %v456_v60  ;;  %v458_v61 = vld [vmem:[%s2123_s5 + $0x7d0] sm:$0xf] }
  0x67   : > { %v460_v62 = vld [vmem:[%s2123_s5 + $0x7e0] sm:$0xf]  ;;  %v462_v63 = vld [vmem:[%s2123_s5 + $0x7f0] sm:$0xf]  ;;  %459 = vst [vmem:[%s2127_s6 + $0x1f4] sm:$0xf] %v458_v61 }
  0x68   : > { %461 = vst [vmem:[%s2127_s6 + $0x1f8] sm:$0xf] %v460_v62  ;;  %463 = vst [vmem:[%s2127_s6 + $0x1fc] sm:$0xf] %v462_v63 }
  0x69 PF: > { %p1728_p8 = scmp.ge.s32.totalorder %s2048_s19, 1  ;;  %p754_p9 = scmp.lt.s32.totalorder %s2048_s19, 5 }
  0x6b   : > { %p755_p10 = pnand %p1728_p8, %p754_p9 }
  0x6c   : > { %s761_s7 = sand.u32 (!%p755_p10), 1, %s2032_s15   ;;  %p804_p11 = scmp.lt.s32.totalorder (!%p755_p10), %s2040_s17, 3 }
  0x6d   : > { %758 = sbr.rel (%p755_p10) target bundleno = 400 (0x190), region = 73  ;;  %s1729_s14 = sshll.u32 (!%p755_p10), %s761_s7, 9 }
  0x6e   : > { %s2412_s23 = scalar_lea.vmem (!%p755_p10), [#allocation2], %s1729_s14  ;;  %s1730_s22 = sshll.u32 (!%p755_p10), %s761_s7, 3 }
  0x72   : > { %v2389_v0 = vld [vmem:[%s2545_s0] sm:$0xff]  ;;  %v2399_v2 = vld [vmem:[%s2545_s0 + $0x8] sm:$0xff]  ;;  %v1946_v6 = vld [vmem:[%s2412_s23 + $0x78] sm:$0xff]   ;;  %s2512_s9 = scalar_select %p804_p11, %s2040_s17, 3 }
  0x73   : > { %v2394_v1 = vld [vmem:[%s2545_s0 + $0x20] sm:$0xff]  ;;  %v2408_v4 = vld [vmem:[%s2545_s0 + $0x28] sm:$0xff]  ;;  %v1947_v7 = vld [vmem:[%s2412_s23 + $0xf8] sm:$0xff]   ;;  %1818 = vmatprep.subr.bf16.mxu0 %v1946_v6  ;;  %s1808_s26 = sshll.u32 (%p2110_p6), %s2040_s17, 2 }
  0x74   : > { %v1733_v3 = vcombine.high %v2389_v0, %v2394_v1  ;;  %v1735_v5 = vcombine.high %v2399_v2, %v2408_v4  ;;  %v1948_v8 = vld [vmem:[%s2412_s23 + $0x38] sm:$0xff]   ;;  %1840 = vmatprep.subr.bf16.mxu1 %v1947_v7  ;;  %v1950_v10 = vld [vmem:[%s2412_s23 + $0x70] sm:$0xff]   ;;  %v1954_v14 = vld [vmem:[%s2412_s23 + $0x68] sm:$0xff]   ;;  %v1732_v42 = vcombine.low %v2389_v0, %v2394_v1  ;;  %v1734_v43 = vcombine.low %v2399_v2, %v2408_v4  ;;  %s806_s12 = scalar_lea.vmem %s2547_s2, %s2512_s9  ;;  %s809_s21 = scalar_lea.vmem %s2548_s3, %s2512_s9 }
  0x75   : > { %v1949_v9 = vld [vmem:[%s2412_s23 + $0xb8] sm:$0xff]   ;;  %1819 = vmatpush3.bf16.msra.mxu0 %v1948_v8  ;;  %v1951_v11 = vld [vmem:[%s2412_s23 + $0xf0] sm:$0xff]   ;;  %v1955_v15 = vld [vmem:[%s2412_s23 + $0xe8] sm:$0xff]   ;;  %s1575_s29 = scalar_lea.vmem (%p2110_p6), %s2549_s4, %s1808_s26 }
  0x76   : > { %1411 = vmatprep.mubr.bf16.mxu0 %v1733_v3  ;;  %1452 = vmatprep.mubr.bf16.mxu1 %v1735_v5  ;;  %v1952_v12 = vld [vmem:[%s2412_s23 + $0x30] sm:$0xff]   ;;  %v1956_v16 = vld [vmem:[%s2412_s23 + $0x28] sm:$0xff]   ;;  %v1958_v18 = vld [vmem:[%s2412_s23 + $0x60] sm:$0xff]  }
  0x77   : > { %1841 = vmatpush3.bf16.msra.mxu1 %v1949_v9  ;;  %1820 = vmatprep.subr.bf16.mxu0 %v1950_v10  ;;  %v1953_v13 = vld [vmem:[%s2412_s23 + $0xb0] sm:$0xff]   ;;  %v1957_v17 = vld [vmem:[%s2412_s23 + $0xa8] sm:$0xff]   ;;  %v1959_v19 = vld [vmem:[%s2412_s23 + $0xe0] sm:$0xff]  }
  0x78   : > { %1842 = vmatprep.subr.bf16.mxu1 %v1951_v11  ;;  %v1960_v20 = vld [vmem:[%s2412_s23 + $0x20] sm:$0xff]   ;;  %v1962_v22 = vld [vmem:[%s2412_s23 + $0x58] sm:$0xff]   ;;  %v1966_v26 = vld [vmem:[%s2412_s23 + $0x50] sm:$0xff]  }
  0x79   : > { %1821 = vmatpush3.bf16.msra.mxu0 %v1952_v12  ;;  %v1961_v21 = vld [vmem:[%s2412_s23 + $0xa0] sm:$0xff]   ;;  %v1963_v23 = vld [vmem:[%s2412_s23 + $0xd8] sm:$0xff]   ;;  %v1967_v27 = vld [vmem:[%s2412_s23 + $0xd0] sm:$0xff]  }
  0x7a   : > { %1822 = vmatprep.subr.bf16.mxu0 %v1954_v14  ;;  %v1964_v24 = vld [vmem:[%s2412_s23 + $0x18] sm:$0xff]   ;;  %v1968_v28 = vld [vmem:[%s2412_s23 + $0x10] sm:$0xff]   ;;  %v1970_v30 = vld [vmem:[%s2412_s23 + $0x48] sm:$0xff]  }
  0x7b   : > { %1843 = vmatpush3.bf16.msra.mxu1 %v1953_v13  ;;  %v1965_v25 = vld [vmem:[%s2412_s23 + $0x98] sm:$0xff]   ;;  %v1969_v29 = vld [vmem:[%s2412_s23 + $0x90] sm:$0xff]   ;;  %v1971_v31 = vld [vmem:[%s2412_s23 + $0xc8] sm:$0xff]  }
  0x7c   : > { %1844 = vmatprep.subr.bf16.mxu1 %v1955_v15  ;;  %v1972_v32 = vld [vmem:[%s2412_s23 + $0x8] sm:$0xff]   ;;  %v1974_v34 = vld [vmem:[%s2412_s23 + $0x40] sm:$0xff]   ;;  %v2446_v35 = vld [vmem:[%s2545_s0 + $0x10] sm:$0xff] }
  0x7d   : > { %1823 = vmatpush3.bf16.msra.mxu0 %v1956_v16  ;;  %v1973_v33 = vld [vmem:[%s2412_s23 + $0x88] sm:$0xff]   ;;  %v2451_v36 = vld [vmem:[%s2545_s0 + $0x30] sm:$0xff]  ;;  %v1975_v37 = vld [vmem:[%s2412_s23 + $0xc0] sm:$0xff]  }
  0x7e   : > { %1824 = vmatprep.subr.bf16.mxu0 %v1958_v18  ;;  %v2457_v38 = vld [vmem:[%s2545_s0 + $0x18] sm:$0xff]  ;;  %v1976_v40 = vld [vmem:[%s2412_s23] sm:$0xff]   ;;  %v1737_v46 = vcombine.high %v2446_v35, %v2451_v36  ;;  %v1982_v50 = vld [vmem:[%s2412_s23 + $0x170] sm:$0xff]   ;;  %v1736_v14 = vcombine.low %v2446_v35, %v2451_v36 }
  0x7f   : > { %1845 = vmatpush3.bf16.msra.mxu1 %v1957_v17  ;;  %v2462_v39 = vld [vmem:[%s2545_s0 + $0x38] sm:$0xff]  ;;  %v1977_v41 = vld [vmem:[%s2412_s23 + $0x80] sm:$0xff]   ;;  %v1983_v51 = vld [vmem:[%s2412_s23 + $0x1f0] sm:$0xff]  }
  0x80   : > { %1846 = vmatprep.subr.bf16.mxu1 %v1959_v19  ;;  %v1978_v44 = vld [vmem:[%s2412_s23 + $0x178] sm:$0xff]   ;;  %v1739_v48 = vcombine.high %v2457_v38, %v2462_v39  ;;  %v1984_v52 = vld [vmem:[%s2412_s23 + $0x130] sm:$0xff]   ;;  %v1986_v54 = vld [vmem:[%s2412_s23 + $0x168] sm:$0xff]   ;;  %v1738_v15 = vcombine.low %v2457_v38, %v2462_v39 }
  0x81   : > { %1825 = vmatpush3.bf16.msra.mxu0 %v1960_v20  ;;  %v1979_v45 = vld [vmem:[%s2412_s23 + $0x1f8] sm:$0xff]   ;;  %v1985_v53 = vld [vmem:[%s2412_s23 + $0x1b0] sm:$0xff]   ;;  %v1987_v55 = vld [vmem:[%s2412_s23 + $0x1e8] sm:$0xff]  }
  0x82   : > { %1826 = vmatprep.subr.bf16.mxu0 %v1962_v22  ;;  %v1980_v47 = vld [vmem:[%s2412_s23 + $0x138] sm:$0xff]   ;;  %v1988_v56 = vld [vmem:[%s2412_s23 + $0x128] sm:$0xff]   ;;  %v1990_v58 = vld [vmem:[%s2412_s23 + $0x160] sm:$0xff]  }
  0x83   : > { %1847 = vmatpush3.bf16.msra.mxu1 %v1961_v21  ;;  %v1981_v49 = vld [vmem:[%s2412_s23 + $0x1b8] sm:$0xff]   ;;  %v1989_v57 = vld [vmem:[%s2412_s23 + $0x1a8] sm:$0xff]   ;;  %v1991_v59 = vld [vmem:[%s2412_s23 + $0x1e0] sm:$0xff]  }
  0x84   : > { %1848 = vmatprep.subr.bf16.mxu1 %v1963_v23  ;;  %v1992_v60 = vld [vmem:[%s2412_s23 + $0x120] sm:$0xff]   ;;  %v1994_v62 = vld [vmem:[%s2412_s23 + $0x158] sm:$0xff]   ;;  %v1998_v2 = vld [vmem:[%s2412_s23 + $0x150] sm:$0xff]  }
  0x85   : > { %1827 = vmatpush3.bf16.msra.mxu0 %v1964_v24  ;;  %v1993_v61 = vld [vmem:[%s2412_s23 + $0x1a0] sm:$0xff]   ;;  %v1995_v63 = vld [vmem:[%s2412_s23 + $0x1d8] sm:$0xff]   ;;  %v1999_v3 = vld [vmem:[%s2412_s23 + $0x1d0] sm:$0xff]  }
  0x86   : > { %1828 = vmatprep.subr.bf16.mxu0 %v1966_v26  ;;  %v1996_v0 = vld [vmem:[%s2412_s23 + $0x118] sm:$0xff]   ;;  %v2000_v4 = vld [vmem:[%s2412_s23 + $0x110] sm:$0xff]   ;;  %v2002_v6 = vld [vmem:[%s2412_s23 + $0x148] sm:$0xff]  }
  0x87   : > { %1849 = vmatpush3.bf16.msra.mxu1 %v1965_v25  ;;  %v1997_v1 = vld [vmem:[%s2412_s23 + $0x198] sm:$0xff]   ;;  %v2001_v5 = vld [vmem:[%s2412_s23 + $0x190] sm:$0xff]   ;;  %v2003_v7 = vld [vmem:[%s2412_s23 + $0x1c8] sm:$0xff]  }
  0x88   : > { %1850 = vmatprep.subr.bf16.mxu1 %v1967_v27  ;;  %v2004_v8 = vld [vmem:[%s2412_s23 + $0x108] sm:$0xff]   ;;  %v2006_v10 = vld [vmem:[%s2412_s23 + $0x140] sm:$0xff]  }
  0x89   : > { %1829 = vmatpush3.bf16.msra.mxu0 %v1968_v28  ;;  %v2005_v9 = vld [vmem:[%s2412_s23 + $0x188] sm:$0xff]   ;;  %v2007_v11 = vld [vmem:[%s2412_s23 + $0x1c0] sm:$0xff]  }
  0x8a   : > { %1830 = vmatprep.subr.bf16.mxu0 %v1970_v30  ;;  %v2008_v12 = vld [vmem:[%s2412_s23 + $0x100] sm:$0xff]  }
  0x8b   : > { %1851 = vmatpush3.bf16.msra.mxu1 %v1969_v29  ;;  %v2009_v13 = vld [vmem:[%s2412_s23 + $0x180] sm:$0xff]   ;;  %s796_s23 = scalar_lea.vmem [#allocation3], %s1730_s22 }
  0x8c   : > { %1852 = vmatprep.subr.bf16.mxu1 %v1971_v31  ;;  %v1731_v23 = vld [vmem:[%s806_s12] ss:$0 sm:$0xff] }
  0x8d   : > { %1831 = vmatpush3.bf16.msra.mxu0 %v1972_v32 }
  0x8e   : > { %1832 = vmatprep.subr.bf16.mxu0 %v1974_v34 }
  0x8f   : > { %1853 = vmatpush3.bf16.msra.mxu1 %v1973_v33 }
  0x90   : > { %1854 = vmatprep.subr.bf16.mxu1 %v1975_v37 }
  0x91   : > { %1833 = vmatpush3.bf16.msra.mxu0 %v1976_v40 }
  0x92   : > { %1862 = vmatprep.subr.bf16.mxu0 %v1978_v44 }
  0x93   : > { %1855 = vmatpush3.bf16.msra.mxu1 %v1977_v41 }
  0x94   : > { %1412 = vmatmul.mubr.bf16.vlgmr.msra.gmra.mxu0 %v1732_v42  ;;  %1884 = vmatprep.subr.bf16.mxu1 %v1979_v45 }
  0x95   : > { %1863 = vmatpush3.bf16.msra.mxu0 %v1980_v47  ;;  %1493 = vmatprep.mubr.bf16.mxu0 %v1737_v46  ;;  %v1804_v46 = vld [vmem:[%s809_s21] ss:$0 sm:$0xff] }
  0x96   : > { %1453 = vmatmul.mubr.bf16.vlgmr.msra.gmra.mxu1 %v1734_v43  ;;  %1864 = vmatprep.subr.bf16.mxu0 %v1982_v50 }
  0x97   : > { %1885 = vmatpush3.bf16.msra.mxu1 %v1981_v49  ;;  %1534 = vmatprep.mubr.bf16.mxu1 %v1739_v48 }
  0x98   : > { %1886 = vmatprep.subr.bf16.mxu1 %v1983_v51 }
  0x99   : > { %1865 = vmatpush3.bf16.msra.mxu0 %v1984_v52 }
  0x9a   : > { %1866 = vmatprep.subr.bf16.mxu0 %v1986_v54 }
  0x9b   : > { %1887 = vmatpush3.bf16.msra.mxu1 %v1985_v53 }
  0x9c   : > { %1888 = vmatprep.subr.bf16.mxu1 %v1987_v55 }
  0x9d   : > { %1867 = vmatpush3.bf16.msra.mxu0 %v1988_v56 }
  0x9e   : > { %1868 = vmatprep.subr.bf16.mxu0 %v1990_v58 }
  0x9f   : > { %1889 = vmatpush3.bf16.msra.mxu1 %v1989_v57 }
  0xa0   : > { %1890 = vmatprep.subr.bf16.mxu1 %v1991_v59 }
  0xa1   : > { %1869 = vmatpush3.bf16.msra.mxu0 %v1992_v60 }
  0xa2   : > { %1870 = vmatprep.subr.bf16.mxu0 %v1994_v62 }
  0xa3   : > { %1891 = vmatpush3.bf16.msra.mxu1 %v1993_v61 }
  0xa4   : > { %1892 = vmatprep.subr.bf16.mxu1 %v1995_v63 }
  0xa5   : > { %1871 = vmatpush3.bf16.msra.mxu0 %v1996_v0 }
  0xa6   : > { %1872 = vmatprep.subr.bf16.mxu0 %v1998_v2 }
  0xa7   : > { %1893 = vmatpush3.bf16.msra.mxu1 %v1997_v1 }
  0xa8   : > { %1894 = vmatprep.subr.bf16.mxu1 %v1999_v3 }
  0xa9   : > { %1873 = vmatpush3.bf16.msra.mxu0 %v2000_v4 }
  0xaa   : > { %1874 = vmatprep.subr.bf16.mxu0 %v2002_v6 }
  0xab   : > { %1895 = vmatpush3.bf16.msra.mxu1 %v2001_v5 }
  0xac   : > { %1896 = vmatprep.subr.bf16.mxu1 %v2003_v7 }
  0xad   : > { %1875 = vmatpush3.bf16.msra.mxu0 %v2004_v8 }
  0xae   : > { %1876 = vmatprep.subr.bf16.mxu0 %v2006_v10 }
  0xaf   : > { %1897 = vmatpush3.bf16.msra.mxu1 %v2005_v9 }
  0xb0   : > { %1898 = vmatprep.subr.bf16.mxu1 %v2007_v11 }
  0xb1   : > { %1877 = vmatpush3.bf16.msra.mxu0 %v2008_v12 }
  0xb3   : > { %1899 = vmatpush3.bf16.msra.mxu1 %v2009_v13 }
  0xb4   : > { %1494 = vmatmul.mubr.bf16.vlgmr.msra.gmra.mxu0 %v1736_v14 }
  0xb6   : > { %1535 = vmatmul.mubr.bf16.vlgmr.msra.gmra.mxu1 %v1738_v15 }
 0x154   : > { %v1834_v16 = vpop.f32.mrf.mxu0 }
 0x156   : > { %v1856_v17 = vpop.f32.mrf.mxu1  ;;  %v1835_v18 = vpop.f32.mrf.mxu0 }
 0x157   : > { %v1836_v21 = vadd.f32 %v1835_v18, %v1834_v16 }
 0x158   : > { %v1857_v19 = vpop.f32.mrf.mxu1  ;;  %v1837_v20 = vpop.f32.mrf.mxu0 }
 0x159   : > { %v1414_v25 = vadd.f32 %v1836_v21, %v1731_v23  ;;  %v1858_v26 = vadd.f32 %v1857_v19, %v1856_v17 }
 0x15a   : > { %v1859_v22 = vpop.f32.mrf.mxu1  ;;  %v1838_v24 = vpop.f32.mrf.mxu0 }
 0x15b   : > { %v1839_v27 = vadd.f32 %v1838_v24, %v1837_v20  ;;  %v1455_v32 = vadd.f32 %v1858_v26, %v1414_v25 }
 0x15c   : > { %v1860_v28 = vpop.f32.mrf.mxu1 }
 0x15d   : > { %v1417_v33 = vadd.f32 %v1839_v27, %v1731_v23  ;;  %v1861_v37 = vadd.f32 %v1860_v28, %v1859_v22 }
 0x15f   : > { %v1458_v42 = vadd.f32 %v1861_v37, %v1417_v33 }
 0x174   : > { %v1878_v29 = vpop.f32.mrf.mxu0 }
 0x176   : > { %v1900_v30 = vpop.f32.mrf.mxu1  ;;  %v1879_v31 = vpop.f32.mrf.mxu0 }
 0x177   : > { %v1880_v34 = vadd.f32 %v1879_v31, %v1878_v29 }
 0x178   : > { %v1901_v35 = vpop.f32.mrf.mxu1  ;;  %v1881_v36 = vpop.f32.mrf.mxu0 }
 0x179   : > { %v1496_v38 = vadd.f32 %v1880_v34, %v1455_v32  ;;  %v1902_v39 = vadd.f32 %v1901_v35, %v1900_v30 }
 0x17a   : > { %v1903_v40 = vpop.f32.mrf.mxu1  ;;  %v1882_v41 = vpop.f32.mrf.mxu0 }
 0x17b   : > { %v1537_v43 = vadd.f32 %v1902_v39, %v1496_v38  ;;  %v1883_v44 = vadd.f32 %v1882_v41, %v1881_v36 }
 0x17c   : > { %v1904_v45 = vpop.f32.mrf.mxu1 }
 0x17d   : > { %v1499_v47 = vadd.f32 %v1883_v44, %v1458_v42  ;;  %v1905_v48 = vadd.f32 %v1904_v45, %v1903_v40  ;;  %v1550_v49 = vmul.f32 %v1804_v46, %v1537_v43 }
 0x17f   : > { %v1540_v50 = vadd.f32 %v1905_v48, %v1499_v47  ;;  %v1552_v52 = vmax.f32 %v1537_v43, %v1550_v49 }
 0x181   : > { %v1551_v51 = vmul.f32 %v1804_v46, %v1540_v50 }
 0x183   : > { %v1553_v53 = vmax.f32 %v1540_v50, %v1551_v51  ;;  %1570 = sbr.rel (!%p2110_p6) target bundleno = 400 (0x190), region = 81 }
 0x185   : > { %v1816_v54 = vpack.c.bf16 %v1553_v53, %v1552_v52 }
 0x187   : > { %1817 = vst [vmem:[%s796_s23] sm:$0xff] %v1816_v54  }
 0x18e   : > { %v1592_v55 = vld [vmem:[%s796_s23] sm:$0xf]  ;;  %v1594_v56 = vld [vmem:[%s796_s23 + $0x4] sm:$0xf] }
 0x18f   : > { %1593 = vst [vmem:[%s1575_s29] sm:$0xf] %v1592_v55  ;;  %1595 = vst [vmem:[%s1575_s29 + $0x10] sm:$0xf] %v1594_v56 }
 0x190 PF: > { %s14_s19 = sadd.s32 1, %s2048_s19   ;;  %s2551_s15 = smov %s2036_s16 }
 0x191   : > { %p11_p12 = scmp.ge.s32.totalorder %s14_s19, 6   ;;  %s2552_s16 = smov %s2115_s25 }
 0x192   : > { %s2553_s17 = smov %s2044_s18  ;;  %s2554_s18 = smov %s2556_s20 }
 0x193   :  { %13 = sbr.rel (!%p11_p12) target bundleno = 3 (0x3), region = 162 }

// kernel: forward.44
= control target key start
LH: loop header
LB: loop body
LE: loop exit
PB: predicated region body
PF: predicated region fallthrough
CT: control target
= control target key end

     0   :  { %s1445_s15 = smov 0   ;;  %s1447_s16 = smov 0   ;;  %s1719_s0 = inlined_call_operand.vmem [shape: bf16[32,512], index: 0, kind: input, shape index: {}]   ;;  %s1720_s1 = inlined_call_operand.vmem [shape: bf16[512,256], index: 1, kind: input, shape index: {}]   ;;  %s1721_s2 = inlined_call_operand.vmem [shape: f32[1,256], index: 2, kind: input, shape index: {}]   ;;  %s1722_s3 = inlined_call_operand.vmem [shape: f32[1,256], index: 3, kind: input, shape index: {}]   ;;  %s1723_s4 = inlined_call_operand.vmem [shape: bf16[32,256], index: 4, kind: output, shape index: {}]  }
   0x1   :  { %s1449_s17 = smov 0   ;;  %s1451_s18 = smov 0  }
   0x2   :  { %s1453_s19 = smov 0  }
   0x3 LB: > { %s23_s20 = sadd.s32 1, %s1414_s18  ;;  %s1165_s21 = sadd.s32 4294967295, %s1418_s19   ;;  %s1418_s19 = sphi %s1453_s19, %s14_s19   ;;  %s1414_s18 = sphi %s1451_s18, %s1728_s18   ;;  %s1410_s17 = sphi %s1449_s17, %s1727_s17   ;;  %s1406_s16 = sphi %s1447_s16, %s1726_s16   ;;  %s1402_s15 = sphi %s1445_s15, %s1725_s15  }
   0x4   : > { %p24_p0 = scmp.ge.s32.totalorder %s23_s20, 2  ;;  %p66_p1 = scmp.ne.s32.totalorder %s1406_s16, %s1402_s15 }
   0x5   : > { %p67_p2 = scmp.eq.s32.totalorder %s1418_s19, 0  ;;  %p150_p4 = scmp.eq.s32.totalorder %s1165_s21, 1 }
   0x6   : > { %s1730_s20 = smov (%p24_p0, %s23_s20), 0  ;;  %s59_s23 = sadd.s32 1, %s1406_s16 }
   0x7   : > { %p68_p3 = por %p67_p2, %p66_p1  ;;  %s56_s22 = ssub.s32 %s1414_s18, %s1730_s20 }
   0x8   : > { %p57_p5 = scmp.eq.s32.totalorder %s56_s22, 0  ;;  %p1480_p6 = por %p150_p4, %p66_p1 }
   0x9   : > { %p1169_p7 = scmp.ge.s32.totalorder %s1418_s19, 2 }
   0xa   : > { %s1485_s25 = scalar_select %p57_p5, %s1406_s16, %s59_s23  }
   0xb   : > { %182 = sbr.rel (%p1169_p7) target bundleno = 62 (0x3e), region = 20 }
  0x10   : > { %185 = sbr.rel (!%p68_p3) target bundleno = 62 (0x3e), region = 24  ;;  %s187_s26 = sand.u32 (%p68_p3), 1, %s1406_s16  }
  0x11   : > { %s1171_s27 = sshll.u32 (%p68_p3), %s1414_s18, 2  ;;  %s1170_s28 = sshll.u32 (%p68_p3), %s187_s26, 8 }
  0x12   : > { %s1493_s5 = scalar_lea.vmem (%p68_p3), %s1720_s1, %s1171_s27  ;;  %s1497_s6 = scalar_lea.vmem (%p68_p3), [#allocation2], %s1170_s28 }
  0x13   : > { %v208_v0 = vld [vmem:[%s1493_s5] sm:$0xf] (%p68_p3)  ;;  %v210_v1 = vld [vmem:[%s1493_s5 + $0x8] sm:$0xf] (%p68_p3)  ;;  %v212_v2 = vld [vmem:[%s1493_s5 + $0x10] sm:$0xf] (%p68_p3) }
  0x14   : > { %209 = vst [vmem:[%s1497_s6] sm:$0xf] (%p68_p3), %v208_v0  ;;  %211 = vst [vmem:[%s1497_s6 + $0x4] sm:$0xf] (%p68_p3), %v210_v1  ;;  %v214_v3 = vld [vmem:[%s1493_s5 + $0x18] sm:$0xf] (%p68_p3) }
  0x15   : > { %v216_v4 = vld [vmem:[%s1493_s5 + $0x20] sm:$0xf]  ;;  %213 = vst [vmem:[%s1497_s6 + $0x8] sm:$0xf] %v212_v2  ;;  %215 = vst [vmem:[%s1497_s6 + $0xc] sm:$0xf] %v214_v3 }
  0x16   : > { %217 = vst [vmem:[%s1497_s6 + $0x10] sm:$0xf] %v216_v4  ;;  %v218_v5 = vld [vmem:[%s1493_s5 + $0x28] sm:$0xf]  ;;  %v220_v6 = vld [vmem:[%s1493_s5 + $0x30] sm:$0xf] }
  0x17   : > { %v222_v7 = vld [vmem:[%s1493_s5 + $0x38] sm:$0xf]  ;;  %219 = vst [vmem:[%s1497_s6 + $0x14] sm:$0xf] %v218_v5  ;;  %221 = vst [vmem:[%s1497_s6 + $0x18] sm:$0xf] %v220_v6 }
  0x18   : > { %223 = vst [vmem:[%s1497_s6 + $0x1c] sm:$0xf] %v222_v7  ;;  %v224_v8 = vld [vmem:[%s1493_s5 + $0x40] sm:$0xf]  ;;  %v226_v9 = vld [vmem:[%s1493_s5 + $0x48] sm:$0xf] }
  0x19   : > { %v228_v10 = vld [vmem:[%s1493_s5 + $0x50] sm:$0xf]  ;;  %225 = vst [vmem:[%s1497_s6 + $0x20] sm:$0xf] %v224_v8  ;;  %227 = vst [vmem:[%s1497_s6 + $0x24] sm:$0xf] %v226_v9 }
  0x1a   : > { %229 = vst [vmem:[%s1497_s6 + $0x28] sm:$0xf] %v228_v10  ;;  %v230_v11 = vld [vmem:[%s1493_s5 + $0x58] sm:$0xf]  ;;  %v232_v12 = vld [vmem:[%s1493_s5 + $0x60] sm:$0xf] }
  0x1b   : > { %v234_v13 = vld [vmem:[%s1493_s5 + $0x68] sm:$0xf]  ;;  %231 = vst [vmem:[%s1497_s6 + $0x2c] sm:$0xf] %v230_v11  ;;  %233 = vst [vmem:[%s1497_s6 + $0x30] sm:$0xf] %v232_v12 }
  0x1c   : > { %235 = vst [vmem:[%s1497_s6 + $0x34] sm:$0xf] %v234_v13  ;;  %v236_v14 = vld [vmem:[%s1493_s5 + $0x70] sm:$0xf]  ;;  %v238_v15 = vld [vmem:[%s1493_s5 + $0x78] sm:$0xf] }
  0x1d   : > { %v240_v16 = vld [vmem:[%s1493_s5 + $0x80] sm:$0xf]  ;;  %237 = vst [vmem:[%s1497_s6 + $0x38] sm:$0xf] %v236_v14  ;;  %239 = vst [vmem:[%s1497_s6 + $0x3c] sm:$0xf] %v238_v15 }
  0x1e   : > { %241 = vst [vmem:[%s1497_s6 + $0x40] sm:$0xf] %v240_v16  ;;  %v242_v17 = vld [vmem:[%s1493_s5 + $0x88] sm:$0xf]  ;;  %v244_v18 = vld [vmem:[%s1493_s5 + $0x90] sm:$0xf] }
  0x1f   : > { %v246_v19 = vld [vmem:[%s1493_s5 + $0x98] sm:$0xf]  ;;  %243 = vst [vmem:[%s1497_s6 + $0x44] sm:$0xf] %v242_v17  ;;  %245 = vst [vmem:[%s1497_s6 + $0x48] sm:$0xf] %v244_v18 }
  0x20   : > { %247 = vst [vmem:[%s1497_s6 + $0x4c] sm:$0xf] %v246_v19  ;;  %v248_v20 = vld [vmem:[%s1493_s5 + $0xa0] sm:$0xf]  ;;  %v250_v21 = vld [vmem:[%s1493_s5 + $0xa8] sm:$0xf] }
  0x21   : > { %v252_v22 = vld [vmem:[%s1493_s5 + $0xb0] sm:$0xf]  ;;  %249 = vst [vmem:[%s1497_s6 + $0x50] sm:$0xf] %v248_v20  ;;  %251 = vst [vmem:[%s1497_s6 + $0x54] sm:$0xf] %v250_v21 }
  0x22   : > { %253 = vst [vmem:[%s1497_s6 + $0x58] sm:$0xf] %v252_v22  ;;  %v254_v23 = vld [vmem:[%s1493_s5 + $0xb8] sm:$0xf]  ;;  %v256_v24 = vld [vmem:[%s1493_s5 + $0xc0] sm:$0xf] }
  0x23   : > { %v258_v25 = vld [vmem:[%s1493_s5 + $0xc8] sm:$0xf]  ;;  %255 = vst [vmem:[%s1497_s6 + $0x5c] sm:$0xf] %v254_v23  ;;  %257 = vst [vmem:[%s1497_s6 + $0x60] sm:$0xf] %v256_v24 }
  0x24   : > { %259 = vst [vmem:[%s1497_s6 + $0x64] sm:$0xf] %v258_v25  ;;  %v260_v26 = vld [vmem:[%s1493_s5 + $0xd0] sm:$0xf]  ;;  %v262_v27 = vld [vmem:[%s1493_s5 + $0xd8] sm:$0xf] }
  0x25   : > { %v264_v28 = vld [vmem:[%s1493_s5 + $0xe0] sm:$0xf]  ;;  %261 = vst [vmem:[%s1497_s6 + $0x68] sm:$0xf] %v260_v26  ;;  %263 = vst [vmem:[%s1497_s6 + $0x6c] sm:$0xf] %v262_v27 }
  0x26   : > { %265 = vst [vmem:[%s1497_s6 + $0x70] sm:$0xf] %v264_v28  ;;  %v266_v29 = vld [vmem:[%s1493_s5 + $0xe8] sm:$0xf]  ;;  %v268_v30 = vld [vmem:[%s1493_s5 + $0xf0] sm:$0xf] }
  0x27   : > { %v270_v31 = vld [vmem:[%s1493_s5 + $0xf8] sm:$0xf]  ;;  %267 = vst [vmem:[%s1497_s6 + $0x74] sm:$0xf] %v266_v29  ;;  %269 = vst [vmem:[%s1497_s6 + $0x78] sm:$0xf] %v268_v30 }
  0x28   : > { %271 = vst [vmem:[%s1497_s6 + $0x7c] sm:$0xf] %v270_v31  ;;  %v272_v32 = vld [vmem:[%s1493_s5 + $0x100] sm:$0xf]  ;;  %v274_v33 = vld [vmem:[%s1493_s5 + $0x108] sm:$0xf] }
  0x29   : > { %v276_v34 = vld [vmem:[%s1493_s5 + $0x110] sm:$0xf]  ;;  %273 = vst [vmem:[%s1497_s6 + $0x80] sm:$0xf] %v272_v32  ;;  %275 = vst [vmem:[%s1497_s6 + $0x84] sm:$0xf] %v274_v33 }
  0x2a   : > { %277 = vst [vmem:[%s1497_s6 + $0x88] sm:$0xf] %v276_v34  ;;  %v278_v35 = vld [vmem:[%s1493_s5 + $0x118] sm:$0xf]  ;;  %v280_v36 = vld [vmem:[%s1493_s5 + $0x120] sm:$0xf] }
  0x2b   : > { %v282_v37 = vld [vmem:[%s1493_s5 + $0x128] sm:$0xf]  ;;  %279 = vst [vmem:[%s1497_s6 + $0x8c] sm:$0xf] %v278_v35  ;;  %281 = vst [vmem:[%s1497_s6 + $0x90] sm:$0xf] %v280_v36 }
  0x2c   : > { %283 = vst [vmem:[%s1497_s6 + $0x94] sm:$0xf] %v282_v37  ;;  %v284_v38 = vld [vmem:[%s1493_s5 + $0x130] sm:$0xf]  ;;  %v286_v39 = vld [vmem:[%s1493_s5 + $0x138] sm:$0xf] }
  0x2d   : > { %v288_v40 = vld [vmem:[%s1493_s5 + $0x140] sm:$0xf]  ;;  %285 = vst [vmem:[%s1497_s6 + $0x98] sm:$0xf] %v284_v38  ;;  %287 = vst [vmem:[%s1497_s6 + $0x9c] sm:$0xf] %v286_v39 }
  0x2e   : > { %289 = vst [vmem:[%s1497_s6 + $0xa0] sm:$0xf] %v288_v40  ;;  %v290_v41 = vld [vmem:[%s1493_s5 + $0x148] sm:$0xf]  ;;  %v292_v42 = vld [vmem:[%s1493_s5 + $0x150] sm:$0xf] }
  0x2f   : > { %v294_v43 = vld [vmem:[%s1493_s5 + $0x158] sm:$0xf]  ;;  %291 = vst [vmem:[%s1497_s6 + $0xa4] sm:$0xf] %v290_v41  ;;  %293 = vst [vmem:[%s1497_s6 + $0xa8] sm:$0xf] %v292_v42 }
  0x30   : > { %295 = vst [vmem:[%s1497_s6 + $0xac] sm:$0xf] %v294_v43  ;;  %v296_v44 = vld [vmem:[%s1493_s5 + $0x160] sm:$0xf]  ;;  %v298_v45 = vld [vmem:[%s1493_s5 + $0x168] sm:$0xf] }
  0x31   : > { %v300_v46 = vld [vmem:[%s1493_s5 + $0x170] sm:$0xf]  ;;  %297 = vst [vmem:[%s1497_s6 + $0xb0] sm:$0xf] %v296_v44  ;;  %299 = vst [vmem:[%s1497_s6 + $0xb4] sm:$0xf] %v298_v45 }
  0x32   : > { %301 = vst [vmem:[%s1497_s6 + $0xb8] sm:$0xf] %v300_v46  ;;  %v302_v47 = vld [vmem:[%s1493_s5 + $0x178] sm:$0xf]  ;;  %v304_v48 = vld [vmem:[%s1493_s5 + $0x180] sm:$0xf] }
  0x33   : > { %v306_v49 = vld [vmem:[%s1493_s5 + $0x188] sm:$0xf]  ;;  %303 = vst [vmem:[%s1497_s6 + $0xbc] sm:$0xf] %v302_v47  ;;  %305 = vst [vmem:[%s1497_s6 + $0xc0] sm:$0xf] %v304_v48 }
  0x34   : > { %307 = vst [vmem:[%s1497_s6 + $0xc4] sm:$0xf] %v306_v49  ;;  %v308_v50 = vld [vmem:[%s1493_s5 + $0x190] sm:$0xf]  ;;  %v310_v51 = vld [vmem:[%s1493_s5 + $0x198] sm:$0xf] }
  0x35   : > { %v312_v52 = vld [vmem:[%s1493_s5 + $0x1a0] sm:$0xf]  ;;  %309 = vst [vmem:[%s1497_s6 + $0xc8] sm:$0xf] %v308_v50  ;;  %311 = vst [vmem:[%s1497_s6 + $0xcc] sm:$0xf] %v310_v51 }
  0x36   : > { %313 = vst [vmem:[%s1497_s6 + $0xd0] sm:$0xf] %v312_v52  ;;  %v314_v53 = vld [vmem:[%s1493_s5 + $0x1a8] sm:$0xf]  ;;  %v316_v54 = vld [vmem:[%s1493_s5 + $0x1b0] sm:$0xf] }
  0x37   : > { %v318_v55 = vld [vmem:[%s1493_s5 + $0x1b8] sm:$0xf]  ;;  %315 = vst [vmem:[%s1497_s6 + $0xd4] sm:$0xf] %v314_v53  ;;  %317 = vst [vmem:[%s1497_s6 + $0xd8] sm:$0xf] %v316_v54 }
  0x38   : > { %319 = vst [vmem:[%s1497_s6 + $0xdc] sm:$0xf] %v318_v55  ;;  %v320_v56 = vld [vmem:[%s1493_s5 + $0x1c0] sm:$0xf]  ;;  %v322_v57 = vld [vmem:[%s1493_s5 + $0x1c8] sm:$0xf] }
  0x39   : > { %v324_v58 = vld [vmem:[%s1493_s5 + $0x1d0] sm:$0xf]  ;;  %321 = vst [vmem:[%s1497_s6 + $0xe0] sm:$0xf] %v320_v56  ;;  %323 = vst [vmem:[%s1497_s6 + $0xe4] sm:$0xf] %v322_v57 }
  0x3a   : > { %325 = vst [vmem:[%s1497_s6 + $0xe8] sm:$0xf] %v324_v58  ;;  %v326_v59 = vld [vmem:[%s1493_s5 + $0x1d8] sm:$0xf]  ;;  %v328_v60 = vld [vmem:[%s1493_s5 + $0x1e0] sm:$0xf] }
  0x3b   : > { %v330_v61 = vld [vmem:[%s1493_s5 + $0x1e8] sm:$0xf]  ;;  %327 = vst [vmem:[%s1497_s6 + $0xec] sm:$0xf] %v326_v59  ;;  %329 = vst [vmem:[%s1497_s6 + $0xf0] sm:$0xf] %v328_v60 }
  0x3c   : > { %331 = vst [vmem:[%s1497_s6 + $0xf4] sm:$0xf] %v330_v61  ;;  %v332_v62 = vld [vmem:[%s1493_s5 + $0x1f0] sm:$0xf]  ;;  %v334_v63 = vld [vmem:[%s1493_s5 + $0x1f8] sm:$0xf] }
  0x3d   : > { %333 = vst [vmem:[%s1497_s6 + $0xf8] sm:$0xf] %v332_v62  ;;  %335 = vst [vmem:[%s1497_s6 + $0xfc] sm:$0xf] %v334_v63 }
  0x3e PF: > { %p1172_p8 = scmp.ge.s32.totalorder %s1418_s19, 1  ;;  %p498_p9 = scmp.lt.s32.totalorder %s1418_s19, 3 }
  0x40   : > { %p499_p10 = pnand %p1172_p8, %p498_p9 }
  0x41   : > { %s505_s7 = sand.u32 (!%p499_p10), 1, %s1402_s15   ;;  %p548_p11 = scmp.lt.s32.totalorder (!%p499_p10), %s1410_s17, 1 }
  0x42   : > { %502 = sbr.rel (%p499_p10) target bundleno = 334 (0x14e), region = 73  ;;  %s1173_s8 = sshll.u32 (!%p499_p10), %s505_s7, 8 }
  0x43   : > { %s1636_s13 = scalar_lea.vmem (!%p499_p10), [#allocation2], %s1173_s8  ;;  %s1174_s22 = sshll.u32 (!%p499_p10), %s505_s7, 4 }
  0x44   : > { %s540_s23 = scalar_lea.vmem (!%p499_p10), [#allocation3], %s1174_s22 }
  0x47   : > { %v1370_v0 = vld [vmem:[%s1719_s0 + $0x4] ss:$16 sps:$4 sm:$0xff]   ;;  %v1373_v1 = vld [vmem:[%s1719_s0 + $0xc] ss:$16 sps:$4 sm:$0xff]   ;;  %v1368_v32 = vld [vmem:[%s1719_s0] ss:$16 sps:$4 sm:$0xff]  }
  0x48   : > { %v1336_v2 = vld [vmem:[%s1636_s13 + $0x78] sm:$0xff]   ;;  %899 = vmatprep.mubr.bf16.mxu0 %v1370_v0  ;;  %948 = vmatprep.mubr.bf16.mxu1 %v1373_v1  ;;  %v1340_v6 = vld [vmem:[%s1636_s13 + $0x70] sm:$0xff]   ;;  %v1344_v10 = vld [vmem:[%s1636_s13 + $0x68] sm:$0xff]   ;;  %s549_s9 = scalar_select %p548_p11, %s1410_s17, 1 }
  0x49   : > { %v1337_v3 = vld [vmem:[%s1636_s13 + $0xf8] sm:$0xff]   ;;  %1240 = vmatprep.subr.bf16.mxu0 %v1336_v2  ;;  %v1341_v7 = vld [vmem:[%s1636_s13 + $0xf0] sm:$0xff]   ;;  %v1345_v11 = vld [vmem:[%s1636_s13 + $0xe8] sm:$0xff]   ;;  %s1222_s15 = sshll.u32 (%p1480_p6), %s1410_s17, 2 }
  0x4a   : > { %v1338_v4 = vld [vmem:[%s1636_s13 + $0x38] sm:$0xff]   ;;  %1268 = vmatprep.subr.bf16.mxu1 %v1337_v3  ;;  %v1342_v8 = vld [vmem:[%s1636_s13 + $0x30] sm:$0xff]   ;;  %v1346_v12 = vld [vmem:[%s1636_s13 + $0x28] sm:$0xff]   ;;  %s550_s12 = scalar_lea.vmem %s1721_s2, %s549_s9  ;;  %s553_s21 = scalar_lea.vmem %s1722_s3, %s549_s9 }
  0x4b   : > { %v1339_v5 = vld [vmem:[%s1636_s13 + $0xb8] sm:$0xff]   ;;  %1241 = vmatpush3.bf16.msra.mxu0 %v1338_v4  ;;  %v1343_v9 = vld [vmem:[%s1636_s13 + $0xb0] sm:$0xff]   ;;  %v1347_v13 = vld [vmem:[%s1636_s13 + $0xa8] sm:$0xff]   ;;  %s1011_s27 = scalar_lea.vmem (%p1480_p6), %s1723_s4, %s1222_s15 }
  0x4c   : > { %1269 = vmatpush3.bf16.msra.mxu1 %v1339_v5  ;;  %1242 = vmatprep.subr.bf16.mxu0 %v1340_v6  ;;  %v1348_v14 = vld [vmem:[%s1636_s13 + $0x60] sm:$0xff]   ;;  %v1352_v18 = vld [vmem:[%s1636_s13 + $0x58] sm:$0xff]   ;;  %v1356_v22 = vld [vmem:[%s1636_s13 + $0x50] sm:$0xff]  }
  0x4d   : > { %1270 = vmatprep.subr.bf16.mxu1 %v1341_v7  ;;  %v1349_v15 = vld [vmem:[%s1636_s13 + $0xe0] sm:$0xff]   ;;  %v1353_v19 = vld [vmem:[%s1636_s13 + $0xd8] sm:$0xff]   ;;  %v1357_v23 = vld [vmem:[%s1636_s13 + $0xd0] sm:$0xff]  }
  0x4e   : > { %v1350_v16 = vld [vmem:[%s1636_s13 + $0x20] sm:$0xff]   ;;  %v1354_v20 = vld [vmem:[%s1636_s13 + $0x18] sm:$0xff]   ;;  %v1358_v24 = vld [vmem:[%s1636_s13 + $0x10] sm:$0xff]  }
  0x4f   : > { %1243 = vmatpush3.bf16.msra.mxu0 %v1342_v8  ;;  %v1351_v17 = vld [vmem:[%s1636_s13 + $0xa0] sm:$0xff]   ;;  %v1355_v21 = vld [vmem:[%s1636_s13 + $0x98] sm:$0xff]   ;;  %v1359_v25 = vld [vmem:[%s1636_s13 + $0x90] sm:$0xff]  }
  0x50   : > { %1271 = vmatpush3.bf16.msra.mxu1 %v1343_v9  ;;  %1244 = vmatprep.subr.bf16.mxu0 %v1344_v10  ;;  %v1360_v26 = vld [vmem:[%s1636_s13 + $0x48] sm:$0xff]   ;;  %v1364_v30 = vld [vmem:[%s1636_s13 + $0x40] sm:$0xff]  }
  0x51   : > { %1272 = vmatprep.subr.bf16.mxu1 %v1345_v11  ;;  %v1361_v27 = vld [vmem:[%s1636_s13 + $0xc8] sm:$0xff]   ;;  %v1365_v31 = vld [vmem:[%s1636_s13 + $0xc0] sm:$0xff]  }
  0x52   : > { %v1362_v28 = vld [vmem:[%s1636_s13 + $0x8] sm:$0xff]   ;;  %v1366_v33 = vld [vmem:[%s1636_s13] sm:$0xff]  }
  0x53   : > { %1245 = vmatpush3.bf16.msra.mxu0 %v1346_v12  ;;  %v1363_v29 = vld [vmem:[%s1636_s13 + $0x88] sm:$0xff]   ;;  %v1367_v35 = vld [vmem:[%s1636_s13 + $0x80] sm:$0xff]  }
  0x54   : > { %1273 = vmatpush3.bf16.msra.mxu1 %v1347_v13  ;;  %1246 = vmatprep.subr.bf16.mxu0 %v1348_v14  ;;  %v1371_v34 = vld [vmem:[%s1719_s0 + $0x8] ss:$16 sps:$4 sm:$0xff]   ;;  %v1374_v36 = vld [vmem:[%s1719_s0 + $0x24] ss:$16 sps:$4 sm:$0xff]   ;;  %v1376_v37 = vld [vmem:[%s1719_s0 + $0x2c] ss:$16 sps:$4 sm:$0xff]  }
  0x55   : > { %1274 = vmatprep.subr.bf16.mxu1 %v1349_v15  ;;  %v1378_v38 = vld [vmem:[%s1719_s0 + $0x20] ss:$16 sps:$4 sm:$0xff]   ;;  %v1379_v39 = vld [vmem:[%s1719_s0 + $0x28] ss:$16 sps:$4 sm:$0xff]  }
  0x56   : > { %v1175_v42 = vld [vmem:[%s550_s12] ss:$0 sm:$0xff] }
  0x57   : > { %1247 = vmatpush3.bf16.msra.mxu0 %v1350_v16  ;;  %v1216_v54 = vld [vmem:[%s553_s21] ss:$0 sm:$0xff] }
  0x58   : > { %1275 = vmatpush3.bf16.msra.mxu1 %v1351_v17  ;;  %1248 = vmatprep.subr.bf16.mxu0 %v1352_v18 }
  0x59   : > { %1276 = vmatprep.subr.bf16.mxu1 %v1353_v19 }
  0x5b   : > { %1249 = vmatpush3.bf16.msra.mxu0 %v1354_v20 }
  0x5c   : > { %1277 = vmatpush3.bf16.msra.mxu1 %v1355_v21  ;;  %1250 = vmatprep.subr.bf16.mxu0 %v1356_v22 }
  0x5d   : > { %1278 = vmatprep.subr.bf16.mxu1 %v1357_v23 }
  0x5f   : > { %1251 = vmatpush3.bf16.msra.mxu0 %v1358_v24 }
  0x60   : > { %1279 = vmatpush3.bf16.msra.mxu1 %v1359_v25  ;;  %1252 = vmatprep.subr.bf16.mxu0 %v1360_v26 }
  0x61   : > { %1280 = vmatprep.subr.bf16.mxu1 %v1361_v27 }
  0x63   : > { %1253 = vmatpush3.bf16.msra.mxu0 %v1362_v28 }
  0x64   : > { %1281 = vmatpush3.bf16.msra.mxu1 %v1363_v29  ;;  %1254 = vmatprep.subr.bf16.mxu0 %v1364_v30 }
  0x65   : > { %1282 = vmatprep.subr.bf16.mxu1 %v1365_v31 }
  0x67   : > { %1255 = vmatpush3.bf16.msra.mxu0 %v1366_v33 }
  0x68   : > { %1283 = vmatpush3.bf16.msra.mxu1 %v1367_v35 }
  0x6a   : > { %900 = vmatmul.mubr.bf16.vlgmr.msra.gmra.mxu0 %v1368_v32 }
  0x6b   : > { %949 = vmatmul.mubr.bf16.vlgmr.msra.gmra.mxu1 %v1371_v34  ;;  %907 = vmatprep.mubr.bf16.mxu0 %v1374_v36 }
  0x6c   : > { %956 = vmatprep.mubr.bf16.mxu1 %v1376_v37 }
  0x72   : > { %908 = vmatmul.mubr.bf16.gmra.mxu0 %v1378_v38 }
  0x73   : > { %957 = vmatmul.mubr.bf16.gmra.mxu1 %v1379_v39 }
 0x12a   : > { %v1256_v40 = vpop.f32.mrf.mxu0 }
 0x12b   : > { %v1284_v41 = vpop.f32.mrf.mxu1 }
 0x12c   : > { %v1257_v43 = vpop.f32.mrf.mxu0 }
 0x12d   : > { %v1258_v44 = vadd.f32 %v1257_v43, %v1256_v40  ;;  %v1285_v45 = vpop.f32.mrf.mxu1 }
 0x12e   : > { %v1259_v46 = vpop.f32.mrf.mxu0  ;;  %v1286_v48 = vadd.f32 %v1285_v45, %v1284_v41 }
 0x12f   : > { %v902_v47 = vadd.f32 %v1258_v44, %v1175_v42  ;;  %v1287_v49 = vpop.f32.mrf.mxu1 }
 0x130   : > { %v1260_v50 = vpop.f32.mrf.mxu0 }
 0x131   : > { %v951_v51 = vadd.f32 %v1286_v48, %v902_v47  ;;  %v1261_v52 = vadd.f32 %v1260_v50, %v1259_v46  ;;  %v1288_v53 = vpop.f32.mrf.mxu1 }
 0x132   : > { %v1262_v55 = vpop.f32.mrf.mxu0  ;;  %v1289_v57 = vadd.f32 %v1288_v53, %v1287_v49 }
 0x133   : > { %v905_v56 = vadd.f32 %v1261_v52, %v1175_v42  ;;  %v1290_v58 = vpop.f32.mrf.mxu1  ;;  %v972_v60 = vmul.f32 %v1216_v54, %v951_v51 }
 0x134   : > { %v1263_v59 = vpop.f32.mrf.mxu0 }
 0x135   : > { %v954_v61 = vadd.f32 %v1289_v57, %v905_v56  ;;  %v1264_v62 = vadd.f32 %v1263_v59, %v1262_v55  ;;  %v1291_v63 = vpop.f32.mrf.mxu1  ;;  %v976_v6 = vmax.f32 %v951_v51, %v972_v60 }
 0x136   : > { %v1265_v0 = vpop.f32.mrf.mxu0  ;;  %v1292_v3 = vadd.f32 %v1291_v63, %v1290_v58 }
 0x137   : > { %v973_v1 = vmul.f32 %v1216_v54, %v954_v61  ;;  %v910_v2 = vadd.f32 %v1264_v62, %v1175_v42  ;;  %v1293_v4 = vpop.f32.mrf.mxu1 }
 0x138   : > { %v1266_v5 = vpop.f32.mrf.mxu0 }
 0x139   : > { %v977_v7 = vmax.f32 %v954_v61, %v973_v1  ;;  %v959_v8 = vadd.f32 %v1292_v3, %v910_v2  ;;  %v1267_v9 = vadd.f32 %v1266_v5, %v1265_v0  ;;  %v1294_v10 = vpop.f32.mrf.mxu1 }
 0x13a   : > { %v1295_v13 = vadd.f32 %v1294_v10, %v1293_v4 }
 0x13b   : > { %v1232_v11 = vpack.c.bf16 %v977_v7, %v976_v6  ;;  %v913_v12 = vadd.f32 %v1267_v9, %v1175_v42  ;;  %v974_v14 = vmul.f32 %v1216_v54, %v959_v8 }
 0x13d   : > { %1233 = vst [vmem:[%s540_s23] sm:$0xff] %v1232_v11   ;;  %v962_v15 = vadd.f32 %v1295_v13, %v913_v12  ;;  %v978_v17 = vmax.f32 %v959_v8, %v974_v14 }
 0x13f   : > { %v975_v16 = vmul.f32 %v1216_v54, %v962_v15 }
 0x141   : > { %v979_v18 = vmax.f32 %v962_v15, %v975_v16  ;;  %1006 = sbr.rel (!%p1480_p6) target bundleno = 334 (0x14e), region = 81 }
 0x143   : > { %v1237_v19 = vpack.c.bf16 %v979_v18, %v978_v17 }
 0x144   : > { %v1028_v20 = vld [vmem:[%s540_s23] sm:$0xf] (%p1480_p6)  ;;  %v1030_v21 = vld [vmem:[%s540_s23 + $0x4] sm:$0xf] (%p1480_p6) }
 0x145   : > { %1239 = vst [vmem:[%s540_s23 + $0x8] sm:$0xff] %v1237_v19   ;;  %1029 = vst [vmem:[%s1011_s27] sm:$0xf] (%p1480_p6), %v1028_v20 }
 0x146   : > { %1031 = vst [vmem:[%s1011_s27 + $0x8] sm:$0xf] %v1030_v21 }
 0x14c   : > { %v1032_v22 = vld [vmem:[%s540_s23 + $0x8] sm:$0xf]  ;;  %v1034_v23 = vld [vmem:[%s540_s23 + $0xc] sm:$0xf] }
 0x14d   : > { %1033 = vst [vmem:[%s1011_s27 + $0x10] sm:$0xf] %v1032_v22  ;;  %1035 = vst [vmem:[%s1011_s27 + $0x18] sm:$0xf] %v1034_v23 }
 0x14e PF: > { %s14_s19 = sadd.s32 1, %s1418_s19   ;;  %s1725_s15 = smov %s1406_s16 }
 0x14f   : > { %p11_p12 = scmp.ge.s32.totalorder %s14_s19, 4   ;;  %s1726_s16 = smov %s1485_s25 }
 0x150   : > { %s1727_s17 = smov %s1414_s18  ;;  %s1728_s18 = smov %s1730_s20 }
 0x151   :  { %13 = sbr.rel (!%p11_p12) target bundleno = 3 (0x3), region = 162 }

// kernel: forward.45
= control target key start
LH: loop header
LB: loop body
LE: loop exit
PB: predicated region body
PF: predicated region fallthrough
CT: control target
= control target key end

     0   :  { %s597_s1 = inlined_call_operand.vmem [shape: bf16[256,128], index: 1, kind: input, shape index: {}]   ;;  %s598_s0 = inlined_call_operand.vmem [shape: bf16[64,256], index: 0, kind: input, shape index: {}]   ;;  %s599_s2 = inlined_call_operand.vmem [shape: f32[1,128], index: 2, kind: input, shape index: {}]   ;;  %s600_s3 = inlined_call_operand.vmem [shape: f32[1,128], index: 3, kind: input, shape index: {}]   ;;  %s601_s4 = inlined_call_operand.vmem [shape: bf16[64,128], index: 4, kind: output, shape index: {}]  }
   0x1   :  { %v454_v0 = vld [vmem:[%s597_s1 + $0x78] sm:$0xff]   ;;  %v456_v2 = vld [vmem:[%s597_s1 + $0x70] sm:$0xff]   ;;  %v458_v4 = vld [vmem:[%s597_s1 + $0x68] sm:$0xff]  }
   0x2   :  { %v455_v1 = vld [vmem:[%s597_s1 + $0x38] sm:$0xff]   ;;  %398 = vmatprep.subr.bf16.mxu0 %v454_v0  ;;  %438 = vmatprep.subr.bf16.mxu1 %v454_v0  ;;  %v457_v3 = vld [vmem:[%s597_s1 + $0x30] sm:$0xff]   ;;  %v459_v5 = vld [vmem:[%s597_s1 + $0x28] sm:$0xff]  }
   0x3   :  { %399 = vmatpush3.bf16.msra.mxu0 %v455_v1  ;;  %446 = vmatpush3.bf16.msra.mxu1 %v455_v1  ;;  %v460_v6 = vld [vmem:[%s597_s1 + $0x60] sm:$0xff]   ;;  %v462_v8 = vld [vmem:[%s597_s1 + $0x58] sm:$0xff]   ;;  %v464_v10 = vld [vmem:[%s597_s1 + $0x50] sm:$0xff]  }
   0x4   :  { %400 = vmatprep.subr.bf16.mxu0 %v456_v2  ;;  %439 = vmatprep.subr.bf16.mxu1 %v456_v2  ;;  %v461_v7 = vld [vmem:[%s597_s1 + $0x20] sm:$0xff]   ;;  %v463_v9 = vld [vmem:[%s597_s1 + $0x18] sm:$0xff]   ;;  %v465_v13 = vld [vmem:[%s597_s1 + $0x10] sm:$0xff]  }
   0x5   :  { %v472_v11 = vld [vmem:[%s598_s0 + $0x4] ss:$8 sps:$4 sm:$0xff]   ;;  %v470_v18 = vld [vmem:[%s598_s0] ss:$8 sps:$4 sm:$0xff]   ;;  %v476_v20 = vld [vmem:[%s598_s0 + $0x14] ss:$8 sps:$4 sm:$0xff]  }
   0x6   :  { %v475_v12 = vld [vmem:[%s598_s0 + $0x24] ss:$8 sps:$4 sm:$0xff]   ;;  %233 = vmatprep.mubr.bf16.mxu0 %v472_v11  ;;  %v473_v19 = vld [vmem:[%s598_s0 + $0x20] ss:$8 sps:$4 sm:$0xff]   ;;  %v478_v21 = vld [vmem:[%s598_s0 + $0x34] ss:$8 sps:$4 sm:$0xff]  }
   0x7   :  { %401 = vmatpush3.bf16.msra.mxu0 %v457_v3  ;;  %447 = vmatpush3.bf16.msra.mxu1 %v457_v3  ;;  %v466_v14 = vld [vmem:[%s597_s1 + $0x48] sm:$0xff]   ;;  %v468_v16 = vld [vmem:[%s597_s1 + $0x40] sm:$0xff]   ;;  %v480_v22 = vld [vmem:[%s598_s0 + $0x10] ss:$8 sps:$4 sm:$0xff]  }
   0x8   :  { %402 = vmatprep.subr.bf16.mxu0 %v458_v4  ;;  %440 = vmatprep.subr.bf16.mxu1 %v458_v4  ;;  %v467_v15 = vld [vmem:[%s597_s1 + $0x8] sm:$0xff]   ;;  %v469_v17 = vld [vmem:[%s597_s1] sm:$0xff]   ;;  %v481_v23 = vld [vmem:[%s598_s0 + $0x30] ss:$8 sps:$4 sm:$0xff]  }
   0x9   :  { %249 = vmatprep.mubr.bf16.mxu1 %v475_v12  ;;  %v333_v26 = vld [vmem:[%s599_s2] ss:$0 sm:$0xff] }
   0xa   :  { %v358_v35 = vld [vmem:[%s600_s3] ss:$0 sm:$0xff] }
   0xb   :  { %403 = vmatpush3.bf16.msra.mxu0 %v459_v5  ;;  %448 = vmatpush3.bf16.msra.mxu1 %v459_v5 }
   0xc   :  { %404 = vmatprep.subr.bf16.mxu0 %v460_v6  ;;  %441 = vmatprep.subr.bf16.mxu1 %v460_v6 }
   0xf   :  { %405 = vmatpush3.bf16.msra.mxu0 %v461_v7  ;;  %449 = vmatpush3.bf16.msra.mxu1 %v461_v7 }
  0x10   :  { %406 = vmatprep.subr.bf16.mxu0 %v462_v8  ;;  %442 = vmatprep.subr.bf16.mxu1 %v462_v8 }
  0x13   :  { %407 = vmatpush3.bf16.msra.mxu0 %v463_v9  ;;  %450 = vmatpush3.bf16.msra.mxu1 %v463_v9 }
  0x14   :  { %408 = vmatprep.subr.bf16.mxu0 %v464_v10  ;;  %443 = vmatprep.subr.bf16.mxu1 %v464_v10 }
  0x17   :  { %409 = vmatpush3.bf16.msra.mxu0 %v465_v13  ;;  %451 = vmatpush3.bf16.msra.mxu1 %v465_v13 }
  0x18   :  { %410 = vmatprep.subr.bf16.mxu0 %v466_v14  ;;  %444 = vmatprep.subr.bf16.mxu1 %v466_v14 }
  0x1b   :  { %411 = vmatpush3.bf16.msra.mxu0 %v467_v15  ;;  %452 = vmatpush3.bf16.msra.mxu1 %v467_v15 }
  0x1c   :  { %412 = vmatprep.subr.bf16.mxu0 %v468_v16  ;;  %445 = vmatprep.subr.bf16.mxu1 %v468_v16 }
  0x1f   :  { %413 = vmatpush3.bf16.msra.mxu0 %v469_v17  ;;  %453 = vmatpush3.bf16.msra.mxu1 %v469_v17 }
  0x22   :  { %234 = vmatmul.mubr.bf16.vlgmr.msra.gmra.mxu0 %v470_v18  ;;  %250 = vmatmul.mubr.bf16.vlgmr.msra.gmra.mxu1 %v473_v19 }
  0x23   :  { %241 = vmatprep.mubr.bf16.mxu0 %v476_v20  ;;  %257 = vmatprep.mubr.bf16.mxu1 %v478_v21 }
  0x2a   :  { %242 = vmatmul.mubr.bf16.gmra.mxu0 %v480_v22  ;;  %258 = vmatmul.mubr.bf16.gmra.mxu1 %v481_v23 }
  0xe2   :  { %v414_v24 = vpop.f32.mrf.mxu0  ;;  %v426_v25 = vpop.f32.mrf.mxu1 }
  0xe4   :  { %v415_v27 = vpop.f32.mrf.mxu0  ;;  %v427_v28 = vpop.f32.mrf.mxu1 }
  0xe5   :  { %v416_v29 = vadd.f32 %v415_v27, %v414_v24  ;;  %v428_v30 = vadd.f32 %v427_v28, %v426_v25 }
  0xe6   :  { %v417_v31 = vpop.f32.mrf.mxu0  ;;  %v429_v32 = vpop.f32.mrf.mxu1 }
  0xe7   :  { %v236_v33 = vadd.f32 %v416_v29, %v333_v26  ;;  %v252_v34 = vadd.f32 %v428_v30, %v333_v26 }
  0xe8   :  { %v418_v36 = vpop.f32.mrf.mxu0  ;;  %v430_v37 = vpop.f32.mrf.mxu1 }
  0xe9   :  { %v419_v38 = vadd.f32 %v418_v36, %v417_v31  ;;  %v431_v39 = vadd.f32 %v430_v37, %v429_v32  ;;  %v273_v42 = vmul.f32 %v358_v35, %v236_v33  ;;  %v277_v43 = vmul.f32 %v358_v35, %v252_v34 }
  0xea   :  { %v420_v40 = vpop.f32.mrf.mxu0  ;;  %v432_v41 = vpop.f32.mrf.mxu1 }
  0xeb   :  { %v239_v44 = vadd.f32 %v419_v38, %v333_v26  ;;  %v255_v45 = vadd.f32 %v431_v39, %v333_v26  ;;  %v281_v54 = vmax.f32 %v236_v33, %v273_v42  ;;  %v285_v55 = vmax.f32 %v252_v34, %v277_v43 }
  0xec   :  { %v421_v46 = vpop.f32.mrf.mxu0  ;;  %v433_v47 = vpop.f32.mrf.mxu1 }
  0xed   :  { %v274_v48 = vmul.f32 %v358_v35, %v239_v44  ;;  %v278_v49 = vmul.f32 %v358_v35, %v255_v45  ;;  %v422_v50 = vadd.f32 %v421_v46, %v420_v40  ;;  %v434_v51 = vadd.f32 %v433_v47, %v432_v41 }
  0xee   :  { %v423_v52 = vpop.f32.mrf.mxu0  ;;  %v435_v53 = vpop.f32.mrf.mxu1 }
  0xef   :  { %v282_v56 = vmax.f32 %v239_v44, %v274_v48  ;;  %v286_v57 = vmax.f32 %v255_v45, %v278_v49  ;;  %v244_v58 = vadd.f32 %v422_v50, %v333_v26  ;;  %v260_v59 = vadd.f32 %v434_v51, %v333_v26 }
  0xf0   :  { %v424_v60 = vpop.f32.mrf.mxu0  ;;  %v436_v61 = vpop.f32.mrf.mxu1 }
  0xf1   :  { %v378_v62 = vpack.c.bf16 %v282_v56, %v281_v54  ;;  %v388_v63 = vpack.c.bf16 %v286_v57, %v285_v55  ;;  %v425_v0 = vadd.f32 %v424_v60, %v423_v52  ;;  %v437_v1 = vadd.f32 %v436_v61, %v435_v53 }
  0xf2   :  { %v275_v2 = vmul.f32 %v358_v35, %v244_v58  ;;  %v279_v3 = vmul.f32 %v358_v35, %v260_v59 }
  0xf3   :  { %379 = vst [vmem:[%s601_s4] sm:$0xff] %v378_v62   ;;  %396 = vst [vmem:[%s601_s4 + $0x10] sm:$0xff] %v388_v63   ;;  %v247_v4 = vadd.f32 %v425_v0, %v333_v26  ;;  %v263_v5 = vadd.f32 %v437_v1, %v333_v26 }
  0xf4   :  { %v283_v8 = vmax.f32 %v244_v58, %v275_v2  ;;  %v287_v9 = vmax.f32 %v260_v59, %v279_v3 }
  0xf5   :  { %v276_v6 = vmul.f32 %v358_v35, %v247_v4  ;;  %v280_v7 = vmul.f32 %v358_v35, %v263_v5 }
  0xf7   :  { %v284_v10 = vmax.f32 %v247_v4, %v276_v6  ;;  %v288_v11 = vmax.f32 %v263_v5, %v280_v7 }
  0xf9   :  { %v383_v12 = vpack.c.bf16 %v284_v10, %v283_v8  ;;  %v393_v13 = vpack.c.bf16 %v288_v11, %v287_v9 }
  0xfb   :  { %395 = vst [vmem:[%s601_s4 + $0x8] sm:$0xff] %v383_v12   ;;  %397 = vst [vmem:[%s601_s4 + $0x18] sm:$0xff] %v393_v13  }

// kernel: forward.46
= control target key start
LH: loop header
LB: loop body
LE: loop exit
PB: predicated region body
PF: predicated region fallthrough
CT: control target
= control target key end

     0   :  { %v709_v0 = vmov 0.0   ;;  %vm710_vm0 = vmmov 0   ;;  %s918_s1 = inlined_call_operand.vmem [shape: bf16[128,128], index: 1, kind: input, shape index: {}]   ;;  %s919_s0 = inlined_call_operand.vmem [shape: bf16[176,128], index: 0, kind: input, shape index: {}]   ;;  %s920_s2 = inlined_call_operand.vmem [shape: f32[1,128], index: 2, kind: input, shape index: {}]   ;;  %s921_s3 = inlined_call_operand.vmem [shape: f32[1,128], index: 3, kind: input, shape index: {}]   ;;  %s922_s4 = inlined_call_operand.vmem [shape: bf16[176,128], index: 4, kind: output, shape index: {}]  }
   0x1   :  { %612 = vmatprep.subr.bf16.mxu0 %v709_v0  ;;  %v690_v1 = vld [vmem:[%s918_s1 + $0x38] sm:$0xff]   ;;  %672 = vmatprep.subr.bf16.mxu1 %v709_v0  ;;  %v691_v2 = vld [vmem:[%s918_s1 + $0x30] sm:$0xff]   ;;  %v692_v3 = vld [vmem:[%s918_s1 + $0x28] sm:$0xff]  }
   0x2   :  { %628 = vmatprep.mubr.msk.bf16.mxu0 %vm710_vm0, %v709_v0  ;;  %652 = vmatprep.mubr.msk.bf16.mxu1 %vm710_vm0, %v709_v0  ;;  %v693_v4 = vld [vmem:[%s918_s1 + $0x20] sm:$0xff]   ;;  %v694_v5 = vld [vmem:[%s918_s1 + $0x18] sm:$0xff]   ;;  %v695_v6 = vld [vmem:[%s918_s1 + $0x10] sm:$0xff]  }
   0x3   :  { %613 = vmatpush3.bf16.msra.mxu0 %v690_v1  ;;  %680 = vmatpush3.bf16.msra.mxu1 %v690_v1  ;;  %v696_v7 = vld [vmem:[%s918_s1 + $0x8] sm:$0xff]   ;;  %v697_v8 = vld [vmem:[%s918_s1] sm:$0xff]   ;;  %v699_v10 = vld [vmem:[%s919_s0 + $0x30] sm:$0xff]  }
   0x4   :  { %614 = vmatprep.subr.bf16.mxu0 %v709_v0  ;;  %673 = vmatprep.subr.bf16.mxu1 %v709_v0  ;;  %v698_v9 = vld [vmem:[%s919_s0] sm:$0xff]   ;;  %v700_v11 = vld [vmem:[%s919_s0 + $0x8] sm:$0xff]   ;;  %v701_v12 = vld [vmem:[%s919_s0 + $0x38] sm:$0xff]  }
   0x5   :  { %v702_v13 = vld [vmem:[%s919_s0 + $0x10] sm:$0xff]   ;;  %v703_v14 = vld [vmem:[%s919_s0 + $0x40] sm:$0xff]   ;;  %v704_v15 = vld [vmem:[%s919_s0 + $0x18] sm:$0xff]  }
   0x6   :  { %v705_v16 = vld [vmem:[%s919_s0 + $0x48] sm:$0xff]   ;;  %v706_v17 = vld [vmem:[%s919_s0 + $0x20] sm:$0xff]   ;;  %v707_v18 = vld [vmem:[%s919_s0 + $0x50] sm:$0xff]  }
   0x7   :  { %615 = vmatpush3.bf16.msra.mxu0 %v691_v2  ;;  %681 = vmatpush3.bf16.msra.mxu1 %v691_v2  ;;  %v708_v19 = vld [vmem:[%s919_s0 + $0x28] sm:$0xff]   ;;  %v834_v20 = vld [vmem:[%s920_s2] ss:$0 sm:$0xff] }
   0x8   :  { %616 = vmatprep.subr.bf16.mxu0 %v709_v0  ;;  %674 = vmatprep.subr.bf16.mxu1 %v709_v0  ;;  %v840_v24 = vld [vmem:[%s921_s3] ss:$0 sm:$0xff] }
   0xb   :  { %617 = vmatpush3.bf16.msra.mxu0 %v692_v3  ;;  %682 = vmatpush3.bf16.msra.mxu1 %v692_v3 }
   0xc   :  { %618 = vmatprep.subr.bf16.mxu0 %v709_v0  ;;  %675 = vmatprep.subr.bf16.mxu1 %v709_v0 }
   0xf   :  { %619 = vmatpush3.bf16.msra.mxu0 %v693_v4  ;;  %683 = vmatpush3.bf16.msra.mxu1 %v693_v4 }
  0x10   :  { %620 = vmatprep.subr.bf16.mxu0 %v709_v0  ;;  %676 = vmatprep.subr.bf16.mxu1 %v709_v0 }
  0x13   :  { %621 = vmatpush3.bf16.msra.mxu0 %v694_v5  ;;  %684 = vmatpush3.bf16.msra.mxu1 %v694_v5 }
  0x14   :  { %622 = vmatprep.subr.bf16.mxu0 %v709_v0  ;;  %677 = vmatprep.subr.bf16.mxu1 %v709_v0 }
  0x17   :  { %623 = vmatpush3.bf16.msra.mxu0 %v695_v6  ;;  %685 = vmatpush3.bf16.msra.mxu1 %v695_v6 }
  0x18   :  { %624 = vmatprep.subr.bf16.mxu0 %v709_v0  ;;  %678 = vmatprep.subr.bf16.mxu1 %v709_v0 }
  0x1b   :  { %625 = vmatpush3.bf16.msra.mxu0 %v696_v7  ;;  %686 = vmatpush3.bf16.msra.mxu1 %v696_v7 }
  0x1c   :  { %626 = vmatprep.subr.bf16.mxu0 %v709_v0  ;;  %679 = vmatprep.subr.bf16.mxu1 %v709_v0 }
  0x1f   :  { %627 = vmatpush3.bf16.msra.mxu0 %v697_v8  ;;  %687 = vmatpush3.bf16.msra.mxu1 %v697_v8 }
  0x22   :  { %629 = vmatmul.mubr.bf16.vlgmr.msra.gmra.mxu0 %v698_v9  ;;  %653 = vmatmul.mubr.bf16.vlgmr.msra.gmra.mxu1 %v699_v10 }
  0x23   :  { %632 = vmatprep.mubr.msk.bf16.mxu0 %vm710_vm0, %v709_v0  ;;  %656 = vmatprep.mubr.msk.bf16.mxu1 %vm710_vm0, %v709_v0 }
  0x2a   :  { %633 = vmatmul.mubr.bf16.gmra.mxu0 %v700_v11  ;;  %657 = vmatmul.mubr.bf16.gmra.mxu1 %v701_v12 }
  0x2b   :  { %636 = vmatprep.mubr.msk.bf16.mxu0 %vm710_vm0, %v709_v0  ;;  %660 = vmatprep.mubr.msk.bf16.mxu1 %vm710_vm0, %v709_v0 }
  0x32   :  { %637 = vmatmul.mubr.bf16.gmra.mxu0 %v702_v13  ;;  %661 = vmatmul.mubr.bf16.gmra.mxu1 %v703_v14 }
  0x33   :  { %640 = vmatprep.mubr.msk.bf16.mxu0 %vm710_vm0, %v709_v0  ;;  %664 = vmatprep.mubr.msk.bf16.mxu1 %vm710_vm0, %v709_v0 }
  0x3a   :  { %641 = vmatmul.mubr.bf16.gmra.mxu0 %v704_v15  ;;  %665 = vmatmul.mubr.bf16.gmra.mxu1 %v705_v16 }
  0x3b   :  { %644 = vmatprep.mubr.msk.bf16.mxu0 %vm710_vm0, %v709_v0  ;;  %668 = vmatprep.mubr.msk.bf16.mxu1 %vm710_vm0, %v709_v0 }
  0x42   :  { %645 = vmatmul.mubr.bf16.gmra.mxu0 %v706_v17  ;;  %669 = vmatmul.mubr.bf16.gmra.mxu1 %v707_v18 }
  0x43   :  { %648 = vmatprep.mubr.msk.bf16.mxu0 %vm710_vm0, %v709_v0 }
  0x4a   :  { %649 = vmatmul.mubr.bf16.gmra.mxu0 %v708_v19 }
  0xe2   :  { %v211_v21 = vpop.f32.mrf.mxu0  ;;  %v259_v22 = vpop.f32.mrf.mxu1 }
  0xe3   :  { %v212_v23 = vadd.f32 %v834_v20, %v211_v21  ;;  %v260_v25 = vadd.f32 %v834_v20, %v259_v22 }
  0xe4   :  { %v630_v26 = vpop.f32.mrf.mxu0  ;;  %v654_v27 = vpop.f32.mrf.mxu1 }
  0xe5   :  { %v317_v28 = vmul.f32 %v840_v24, %v260_v25  ;;  %v305_v29 = vmul.f32 %v840_v24, %v212_v23 }
  0xe6   :  { %v214_v30 = vpop.f32.mrf.mxu0  ;;  %v262_v31 = vpop.f32.mrf.mxu1 }
  0xe7   :  { %v215_v32 = vadd.f32 %v834_v20, %v214_v30  ;;  %v263_v33 = vadd.f32 %v834_v20, %v262_v31  ;;  %v339_v36 = vmax.f32 %v260_v25, %v317_v28  ;;  %v327_v39 = vmax.f32 %v212_v23, %v305_v29 }
  0xe8   :  { %v631_v34 = vpop.f32.mrf.mxu0  ;;  %v655_v35 = vpop.f32.mrf.mxu1 }
  0xe9   :  { %v306_v37 = vmul.f32 %v840_v24, %v215_v32  ;;  %v318_v38 = vmul.f32 %v840_v24, %v263_v33 }
  0xea   :  { %v219_v40 = vpop.f32.mrf.mxu0  ;;  %v267_v41 = vpop.f32.mrf.mxu1 }
  0xeb   :  { %v328_v42 = vmax.f32 %v215_v32, %v306_v37  ;;  %v340_v43 = vmax.f32 %v263_v33, %v318_v38  ;;  %v220_v44 = vadd.f32 %v834_v20, %v219_v40  ;;  %v268_v45 = vadd.f32 %v834_v20, %v267_v41 }
  0xec   :  { %v634_v46 = vpop.f32.mrf.mxu0  ;;  %v658_v47 = vpop.f32.mrf.mxu1 }
  0xed   :  { %v531_v48 = vpack.c.bf16 %v328_v42, %v327_v39  ;;  %v561_v49 = vpack.c.bf16 %v340_v43, %v339_v36  ;;  %v319_v50 = vmul.f32 %v840_v24, %v268_v45  ;;  %v307_v51 = vmul.f32 %v840_v24, %v220_v44 }
  0xee   :  { %v222_v52 = vpop.f32.mrf.mxu0  ;;  %v270_v53 = vpop.f32.mrf.mxu1 }
  0xef   :  { %532 = vst [vmem:[%s922_s4] sm:$0xff] %v531_v48   ;;  %588 = vst [vmem:[%s922_s4 + $0x30] sm:$0xff] %v561_v49   ;;  %v223_v54 = vadd.f32 %v834_v20, %v222_v52  ;;  %v271_v55 = vadd.f32 %v834_v20, %v270_v53  ;;  %v341_v58 = vmax.f32 %v268_v45, %v319_v50 }
  0xf0   :  { %v635_v56 = vpop.f32.mrf.mxu0  ;;  %v659_v57 = vpop.f32.mrf.mxu1  ;;  %v329_v61 = vmax.f32 %v220_v44, %v307_v51 }
  0xf1   :  { %v308_v59 = vmul.f32 %v840_v24, %v223_v54  ;;  %v320_v60 = vmul.f32 %v840_v24, %v271_v55 }
  0xf2   :  { %v227_v62 = vpop.f32.mrf.mxu0  ;;  %v275_v63 = vpop.f32.mrf.mxu1 }
  0xf3   :  { %v330_v0 = vmax.f32 %v223_v54, %v308_v59  ;;  %v342_v1 = vmax.f32 %v271_v55, %v320_v60  ;;  %v228_v2 = vadd.f32 %v834_v20, %v227_v62  ;;  %v276_v3 = vadd.f32 %v834_v20, %v275_v63 }
  0xf4   :  { %v638_v4 = vpop.f32.mrf.mxu0  ;;  %v662_v5 = vpop.f32.mrf.mxu1 }
  0xf5   :  { %v536_v6 = vpack.c.bf16 %v330_v0, %v329_v61  ;;  %v566_v7 = vpack.c.bf16 %v342_v1, %v341_v58  ;;  %v321_v8 = vmul.f32 %v840_v24, %v276_v3  ;;  %v309_v9 = vmul.f32 %v840_v24, %v228_v2 }
  0xf6   :  { %v230_v10 = vpop.f32.mrf.mxu0  ;;  %v278_v11 = vpop.f32.mrf.mxu1 }
  0xf7   :  { %583 = vst [vmem:[%s922_s4 + $0x8] sm:$0xff] %v536_v6   ;;  %589 = vst [vmem:[%s922_s4 + $0x38] sm:$0xff] %v566_v7   ;;  %v231_v12 = vadd.f32 %v834_v20, %v230_v10  ;;  %v279_v13 = vadd.f32 %v834_v20, %v278_v11  ;;  %v343_v16 = vmax.f32 %v276_v3, %v321_v8 }
  0xf8   :  { %v639_v14 = vpop.f32.mrf.mxu0  ;;  %v663_v15 = vpop.f32.mrf.mxu1  ;;  %v331_v19 = vmax.f32 %v228_v2, %v309_v9 }
  0xf9   :  { %v310_v17 = vmul.f32 %v840_v24, %v231_v12  ;;  %v322_v18 = vmul.f32 %v840_v24, %v279_v13 }
  0xfa   :  { %v235_v21 = vpop.f32.mrf.mxu0  ;;  %v283_v22 = vpop.f32.mrf.mxu1 }
  0xfb   :  { %v332_v23 = vmax.f32 %v231_v12, %v310_v17  ;;  %v344_v25 = vmax.f32 %v279_v13, %v322_v18  ;;  %v236_v26 = vadd.f32 %v834_v20, %v235_v21  ;;  %v284_v27 = vadd.f32 %v834_v20, %v283_v22 }
  0xfc   :  { %v642_v28 = vpop.f32.mrf.mxu0  ;;  %v666_v29 = vpop.f32.mrf.mxu1 }
  0xfd   :  { %v541_v30 = vpack.c.bf16 %v332_v23, %v331_v19  ;;  %v571_v31 = vpack.c.bf16 %v344_v25, %v343_v16  ;;  %v323_v32 = vmul.f32 %v840_v24, %v284_v27  ;;  %v311_v33 = vmul.f32 %v840_v24, %v236_v26 }
  0xfe   :  { %v238_v34 = vpop.f32.mrf.mxu0  ;;  %v286_v35 = vpop.f32.mrf.mxu1 }
  0xff   :  { %584 = vst [vmem:[%s922_s4 + $0x10] sm:$0xff] %v541_v30   ;;  %590 = vst [vmem:[%s922_s4 + $0x40] sm:$0xff] %v571_v31   ;;  %v239_v36 = vadd.f32 %v834_v20, %v238_v34  ;;  %v287_v37 = vadd.f32 %v834_v20, %v286_v35  ;;  %v345_v40 = vmax.f32 %v284_v27, %v323_v32 }
 0x100   :  { %v643_v38 = vpop.f32.mrf.mxu0  ;;  %v667_v39 = vpop.f32.mrf.mxu1  ;;  %v333_v43 = vmax.f32 %v236_v26, %v311_v33 }
 0x101   :  { %v312_v41 = vmul.f32 %v840_v24, %v239_v36  ;;  %v324_v42 = vmul.f32 %v840_v24, %v287_v37 }
 0x102   :  { %v243_v44 = vpop.f32.mrf.mxu0  ;;  %v291_v45 = vpop.f32.mrf.mxu1 }
 0x103   :  { %v334_v46 = vmax.f32 %v239_v36, %v312_v41  ;;  %v346_v47 = vmax.f32 %v287_v37, %v324_v42  ;;  %v244_v48 = vadd.f32 %v834_v20, %v243_v44  ;;  %v292_v49 = vadd.f32 %v834_v20, %v291_v45 }
 0x104   :  { %v646_v50 = vpop.f32.mrf.mxu0  ;;  %v670_v51 = vpop.f32.mrf.mxu1 }
 0x105   :  { %v546_v52 = vpack.c.bf16 %v334_v46, %v333_v43  ;;  %v576_v53 = vpack.c.bf16 %v346_v47, %v345_v40  ;;  %v325_v54 = vmul.f32 %v840_v24, %v292_v49  ;;  %v313_v57 = vmul.f32 %v840_v24, %v244_v48 }
 0x106   :  { %v246_v55 = vpop.f32.mrf.mxu0  ;;  %v294_v56 = vpop.f32.mrf.mxu1 }
 0x107   :  { %585 = vst [vmem:[%s922_s4 + $0x18] sm:$0xff] %v546_v52   ;;  %591 = vst [vmem:[%s922_s4 + $0x48] sm:$0xff] %v576_v53   ;;  %v247_v58 = vadd.f32 %v834_v20, %v246_v55  ;;  %v295_v59 = vadd.f32 %v834_v20, %v294_v56  ;;  %v347_v62 = vmax.f32 %v292_v49, %v325_v54 }
 0x108   :  { %v647_v60 = vpop.f32.mrf.mxu0  ;;  %v671_v61 = vpop.f32.mrf.mxu1  ;;  %v335_v2 = vmax.f32 %v244_v48, %v313_v57 }
 0x109   :  { %v314_v63 = vmul.f32 %v840_v24, %v247_v58  ;;  %v326_v0 = vmul.f32 %v840_v24, %v295_v59 }
 0x10a   :  { %v251_v1 = vpop.f32.mrf.mxu0 }
 0x10b   :  { %v336_v3 = vmax.f32 %v247_v58, %v314_v63  ;;  %v348_v4 = vmax.f32 %v295_v59, %v326_v0  ;;  %v252_v5 = vadd.f32 %v834_v20, %v251_v1 }
 0x10c   :  { %v650_v6 = vpop.f32.mrf.mxu0 }
 0x10d   :  { %v551_v7 = vpack.c.bf16 %v336_v3, %v335_v2  ;;  %v581_v8 = vpack.c.bf16 %v348_v4, %v347_v62  ;;  %v315_v10 = vmul.f32 %v840_v24, %v252_v5 }
 0x10e   :  { %v254_v9 = vpop.f32.mrf.mxu0 }
 0x10f   :  { %586 = vst [vmem:[%s922_s4 + $0x20] sm:$0xff] %v551_v7   ;;  %592 = vst [vmem:[%s922_s4 + $0x50] sm:$0xff] %v581_v8   ;;  %v255_v11 = vadd.f32 %v834_v20, %v254_v9  ;;  %v337_v14 = vmax.f32 %v252_v5, %v315_v10 }
 0x110   :  { %v651_v12 = vpop.f32.mrf.mxu0 }
 0x111   :  { %v316_v13 = vmul.f32 %v840_v24, %v255_v11 }
 0x113   :  { %v338_v15 = vmax.f32 %v255_v11, %v316_v13 }
 0x115   :  { %v556_v16 = vpack.c.bf16 %v338_v15, %v337_v14 }
 0x117   :  { %587 = vst [vmem:[%s922_s4 + $0x28] sm:$0xff] %v556_v16  }

</bundles_post_ra>
